<compile_context>
chip_gen: v5e
topology: v5e:2x2
jax: 0.10.0
libtpu: 0.0.40
codegen_flags: <defaults>
</compile_context>

<pallas_src>
import jax
import jax.numpy as jnp
from jax import lax
from jax.experimental import pallas as pl
from jax.experimental.pallas import tpu as pltpu


def _lstm_fc_kernel(xp1_ref,            # (T, B, 4H)  precomputed x@Wih1 + b1
                    whh1_ref,           # (H, 4H)
                    w2_ref,             # (2H, 4H)    fused [Wih2 ; Whh2]
                    b2_ref,             # (1, 4H)
                    wfc_ref, bfc_ref,   # (H, C), (1, C)
                    out_ref):           # (B, C)
    T, B, _ = xp1_ref.shape
    H = whh1_ref.shape[0]

    # Hoist loop-invariant loads / broadcasts out of the recurrence.
    whh1 = whh1_ref[...]                                   # (H, 4H)
    w2 = w2_ref[...]                                       # (2H, 4H)
    b2 = jnp.broadcast_to(b2_ref[...], (B, 4 * H))         # (B, 4H)

    def sig(v):
        # sigmoid(x) = 0.5 * tanh(0.5 x) + 0.5  -- single native EUP tanh.
        return 0.5 * jnp.tanh(0.5 * v) + 0.5

    def apply_gates(g, c):
        # gate layout matches PyTorch: [i | f | g | o] along the 4H axis.
        i_g = sig(g[:, 0 * H:1 * H])
        f_g = sig(g[:, 1 * H:2 * H])
        g_g = jnp.tanh(g[:, 2 * H:3 * H])
        o_g = sig(g[:, 3 * H:4 * H])
        c_new = f_g * c + i_g * g_g
        h_new = o_g * jnp.tanh(c_new)
        return h_new, c_new

    zeros = jnp.zeros((B, H), jnp.float32)
    h1, c1, h2, c2 = zeros, zeros, zeros, zeros            # loop-carried vregs

    # T is static (from xp1_ref.shape): fully unroll so layer-1(t+1) can be
    # software-pipelined under layer-2(t)'s nonlinearity tail.
    # TODO(synk): on v6e/v7x, casting matmul operands to bf16 (f32 accumulate)
    # would further shorten the serial MXU latency but needs a looser test tol.
    for t in range(T):
        # Layer 1: input projection already precomputed; only h1 @ Whh1 left.
        g1 = xp1_ref[t] + jnp.dot(h1, whh1,
                                  preferred_element_type=jnp.float32)
        h1, c1 = apply_gates(g1, c1)

        # Layer 2: fused K=2H matmul over [h1_new ; h2].
        hh = jnp.concatenate([h1, h2], axis=-1)            # (B, 2H)
        g2 = jnp.dot(hh, w2, preferred_element_type=jnp.float32) + b2
        h2, c2 = apply_gates(g2, c2)

    out_ref[...] = (jnp.dot(h2, wfc_ref[...],
                            preferred_element_type=jnp.float32)
                    + bfc_ref[...])


def rnn_forward(x, params):
    """x: (B, T, I) float32, batch_first like the PyTorch module. Returns (B, 2)."""
    B, T, I = x.shape
    H = params["whh1"].shape[0]
    C = params["wfc"].shape[1]

    x_tbi = jnp.transpose(x, (1, 0, 2))                    # (T, B, I)
    # Hoist the tiny (K=I=3) layer-1 input projection off the serial chain:
    # one batched matmul over all timesteps, folded with b1.
    xproj1 = (jnp.einsum("tbi,ih->tbh", x_tbi, params["wih1"],
                         preferred_element_type=jnp.float32)
              + params["b1"])                              # (T, B, 4H)

    vmem = pl.BlockSpec(memory_space=pltpu.MemorySpace.VMEM)
    out = pl.pallas_call(
        _lstm_fc_kernel,
        out_shape=jax.ShapeDtypeStruct((B, C), jnp.float32),
        in_specs=[vmem] * 6,
        out_specs=vmem,
    )(xproj1,
      params["whh1"], params["w2"], params["b2"],
      params["wfc"], params["bfc"])
    return out


def init_params(key, input_size, hidden_size, num_classes):
    """Deterministic params; PyTorch-style uniform(-1/sqrt(H), 1/sqrt(H))."""
    H, I, C = hidden_size, input_size, num_classes
    k = 1.0 / jnp.sqrt(jnp.float32(H))
    keys = jax.random.split(key, 10)

    def u(kk, shape):
        return jax.random.uniform(kk, shape, jnp.float32, -k, k)

    wih2 = u(keys[4], (H, 4 * H))
    whh2 = u(keys[5], (H, 4 * H))

    # Weights stored pre-transposed: (in_features, out_features).
    params = {
        "wih1": u(keys[0], (I, 4 * H)),
        "whh1": u(keys[1], (H, 4 * H)),
        # PyTorch adds b_ih + b_hh; fold them into a single bias.
        "b1":   u(keys[2], (1, 4 * H)) + u(keys[3], (1, 4 * H)),
        # Layer-2 weights fused at init time: [Wih2 ; Whh2] -> (2H, 4H).
        "w2":   jnp.concatenate([wih2, whh2], axis=0),
        "b2":   u(keys[6], (1, 4 * H)) + u(keys[7], (1, 4 * H)),
        "wfc":  u(keys[8], (H, C)),
        "bfc":  u(keys[9], (1, C)),
    }
    return params


def rnn_reference(x, params):
    """Pure-JAX reference (same math) for a sanity check."""
    B, T, I = x.shape
    H = params["whh1"].shape[0]
    wih2 = params["w2"][:H]
    whh2 = params["w2"][H:]

    def cell(x_t, h, c, wih, whh, b):
        g = x_t @ wih + h @ whh + b
        i = jax.nn.sigmoid(g[:, 0 * H:1 * H])
        f = jax.nn.sigmoid(g[:, 1 * H:2 * H])
        gg = jnp.tanh(g[:, 2 * H:3 * H])
        o = jax.nn.sigmoid(g[:, 3 * H:4 * H])
        c = f * c + i * gg
        h = o * jnp.tanh(c)
        return h, c

    def step(carry, x_t):
        h1, c1, h2, c2 = carry
        h1, c1 = cell(x_t, h1, c1, params["wih1"], params["whh1"], params["b1"])
        h2, c2 = cell(h1, h2, c2, wih2, whh2, params["b2"])
        return (h1, c1, h2, c2), None

    z = jnp.zeros((B, H), jnp.float32)
    (h1, c1, h2, c2), _ = lax.scan(step, (z, z, z, z),
                                   jnp.transpose(x, (1, 0, 2)))
    return h2 @ params["wfc"] + params["bfc"]


if __name__ == "__main__":
    B, T = 2, 8
    input_size, hidden_size, num_classes = 3, 128, 2

    key = jax.random.PRNGKey(0)
    kx, kp = jax.random.split(key)
    x = jax.random.normal(kx, (B, T, input_size), jnp.float32)
    params = init_params(kp, input_size, hidden_size, num_classes)

    out = jax.jit(rnn_forward)(x, params)
    out = jax.block_until_ready(out)

    ref = rnn_reference(x, params)
    assert out.shape == (B, num_classes)
    assert jnp.allclose(out, ref, atol=1e-4, rtol=1e-4), "mismatch vs reference"

    print("KERNEL_OK")
</pallas_src>

<mosaic_0001>
module attributes {stable_mosaic.version = 11 : i64} {
  func.func @_lstm_fc_kernel(%arg0: memref<8x2x512xf32, #tpu.memory_space<vmem>>, %arg1: memref<128x512xf32, #tpu.memory_space<vmem>>, %arg2: memref<256x512xf32, #tpu.memory_space<vmem>>, %arg3: memref<1x512xf32, #tpu.memory_space<vmem>>, %arg4: memref<128x2xf32, #tpu.memory_space<vmem>>, %arg5: memref<1x2xf32, #tpu.memory_space<vmem>>, %arg6: memref<2x2xf32, #tpu.memory_space<vmem>>) attributes {dimension_semantics = [], scalar_prefetch = 0 : i64, scratch_operands = 0 : i64, tpu.core_type = #tpu.core_type<tc>} {
    %c0 = arith.constant 0 : index
    %c0_0 = arith.constant 0 : index
    %0 = vector.load %arg1[%c0, %c0_0] : memref<128x512xf32, #tpu.memory_space<vmem>>, vector<128x512xf32>
    %c0_1 = arith.constant 0 : index
    %c0_2 = arith.constant 0 : index
    %1 = vector.load %arg2[%c0_1, %c0_2] : memref<256x512xf32, #tpu.memory_space<vmem>>, vector<256x512xf32>
    %c0_3 = arith.constant 0 : index
    %c0_4 = arith.constant 0 : index
    %2 = vector.load %arg3[%c0_3, %c0_4] : memref<1x512xf32, #tpu.memory_space<vmem>>, vector<1x512xf32>
    %3 = vector.shape_cast %2 : vector<1x512xf32> to vector<1x512xf32>
    %4 = vector.broadcast %3 : vector<1x512xf32> to vector<2x512xf32>
    %cst = arith.constant 0.000000e+00 : f32
    %5 = vector.broadcast %cst : f32 to vector<2x128xf32>
    %c0_5 = arith.constant 0 : index
    %c0_6 = arith.constant 0 : index
    %c0_7 = arith.constant 0 : index
    %6 = vector.load %arg0[%c0_5, %c0_6, %c0_7] : memref<8x2x512xf32, #tpu.memory_space<vmem>>, vector<1x2x512xf32>
    %7 = vector.shape_cast %6 : vector<1x2x512xf32> to vector<2x512xf32>
    %cst_8 = arith.constant dense<0.000000e+00> : vector<2x512xf32>
    %8 = tpu.matmul %5, %0, %cst_8 {dimension_numbers = #tpu.dot_dimension_numbers<[1], [0], [0], [1], [0, 0, 1, 1], [], []>} : vector<2x128xf32>, vector<128x512xf32>, vector<2x512xf32> -> vector<2x512xf32>
    %9 = arith.addf %7, %8 : vector<2x512xf32>
    %10 = vector.extract_strided_slice %9 {offsets = [0, 0], sizes = [2, 128], strides = [1, 1]} : vector<2x512xf32> to vector<2x128xf32>
    %cst_9 = arith.constant 5.000000e-01 : f32
    %11 = vector.broadcast %cst_9 : f32 to vector<2x128xf32>
    %12 = arith.mulf %11, %10 : vector<2x128xf32>
    %13 = math.tanh %12 : vector<2x128xf32>
    %cst_10 = arith.constant 5.000000e-01 : f32
    %14 = vector.broadcast %cst_10 : f32 to vector<2x128xf32>
    %15 = arith.mulf %14, %13 : vector<2x128xf32>
    %cst_11 = arith.constant 5.000000e-01 : f32
    %16 = vector.broadcast %cst_11 : f32 to vector<2x128xf32>
    %17 = arith.addf %15, %16 : vector<2x128xf32>
    %18 = vector.extract_strided_slice %9 {offsets = [0, 128], sizes = [2, 128], strides = [1, 1]} : vector<2x512xf32> to vector<2x128xf32>
    %cst_12 = arith.constant 5.000000e-01 : f32
    %19 = vector.broadcast %cst_12 : f32 to vector<2x128xf32>
    %20 = arith.mulf %19, %18 : vector<2x128xf32>
    %21 = math.tanh %20 : vector<2x128xf32>
    %cst_13 = arith.constant 5.000000e-01 : f32
    %22 = vector.broadcast %cst_13 : f32 to vector<2x128xf32>
    %23 = arith.mulf %22, %21 : vector<2x128xf32>
    %cst_14 = arith.constant 5.000000e-01 : f32
    %24 = vector.broadcast %cst_14 : f32 to vector<2x128xf32>
    %25 = arith.addf %23, %24 : vector<2x128xf32>
    %26 = vector.extract_strided_slice %9 {offsets = [0, 256], sizes = [2, 128], strides = [1, 1]} : vector<2x512xf32> to vector<2x128xf32>
    %27 = math.tanh %26 : vector<2x128xf32>
    %28 = vector.extract_strided_slice %9 {offsets = [0, 384], sizes = [2, 128], strides = [1, 1]} : vector<2x512xf32> to vector<2x128xf32>
    %cst_15 = arith.constant 5.000000e-01 : f32
    %29 = vector.broadcast %cst_15 : f32 to vector<2x128xf32>
    %30 = arith.mulf %29, %28 : vector<2x128xf32>
    %31 = math.tanh %30 : vector<2x128xf32>
    %cst_16 = arith.constant 5.000000e-01 : f32
    %32 = vector.broadcast %cst_16 : f32 to vector<2x128xf32>
    %33 = arith.mulf %32, %31 : vector<2x128xf32>
    %cst_17 = arith.constant 5.000000e-01 : f32
    %34 = vector.broadcast %cst_17 : f32 to vector<2x128xf32>
    %35 = arith.addf %33, %34 : vector<2x128xf32>
    %36 = arith.mulf %25, %5 : vector<2x128xf32>
    %37 = arith.mulf %17, %27 : vector<2x128xf32>
    %38 = arith.addf %36, %37 : vector<2x128xf32>
    %39 = math.tanh %38 : vector<2x128xf32>
    %40 = arith.mulf %35, %39 : vector<2x128xf32>
    %41 = tpu.concatenate %40, %5 in 1 : vector<2x128xf32>, vector<2x128xf32> -> vector<2x256xf32>
    %cst_18 = arith.constant dense<0.000000e+00> : vector<2x512xf32>
    %42 = tpu.matmul %41, %1, %cst_18 {dimension_numbers = #tpu.dot_dimension_numbers<[1], [0], [0], [1], [0, 0, 1, 1], [], []>} : vector<2x256xf32>, vector<256x512xf32>, vector<2x512xf32> -> vector<2x512xf32>
    %43 = arith.addf %42, %4 : vector<2x512xf32>
    %44 = vector.extract_strided_slice %43 {offsets = [0, 0], sizes = [2, 128], strides = [1, 1]} : vector<2x512xf32> to vector<2x128xf32>
    %cst_19 = arith.constant 5.000000e-01 : f32
    %45 = vector.broadcast %cst_19 : f32 to vector<2x128xf32>
    %46 = arith.mulf %45, %44 : vector<2x128xf32>
    %47 = math.tanh %46 : vector<2x128xf32>
    %cst_20 = arith.constant 5.000000e-01 : f32
    %48 = vector.broadcast %cst_20 : f32 to vector<2x128xf32>
    %49 = arith.mulf %48, %47 : vector<2x128xf32>
    %cst_21 = arith.constant 5.000000e-01 : f32
    %50 = vector.broadcast %cst_21 : f32 to vector<2x128xf32>
    %51 = arith.addf %49, %50 : vector<2x128xf32>
    %52 = vector.extract_strided_slice %43 {offsets = [0, 128], sizes = [2, 128], strides = [1, 1]} : vector<2x512xf32> to vector<2x128xf32>
    %cst_22 = arith.constant 5.000000e-01 : f32
    %53 = vector.broadcast %cst_22 : f32 to vector<2x128xf32>
    %54 = arith.mulf %53, %52 : vector<2x128xf32>
    %55 = math.tanh %54 : vector<2x128xf32>
    %cst_23 = arith.constant 5.000000e-01 : f32
    %56 = vector.broadcast %cst_23 : f32 to vector<2x128xf32>
    %57 = arith.mulf %56, %55 : vector<2x128xf32>
    %cst_24 = arith.constant 5.000000e-01 : f32
    %58 = vector.broadcast %cst_24 : f32 to vector<2x128xf32>
    %59 = arith.addf %57, %58 : vector<2x128xf32>
    %60 = vector.extract_strided_slice %43 {offsets = [0, 256], sizes = [2, 128], strides = [1, 1]} : vector<2x512xf32> to vector<2x128xf32>
    %61 = math.tanh %60 : vector<2x128xf32>
    %62 = vector.extract_strided_slice %43 {offsets = [0, 384], sizes = [2, 128], strides = [1, 1]} : vector<2x512xf32> to vector<2x128xf32>
    %cst_25 = arith.constant 5.000000e-01 : f32
    %63 = vector.broadcast %cst_25 : f32 to vector<2x128xf32>
    %64 = arith.mulf %63, %62 : vector<2x128xf32>
    %65 = math.tanh %64 : vector<2x128xf32>
    %cst_26 = arith.constant 5.000000e-01 : f32
    %66 = vector.broadcast %cst_26 : f32 to vector<2x128xf32>
    %67 = arith.mulf %66, %65 : vector<2x128xf32>
    %cst_27 = arith.constant 5.000000e-01 : f32
    %68 = vector.broadcast %cst_27 : f32 to vector<2x128xf32>
    %69 = arith.addf %67, %68 : vector<2x128xf32>
    %70 = arith.mulf %59, %5 : vector<2x128xf32>
    %71 = arith.mulf %51, %61 : vector<2x128xf32>
    %72 = arith.addf %70, %71 : vector<2x128xf32>
    %73 = math.tanh %72 : vector<2x128xf32>
    %74 = arith.mulf %69, %73 : vector<2x128xf32>
    %c1 = arith.constant 1 : index
    %c0_28 = arith.constant 0 : index
    %c0_29 = arith.constant 0 : index
    %75 = vector.load %arg0[%c1, %c0_28, %c0_29] : memref<8x2x512xf32, #tpu.memory_space<vmem>>, vector<1x2x512xf32>
    %76 = vector.shape_cast %75 : vector<1x2x512xf32> to vector<2x512xf32>
    %cst_30 = arith.constant dense<0.000000e+00> : vector<2x512xf32>
    %77 = tpu.matmul %40, %0, %cst_30 {dimension_numbers = #tpu.dot_dimension_numbers<[1], [0], [0], [1], [0, 0, 1, 1], [], []>} : vector<2x128xf32>, vector<128x512xf32>, vector<2x512xf32> -> vector<2x512xf32>
    %78 = arith.addf %76, %77 : vector<2x512xf32>
    %79 = vector.extract_strided_slice %78 {offsets = [0, 0], sizes = [2, 128], strides = [1, 1]} : vector<2x512xf32> to vector<2x128xf32>
    %cst_31 = arith.constant 5.000000e-01 : f32
    %80 = vector.broadcast %cst_31 : f32 to vector<2x128xf32>
    %81 = arith.mulf %80, %79 : vector<2x128xf32>
    %82 = math.tanh %81 : vector<2x128xf32>
    %cst_32 = arith.constant 5.000000e-01 : f32
    %83 = vector.broadcast %cst_32 : f32 to vector<2x128xf32>
    %84 = arith.mulf %83, %82 : vector<2x128xf32>
    %cst_33 = arith.constant 5.000000e-01 : f32
    %85 = vector.broadcast %cst_33 : f32 to vector<2x128xf32>
    %86 = arith.addf %84, %85 : vector<2x128xf32>
    %87 = vector.extract_strided_slice %78 {offsets = [0, 128], sizes = [2, 128], strides = [1, 1]} : vector<2x512xf32> to vector<2x128xf32>
    %cst_34 = arith.constant 5.000000e-01 : f32
    %88 = vector.broadcast %cst_34 : f32 to vector<2x128xf32>
    %89 = arith.mulf %88, %87 : vector<2x128xf32>
    %90 = math.tanh %89 : vector<2x128xf32>
    %cst_35 = arith.constant 5.000000e-01 : f32
    %91 = vector.broadcast %cst_35 : f32 to vector<2x128xf32>
    %92 = arith.mulf %91, %90 : vector<2x128xf32>
    %cst_36 = arith.constant 5.000000e-01 : f32
    %93 = vector.broadcast %cst_36 : f32 to vector<2x128xf32>
    %94 = arith.addf %92, %93 : vector<2x128xf32>
    %95 = vector.extract_strided_slice %78 {offsets = [0, 256], sizes = [2, 128], strides = [1, 1]} : vector<2x512xf32> to vector<2x128xf32>
    %96 = math.tanh %95 : vector<2x128xf32>
    %97 = vector.extract_strided_slice %78 {offsets = [0, 384], sizes = [2, 128], strides = [1, 1]} : vector<2x512xf32> to vector<2x128xf32>
    %cst_37 = arith.constant 5.000000e-01 : f32
    %98 = vector.broadcast %cst_37 : f32 to vector<2x128xf32>
    %99 = arith.mulf %98, %97 : vector<2x128xf32>
    %100 = math.tanh %99 : vector<2x128xf32>
    %cst_38 = arith.constant 5.000000e-01 : f32
    %101 = vector.broadcast %cst_38 : f32 to vector<2x128xf32>
    %102 = arith.mulf %101, %100 : vector<2x128xf32>
    %cst_39 = arith.constant 5.000000e-01 : f32
    %103 = vector.broadcast %cst_39 : f32 to vector<2x128xf32>
    %104 = arith.addf %102, %103 : vector<2x128xf32>
    %105 = arith.mulf %94, %38 : vector<2x128xf32>
    %106 = arith.mulf %86, %96 : vector<2x128xf32>
    %107 = arith.addf %105, %106 : vector<2x128xf32>
    %108 = math.tanh %107 : vector<2x128xf32>
    %109 = arith.mulf %104, %108 : vector<2x128xf32>
    %110 = tpu.concatenate %109, %74 in 1 : vector<2x128xf32>, vector<2x128xf32> -> vector<2x256xf32>
    %cst_40 = arith.constant dense<0.000000e+00> : vector<2x512xf32>
    %111 = tpu.matmul %110, %1, %cst_40 {dimension_numbers = #tpu.dot_dimension_numbers<[1], [0], [0], [1], [0, 0, 1, 1], [], []>} : vector<2x256xf32>, vector<256x512xf32>, vector<2x512xf32> -> vector<2x512xf32>
    %112 = arith.addf %111, %4 : vector<2x512xf32>
    %113 = vector.extract_strided_slice %112 {offsets = [0, 0], sizes = [2, 128], strides = [1, 1]} : vector<2x512xf32> to vector<2x128xf32>
    %cst_41 = arith.constant 5.000000e-01 : f32
    %114 = vector.broadcast %cst_41 : f32 to vector<2x128xf32>
    %115 = arith.mulf %114, %113 : vector<2x128xf32>
    %116 = math.tanh %115 : vector<2x128xf32>
    %cst_42 = arith.constant 5.000000e-01 : f32
    %117 = vector.broadcast %cst_42 : f32 to vector<2x128xf32>
    %118 = arith.mulf %117, %116 : vector<2x128xf32>
    %cst_43 = arith.constant 5.000000e-01 : f32
    %119 = vector.broadcast %cst_43 : f32 to vector<2x128xf32>
    %120 = arith.addf %118, %119 : vector<2x128xf32>
    %121 = vector.extract_strided_slice %112 {offsets = [0, 128], sizes = [2, 128], strides = [1, 1]} : vector<2x512xf32> to vector<2x128xf32>
    %cst_44 = arith.constant 5.000000e-01 : f32
    %122 = vector.broadcast %cst_44 : f32 to vector<2x128xf32>
    %123 = arith.mulf %122, %121 : vector<2x128xf32>
    %124 = math.tanh %123 : vector<2x128xf32>
    %cst_45 = arith.constant 5.000000e-01 : f32
    %125 = vector.broadcast %cst_45 : f32 to vector<2x128xf32>
    %126 = arith.mulf %125, %124 : vector<2x128xf32>
    %cst_46 = arith.constant 5.000000e-01 : f32
    %127 = vector.broadcast %cst_46 : f32 to vector<2x128xf32>
    %128 = arith.addf %126, %127 : vector<2x128xf32>
    %129 = vector.extract_strided_slice %112 {offsets = [0, 256], sizes = [2, 128], strides = [1, 1]} : vector<2x512xf32> to vector<2x128xf32>
    %130 = math.tanh %129 : vector<2x128xf32>
    %131 = vector.extract_strided_slice %112 {offsets = [0, 384], sizes = [2, 128], strides = [1, 1]} : vector<2x512xf32> to vector<2x128xf32>
    %cst_47 = arith.constant 5.000000e-01 : f32
    %132 = vector.broadcast %cst_47 : f32 to vector<2x128xf32>
    %133 = arith.mulf %132, %131 : vector<2x128xf32>
    %134 = math.tanh %133 : vector<2x128xf32>
    %cst_48 = arith.constant 5.000000e-01 : f32
    %135 = vector.broadcast %cst_48 : f32 to vector<2x128xf32>
    %136 = arith.mulf %135, %134 : vector<2x128xf32>
    %cst_49 = arith.constant 5.000000e-01 : f32
    %137 = vector.broadcast %cst_49 : f32 to vector<2x128xf32>
    %138 = arith.addf %136, %137 : vector<2x128xf32>
    %139 = arith.mulf %128, %72 : vector<2x128xf32>
    %140 = arith.mulf %120, %130 : vector<2x128xf32>
    %141 = arith.addf %139, %140 : vector<2x128xf32>
    %142 = math.tanh %141 : vector<2x128xf32>
    %143 = arith.mulf %138, %142 : vector<2x128xf32>
    %c2 = arith.constant 2 : index
    %c0_50 = arith.constant 0 : index
    %c0_51 = arith.constant 0 : index
    %144 = vector.load %arg0[%c2, %c0_50, %c0_51] : memref<8x2x512xf32, #tpu.memory_space<vmem>>, vector<1x2x512xf32>
    %145 = vector.shape_cast %144 : vector<1x2x512xf32> to vector<2x512xf32>
    %cst_52 = arith.constant dense<0.000000e+00> : vector<2x512xf32>
    %146 = tpu.matmul %109, %0, %cst_52 {dimension_numbers = #tpu.dot_dimension_numbers<[1], [0], [0], [1], [0, 0, 1, 1], [], []>} : vector<2x128xf32>, vector<128x512xf32>, vector<2x512xf32> -> vector<2x512xf32>
    %147 = arith.addf %145, %146 : vector<2x512xf32>
    %148 = vector.extract_strided_slice %147 {offsets = [0, 0], sizes = [2, 128], strides = [1, 1]} : vector<2x512xf32> to vector<2x128xf32>
    %cst_53 = arith.constant 5.000000e-01 : f32
    %149 = vector.broadcast %cst_53 : f32 to vector<2x128xf32>
    %150 = arith.mulf %149, %148 : vector<2x128xf32>
    %151 = math.tanh %150 : vector<2x128xf32>
    %cst_54 = arith.constant 5.000000e-01 : f32
    %152 = vector.broadcast %cst_54 : f32 to vector<2x128xf32>
    %153 = arith.mulf %152, %151 : vector<2x128xf32>
    %cst_55 = arith.constant 5.000000e-01 : f32
    %154 = vector.broadcast %cst_55 : f32 to vector<2x128xf32>
    %155 = arith.addf %153, %154 : vector<2x128xf32>
    %156 = vector.extract_strided_slice %147 {offsets = [0, 128], sizes = [2, 128], strides = [1, 1]} : vector<2x512xf32> to vector<2x128xf32>
    %cst_56 = arith.constant 5.000000e-01 : f32
    %157 = vector.broadcast %cst_56 : f32 to vector<2x128xf32>
    %158 = arith.mulf %157, %156 : vector<2x128xf32>
    %159 = math.tanh %158 : vector<2x128xf32>
    %cst_57 = arith.constant 5.000000e-01 : f32
    %160 = vector.broadcast %cst_57 : f32 to vector<2x128xf32>
    %161 = arith.mulf %160, %159 : vector<2x128xf32>
    %cst_58 = arith.constant 5.000000e-01 : f32
    %162 = vector.broadcast %cst_58 : f32 to vector<2x128xf32>
    %163 = arith.addf %161, %162 : vector<2x128xf32>
    %164 = vector.extract_strided_slice %147 {offsets = [0, 256], sizes = [2, 128], strides = [1, 1]} : vector<2x512xf32> to vector<2x128xf32>
    %165 = math.tanh %164 : vector<2x128xf32>
    %166 = vector.extract_strided_slice %147 {offsets = [0, 384], sizes = [2, 128], strides = [1, 1]} : vector<2x512xf32> to vector<2x128xf32>
    %cst_59 = arith.constant 5.000000e-01 : f32
    %167 = vector.broadcast %cst_59 : f32 to vector<2x128xf32>
    %168 = arith.mulf %167, %166 : vector<2x128xf32>
    %169 = math.tanh %168 : vector<2x128xf32>
    %cst_60 = arith.constant 5.000000e-01 : f32
    %170 = vector.broadcast %cst_60 : f32 to vector<2x128xf32>
    %171 = arith.mulf %170, %169 : vector<2x128xf32>
    %cst_61 = arith.constant 5.000000e-01 : f32
    %172 = vector.broadcast %cst_61 : f32 to vector<2x128xf32>
    %173 = arith.addf %171, %172 : vector<2x128xf32>
    %174 = arith.mulf %163, %107 : vector<2x128xf32>
    %175 = arith.mulf %155, %165 : vector<2x128xf32>
    %176 = arith.addf %174, %175 : vector<2x128xf32>
    %177 = math.tanh %176 : vector<2x128xf32>
    %178 = arith.mulf %173, %177 : vector<2x128xf32>
    %179 = tpu.concatenate %178, %143 in 1 : vector<2x128xf32>, vector<2x128xf32> -> vector<2x256xf32>
    %cst_62 = arith.constant dense<0.000000e+00> : vector<2x512xf32>
    %180 = tpu.matmul %179, %1, %cst_62 {dimension_numbers = #tpu.dot_dimension_numbers<[1], [0], [0], [1], [0, 0, 1, 1], [], []>} : vector<2x256xf32>, vector<256x512xf32>, vector<2x512xf32> -> vector<2x512xf32>
    %181 = arith.addf %180, %4 : vector<2x512xf32>
    %182 = vector.extract_strided_slice %181 {offsets = [0, 0], sizes = [2, 128], strides = [1, 1]} : vector<2x512xf32> to vector<2x128xf32>
    %cst_63 = arith.constant 5.000000e-01 : f32
    %183 = vector.broadcast %cst_63 : f32 to vector<2x128xf32>
    %184 = arith.mulf %183, %182 : vector<2x128xf32>
    %185 = math.tanh %184 : vector<2x128xf32>
    %cst_64 = arith.constant 5.000000e-01 : f32
    %186 = vector.broadcast %cst_64 : f32 to vector<2x128xf32>
    %187 = arith.mulf %186, %185 : vector<2x128xf32>
    %cst_65 = arith.constant 5.000000e-01 : f32
    %188 = vector.broadcast %cst_65 : f32 to vector<2x128xf32>
    %189 = arith.addf %187, %188 : vector<2x128xf32>
    %190 = vector.extract_strided_slice %181 {offsets = [0, 128], sizes = [2, 128], strides = [1, 1]} : vector<2x512xf32> to vector<2x128xf32>
    %cst_66 = arith.constant 5.000000e-01 : f32
    %191 = vector.broadcast %cst_66 : f32 to vector<2x128xf32>
    %192 = arith.mulf %191, %190 : vector<2x128xf32>
    %193 = math.tanh %192 : vector<2x128xf32>
    %cst_67 = arith.constant 5.000000e-01 : f32
    %194 = vector.broadcast %cst_67 : f32 to vector<2x128xf32>
    %195 = arith.mulf %194, %193 : vector<2x128xf32>
    %cst_68 = arith.constant 5.000000e-01 : f32
    %196 = vector.broadcast %cst_68 : f32 to vector<2x128xf32>
    %197 = arith.addf %195, %196 : vector<2x128xf32>
    %198 = vector.extract_strided_slice %181 {offsets = [0, 256], sizes = [2, 128], strides = [1, 1]} : vector<2x512xf32> to vector<2x128xf32>
    %199 = math.tanh %198 : vector<2x128xf32>
    %200 = vector.extract_strided_slice %181 {offsets = [0, 384], sizes = [2, 128], strides = [1, 1]} : vector<2x512xf32> to vector<2x128xf32>
    %cst_69 = arith.constant 5.000000e-01 : f32
    %201 = vector.broadcast %cst_69 : f32 to vector<2x128xf32>
    %202 = arith.mulf %201, %200 : vector<2x128xf32>
    %203 = math.tanh %202 : vector<2x128xf32>
    %cst_70 = arith.constant 5.000000e-01 : f32
    %204 = vector.broadcast %cst_70 : f32 to vector<2x128xf32>
    %205 = arith.mulf %204, %203 : vector<2x128xf32>
    %cst_71 = arith.constant 5.000000e-01 : f32
    %206 = vector.broadcast %cst_71 : f32 to vector<2x128xf32>
    %207 = arith.addf %205, %206 : vector<2x128xf32>
    %208 = arith.mulf %197, %141 : vector<2x128xf32>
    %209 = arith.mulf %189, %199 : vector<2x128xf32>
    %210 = arith.addf %208, %209 : vector<2x128xf32>
    %211 = math.tanh %210 : vector<2x128xf32>
    %212 = arith.mulf %207, %211 : vector<2x128xf32>
    %c3 = arith.constant 3 : index
    %c0_72 = arith.constant 0 : index
    %c0_73 = arith.constant 0 : index
    %213 = vector.load %arg0[%c3, %c0_72, %c0_73] : memref<8x2x512xf32, #tpu.memory_space<vmem>>, vector<1x2x512xf32>
    %214 = vector.shape_cast %213 : vector<1x2x512xf32> to vector<2x512xf32>
    %cst_74 = arith.constant dense<0.000000e+00> : vector<2x512xf32>
    %215 = tpu.matmul %178, %0, %cst_74 {dimension_numbers = #tpu.dot_dimension_numbers<[1], [0], [0], [1], [0, 0, 1, 1], [], []>} : vector<2x128xf32>, vector<128x512xf32>, vector<2x512xf32> -> vector<2x512xf32>
    %216 = arith.addf %214, %215 : vector<2x512xf32>
    %217 = vector.extract_strided_slice %216 {offsets = [0, 0], sizes = [2, 128], strides = [1, 1]} : vector<2x512xf32> to vector<2x128xf32>
    %cst_75 = arith.constant 5.000000e-01 : f32
    %218 = vector.broadcast %cst_75 : f32 to vector<2x128xf32>
    %219 = arith.mulf %218, %217 : vector<2x128xf32>
    %220 = math.tanh %219 : vector<2x128xf32>
    %cst_76 = arith.constant 5.000000e-01 : f32
    %221 = vector.broadcast %cst_76 : f32 to vector<2x128xf32>
    %222 = arith.mulf %221, %220 : vector<2x128xf32>
    %cst_77 = arith.constant 5.000000e-01 : f32
    %223 = vector.broadcast %cst_77 : f32 to vector<2x128xf32>
    %224 = arith.addf %222, %223 : vector<2x128xf32>
    %225 = vector.extract_strided_slice %216 {offsets = [0, 128], sizes = [2, 128], strides = [1, 1]} : vector<2x512xf32> to vector<2x128xf32>
    %cst_78 = arith.constant 5.000000e-01 : f32
    %226 = vector.broadcast %cst_78 : f32 to vector<2x128xf32>
    %227 = arith.mulf %226, %225 : vector<2x128xf32>
    %228 = math.tanh %227 : vector<2x128xf32>
    %cst_79 = arith.constant 5.000000e-01 : f32
    %229 = vector.broadcast %cst_79 : f32 to vector<2x128xf32>
    %230 = arith.mulf %229, %228 : vector<2x128xf32>
    %cst_80 = arith.constant 5.000000e-01 : f32
    %231 = vector.broadcast %cst_80 : f32 to vector<2x128xf32>
    %232 = arith.addf %230, %231 : vector<2x128xf32>
    %233 = vector.extract_strided_slice %216 {offsets = [0, 256], sizes = [2, 128], strides = [1, 1]} : vector<2x512xf32> to vector<2x128xf32>
    %234 = math.tanh %233 : vector<2x128xf32>
    %235 = vector.extract_strided_slice %216 {offsets = [0, 384], sizes = [2, 128], strides = [1, 1]} : vector<2x512xf32> to vector<2x128xf32>
    %cst_81 = arith.constant 5.000000e-01 : f32
    %236 = vector.broadcast %cst_81 : f32 to vector<2x128xf32>
    %237 = arith.mulf %236, %235 : vector<2x128xf32>
    %238 = math.tanh %237 : vector<2x128xf32>
    %cst_82 = arith.constant 5.000000e-01 : f32
    %239 = vector.broadcast %cst_82 : f32 to vector<2x128xf32>
    %240 = arith.mulf %239, %238 : vector<2x128xf32>
    %cst_83 = arith.constant 5.000000e-01 : f32
    %241 = vector.broadcast %cst_83 : f32 to vector<2x128xf32>
    %242 = arith.addf %240, %241 : vector<2x128xf32>
    %243 = arith.mulf %232, %176 : vector<2x128xf32>
    %244 = arith.mulf %224, %234 : vector<2x128xf32>
    %245 = arith.addf %243, %244 : vector<2x128xf32>
    %246 = math.tanh %245 : vector<2x128xf32>
    %247 = arith.mulf %242, %246 : vector<2x128xf32>
    %248 = tpu.concatenate %247, %212 in 1 : vector<2x128xf32>, vector<2x128xf32> -> vector<2x256xf32>
    %cst_84 = arith.constant dense<0.000000e+00> : vector<2x512xf32>
    %249 = tpu.matmul %248, %1, %cst_84 {dimension_numbers = #tpu.dot_dimension_numbers<[1], [0], [0], [1], [0, 0, 1, 1], [], []>} : vector<2x256xf32>, vector<256x512xf32>, vector<2x512xf32> -> vector<2x512xf32>
    %250 = arith.addf %249, %4 : vector<2x512xf32>
    %251 = vector.extract_strided_slice %250 {offsets = [0, 0], sizes = [2, 128], strides = [1, 1]} : vector<2x512xf32> to vector<2x128xf32>
    %cst_85 = arith.constant 5.000000e-01 : f32
    %252 = vector.broadcast %cst_85 : f32 to vector<2x128xf32>
    %253 = arith.mulf %252, %251 : vector<2x128xf32>
    %254 = math.tanh %253 : vector<2x128xf32>
    %cst_86 = arith.constant 5.000000e-01 : f32
    %255 = vector.broadcast %cst_86 : f32 to vector<2x128xf32>
    %256 = arith.mulf %255, %254 : vector<2x128xf32>
    %cst_87 = arith.constant 5.000000e-01 : f32
    %257 = vector.broadcast %cst_87 : f32 to vector<2x128xf32>
    %258 = arith.addf %256, %257 : vector<2x128xf32>
    %259 = vector.extract_strided_slice %250 {offsets = [0, 128], sizes = [2, 128], strides = [1, 1]} : vector<2x512xf32> to vector<2x128xf32>
    %cst_88 = arith.constant 5.000000e-01 : f32
    %260 = vector.broadcast %cst_88 : f32 to vector<2x128xf32>
    %261 = arith.mulf %260, %259 : vector<2x128xf32>
    %262 = math.tanh %261 : vector<2x128xf32>
    %cst_89 = arith.constant 5.000000e-01 : f32
    %263 = vector.broadcast %cst_89 : f32 to vector<2x128xf32>
    %264 = arith.mulf %263, %262 : vector<2x128xf32>
    %cst_90 = arith.constant 5.000000e-01 : f32
    %265 = vector.broadcast %cst_90 : f32 to vector<2x128xf32>
    %266 = arith.addf %264, %265 : vector<2x128xf32>
    %267 = vector.extract_strided_slice %250 {offsets = [0, 256], sizes = [2, 128], strides = [1, 1]} : vector<2x512xf32> to vector<2x128xf32>
    %268 = math.tanh %267 : vector<2x128xf32>
    %269 = vector.extract_strided_slice %250 {offsets = [0, 384], sizes = [2, 128], strides = [1, 1]} : vector<2x512xf32> to vector<2x128xf32>
    %cst_91 = arith.constant 5.000000e-01 : f32
    %270 = vector.broadcast %cst_91 : f32 to vector<2x128xf32>
    %271 = arith.mulf %270, %269 : vector<2x128xf32>
    %272 = math.tanh %271 : vector<2x128xf32>
    %cst_92 = arith.constant 5.000000e-01 : f32
    %273 = vector.broadcast %cst_92 : f32 to vector<2x128xf32>
    %274 = arith.mulf %273, %272 : vector<2x128xf32>
    %cst_93 = arith.constant 5.000000e-01 : f32
    %275 = vector.broadcast %cst_93 : f32 to vector<2x128xf32>
    %276 = arith.addf %274, %275 : vector<2x128xf32>
    %277 = arith.mulf %266, %210 : vector<2x128xf32>
    %278 = arith.mulf %258, %268 : vector<2x128xf32>
    %279 = arith.addf %277, %278 : vector<2x128xf32>
    %280 = math.tanh %279 : vector<2x128xf32>
    %281 = arith.mulf %276, %280 : vector<2x128xf32>
    %c4 = arith.constant 4 : index
    %c0_94 = arith.constant 0 : index
    %c0_95 = arith.constant 0 : index
    %282 = vector.load %arg0[%c4, %c0_94, %c0_95] : memref<8x2x512xf32, #tpu.memory_space<vmem>>, vector<1x2x512xf32>
    %283 = vector.shape_cast %282 : vector<1x2x512xf32> to vector<2x512xf32>
    %cst_96 = arith.constant dense<0.000000e+00> : vector<2x512xf32>
    %284 = tpu.matmul %247, %0, %cst_96 {dimension_numbers = #tpu.dot_dimension_numbers<[1], [0], [0], [1], [0, 0, 1, 1], [], []>} : vector<2x128xf32>, vector<128x512xf32>, vector<2x512xf32> -> vector<2x512xf32>
    %285 = arith.addf %283, %284 : vector<2x512xf32>
    %286 = vector.extract_strided_slice %285 {offsets = [0, 0], sizes = [2, 128], strides = [1, 1]} : vector<2x512xf32> to vector<2x128xf32>
    %cst_97 = arith.constant 5.000000e-01 : f32
    %287 = vector.broadcast %cst_97 : f32 to vector<2x128xf32>
    %288 = arith.mulf %287, %286 : vector<2x128xf32>
    %289 = math.tanh %288 : vector<2x128xf32>
    %cst_98 = arith.constant 5.000000e-01 : f32
    %290 = vector.broadcast %cst_98 : f32 to vector<2x128xf32>
    %291 = arith.mulf %290, %289 : vector<2x128xf32>
    %cst_99 = arith.constant 5.000000e-01 : f32
    %292 = vector.broadcast %cst_99 : f32 to vector<2x128xf32>
    %293 = arith.addf %291, %292 : vector<2x128xf32>
    %294 = vector.extract_strided_slice %285 {offsets = [0, 128], sizes = [2, 128], strides = [1, 1]} : vector<2x512xf32> to vector<2x128xf32>
    %cst_100 = arith.constant 5.000000e-01 : f32
    %295 = vector.broadcast %cst_100 : f32 to vector<2x128xf32>
    %296 = arith.mulf %295, %294 : vector<2x128xf32>
    %297 = math.tanh %296 : vector<2x128xf32>
    %cst_101 = arith.constant 5.000000e-01 : f32
    %298 = vector.broadcast %cst_101 : f32 to vector<2x128xf32>
    %299 = arith.mulf %298, %297 : vector<2x128xf32>
    %cst_102 = arith.constant 5.000000e-01 : f32
    %300 = vector.broadcast %cst_102 : f32 to vector<2x128xf32>
    %301 = arith.addf %299, %300 : vector<2x128xf32>
    %302 = vector.extract_strided_slice %285 {offsets = [0, 256], sizes = [2, 128], strides = [1, 1]} : vector<2x512xf32> to vector<2x128xf32>
    %303 = math.tanh %302 : vector<2x128xf32>
    %304 = vector.extract_strided_slice %285 {offsets = [0, 384], sizes = [2, 128], strides = [1, 1]} : vector<2x512xf32> to vector<2x128xf32>
    %cst_103 = arith.constant 5.000000e-01 : f32
    %305 = vector.broadcast %cst_103 : f32 to vector<2x128xf32>
    %306 = arith.mulf %305, %304 : vector<2x128xf32>
    %307 = math.tanh %306 : vector<2x128xf32>
    %cst_104 = arith.constant 5.000000e-01 : f32
    %308 = vector.broadcast %cst_104 : f32 to vector<2x128xf32>
    %309 = arith.mulf %308, %307 : vector<2x128xf32>
    %cst_105 = arith.constant 5.000000e-01 : f32
    %310 = vector.broadcast %cst_105 : f32 to vector<2x128xf32>
    %311 = arith.addf %309, %310 : vector<2x128xf32>
    %312 = arith.mulf %301, %245 : vector<2x128xf32>
    %313 = arith.mulf %293, %303 : vector<2x128xf32>
    %314 = arith.addf %312, %313 : vector<2x128xf32>
    %315 = math.tanh %314 : vector<2x128xf32>
    %316 = arith.mulf %311, %315 : vector<2x128xf32>
    %317 = tpu.concatenate %316, %281 in 1 : vector<2x128xf32>, vector<2x128xf32> -> vector<2x256xf32>
    %cst_106 = arith.constant dense<0.000000e+00> : vector<2x512xf32>
    %318 = tpu.matmul %317, %1, %cst_106 {dimension_numbers = #tpu.dot_dimension_numbers<[1], [0], [0], [1], [0, 0, 1, 1], [], []>} : vector<2x256xf32>, vector<256x512xf32>, vector<2x512xf32> -> vector<2x512xf32>
    %319 = arith.addf %318, %4 : vector<2x512xf32>
    %320 = vector.extract_strided_slice %319 {offsets = [0, 0], sizes = [2, 128], strides = [1, 1]} : vector<2x512xf32> to vector<2x128xf32>
    %cst_107 = arith.constant 5.000000e-01 : f32
    %321 = vector.broadcast %cst_107 : f32 to vector<2x128xf32>
    %322 = arith.mulf %321, %320 : vector<2x128xf32>
    %323 = math.tanh %322 : vector<2x128xf32>
    %cst_108 = arith.constant 5.000000e-01 : f32
    %324 = vector.broadcast %cst_108 : f32 to vector<2x128xf32>
    %325 = arith.mulf %324, %323 : vector<2x128xf32>
    %cst_109 = arith.constant 5.000000e-01 : f32
    %326 = vector.broadcast %cst_109 : f32 to vector<2x128xf32>
    %327 = arith.addf %325, %326 : vector<2x128xf32>
    %328 = vector.extract_strided_slice %319 {offsets = [0, 128], sizes = [2, 128], strides = [1, 1]} : vector<2x512xf32> to vector<2x128xf32>
    %cst_110 = arith.constant 5.000000e-01 : f32
    %329 = vector.broadcast %cst_110 : f32 to vector<2x128xf32>
    %330 = arith.mulf %329, %328 : vector<2x128xf32>
    %331 = math.tanh %330 : vector<2x128xf32>
    %cst_111 = arith.constant 5.000000e-01 : f32
    %332 = vector.broadcast %cst_111 : f32 to vector<2x128xf32>
    %333 = arith.mulf %332, %331 : vector<2x128xf32>
    %cst_112 = arith.constant 5.000000e-01 : f32
    %334 = vector.broadcast %cst_112 : f32 to vector<2x128xf32>
    %335 = arith.addf %333, %334 : vector<2x128xf32>
    %336 = vector.extract_strided_slice %319 {offsets = [0, 256], sizes = [2, 128], strides = [1, 1]} : vector<2x512xf32> to vector<2x128xf32>
    %337 = math.tanh %336 : vector<2x128xf32>
    %338 = vector.extract_strided_slice %319 {offsets = [0, 384], sizes = [2, 128], strides = [1, 1]} : vector<2x512xf32> to vector<2x128xf32>
    %cst_113 = arith.constant 5.000000e-01 : f32
    %339 = vector.broadcast %cst_113 : f32 to vector<2x128xf32>
    %340 = arith.mulf %339, %338 : vector<2x128xf32>
    %341 = math.tanh %340 : vector<2x128xf32>
    %cst_114 = arith.constant 5.000000e-01 : f32
    %342 = vector.broadcast %cst_114 : f32 to vector<2x128xf32>
    %343 = arith.mulf %342, %341 : vector<2x128xf32>
    %cst_115 = arith.constant 5.000000e-01 : f32
    %344 = vector.broadcast %cst_115 : f32 to vector<2x128xf32>
    %345 = arith.addf %343, %344 : vector<2x128xf32>
    %346 = arith.mulf %335, %279 : vector<2x128xf32>
    %347 = arith.mulf %327, %337 : vector<2x128xf32>
    %348 = arith.addf %346, %347 : vector<2x128xf32>
    %349 = math.tanh %348 : vector<2x128xf32>
    %350 = arith.mulf %345, %349 : vector<2x128xf32>
    %c5 = arith.constant 5 : index
    %c0_116 = arith.constant 0 : index
    %c0_117 = arith.constant 0 : index
    %351 = vector.load %arg0[%c5, %c0_116, %c0_117] : memref<8x2x512xf32, #tpu.memory_space<vmem>>, vector<1x2x512xf32>
    %352 = vector.shape_cast %351 : vector<1x2x512xf32> to vector<2x512xf32>
    %cst_118 = arith.constant dense<0.000000e+00> : vector<2x512xf32>
    %353 = tpu.matmul %316, %0, %cst_118 {dimension_numbers = #tpu.dot_dimension_numbers<[1], [0], [0], [1], [0, 0, 1, 1], [], []>} : vector<2x128xf32>, vector<128x512xf32>, vector<2x512xf32> -> vector<2x512xf32>
    %354 = arith.addf %352, %353 : vector<2x512xf32>
    %355 = vector.extract_strided_slice %354 {offsets = [0, 0], sizes = [2, 128], strides = [1, 1]} : vector<2x512xf32> to vector<2x128xf32>
    %cst_119 = arith.constant 5.000000e-01 : f32
    %356 = vector.broadcast %cst_119 : f32 to vector<2x128xf32>
    %357 = arith.mulf %356, %355 : vector<2x128xf32>
    %358 = math.tanh %357 : vector<2x128xf32>
    %cst_120 = arith.constant 5.000000e-01 : f32
    %359 = vector.broadcast %cst_120 : f32 to vector<2x128xf32>
    %360 = arith.mulf %359, %358 : vector<2x128xf32>
    %cst_121 = arith.constant 5.000000e-01 : f32
    %361 = vector.broadcast %cst_121 : f32 to vector<2x128xf32>
    %362 = arith.addf %360, %361 : vector<2x128xf32>
    %363 = vector.extract_strided_slice %354 {offsets = [0, 128], sizes = [2, 128], strides = [1, 1]} : vector<2x512xf32> to vector<2x128xf32>
    %cst_122 = arith.constant 5.000000e-01 : f32
    %364 = vector.broadcast %cst_122 : f32 to vector<2x128xf32>
    %365 = arith.mulf %364, %363 : vector<2x128xf32>
    %366 = math.tanh %365 : vector<2x128xf32>
    %cst_123 = arith.constant 5.000000e-01 : f32
    %367 = vector.broadcast %cst_123 : f32 to vector<2x128xf32>
    %368 = arith.mulf %367, %366 : vector<2x128xf32>
    %cst_124 = arith.constant 5.000000e-01 : f32
    %369 = vector.broadcast %cst_124 : f32 to vector<2x128xf32>
    %370 = arith.addf %368, %369 : vector<2x128xf32>
    %371 = vector.extract_strided_slice %354 {offsets = [0, 256], sizes = [2, 128], strides = [1, 1]} : vector<2x512xf32> to vector<2x128xf32>
    %372 = math.tanh %371 : vector<2x128xf32>
    %373 = vector.extract_strided_slice %354 {offsets = [0, 384], sizes = [2, 128], strides = [1, 1]} : vector<2x512xf32> to vector<2x128xf32>
    %cst_125 = arith.constant 5.000000e-01 : f32
    %374 = vector.broadcast %cst_125 : f32 to vector<2x128xf32>
    %375 = arith.mulf %374, %373 : vector<2x128xf32>
    %376 = math.tanh %375 : vector<2x128xf32>
    %cst_126 = arith.constant 5.000000e-01 : f32
    %377 = vector.broadcast %cst_126 : f32 to vector<2x128xf32>
    %378 = arith.mulf %377, %376 : vector<2x128xf32>
    %cst_127 = arith.constant 5.000000e-01 : f32
    %379 = vector.broadcast %cst_127 : f32 to vector<2x128xf32>
    %380 = arith.addf %378, %379 : vector<2x128xf32>
    %381 = arith.mulf %370, %314 : vector<2x128xf32>
    %382 = arith.mulf %362, %372 : vector<2x128xf32>
    %383 = arith.addf %381, %382 : vector<2x128xf32>
    %384 = math.tanh %383 : vector<2x128xf32>
    %385 = arith.mulf %380, %384 : vector<2x128xf32>
    %386 = tpu.concatenate %385, %350 in 1 : vector<2x128xf32>, vector<2x128xf32> -> vector<2x256xf32>
    %cst_128 = arith.constant dense<0.000000e+00> : vector<2x512xf32>
    %387 = tpu.matmul %386, %1, %cst_128 {dimension_numbers = #tpu.dot_dimension_numbers<[1], [0], [0], [1], [0, 0, 1, 1], [], []>} : vector<2x256xf32>, vector<256x512xf32>, vector<2x512xf32> -> vector<2x512xf32>
    %388 = arith.addf %387, %4 : vector<2x512xf32>
    %389 = vector.extract_strided_slice %388 {offsets = [0, 0], sizes = [2, 128], strides = [1, 1]} : vector<2x512xf32> to vector<2x128xf32>
    %cst_129 = arith.constant 5.000000e-01 : f32
    %390 = vector.broadcast %cst_129 : f32 to vector<2x128xf32>
    %391 = arith.mulf %390, %389 : vector<2x128xf32>
    %392 = math.tanh %391 : vector<2x128xf32>
    %cst_130 = arith.constant 5.000000e-01 : f32
    %393 = vector.broadcast %cst_130 : f32 to vector<2x128xf32>
    %394 = arith.mulf %393, %392 : vector<2x128xf32>
    %cst_131 = arith.constant 5.000000e-01 : f32
    %395 = vector.broadcast %cst_131 : f32 to vector<2x128xf32>
    %396 = arith.addf %394, %395 : vector<2x128xf32>
    %397 = vector.extract_strided_slice %388 {offsets = [0, 128], sizes = [2, 128], strides = [1, 1]} : vector<2x512xf32> to vector<2x128xf32>
    %cst_132 = arith.constant 5.000000e-01 : f32
    %398 = vector.broadcast %cst_132 : f32 to vector<2x128xf32>
    %399 = arith.mulf %398, %397 : vector<2x128xf32>
    %400 = math.tanh %399 : vector<2x128xf32>
    %cst_133 = arith.constant 5.000000e-01 : f32
    %401 = vector.broadcast %cst_133 : f32 to vector<2x128xf32>
    %402 = arith.mulf %401, %400 : vector<2x128xf32>
    %cst_134 = arith.constant 5.000000e-01 : f32
    %403 = vector.broadcast %cst_134 : f32 to vector<2x128xf32>
    %404 = arith.addf %402, %403 : vector<2x128xf32>
    %405 = vector.extract_strided_slice %388 {offsets = [0, 256], sizes = [2, 128], strides = [1, 1]} : vector<2x512xf32> to vector<2x128xf32>
    %406 = math.tanh %405 : vector<2x128xf32>
    %407 = vector.extract_strided_slice %388 {offsets = [0, 384], sizes = [2, 128], strides = [1, 1]} : vector<2x512xf32> to vector<2x128xf32>
    %cst_135 = arith.constant 5.000000e-01 : f32
    %408 = vector.broadcast %cst_135 : f32 to vector<2x128xf32>
    %409 = arith.mulf %408, %407 : vector<2x128xf32>
    %410 = math.tanh %409 : vector<2x128xf32>
    %cst_136 = arith.constant 5.000000e-01 : f32
    %411 = vector.broadcast %cst_136 : f32 to vector<2x128xf32>
    %412 = arith.mulf %411, %410 : vector<2x128xf32>
    %cst_137 = arith.constant 5.000000e-01 : f32
    %413 = vector.broadcast %cst_137 : f32 to vector<2x128xf32>
    %414 = arith.addf %412, %413 : vector<2x128xf32>
    %415 = arith.mulf %404, %348 : vector<2x128xf32>
    %416 = arith.mulf %396, %406 : vector<2x128xf32>
    %417 = arith.addf %415, %416 : vector<2x128xf32>
    %418 = math.tanh %417 : vector<2x128xf32>
    %419 = arith.mulf %414, %418 : vector<2x128xf32>
    %c6 = arith.constant 6 : index
    %c0_138 = arith.constant 0 : index
    %c0_139 = arith.constant 0 : index
    %420 = vector.load %arg0[%c6, %c0_138, %c0_139] : memref<8x2x512xf32, #tpu.memory_space<vmem>>, vector<1x2x512xf32>
    %421 = vector.shape_cast %420 : vector<1x2x512xf32> to vector<2x512xf32>
    %cst_140 = arith.constant dense<0.000000e+00> : vector<2x512xf32>
    %422 = tpu.matmul %385, %0, %cst_140 {dimension_numbers = #tpu.dot_dimension_numbers<[1], [0], [0], [1], [0, 0, 1, 1], [], []>} : vector<2x128xf32>, vector<128x512xf32>, vector<2x512xf32> -> vector<2x512xf32>
    %423 = arith.addf %421, %422 : vector<2x512xf32>
    %424 = vector.extract_strided_slice %423 {offsets = [0, 0], sizes = [2, 128], strides = [1, 1]} : vector<2x512xf32> to vector<2x128xf32>
    %cst_141 = arith.constant 5.000000e-01 : f32
    %425 = vector.broadcast %cst_141 : f32 to vector<2x128xf32>
    %426 = arith.mulf %425, %424 : vector<2x128xf32>
    %427 = math.tanh %426 : vector<2x128xf32>
    %cst_142 = arith.constant 5.000000e-01 : f32
    %428 = vector.broadcast %cst_142 : f32 to vector<2x128xf32>
    %429 = arith.mulf %428, %427 : vector<2x128xf32>
    %cst_143 = arith.constant 5.000000e-01 : f32
    %430 = vector.broadcast %cst_143 : f32 to vector<2x128xf32>
    %431 = arith.addf %429, %430 : vector<2x128xf32>
    %432 = vector.extract_strided_slice %423 {offsets = [0, 128], sizes = [2, 128], strides = [1, 1]} : vector<2x512xf32> to vector<2x128xf32>
    %cst_144 = arith.constant 5.000000e-01 : f32
    %433 = vector.broadcast %cst_144 : f32 to vector<2x128xf32>
    %434 = arith.mulf %433, %432 : vector<2x128xf32>
    %435 = math.tanh %434 : vector<2x128xf32>
    %cst_145 = arith.constant 5.000000e-01 : f32
    %436 = vector.broadcast %cst_145 : f32 to vector<2x128xf32>
    %437 = arith.mulf %436, %435 : vector<2x128xf32>
    %cst_146 = arith.constant 5.000000e-01 : f32
    %438 = vector.broadcast %cst_146 : f32 to vector<2x128xf32>
    %439 = arith.addf %437, %438 : vector<2x128xf32>
    %440 = vector.extract_strided_slice %423 {offsets = [0, 256], sizes = [2, 128], strides = [1, 1]} : vector<2x512xf32> to vector<2x128xf32>
    %441 = math.tanh %440 : vector<2x128xf32>
    %442 = vector.extract_strided_slice %423 {offsets = [0, 384], sizes = [2, 128], strides = [1, 1]} : vector<2x512xf32> to vector<2x128xf32>
    %cst_147 = arith.constant 5.000000e-01 : f32
    %443 = vector.broadcast %cst_147 : f32 to vector<2x128xf32>
    %444 = arith.mulf %443, %442 : vector<2x128xf32>
    %445 = math.tanh %444 : vector<2x128xf32>
    %cst_148 = arith.constant 5.000000e-01 : f32
    %446 = vector.broadcast %cst_148 : f32 to vector<2x128xf32>
    %447 = arith.mulf %446, %445 : vector<2x128xf32>
    %cst_149 = arith.constant 5.000000e-01 : f32
    %448 = vector.broadcast %cst_149 : f32 to vector<2x128xf32>
    %449 = arith.addf %447, %448 : vector<2x128xf32>
    %450 = arith.mulf %439, %383 : vector<2x128xf32>
    %451 = arith.mulf %431, %441 : vector<2x128xf32>
    %452 = arith.addf %450, %451 : vector<2x128xf32>
    %453 = math.tanh %452 : vector<2x128xf32>
    %454 = arith.mulf %449, %453 : vector<2x128xf32>
    %455 = tpu.concatenate %454, %419 in 1 : vector<2x128xf32>, vector<2x128xf32> -> vector<2x256xf32>
    %cst_150 = arith.constant dense<0.000000e+00> : vector<2x512xf32>
    %456 = tpu.matmul %455, %1, %cst_150 {dimension_numbers = #tpu.dot_dimension_numbers<[1], [0], [0], [1], [0, 0, 1, 1], [], []>} : vector<2x256xf32>, vector<256x512xf32>, vector<2x512xf32> -> vector<2x512xf32>
    %457 = arith.addf %456, %4 : vector<2x512xf32>
    %458 = vector.extract_strided_slice %457 {offsets = [0, 0], sizes = [2, 128], strides = [1, 1]} : vector<2x512xf32> to vector<2x128xf32>
    %cst_151 = arith.constant 5.000000e-01 : f32
    %459 = vector.broadcast %cst_151 : f32 to vector<2x128xf32>
    %460 = arith.mulf %459, %458 : vector<2x128xf32>
    %461 = math.tanh %460 : vector<2x128xf32>
    %cst_152 = arith.constant 5.000000e-01 : f32
    %462 = vector.broadcast %cst_152 : f32 to vector<2x128xf32>
    %463 = arith.mulf %462, %461 : vector<2x128xf32>
    %cst_153 = arith.constant 5.000000e-01 : f32
    %464 = vector.broadcast %cst_153 : f32 to vector<2x128xf32>
    %465 = arith.addf %463, %464 : vector<2x128xf32>
    %466 = vector.extract_strided_slice %457 {offsets = [0, 128], sizes = [2, 128], strides = [1, 1]} : vector<2x512xf32> to vector<2x128xf32>
    %cst_154 = arith.constant 5.000000e-01 : f32
    %467 = vector.broadcast %cst_154 : f32 to vector<2x128xf32>
    %468 = arith.mulf %467, %466 : vector<2x128xf32>
    %469 = math.tanh %468 : vector<2x128xf32>
    %cst_155 = arith.constant 5.000000e-01 : f32
    %470 = vector.broadcast %cst_155 : f32 to vector<2x128xf32>
    %471 = arith.mulf %470, %469 : vector<2x128xf32>
    %cst_156 = arith.constant 5.000000e-01 : f32
    %472 = vector.broadcast %cst_156 : f32 to vector<2x128xf32>
    %473 = arith.addf %471, %472 : vector<2x128xf32>
    %474 = vector.extract_strided_slice %457 {offsets = [0, 256], sizes = [2, 128], strides = [1, 1]} : vector<2x512xf32> to vector<2x128xf32>
    %475 = math.tanh %474 : vector<2x128xf32>
    %476 = vector.extract_strided_slice %457 {offsets = [0, 384], sizes = [2, 128], strides = [1, 1]} : vector<2x512xf32> to vector<2x128xf32>
    %cst_157 = arith.constant 5.000000e-01 : f32
    %477 = vector.broadcast %cst_157 : f32 to vector<2x128xf32>
    %478 = arith.mulf %477, %476 : vector<2x128xf32>
    %479 = math.tanh %478 : vector<2x128xf32>
    %cst_158 = arith.constant 5.000000e-01 : f32
    %480 = vector.broadcast %cst_158 : f32 to vector<2x128xf32>
    %481 = arith.mulf %480, %479 : vector<2x128xf32>
    %cst_159 = arith.constant 5.000000e-01 : f32
    %482 = vector.broadcast %cst_159 : f32 to vector<2x128xf32>
    %483 = arith.addf %481, %482 : vector<2x128xf32>
    %484 = arith.mulf %473, %417 : vector<2x128xf32>
    %485 = arith.mulf %465, %475 : vector<2x128xf32>
    %486 = arith.addf %484, %485 : vector<2x128xf32>
    %487 = math.tanh %486 : vector<2x128xf32>
    %488 = arith.mulf %483, %487 : vector<2x128xf32>
    %c7 = arith.constant 7 : index
    %c0_160 = arith.constant 0 : index
    %c0_161 = arith.constant 0 : index
    %489 = vector.load %arg0[%c7, %c0_160, %c0_161] : memref<8x2x512xf32, #tpu.memory_space<vmem>>, vector<1x2x512xf32>
    %490 = vector.shape_cast %489 : vector<1x2x512xf32> to vector<2x512xf32>
    %cst_162 = arith.constant dense<0.000000e+00> : vector<2x512xf32>
    %491 = tpu.matmul %454, %0, %cst_162 {dimension_numbers = #tpu.dot_dimension_numbers<[1], [0], [0], [1], [0, 0, 1, 1], [], []>} : vector<2x128xf32>, vector<128x512xf32>, vector<2x512xf32> -> vector<2x512xf32>
    %492 = arith.addf %490, %491 : vector<2x512xf32>
    %493 = vector.extract_strided_slice %492 {offsets = [0, 0], sizes = [2, 128], strides = [1, 1]} : vector<2x512xf32> to vector<2x128xf32>
    %cst_163 = arith.constant 5.000000e-01 : f32
    %494 = vector.broadcast %cst_163 : f32 to vector<2x128xf32>
    %495 = arith.mulf %494, %493 : vector<2x128xf32>
    %496 = math.tanh %495 : vector<2x128xf32>
    %cst_164 = arith.constant 5.000000e-01 : f32
    %497 = vector.broadcast %cst_164 : f32 to vector<2x128xf32>
    %498 = arith.mulf %497, %496 : vector<2x128xf32>
    %cst_165 = arith.constant 5.000000e-01 : f32
    %499 = vector.broadcast %cst_165 : f32 to vector<2x128xf32>
    %500 = arith.addf %498, %499 : vector<2x128xf32>
    %501 = vector.extract_strided_slice %492 {offsets = [0, 128], sizes = [2, 128], strides = [1, 1]} : vector<2x512xf32> to vector<2x128xf32>
    %cst_166 = arith.constant 5.000000e-01 : f32
    %502 = vector.broadcast %cst_166 : f32 to vector<2x128xf32>
    %503 = arith.mulf %502, %501 : vector<2x128xf32>
    %504 = math.tanh %503 : vector<2x128xf32>
    %cst_167 = arith.constant 5.000000e-01 : f32
    %505 = vector.broadcast %cst_167 : f32 to vector<2x128xf32>
    %506 = arith.mulf %505, %504 : vector<2x128xf32>
    %cst_168 = arith.constant 5.000000e-01 : f32
    %507 = vector.broadcast %cst_168 : f32 to vector<2x128xf32>
    %508 = arith.addf %506, %507 : vector<2x128xf32>
    %509 = vector.extract_strided_slice %492 {offsets = [0, 256], sizes = [2, 128], strides = [1, 1]} : vector<2x512xf32> to vector<2x128xf32>
    %510 = math.tanh %509 : vector<2x128xf32>
    %511 = vector.extract_strided_slice %492 {offsets = [0, 384], sizes = [2, 128], strides = [1, 1]} : vector<2x512xf32> to vector<2x128xf32>
    %cst_169 = arith.constant 5.000000e-01 : f32
    %512 = vector.broadcast %cst_169 : f32 to vector<2x128xf32>
    %513 = arith.mulf %512, %511 : vector<2x128xf32>
    %514 = math.tanh %513 : vector<2x128xf32>
    %cst_170 = arith.constant 5.000000e-01 : f32
    %515 = vector.broadcast %cst_170 : f32 to vector<2x128xf32>
    %516 = arith.mulf %515, %514 : vector<2x128xf32>
    %cst_171 = arith.constant 5.000000e-01 : f32
    %517 = vector.broadcast %cst_171 : f32 to vector<2x128xf32>
    %518 = arith.addf %516, %517 : vector<2x128xf32>
    %519 = arith.mulf %508, %452 : vector<2x128xf32>
    %520 = arith.mulf %500, %510 : vector<2x128xf32>
    %521 = arith.addf %519, %520 : vector<2x128xf32>
    %522 = math.tanh %521 : vector<2x128xf32>
    %523 = arith.mulf %518, %522 : vector<2x128xf32>
    %524 = tpu.concatenate %523, %488 in 1 : vector<2x128xf32>, vector<2x128xf32> -> vector<2x256xf32>
    %cst_172 = arith.constant dense<0.000000e+00> : vector<2x512xf32>
    %525 = tpu.matmul %524, %1, %cst_172 {dimension_numbers = #tpu.dot_dimension_numbers<[1], [0], [0], [1], [0, 0, 1, 1], [], []>} : vector<2x256xf32>, vector<256x512xf32>, vector<2x512xf32> -> vector<2x512xf32>
    %526 = arith.addf %525, %4 : vector<2x512xf32>
    %527 = vector.extract_strided_slice %526 {offsets = [0, 0], sizes = [2, 128], strides = [1, 1]} : vector<2x512xf32> to vector<2x128xf32>
    %cst_173 = arith.constant 5.000000e-01 : f32
    %528 = vector.broadcast %cst_173 : f32 to vector<2x128xf32>
    %529 = arith.mulf %528, %527 : vector<2x128xf32>
    %530 = math.tanh %529 : vector<2x128xf32>
    %cst_174 = arith.constant 5.000000e-01 : f32
    %531 = vector.broadcast %cst_174 : f32 to vector<2x128xf32>
    %532 = arith.mulf %531, %530 : vector<2x128xf32>
    %cst_175 = arith.constant 5.000000e-01 : f32
    %533 = vector.broadcast %cst_175 : f32 to vector<2x128xf32>
    %534 = arith.addf %532, %533 : vector<2x128xf32>
    %535 = vector.extract_strided_slice %526 {offsets = [0, 128], sizes = [2, 128], strides = [1, 1]} : vector<2x512xf32> to vector<2x128xf32>
    %cst_176 = arith.constant 5.000000e-01 : f32
    %536 = vector.broadcast %cst_176 : f32 to vector<2x128xf32>
    %537 = arith.mulf %536, %535 : vector<2x128xf32>
    %538 = math.tanh %537 : vector<2x128xf32>
    %cst_177 = arith.constant 5.000000e-01 : f32
    %539 = vector.broadcast %cst_177 : f32 to vector<2x128xf32>
    %540 = arith.mulf %539, %538 : vector<2x128xf32>
    %cst_178 = arith.constant 5.000000e-01 : f32
    %541 = vector.broadcast %cst_178 : f32 to vector<2x128xf32>
    %542 = arith.addf %540, %541 : vector<2x128xf32>
    %543 = vector.extract_strided_slice %526 {offsets = [0, 256], sizes = [2, 128], strides = [1, 1]} : vector<2x512xf32> to vector<2x128xf32>
    %544 = math.tanh %543 : vector<2x128xf32>
    %545 = vector.extract_strided_slice %526 {offsets = [0, 384], sizes = [2, 128], strides = [1, 1]} : vector<2x512xf32> to vector<2x128xf32>
    %cst_179 = arith.constant 5.000000e-01 : f32
    %546 = vector.broadcast %cst_179 : f32 to vector<2x128xf32>
    %547 = arith.mulf %546, %545 : vector<2x128xf32>
    %548 = math.tanh %547 : vector<2x128xf32>
    %cst_180 = arith.constant 5.000000e-01 : f32
    %549 = vector.broadcast %cst_180 : f32 to vector<2x128xf32>
    %550 = arith.mulf %549, %548 : vector<2x128xf32>
    %cst_181 = arith.constant 5.000000e-01 : f32
    %551 = vector.broadcast %cst_181 : f32 to vector<2x128xf32>
    %552 = arith.addf %550, %551 : vector<2x128xf32>
    %553 = arith.mulf %542, %486 : vector<2x128xf32>
    %554 = arith.mulf %534, %544 : vector<2x128xf32>
    %555 = arith.addf %553, %554 : vector<2x128xf32>
    %556 = math.tanh %555 : vector<2x128xf32>
    %557 = arith.mulf %552, %556 : vector<2x128xf32>
    %c0_182 = arith.constant 0 : index
    %c0_183 = arith.constant 0 : index
    %558 = vector.load %arg4[%c0_182, %c0_183] : memref<128x2xf32, #tpu.memory_space<vmem>>, vector<128x2xf32>
    %cst_184 = arith.constant dense<0.000000e+00> : vector<2x2xf32>
    %559 = tpu.matmul %557, %558, %cst_184 {dimension_numbers = #tpu.dot_dimension_numbers<[1], [0], [0], [1], [0, 0, 1, 1], [], []>} : vector<2x128xf32>, vector<128x2xf32>, vector<2x2xf32> -> vector<2x2xf32>
    %c0_185 = arith.constant 0 : index
    %c0_186 = arith.constant 0 : index
    %560 = vector.load %arg5[%c0_185, %c0_186] : memref<1x2xf32, #tpu.memory_space<vmem>>, vector<1x2xf32>
    %561 = vector.broadcast %560 : vector<1x2xf32> to vector<2x2xf32>
    %562 = arith.addf %559, %561 : vector<2x2xf32>
    %c0_187 = arith.constant 0 : index
    %c0_188 = arith.constant 0 : index
    %563 = vector.load %arg6[%c0_187, %c0_188] : memref<2x2xf32, #tpu.memory_space<vmem>>, vector<2x2xf32>
    tpu.vector_store %arg6[%c0_187, %c0_188], %562 {strides = array<i32>} : memref<2x2xf32, #tpu.memory_space<vmem>>, vector<2x2xf32>,
    return
  }
}

</mosaic_0001>

<bundles_post_ra>
// kernel: rnn_forward.1
= control target key start
LH: loop header
LB: loop body
LE: loop exit
PB: predicated region body
PF: predicated region fallthrough
CT: control target
= control target key end

     0   :  { %11 = vsyncpa [#allocation3], 0  ;;  %s6904_s0 = inlined_call_operand.vmem [shape: f32[8,2,512], index: 0, kind: input, shape index: {}]   ;;  %s6905_s1 = inlined_call_operand.hbm [shape: f32[128,512], index: 1, kind: input, shape index: {}]   ;;  %s6906_s2 = inlined_call_operand.hbm [shape: f32[256,512], index: 2, kind: input, shape index: {}]   ;;  %s6907_s3 = inlined_call_operand.vmem [shape: f32[1,512], index: 3, kind: input, shape index: {}]   ;;  %s6908_s4 = inlined_call_operand.vmem [shape: f32[128,2], index: 4, kind: input, shape index: {}]   ;;  %s6909_s5 = inlined_call_operand.vmem [shape: f32[1,2], index: 5, kind: input, shape index: {}]   ;;  %s6910_s6 = inlined_call_operand.hbm [shape: f32[2,2], index: 6, kind: output, shape index: {}]  }
   0x1   :  { %12 = vsyncpa [#allocation6], 0 }
   0x2   :  { %13 = vsyncpa [#allocation4], 0  ;;  %s20_s23 = sshll.u32 %s6905_s1, 4  ;;  %s3524_s24 = smov [#allocation2]   ;;  %s21_s23 = int_to_ptr.hbm [resolvable:$true] %s20_s23 }
   0x3   :  { %s22_s25 = sshll.u32 %s3524_s24, 4  ;;  %s33_s28 = sshll.u32 %s6906_s2, 4  ;;  %s23_s25 = int_to_ptr.vmem [resolvable:$true] %s22_s25  ;;  %s34_s28 = int_to_ptr.hbm [resolvable:$true] %s33_s28 }
   0x4   :  { %s3525_s29 = smov 512   ;;  %s3526_s30 = smov 32  }
   0x5   :  { %28 = dma.hbm_to_vmem [thread:$0]  %s21_s23, 8192, %s23_s25, [#allocation3], %s3525_s29, %s3525_s29, %s3526_s30  }
   0x6   :  { %s3527_s7 = smov [#allocation5]  }
   0x7   :  { %s35_s8 = sshll.u32 %s3527_s7, 4  ;;  %s36_s8 = int_to_ptr.vmem [resolvable:$true] %s35_s8 }
   0x8   :  { %41 = dma.hbm_to_vmem [thread:$0]  %s34_s28, 16384, %s36_s8, [#allocation6], %s3525_s29, %s3525_s29, %s3526_s30  }
   0x9   :  { %3518 = dma.done.wait [#allocation3], 8192  }
   0xa   :  { %3519 = vsyncadd [#allocation3], 4294959104 }
   0xb   :  { %3520 = dma.done.wait [#allocation6], 16384  }
   0xc   :  { %3521 = vsyncadd [#allocation6], 4294950912  ;;  %v3571_v0 = vld [vmem:[#allocation2 + $0x1f0] sm:$0xff]  ;;  %v3573_v1 = vld [vmem:[#allocation2 + $0x1f8] sm:$0xff]  ;;  %v6916_v63 = vmov 0.0   ;;  %vm346_vm0 = vcmask 1041408  }
   0xd   :  { %7466 = vst [vmem:[#allocation11_spill] sm:$0xff] %v3571_v0  ;;  %v3575_v2 = vld [vmem:[#allocation2 + $0x1d0] sm:$0xff]  ;;  %299 = vmatpush.msra.mxu2 %v3571_v0  ;;  %319 = vmatpush.msra.mxu3 %v3573_v1  ;;  %v3579_v3 = vld [vmem:[#allocation2 + $0x1d8] sm:$0xff]  ;;  %v3585_v6 = vld [vmem:[#allocation2 + $0x1e8] sm:$0xff]  ;;  %vm348_vm1 = vcmask 1045508   ;;  %vm350_vm2 = vcmask 1043456  }
   0xe   :  { %7467 = vst [vmem:[#allocation12_spill] sm:$0xff] %v3575_v2  ;;  %v3581_v4 = vld [vmem:[#allocation2 + $0x1b0] sm:$0xff]  ;;  %v3583_v5 = vld [vmem:[#allocation2 + $0x1b8] sm:$0xff]  ;;  %v3589_v7 = vld [vmem:[#allocation2 + $0x1e0] sm:$0xff]  ;;  %279 = vmatpush.msra.mxu1 %v3585_v6  ;;  %s3529_s28 = smov [#allocation7]   ;;  %s2685_s8 = sshll.u32 %s6910_s6, 4  ;;  %s2686_s8 = int_to_ptr.hbm [resolvable:$true] %s2685_s8 }
   0xf   :  { %7468 = vst [vmem:[#allocation13_spill] sm:$0xff] %v3581_v4  ;;  %300 = vmatpush.msra.mxu2 %v3575_v2  ;;  %320 = vmatpush.msra.mxu3 %v3579_v3  ;;  %v3591_v8 = vld [vmem:[#allocation2 + $0x1c8] sm:$0xff]  ;;  %v3594_v9 = vld [vmem:[#allocation2 + $0x190] sm:$0xff]  ;;  %v3596_v10 = vld [vmem:[#allocation2 + $0x198] sm:$0xff]  ;;  %s2683_s29 = sshll.u32 %s3529_s28, 4  ;;  %vm2676_vm3 = vcmask 9216   ;;  %s2684_s29 = int_to_ptr.vmem [resolvable:$true] %s2683_s29 }
  0x10   :  { %7469 = vst [vmem:[#allocation14_spill] sm:$0xff] %v3589_v7  ;;  %259 = vmatpush.msra.mxu0 %v3589_v7  ;;  %v3599_v11 = vld [vmem:[#allocation2 + $0x1c0] sm:$0xff]  ;;  %v3603_v12 = vld [vmem:[#allocation2 + $0x1a8] sm:$0xff]  ;;  %280 = vmatpush.msra.mxu1 %v3591_v8  ;;  %v3608_v14 = vld [vmem:[#allocation2 + $0x170] sm:$0xff] }
  0x11   :  { %7470 = vst [vmem:[#allocation15_spill] sm:$0xff] %v3594_v9  ;;  %301 = vmatpush.msra.mxu2 %v3581_v4  ;;  %321 = vmatpush.msra.mxu3 %v3583_v5  ;;  %v3605_v13 = vld [vmem:[#allocation2 + $0x1a0] sm:$0xff]  ;;  %v3610_v15 = vld [vmem:[#allocation2 + $0x178] sm:$0xff]  ;;  %v3615_v16 = vld [vmem:[#allocation2 + $0x188] sm:$0xff] }
  0x12   :  { %7471 = vst [vmem:[#allocation16_spill] sm:$0xff] %v3599_v11  ;;  %260 = vmatpush.msra.mxu0 %v3599_v11  ;;  %v3617_v17 = vld [vmem:[#allocation2 + $0x180] sm:$0xff]  ;;  %281 = vmatpush.msra.mxu1 %v3603_v12  ;;  %v3620_v18 = vld [vmem:[#allocation2 + $0x150] sm:$0xff]  ;;  %v3622_v19 = vld [vmem:[#allocation2 + $0x158] sm:$0xff] }
  0x13   :  { %7472 = vst [vmem:[#allocation17_spill] sm:$0xff] %v3605_v13  ;;  %302 = vmatpush.msra.mxu2 %v3594_v9  ;;  %322 = vmatpush.msra.mxu3 %v3596_v10  ;;  %v3627_v20 = vld [vmem:[#allocation2 + $0x168] sm:$0xff]  ;;  %v3629_v21 = vld [vmem:[#allocation2 + $0x160] sm:$0xff]  ;;  %v3632_v22 = vld [vmem:[#allocation2 + $0x130] sm:$0xff] }
  0x14   :  { %7473 = vst [vmem:[#allocation18_spill] sm:$0xff] %v3608_v14  ;;  %261 = vmatpush.msra.mxu0 %v3605_v13  ;;  %282 = vmatpush.msra.mxu1 %v3615_v16  ;;  %v3634_v23 = vld [vmem:[#allocation2 + $0x138] sm:$0xff]  ;;  %v3639_v24 = vld [vmem:[#allocation2 + $0x148] sm:$0xff]  ;;  %v3641_v25 = vld [vmem:[#allocation2 + $0x140] sm:$0xff] }
  0x15   :  { %7474 = vst [vmem:[#allocation19_spill] sm:$0xff] %v3617_v17  ;;  %303 = vmatpush.msra.mxu2 %v3608_v14  ;;  %323 = vmatpush.msra.mxu3 %v3610_v15  ;;  %v3644_v26 = vld [vmem:[#allocation2 + $0x110] sm:$0xff]  ;;  %v3646_v27 = vld [vmem:[#allocation2 + $0x118] sm:$0xff]  ;;  %v3651_v28 = vld [vmem:[#allocation2 + $0x128] sm:$0xff] }
  0x16   :  { %7475 = vst [vmem:[#allocation20_spill] sm:$0xff] %v3620_v18  ;;  %262 = vmatpush.msra.mxu0 %v3617_v17  ;;  %283 = vmatpush.msra.mxu1 %v3627_v20  ;;  %v3653_v29 = vld [vmem:[#allocation2 + $0x120] sm:$0xff]  ;;  %v3656_v30 = vld [vmem:[#allocation2 + $0xf0] sm:$0xff]  ;;  %v3658_v31 = vld [vmem:[#allocation2 + $0xf8] sm:$0xff] }
  0x17   :  { %7476 = vst [vmem:[#allocation21_spill] sm:$0xff] %v3629_v21  ;;  %304 = vmatpush.msra.mxu2 %v3620_v18  ;;  %324 = vmatpush.msra.mxu3 %v3622_v19  ;;  %v3663_v32 = vld [vmem:[#allocation2 + $0x108] sm:$0xff]  ;;  %v3665_v33 = vld [vmem:[#allocation2 + $0x100] sm:$0xff]  ;;  %v3668_v34 = vld [vmem:[#allocation2 + $0xd0] sm:$0xff] }
  0x18   :  { %7477 = vst [vmem:[#allocation22_spill] sm:$0xff] %v3632_v22  ;;  %263 = vmatpush.msra.mxu0 %v3629_v21  ;;  %284 = vmatpush.msra.mxu1 %v3639_v24  ;;  %v3670_v35 = vld [vmem:[#allocation2 + $0xd8] sm:$0xff]  ;;  %v3675_v36 = vld [vmem:[#allocation2 + $0xe8] sm:$0xff]  ;;  %v3677_v37 = vld [vmem:[#allocation2 + $0xe0] sm:$0xff] }
  0x19   :  { %7478 = vst [vmem:[#allocation23_spill] sm:$0xff] %v3641_v25  ;;  %305 = vmatpush.msra.mxu2 %v3632_v22  ;;  %325 = vmatpush.msra.mxu3 %v3634_v23  ;;  %v3680_v38 = vld [vmem:[#allocation2 + $0xb0] sm:$0xff]  ;;  %v3682_v39 = vld [vmem:[#allocation2 + $0xb8] sm:$0xff]  ;;  %v3687_v40 = vld [vmem:[#allocation2 + $0xc8] sm:$0xff] }
  0x1a   :  { %7479 = vst [vmem:[#allocation24_spill] sm:$0xff] %v3644_v26  ;;  %264 = vmatpush.msra.mxu0 %v3641_v25  ;;  %285 = vmatpush.msra.mxu1 %v3651_v28  ;;  %v3689_v41 = vld [vmem:[#allocation2 + $0xc0] sm:$0xff]  ;;  %v3692_v42 = vld [vmem:[#allocation2 + $0x90] sm:$0xff]  ;;  %v3694_v43 = vld [vmem:[#allocation2 + $0x98] sm:$0xff] }
  0x1b   :  { %7480 = vst [vmem:[#allocation25_spill] sm:$0xff] %v3653_v29  ;;  %306 = vmatpush.msra.mxu2 %v3644_v26  ;;  %326 = vmatpush.msra.mxu3 %v3646_v27  ;;  %v3699_v44 = vld [vmem:[#allocation2 + $0xa8] sm:$0xff]  ;;  %v3701_v45 = vld [vmem:[#allocation2 + $0xa0] sm:$0xff]  ;;  %v3704_v46 = vld [vmem:[#allocation2 + $0x70] sm:$0xff] }
  0x1c   :  { %7481 = vst [vmem:[#allocation26_spill] sm:$0xff] %v3656_v30  ;;  %265 = vmatpush.msra.mxu0 %v3653_v29  ;;  %286 = vmatpush.msra.mxu1 %v3663_v32  ;;  %v3706_v47 = vld [vmem:[#allocation2 + $0x78] sm:$0xff]  ;;  %v3711_v48 = vld [vmem:[#allocation2 + $0x88] sm:$0xff]  ;;  %v3713_v49 = vld [vmem:[#allocation2 + $0x80] sm:$0xff] }
  0x1d   :  { %7482 = vst [vmem:[#allocation27_spill] sm:$0xff] %v3665_v33  ;;  %307 = vmatpush.msra.mxu2 %v3656_v30  ;;  %327 = vmatpush.msra.mxu3 %v3658_v31  ;;  %v3716_v50 = vld [vmem:[#allocation2 + $0x50] sm:$0xff]  ;;  %v3718_v51 = vld [vmem:[#allocation2 + $0x58] sm:$0xff]  ;;  %v3723_v52 = vld [vmem:[#allocation2 + $0x68] sm:$0xff] }
  0x1e   :  { %7483 = vst [vmem:[#allocation28_spill] sm:$0xff] %v3668_v34  ;;  %266 = vmatpush.msra.mxu0 %v3665_v33  ;;  %287 = vmatpush.msra.mxu1 %v3675_v36  ;;  %v3725_v53 = vld [vmem:[#allocation2 + $0x60] sm:$0xff]  ;;  %v3728_v54 = vld [vmem:[#allocation2 + $0x30] sm:$0xff]  ;;  %v3730_v55 = vld [vmem:[#allocation2 + $0x38] sm:$0xff] }
  0x1f   :  { %7484 = vst [vmem:[#allocation29_spill] sm:$0xff] %v3677_v37  ;;  %308 = vmatpush.msra.mxu2 %v3668_v34  ;;  %328 = vmatpush.msra.mxu3 %v3670_v35  ;;  %v3735_v56 = vld [vmem:[#allocation2 + $0x48] sm:$0xff]  ;;  %v3737_v57 = vld [vmem:[#allocation2 + $0x40] sm:$0xff]  ;;  %v3740_v58 = vld [vmem:[#allocation2 + $0x10] sm:$0xff] }
  0x20   :  { %7485 = vst [vmem:[#allocation30_spill] sm:$0xff] %v3680_v38  ;;  %267 = vmatpush.msra.mxu0 %v3677_v37  ;;  %288 = vmatpush.msra.mxu1 %v3687_v40  ;;  %v3742_v59 = vld [vmem:[#allocation2 + $0x18] sm:$0xff]  ;;  %v3749_v60 = vld [vmem:[#allocation2 + $0x28] sm:$0xff]  ;;  %v3751_v61 = vld [vmem:[#allocation2 + $0x20] sm:$0xff] }
  0x21   :  { %7486 = vst [vmem:[#allocation31_spill] sm:$0xff] %v3689_v41  ;;  %309 = vmatpush.msra.mxu2 %v3680_v38  ;;  %329 = vmatpush.msra.mxu3 %v3682_v39  ;;  %v3755_v62 = vld [vmem:[#allocation5 + $0x3e8] sm:$0xff]  ;;  %v3796_v34 = vld [vmem:[#allocation5 + $0x1a0] sm:$0xff] }
  0x22   :  { %7487 = vst [vmem:[#allocation32_spill] sm:$0xff] %v3692_v42  ;;  %268 = vmatpush.msra.mxu0 %v3689_v41  ;;  %289 = vmatpush.msra.mxu1 %v3699_v44  ;;  %v3786_v38 = vld [vmem:[#allocation5 + $0x1c8] sm:$0xff]  ;;  %v3800_v30 = vld [vmem:[#allocation5 + $0x380] sm:$0xff] }
  0x23   :  { %7488 = vst [vmem:[#allocation33_spill] sm:$0xff] %v3701_v45  ;;  %310 = vmatpush.msra.mxu2 %v3692_v42  ;;  %330 = vmatpush.msra.mxu3 %v3694_v43  ;;  %v3778_v42 = vld [vmem:[#allocation5 + $0x3c0] sm:$0xff]  ;;  %v3798_v41 = vld [vmem:[#allocation5 + $0x1a8] sm:$0xff] }
  0x24   :  { %7489 = vst [vmem:[#allocation34_spill] sm:$0xff] %v3704_v46  ;;  %269 = vmatpush.msra.mxu0 %v3701_v45  ;;  %290 = vmatpush.msra.mxu1 %v3711_v48  ;;  %v3790_v45 = vld [vmem:[#allocation5 + $0x388] sm:$0xff]  ;;  %v3812_v26 = vld [vmem:[#allocation5 + $0x360] sm:$0xff] }
  0x25   :  { %7490 = vst [vmem:[#allocation35_spill] sm:$0xff] %v3713_v49  ;;  %311 = vmatpush.msra.mxu2 %v3704_v46  ;;  %331 = vmatpush.msra.mxu3 %v3706_v47  ;;  %v3772_v46 = vld [vmem:[#allocation5 + $0x1e0] sm:$0xff]  ;;  %v3802_v37 = vld [vmem:[#allocation5 + $0x368] sm:$0xff] }
  0x26   :  { %7491 = vst [vmem:[#allocation36_spill] sm:$0xff] %v3716_v50  ;;  %270 = vmatpush.msra.mxu0 %v3713_v49  ;;  %291 = vmatpush.msra.mxu1 %v3723_v52  ;;  %v3784_v49 = vld [vmem:[#allocation5 + $0x1c0] sm:$0xff]  ;;  %v3814_v33 = vld [vmem:[#allocation5 + $0x348] sm:$0xff] }
  0x27   :  { %7492 = vst [vmem:[#allocation37_spill] sm:$0xff] %v3725_v53  ;;  %312 = vmatpush.msra.mxu2 %v3716_v50  ;;  %332 = vmatpush.msra.mxu3 %v3718_v51  ;;  %v3761_v50 = vld [vmem:[#allocation2] sm:$0xff]  ;;  %v3826_v29 = vld [vmem:[#allocation5 + $0x328] sm:$0xff] }
  0x28   :  { %7493 = vst [vmem:[#allocation38_spill] sm:$0xff] %v3728_v54  ;;  %271 = vmatpush.msra.mxu0 %v3725_v53  ;;  %292 = vmatpush.msra.mxu1 %v3735_v56  ;;  %v7500_v53 = vmov 0.0   ;;  %v3824_v22 = vld [vmem:[#allocation5 + $0x340] sm:$0xff]  ;;  %v3838_v25 = vld [vmem:[#allocation5 + $0x308] sm:$0xff] }
  0x29   :  { %7494 = vst [vmem:[#allocation39_spill] sm:$0xff] %v3737_v57  ;;  %313 = vmatpush.msra.mxu2 %v3728_v54  ;;  %333 = vmatpush.msra.mxu3 %v3730_v55  ;;  %v3759_v54 = vld [vmem:[#allocation2 + $0x8] sm:$0xff]  ;;  %v3836_v18 = vld [vmem:[#allocation5 + $0x320] sm:$0xff] }
  0x2a   :  { %7495 = vst [vmem:[#allocation40_spill] sm:$0xff] %v3740_v58  ;;  %272 = vmatpush.msra.mxu0 %v3737_v57  ;;  %293 = vmatpush.msra.mxu1 %v3749_v60  ;;  %v3765_v57 = vld [vmem:[#allocation5 + $0x3e0] sm:$0xff]  ;;  %v3850_v21 = vld [vmem:[#allocation5 + $0x2e8] sm:$0xff] }
  0x2b   :  { %7496 = vst [vmem:[#allocation41_spill] sm:$0xff] %v3751_v61  ;;  %314 = vmatpush.msra.mxu2 %v3740_v58  ;;  %334 = vmatpush.msra.mxu3 %v3742_v59  ;;  %v3768_v58 = vld [vmem:[#allocation5 + $0x3c8] sm:$0xff]  ;;  %v3848_v14 = vld [vmem:[#allocation5 + $0x300] sm:$0xff] }
  0x2c   :  { %315 = vmatmul.f32.vlgmr.msra.gmra.mxu2 %v6916_v63  ;;  %335 = vmatmul.f32.vlgmr.msra.gmra.mxu3 %v6916_v63  ;;  %7497 = vst [vmem:[#allocation42_spill] sm:$0xff] %v3761_v50  ;;  %v3774_v63 = vld [vmem:[#allocation5 + $0x1e8] sm:$0xff]  ;;  %v3860_v9 = vld [vmem:[#allocation5 + $0x2e0] sm:$0xff] }
  0x2d   :  { %273 = vmatpush.msra.mxu0 %v3751_v61  ;;  %439 = vmatpush.msrb.mxu3 %v3755_v62  ;;  %7498 = vst [vmem:[#allocation43_spill] sm:$0xff] %v3772_v46  ;;  %v3780_v61 = vld [vmem:[#allocation5 + $0x3a8] sm:$0xff]  ;;  %v3872_v4 = vld [vmem:[#allocation5 + $0x2c0] sm:$0xff] }
  0x2e   :  { %294 = vmatpush.msra.mxu1 %v3759_v54  ;;  %7499 = vst [vmem:[#allocation44_spill] sm:$0xff] %v3774_v63  ;;  %419 = vmatpush.msrb.mxu2 %v3774_v63  ;;  %v3808_v63 = vld [vmem:[#allocation5 + $0x180] sm:$0xff]  ;;  %v3862_v17 = vld [vmem:[#allocation5 + $0x2c8] sm:$0xff] }
  0x2f   :  { %274 = vmatpush.msra.mxu0 %v3761_v50  ;;  %295 = vmatmul.f32.vlgmr.msra.gmra.mxu1 %v7500_v53  ;;  %7501 = vst [vmem:[#allocation45_spill] sm:$0xff] %v3784_v49  ;;  %v3788_v50 = vld [vmem:[#allocation5 + $0x3a0] sm:$0xff]  ;;  %v3874_v13 = vld [vmem:[#allocation5 + $0x2a8] sm:$0xff] }
  0x30   :  { %275 = vmatmul.f32.vlgmr.msra.gmra.mxu0 %v7500_v53  ;;  %399 = vmatpush.msrb.mxu1 %v3765_v57  ;;  %7502 = vst [vmem:[#allocation46_spill] sm:$0xff] %v3786_v38  ;;  %v3884_v2 = vld [vmem:[#allocation5 + $0x2a0] sm:$0xff]  ;;  %v3886_v11 = vld [vmem:[#allocation5 + $0x288] sm:$0xff] }
  0x31   :  { %440 = vmatpush.msrb.mxu3 %v3768_v58  ;;  %379 = vmatpush.msrb.mxu0 %v3772_v46  ;;  %7503 = vst [vmem:[#allocation47_spill] sm:$0xff] %v3796_v34  ;;  %v3810_v46 = vld [vmem:[#allocation5 + $0x188] sm:$0xff]  ;;  %v3896_v0 = vld [vmem:[#allocation5 + $0x280] sm:$0xff] }
  0x32   :  { %400 = vmatpush.msrb.mxu1 %v3778_v42  ;;  %7504 = vst [vmem:[#allocation48_spill] sm:$0xff] %v3798_v41  ;;  %420 = vmatpush.msrb.mxu2 %v3786_v38  ;;  %v3820_v38 = vld [vmem:[#allocation5 + $0x160] sm:$0xff]  ;;  %v3898_v7 = vld [vmem:[#allocation5 + $0x268] sm:$0xff] }
  0x33   :  { %441 = vmatpush.msrb.mxu3 %v3780_v61  ;;  %380 = vmatpush.msrb.mxu0 %v3784_v49  ;;  %7505 = vst [vmem:[#allocation49_spill] sm:$0xff] %v3808_v63  ;;  %v3822_v49 = vld [vmem:[#allocation5 + $0x168] sm:$0xff] }
  0x34   :  { %401 = vmatpush.msrb.mxu1 %v3788_v50  ;;  %7506 = vst [vmem:[#allocation50_spill] sm:$0xff] %v3810_v46  ;;  %421 = vmatpush.msrb.mxu2 %v3798_v41  ;;  %v3832_v41 = vld [vmem:[#allocation5 + $0x140] sm:$0xff] }
  0x35   :  { %442 = vmatpush.msrb.mxu3 %v3790_v45  ;;  %381 = vmatpush.msrb.mxu0 %v3796_v34  ;;  %7507 = vst [vmem:[#allocation51_spill] sm:$0xff] %v3820_v38  ;;  %v3834_v34 = vld [vmem:[#allocation5 + $0x148] sm:$0xff] }
  0x36   :  { %402 = vmatpush.msrb.mxu1 %v3800_v30  ;;  %7508 = vst [vmem:[#allocation52_spill] sm:$0xff] %v3822_v49  ;;  %422 = vmatpush.msrb.mxu2 %v3810_v46  ;;  %v3844_v46 = vld [vmem:[#allocation5 + $0x120] sm:$0xff] }
  0x37   :  { %443 = vmatpush.msrb.mxu3 %v3802_v37  ;;  %382 = vmatpush.msrb.mxu0 %v3808_v63  ;;  %7509 = vst [vmem:[#allocation53_spill] sm:$0xff] %v3832_v41  ;;  %v3846_v63 = vld [vmem:[#allocation5 + $0x128] sm:$0xff] }
  0x38   :  { %403 = vmatpush.msrb.mxu1 %v3812_v26  ;;  %7510 = vst [vmem:[#allocation54_spill] sm:$0xff] %v3834_v34  ;;  %423 = vmatpush.msrb.mxu2 %v3822_v49  ;;  %v3856_v49 = vld [vmem:[#allocation5 + $0x100] sm:$0xff] }
  0x39   :  { %444 = vmatpush.msrb.mxu3 %v3814_v33  ;;  %383 = vmatpush.msrb.mxu0 %v3820_v38  ;;  %7511 = vst [vmem:[#allocation55_spill] sm:$0xff] %v3844_v46  ;;  %v3858_v38 = vld [vmem:[#allocation5 + $0x108] sm:$0xff] }
  0x3a   :  { %404 = vmatpush.msrb.mxu1 %v3824_v22  ;;  %7512 = vst [vmem:[#allocation56_spill] sm:$0xff] %v3846_v63  ;;  %424 = vmatpush.msrb.mxu2 %v3834_v34  ;;  %v3868_v34 = vld [vmem:[#allocation5 + $0xe0] sm:$0xff] }
  0x3b   :  { %445 = vmatpush.msrb.mxu3 %v3826_v29  ;;  %384 = vmatpush.msrb.mxu0 %v3832_v41  ;;  %7513 = vst [vmem:[#allocation57_spill] sm:$0xff] %v3856_v49  ;;  %v3870_v41 = vld [vmem:[#allocation5 + $0xe8] sm:$0xff] }
  0x3c   :  { %405 = vmatpush.msrb.mxu1 %v3836_v18  ;;  %7514 = vst [vmem:[#allocation58_spill] sm:$0xff] %v3858_v38  ;;  %425 = vmatpush.msrb.mxu2 %v3846_v63  ;;  %v3880_v63 = vld [vmem:[#allocation5 + $0xc0] sm:$0xff] }
  0x3d   :  { %446 = vmatpush.msrb.mxu3 %v3838_v25  ;;  %7515 = vst [vmem:[#allocation59_spill] sm:$0xff] %v3862_v17  ;;  %385 = vmatpush.msrb.mxu0 %v3844_v46  ;;  %v3882_v46 = vld [vmem:[#allocation5 + $0xc8] sm:$0xff] }
  0x3e   :  { %406 = vmatpush.msrb.mxu1 %v3848_v14  ;;  %7516 = vst [vmem:[#allocation60_spill] sm:$0xff] %v3868_v34  ;;  %426 = vmatpush.msrb.mxu2 %v3858_v38  ;;  %v3892_v38 = vld [vmem:[#allocation5 + $0xa0] sm:$0xff] }
  0x3f   :  { %447 = vmatpush.msrb.mxu3 %v3850_v21  ;;  %7517 = vst [vmem:[#allocation61_spill] sm:$0xff] %v3870_v41  ;;  %386 = vmatpush.msrb.mxu0 %v3856_v49  ;;  %v3894_v49 = vld [vmem:[#allocation5 + $0xa8] sm:$0xff] }
  0x40   :  { %7518 = vst [vmem:[#allocation62_spill] sm:$0xff] %v3874_v13  ;;  %407 = vmatpush.msrb.mxu1 %v3860_v9  ;;  %427 = vmatpush.msrb.mxu2 %v3870_v41  ;;  %v3904_v41 = vld [vmem:[#allocation5 + $0x80] sm:$0xff] }
  0x41   :  { %448 = vmatpush.msrb.mxu3 %v3862_v17  ;;  %7519 = vst [vmem:[#allocation63_spill] sm:$0xff] %v3880_v63  ;;  %387 = vmatpush.msrb.mxu0 %v3868_v34  ;;  %v3906_v34 = vld [vmem:[#allocation5 + $0x88] sm:$0xff] }
  0x42   :  { %7520 = vst [vmem:[#allocation64_spill] sm:$0xff] %v3882_v46  ;;  %408 = vmatpush.msrb.mxu1 %v3872_v4  ;;  %428 = vmatpush.msrb.mxu2 %v3882_v46  ;;  %v3910_v17 = vld [vmem:[#allocation5 + $0x248] sm:$0xff]  ;;  %v3916_v46 = vld [vmem:[#allocation5 + $0x60] sm:$0xff] }
  0x43   :  { %7521 = vst [vmem:[#allocation65_spill] sm:$0xff] %v3884_v2  ;;  %449 = vmatpush.msrb.mxu3 %v3874_v13  ;;  %388 = vmatpush.msrb.mxu0 %v3880_v63  ;;  %v3908_v13 = vld [vmem:[#allocation5 + $0x260] sm:$0xff]  ;;  %v3918_v63 = vld [vmem:[#allocation5 + $0x68] sm:$0xff] }
  0x44   :  { %7522 = vst [vmem:[#allocation66_spill] sm:$0xff] %v3886_v11  ;;  %409 = vmatpush.msrb.mxu1 %v3884_v2  ;;  %429 = vmatpush.msrb.mxu2 %v3894_v49  ;;  %v3922_v2 = vld [vmem:[#allocation5 + $0x228] sm:$0xff] }
  0x45   :  { %7523 = vst [vmem:[#allocation67_spill] sm:$0xff] %v3892_v38  ;;  %450 = vmatpush.msrb.mxu3 %v3886_v11  ;;  %389 = vmatpush.msrb.mxu0 %v3892_v38  ;;  %v3920_v11 = vld [vmem:[#allocation5 + $0x240] sm:$0xff]  ;;  %v3930_v38 = vld [vmem:[#allocation5 + $0x48] sm:$0xff] }
  0x46   :  { %7524 = vst [vmem:[#allocation68_spill] sm:$0xff] %v3894_v49  ;;  %410 = vmatpush.msrb.mxu1 %v3896_v0  ;;  %430 = vmatpush.msrb.mxu2 %v3906_v34  ;;  %v3928_v49 = vld [vmem:[#allocation5 + $0x40] sm:$0xff] }
  0x47   :  { %7525 = vst [vmem:[#allocation69_spill] sm:$0xff] %v3896_v0  ;;  %451 = vmatpush.msrb.mxu3 %v3898_v7  ;;  %390 = vmatpush.msrb.mxu0 %v3904_v41  ;;  %v3934_v0 = vld [vmem:[#allocation5 + $0x208] sm:$0xff] }
  0x48   :  { %7526 = vst [vmem:[#allocation70_spill] sm:$0xff] %v3898_v7  ;;  %411 = vmatpush.msrb.mxu1 %v3908_v13  ;;  %v3932_v7 = vld [vmem:[#allocation5 + $0x220] sm:$0xff]  ;;  %431 = vmatpush.msrb.mxu2 %v3918_v63 }
  0x49   :  { %7527 = vst [vmem:[#allocation71_spill] sm:$0xff] %v3904_v41  ;;  %452 = vmatpush.msrb.mxu3 %v3910_v17  ;;  %391 = vmatpush.msrb.mxu0 %v3916_v46  ;;  %v3942_v41 = vld [vmem:[#allocation5 + $0x200] sm:$0xff] }
  0x4a   :  { %7528 = vst [vmem:[#allocation72_spill] sm:$0xff] %v3906_v34  ;;  %412 = vmatpush.msrb.mxu1 %v3920_v11  ;;  %v3940_v34 = vld [vmem:[#allocation5 + $0x3f8] sm:$0xff]  ;;  %432 = vmatpush.msrb.mxu2 %v3930_v38 }
  0x4b   :  { %7529 = vst [vmem:[#allocation73_spill] sm:$0xff] %v3910_v17  ;;  %453 = vmatpush.msrb.mxu3 %v3922_v2  ;;  %392 = vmatpush.msrb.mxu0 %v3928_v49  ;;  %v3948_v17 = vld [vmem:[#allocation5 + $0x3f0] sm:$0xff] }
  0x4c   :  { %7530 = vst [vmem:[#allocation74_spill] sm:$0xff] %v3916_v46  ;;  %413 = vmatpush.msrb.mxu1 %v3932_v7  ;;  %v3950_v46 = vld [vmem:[#allocation5 + $0x3d8] sm:$0xff] }
  0x4d   :  { %7531 = vst [vmem:[#allocation75_spill] sm:$0xff] %v3918_v63  ;;  %454 = vmatpush.msrb.mxu3 %v3934_v0  ;;  %v3954_v63 = vld [vmem:[#allocation5 + $0x3d0] sm:$0xff] }
  0x4e   :  { %7532 = vst [vmem:[#allocation76_spill] sm:$0xff] %v3922_v2  ;;  %414 = vmatpush.msrb.mxu1 %v3942_v41  ;;  %v3956_v2 = vld [vmem:[#allocation5 + $0x3b8] sm:$0xff]  ;;  %455 = vmatmul.f32.vlgmr.msrb.gmra.mxu3 %v7500_v53 }
  0x4f   :  { %7533 = vst [vmem:[#allocation77_spill] sm:$0xff] %v3928_v49  ;;  %519 = vmatpush.msra.mxu3 %v3940_v34  ;;  %v3963_v49 = vld [vmem:[#allocation5 + $0x398] sm:$0xff]  ;;  %415 = vmatmul.f32.vlgmr.msrb.gmra.mxu1 %v7500_v53 }
  0x50   :  { %7534 = vst [vmem:[#allocation78_spill] sm:$0xff] %v3930_v38  ;;  %479 = vmatpush.msra.mxu1 %v3948_v17  ;;  %v3961_v38 = vld [vmem:[#allocation5 + $0x3b0] sm:$0xff] }
  0x51   :  { %7535 = vst [vmem:[#allocation79_spill] sm:$0xff] %v3934_v0  ;;  %520 = vmatpush.msra.mxu3 %v3950_v46  ;;  %v3970_v0 = vld [vmem:[#allocation5 + $0x378] sm:$0xff] }
  0x52   :  { %7536 = vst [vmem:[#allocation80_spill] sm:$0xff] %v3940_v34  ;;  %480 = vmatpush.msra.mxu1 %v3954_v63  ;;  %v3968_v34 = vld [vmem:[#allocation5 + $0x390] sm:$0xff] }
  0x53   :  { %7537 = vst [vmem:[#allocation81_spill] sm:$0xff] %v3942_v41  ;;  %521 = vmatpush.msra.mxu3 %v3956_v2  ;;  %v3980_v41 = vld [vmem:[#allocation5 + $0x350] sm:$0xff] }
  0x54   :  { %7538 = vst [vmem:[#allocation82_spill] sm:$0xff] %v3948_v17  ;;  %481 = vmatpush.msra.mxu1 %v3961_v38  ;;  %v3974_v17 = vld [vmem:[#allocation5 + $0x370] sm:$0xff] }
  0x55   :  { %7539 = vst [vmem:[#allocation83_spill] sm:$0xff] %v3950_v46  ;;  %522 = vmatpush.msra.mxu3 %v3963_v49  ;;  %v3976_v46 = vld [vmem:[#allocation5 + $0x358] sm:$0xff] }
  0x56   :  { %7540 = vst [vmem:[#allocation84_spill] sm:$0xff] %v3954_v63  ;;  %482 = vmatpush.msra.mxu1 %v3968_v34  ;;  %v3982_v63 = vld [vmem:[#allocation5 + $0x338] sm:$0xff] }
  0x57   :  { %7541 = vst [vmem:[#allocation85_spill] sm:$0xff] %v3956_v2  ;;  %523 = vmatpush.msra.mxu3 %v3970_v0  ;;  %v3986_v2 = vld [vmem:[#allocation5 + $0x330] sm:$0xff] }
  0x58   :  { %7542 = vst [vmem:[#allocation86_spill] sm:$0xff] %v3961_v38  ;;  %483 = vmatpush.msra.mxu1 %v3974_v17  ;;  %v3988_v38 = vld [vmem:[#allocation5 + $0x318] sm:$0xff] }
  0x59   :  { %7543 = vst [vmem:[#allocation87_spill] sm:$0xff] %v3963_v49  ;;  %524 = vmatpush.msra.mxu3 %v3976_v46  ;;  %v3992_v49 = vld [vmem:[#allocation5 + $0x310] sm:$0xff] }
  0x5a   :  { %7544 = vst [vmem:[#allocation88_spill] sm:$0xff] %v3968_v34  ;;  %484 = vmatpush.msra.mxu1 %v3980_v41  ;;  %v3994_v34 = vld [vmem:[#allocation5 + $0x2f8] sm:$0xff] }
  0x5b   :  { %7545 = vst [vmem:[#allocation89_spill] sm:$0xff] %v3970_v0  ;;  %525 = vmatpush.msra.mxu3 %v3982_v63  ;;  %v3998_v0 = vld [vmem:[#allocation5 + $0x2f0] sm:$0xff] }
  0x5c   :  { %7546 = vst [vmem:[#allocation90_spill] sm:$0xff] %v3974_v17  ;;  %485 = vmatpush.msra.mxu1 %v3986_v2  ;;  %v4000_v17 = vld [vmem:[#allocation5 + $0x2d8] sm:$0xff] }
  0x5d   :  { %7547 = vst [vmem:[#allocation91_spill] sm:$0xff] %v3976_v46  ;;  %526 = vmatpush.msra.mxu3 %v3988_v38  ;;  %v4004_v46 = vld [vmem:[#allocation5 + $0x2d0] sm:$0xff] }
  0x5e   :  { %7548 = vst [vmem:[#allocation92_spill] sm:$0xff] %v3980_v41  ;;  %486 = vmatpush.msra.mxu1 %v3992_v49  ;;  %v4006_v41 = vld [vmem:[#allocation5 + $0x2b8] sm:$0xff] }
  0x5f   :  { %7549 = vst [vmem:[#allocation93_spill] sm:$0xff] %v3982_v63  ;;  %527 = vmatpush.msra.mxu3 %v3994_v34  ;;  %v4010_v63 = vld [vmem:[#allocation5 + $0x2b0] sm:$0xff] }
  0x60   :  { %7550 = vst [vmem:[#allocation94_spill] sm:$0xff] %v3986_v2  ;;  %487 = vmatpush.msra.mxu1 %v3998_v0  ;;  %v4012_v2 = vld [vmem:[#allocation5 + $0x298] sm:$0xff] }
  0x61   :  { %7551 = vst [vmem:[#allocation95_spill] sm:$0xff] %v3988_v38  ;;  %528 = vmatpush.msra.mxu3 %v4000_v17  ;;  %v4016_v38 = vld [vmem:[#allocation5 + $0x290] sm:$0xff] }
  0x62   :  { %7552 = vst [vmem:[#allocation96_spill] sm:$0xff] %v3992_v49  ;;  %488 = vmatpush.msra.mxu1 %v4004_v46  ;;  %v4018_v49 = vld [vmem:[#allocation5 + $0x278] sm:$0xff] }
  0x63   :  { %7553 = vst [vmem:[#allocation97_spill] sm:$0xff] %v3994_v34  ;;  %529 = vmatpush.msra.mxu3 %v4006_v41  ;;  %v4022_v34 = vld [vmem:[#allocation5 + $0x270] sm:$0xff] }
  0x64   :  { %7554 = vst [vmem:[#allocation98_spill] sm:$0xff] %v3998_v0  ;;  %489 = vmatpush.msra.mxu1 %v4010_v63  ;;  %v4024_v0 = vld [vmem:[#allocation5 + $0x258] sm:$0xff] }
  0x65   :  { %7555 = vst [vmem:[#allocation99_spill] sm:$0xff] %v4000_v17  ;;  %530 = vmatpush.msra.mxu3 %v4012_v2  ;;  %v4028_v17 = vld [vmem:[#allocation5 + $0x250] sm:$0xff] }
  0x66   :  { %7556 = vst [vmem:[#allocation100_spill] sm:$0xff] %v4006_v41  ;;  %490 = vmatpush.msra.mxu1 %v4016_v38  ;;  %v4033_v41 = vld [vmem:[#allocation5 + $0x20] sm:$0xff] }
  0x67   :  { %7557 = vst [vmem:[#allocation101_spill] sm:$0xff] %v4010_v63  ;;  %531 = vmatpush.msra.mxu3 %v4018_v49  ;;  %v4035_v63 = vld [vmem:[#allocation5 + $0x28] sm:$0xff]  ;;  %393 = vmatpush.msrb.mxu0 %v4033_v41 }
  0x68   :  { %7558 = vst [vmem:[#allocation102_spill] sm:$0xff] %v4012_v2  ;;  %491 = vmatpush.msra.mxu1 %v4022_v34  ;;  %v4037_v2 = vld [vmem:[#allocation5 + $0x230] sm:$0xff]  ;;  %433 = vmatpush.msrb.mxu2 %v4035_v63 }
  0x69   :  { %7559 = vst [vmem:[#allocation103_spill] sm:$0xff] %v4016_v38  ;;  %532 = vmatpush.msra.mxu3 %v4024_v0  ;;  %v4041_v38 = vld [vmem:[#allocation5 + $0x238] sm:$0xff] }
  0x6a   :  { %7560 = vst [vmem:[#allocation104_spill] sm:$0xff] %v4018_v49  ;;  %492 = vmatpush.msra.mxu1 %v4028_v17  ;;  %v4045_v49 = vld [vmem:[#allocation5] sm:$0xff] }
  0x6b   :  { %7561 = vst [vmem:[#allocation105_spill] sm:$0xff] %v4022_v34  ;;  %533 = vmatpush.msra.mxu3 %v4041_v38  ;;  %394 = vmatpush.msrb.mxu0 %v4045_v49  ;;  %v4053_v34 = vld [vmem:[#allocation5 + $0x218] sm:$0xff] }
  0x6c   :  { %7562 = vst [vmem:[#allocation106_spill] sm:$0xff] %v4024_v0  ;;  %493 = vmatpush.msra.mxu1 %v4037_v2  ;;  %v4047_v0 = vld [vmem:[#allocation5 + $0x8] sm:$0xff] }
  0x6d   :  { %7563 = vst [vmem:[#allocation107_spill] sm:$0xff] %v4028_v17  ;;  %434 = vmatpush.msrb.mxu2 %v4047_v0  ;;  %v4051_v17 = vld [vmem:[#allocation5 + $0x210] sm:$0xff]  ;;  %534 = vmatpush.msra.mxu3 %v4053_v34 }
  0x6e   :  { %7564 = vst [vmem:[#allocation108_spill] sm:$0xff] %v4033_v41  ;;  %v4055_v41 = vld [vmem:[#allocation5 + $0x1f0] sm:$0xff]  ;;  %494 = vmatpush.msra.mxu1 %v4051_v17  ;;  %535 = vmatmul.f32.vlgmr.msra.gmra.mxu3 %v7500_v53 }
  0x6f   :  { %7565 = vst [vmem:[#allocation109_spill] sm:$0xff] %v4035_v63  ;;  %v4059_v63 = vld [vmem:[#allocation5 + $0x1f8] sm:$0xff]  ;;  %459 = vmatpush.msra.mxu0 %v4055_v41  ;;  %619 = vmatpush.msrb.mxu3 %v3573_v1  ;;  %v4087_v1 = vld [vmem:[#allocation5 + $0x170] sm:$0xff] }
  0x70   :  { %7566 = vst [vmem:[#allocation110_spill] sm:$0xff] %v4041_v38  ;;  %499 = vmatpush.msra.mxu2 %v4059_v63  ;;  %v4063_v38 = vld [vmem:[#allocation5 + $0x1d0] sm:$0xff]  ;;  %579 = vmatpush.msrb.mxu1 %v3585_v6  ;;  %v4081_v6 = vld [vmem:[#allocation5 + $0x198] sm:$0xff] }
  0x71   :  { %7567 = vst [vmem:[#allocation111_spill] sm:$0xff] %v4045_v49  ;;  %v4065_v49 = vld [vmem:[#allocation5 + $0x1d8] sm:$0xff]  ;;  %460 = vmatpush.msra.mxu0 %v4063_v38  ;;  %620 = vmatpush.msrb.mxu3 %v3579_v3  ;;  %v4095_v3 = vld [vmem:[#allocation5 + $0x150] sm:$0xff] }
  0x72   :  { %7568 = vst [vmem:[#allocation112_spill] sm:$0xff] %v4047_v0  ;;  %500 = vmatpush.msra.mxu2 %v4065_v49  ;;  %v4071_v0 = vld [vmem:[#allocation5 + $0x1b0] sm:$0xff]  ;;  %580 = vmatpush.msrb.mxu1 %v3591_v8  ;;  %v4089_v8 = vld [vmem:[#allocation5 + $0x178] sm:$0xff] }
  0x73   :  { %7569 = vst [vmem:[#allocation113_spill] sm:$0xff] %v4053_v34  ;;  %v4073_v34 = vld [vmem:[#allocation5 + $0x1b8] sm:$0xff]  ;;  %461 = vmatpush.msra.mxu0 %v4071_v0  ;;  %621 = vmatpush.msrb.mxu3 %v3583_v5  ;;  %v4103_v5 = vld [vmem:[#allocation5 + $0x130] sm:$0xff] }
  0x74   :  { %7570 = vst [vmem:[#allocation114_spill] sm:$0xff] %v4059_v63  ;;  %501 = vmatpush.msra.mxu2 %v4073_v34  ;;  %v4079_v63 = vld [vmem:[#allocation5 + $0x190] sm:$0xff]  ;;  %581 = vmatpush.msrb.mxu1 %v3603_v12  ;;  %v4097_v12 = vld [vmem:[#allocation5 + $0x158] sm:$0xff] }
  0x75   :  { %462 = vmatpush.msra.mxu0 %v4079_v63  ;;  %622 = vmatpush.msrb.mxu3 %v3596_v10  ;;  %v4111_v10 = vld [vmem:[#allocation5 + $0x110] sm:$0xff] }
  0x76   :  { %502 = vmatpush.msra.mxu2 %v4081_v6  ;;  %582 = vmatpush.msrb.mxu1 %v3615_v16  ;;  %v4105_v16 = vld [vmem:[#allocation5 + $0x138] sm:$0xff] }
  0x77   :  { %463 = vmatpush.msra.mxu0 %v4087_v1  ;;  %623 = vmatpush.msrb.mxu3 %v3610_v15  ;;  %v4119_v15 = vld [vmem:[#allocation5 + $0xf0] sm:$0xff] }
  0x78   :  { %503 = vmatpush.msra.mxu2 %v4089_v8  ;;  %583 = vmatpush.msrb.mxu1 %v3627_v20  ;;  %v4113_v20 = vld [vmem:[#allocation5 + $0x118] sm:$0xff] }
  0x79   :  { %464 = vmatpush.msra.mxu0 %v4095_v3  ;;  %624 = vmatpush.msrb.mxu3 %v3622_v19  ;;  %v4127_v19 = vld [vmem:[#allocation5 + $0xd0] sm:$0xff] }
  0x7a   :  { %504 = vmatpush.msra.mxu2 %v4097_v12  ;;  %584 = vmatpush.msrb.mxu1 %v3639_v24  ;;  %v4121_v24 = vld [vmem:[#allocation5 + $0xf8] sm:$0xff]  ;;  %7571 = vst [vmem:[#allocation115_spill] sm:$0xff] %v4127_v19 }
  0x7b   :  { %465 = vmatpush.msra.mxu0 %v4103_v5  ;;  %625 = vmatpush.msrb.mxu3 %v3634_v23  ;;  %v4135_v23 = vld [vmem:[#allocation5 + $0xb0] sm:$0xff] }
  0x7c   :  { %505 = vmatpush.msra.mxu2 %v4105_v16  ;;  %585 = vmatpush.msrb.mxu1 %v3651_v28  ;;  %v4129_v28 = vld [vmem:[#allocation5 + $0xd8] sm:$0xff]  ;;  %7573 = vst [vmem:[#allocation117_spill] sm:$0xff] %v4135_v23 }
  0x7d   :  { %466 = vmatpush.msra.mxu0 %v4111_v10  ;;  %626 = vmatpush.msrb.mxu3 %v3646_v27  ;;  %7572 = vst [vmem:[#allocation116_spill] sm:$0xff] %v4129_v28  ;;  %v4143_v27 = vld [vmem:[#allocation5 + $0x90] sm:$0xff] }
  0x7e   :  { %506 = vmatpush.msra.mxu2 %v4113_v20  ;;  %586 = vmatpush.msrb.mxu1 %v3663_v32  ;;  %v4137_v32 = vld [vmem:[#allocation5 + $0xb8] sm:$0xff]  ;;  %7575 = vst [vmem:[#allocation119_spill] sm:$0xff] %v4143_v27 }
  0x7f   :  { %467 = vmatpush.msra.mxu0 %v4119_v15  ;;  %627 = vmatpush.msrb.mxu3 %v3658_v31  ;;  %7574 = vst [vmem:[#allocation118_spill] sm:$0xff] %v4137_v32  ;;  %v4151_v31 = vld [vmem:[#allocation5 + $0x70] sm:$0xff] }
  0x80   :  { %507 = vmatpush.msra.mxu2 %v4121_v24  ;;  %587 = vmatpush.msrb.mxu1 %v3675_v36  ;;  %v4145_v36 = vld [vmem:[#allocation5 + $0x98] sm:$0xff] }
  0x81   :  { %468 = vmatpush.msra.mxu0 %v4127_v19  ;;  %628 = vmatpush.msrb.mxu3 %v3670_v35  ;;  %7576 = vst [vmem:[#allocation120_spill] sm:$0xff] %v4145_v36 }
  0x82   :  { %508 = vmatpush.msra.mxu2 %v4129_v28  ;;  %588 = vmatpush.msrb.mxu1 %v3687_v40  ;;  %v4153_v40 = vld [vmem:[#allocation5 + $0x78] sm:$0xff] }
  0x83   :  { %469 = vmatpush.msra.mxu0 %v4135_v23  ;;  %629 = vmatpush.msrb.mxu3 %v3682_v39  ;;  %v4159_v39 = vld [vmem:[#allocation5 + $0x50] sm:$0xff]  ;;  %v4169_v23 = vld [vmem:[#allocation5 + $0x38] sm:$0xff] }
  0x84   :  { %509 = vmatpush.msra.mxu2 %v4137_v32  ;;  %589 = vmatpush.msrb.mxu1 %v3699_v44  ;;  %v4161_v44 = vld [vmem:[#allocation5 + $0x58] sm:$0xff] }
  0x85   :  { %470 = vmatpush.msra.mxu0 %v4143_v27  ;;  %630 = vmatpush.msrb.mxu3 %v3694_v43  ;;  %v4167_v43 = vld [vmem:[#allocation5 + $0x30] sm:$0xff] }
  0x86   :  { %510 = vmatpush.msra.mxu2 %v4145_v36  ;;  %590 = vmatpush.msrb.mxu1 %v3711_v48 }
  0x87   :  { %495 = vmatmul.f32.vlgmr.msra.gmra.mxu1 %v7500_v53  ;;  %471 = vmatpush.msra.mxu0 %v4151_v31 }
  0x88   :  { %511 = vmatpush.msra.mxu2 %v4153_v40  ;;  %591 = vmatpush.msrb.mxu1 %v3723_v52  ;;  %v4181_v52 = vld [vmem:[#allocation5 + $0x18] sm:$0xff] }
  0x89   :  { %631 = vmatpush.msrb.mxu3 %v3706_v47  ;;  %472 = vmatpush.msra.mxu0 %v4159_v39  ;;  %v4179_v47 = vld [vmem:[#allocation5 + $0x10] sm:$0xff] }
  0x8a   :  { %512 = vmatpush.msra.mxu2 %v4161_v44  ;;  %592 = vmatpush.msrb.mxu1 %v3735_v56 }
  0x8b   :  { %632 = vmatpush.msrb.mxu3 %v3718_v51  ;;  %473 = vmatpush.msra.mxu0 %v4167_v43 }
  0x8c   :  { %513 = vmatpush.msra.mxu2 %v4169_v23  ;;  %593 = vmatpush.msrb.mxu1 %v3749_v60 }
  0x8d   :  { %633 = vmatpush.msrb.mxu3 %v3730_v55  ;;  %474 = vmatpush.msra.mxu0 %v4179_v47 }
  0x8e   :  { %514 = vmatpush.msra.mxu2 %v4181_v52  ;;  %594 = vmatpush.msrb.mxu1 %v3759_v54 }
  0x8f   :  { %634 = vmatpush.msrb.mxu3 %v3742_v59 }
  0x90   :  { %696 = vmatpush.msra.mxu1 %v3765_v57 }
  0x91   :  { %736 = vmatpush.msra.mxu3 %v3755_v62  ;;  %v7581_v62 = vld [vmem:[#allocation66_spill] sm:$0xff] }
  0x92   :  { %697 = vmatpush.msra.mxu1 %v3778_v42 }
  0x93   :  { %737 = vmatpush.msra.mxu3 %v3768_v58 }
  0x94   :  { %698 = vmatpush.msra.mxu1 %v3788_v50 }
  0x95   :  { %738 = vmatpush.msra.mxu3 %v3780_v61  ;;  %v7578_v61 = vld [vmem:[#allocation65_spill] sm:$0xff] }
  0x96   :  { %699 = vmatpush.msra.mxu1 %v3800_v30 }
  0x97   :  { %739 = vmatpush.msra.mxu3 %v3790_v45 }
  0x98   :  { %700 = vmatpush.msra.mxu1 %v3812_v26 }
  0x99   :  { %740 = vmatpush.msra.mxu3 %v3802_v37 }
  0x9a   :  { %701 = vmatpush.msra.mxu1 %v3824_v22 }
  0x9b   :  { %741 = vmatpush.msra.mxu3 %v3814_v33 }
  0x9c   :  { %702 = vmatpush.msra.mxu1 %v3836_v18  ;;  %v7577_v18 = vld [vmem:[#allocation59_spill] sm:$0xff] }
  0x9d   :  { %742 = vmatpush.msra.mxu3 %v3826_v29 }
  0x9e   :  { %703 = vmatpush.msra.mxu1 %v3848_v14  ;;  %v7579_v14 = vld [vmem:[#allocation62_spill] sm:$0xff] }
  0x9f   :  { %743 = vmatpush.msra.mxu3 %v3838_v25  ;;  %v7580_v25 = vld [vmem:[#allocation69_spill] sm:$0xff] }
  0xa0   :  { %704 = vmatpush.msra.mxu1 %v3860_v9 }
  0xa1   :  { %744 = vmatpush.msra.mxu3 %v3850_v21  ;;  %v7582_v21 = vld [vmem:[#allocation70_spill] sm:$0xff] }
  0xa2   :  { %705 = vmatpush.msra.mxu1 %v3872_v4 }
  0xa3   :  { %745 = vmatpush.msra.mxu3 %v7577_v18  ;;  %v7608_v18 = vld [vmem:[#allocation88_spill] sm:$0xff] }
  0xa4   :  { %706 = vmatpush.msra.mxu1 %v7578_v61  ;;  %v7610_v61 = vld [vmem:[#allocation87_spill] sm:$0xff] }
  0xa5   :  { %746 = vmatpush.msra.mxu3 %v7579_v14  ;;  %v7611_v14 = vld [vmem:[#allocation29_spill] sm:$0xff] }
  0xa6   :  { %707 = vmatpush.msra.mxu1 %v7580_v25  ;;  %v7612_v25 = vld [vmem:[#allocation90_spill] sm:$0xff] }
  0xa7   :  { %747 = vmatpush.msra.mxu3 %v7581_v62  ;;  %v7613_v62 = vld [vmem:[#allocation26_spill] sm:$0xff] }
  0xa8   :  { %708 = vmatpush.msra.mxu1 %v3908_v13  ;;  %v7586_v13 = vld [vmem:[#allocation16_spill] sm:$0xff] }
  0xa9   :  { %748 = vmatpush.msra.mxu3 %v7582_v21  ;;  %v7615_v21 = vld [vmem:[#allocation31_spill] sm:$0xff] }
  0xaa   :  { %709 = vmatpush.msra.mxu1 %v3920_v11  ;;  %v7588_v11 = vld [vmem:[#allocation76_spill] sm:$0xff] }
  0xac   :  { %v296_v35 = vpop.f32.mrf.mxu1  ;;  %710 = vmatpush.msra.mxu1 %v3932_v7  ;;  %v7596_v7 = vld [vmem:[#allocation21_spill] sm:$0xff] }
  0xad   :  { %v276_v32 = vpop.f32.mrf.mxu0  ;;  %v343_v36 = vrot.slane %v296_v35, 6  ;;  %v258_v35 = vld [vmem:[%s6904_s0] sm:$0xff] }
  0xaf   :  { %v316_v27 = vpop.f32.mrf.mxu2  ;;  %v336_v48 = vpop.f32.mrf.mxu3  ;;  %v347_v19 = vsel %vm346_vm0, %v276_v32, %v343_v36 }
  0xb0   :  { %v344_v53 = vrot.slane %v316_v27, 4  ;;  %v345_v28 = vrot.slane %v336_v48, 2  ;;  %v7583_v48 = vld [vmem:[#allocation73_spill] sm:$0xff] }
  0xb1   :  { %749 = vmatpush.msra.mxu3 %v7583_v48  ;;  %v7617_v48 = vld [vmem:[#allocation28_spill] sm:$0xff] }
  0xb2   :  { %v349_v27 = vsel %vm348_vm1, %v344_v53, %v345_v28  ;;  %v7584_v53 = vld [vmem:[#allocation14_spill] sm:$0xff] }
  0xb3   :  { %v351_v32 = vsel %vm350_vm2, %v347_v19, %v349_v27  ;;  %v7587_v27 = vld [vmem:[#allocation12_spill] sm:$0xff]  ;;  %750 = vmatpush.msra.mxu3 %v7588_v11  ;;  %v7622_v11 = vld [vmem:[#allocation93_spill] sm:$0xff] }
  0xb4   :  { %v353_v36 = vadd.f32 %v351_v32, %v258_v35  ;;  %v7585_v35 = vld [vmem:[#allocation11_spill] sm:$0xff]  ;;  %v7589_v32 = vld [vmem:[#allocation17_spill] sm:$0xff] }
  0xb6   :  { %v354_v51 = vmul.f32 0.5, %v353_v36  ;;  %v359_v56 = vrot.slane %v353_v36, 2  ;;  %v368_v55 = vrot.slane %v353_v36, 6  ;;  %v365_v60 = vrot.slane %v353_v36, 4  ;;  %v7590_v36 = vld [vmem:[#allocation81_spill] sm:$0xff] }
  0xb7   :  { %711 = vmatpush.msra.mxu1 %v7590_v36  ;;  %v7624_v36 = vld [vmem:[#allocation96_spill] sm:$0xff] }
  0xb8   :  { %2710 = vtanh.f32 %v354_v51  ;;  %v361_v19 = vmul.f32 0.5, %v359_v56  ;;  %v370_v54 = vmul.f32 0.5, %v368_v55  ;;  %v7591_v51 = vld [vmem:[#allocation13_spill] sm:$0xff]  ;;  %v7592_v56 = vld [vmem:[#allocation79_spill] sm:$0xff]  ;;  %v7594_v55 = vld [vmem:[#allocation82_spill] sm:$0xff] }
  0xb9   :  { %751 = vmatpush.msra.mxu3 %v7592_v56  ;;  %v7626_v56 = vld [vmem:[#allocation95_spill] sm:$0xff] }
  0xba   :  { %2712 = vtanh.f32 %v361_v19  ;;  %v7593_v19 = vld [vmem:[#allocation19_spill] sm:$0xff] }
  0xbb   :  { %2714 = vtanh.f32 %v365_v60  ;;  %v7595_v60 = vld [vmem:[#allocation15_spill] sm:$0xff] }
  0xbc   :  { %2716 = vtanh.f32 %v370_v54  ;;  %v7597_v54 = vld [vmem:[#allocation18_spill] sm:$0xff] }
  0xbe   :  { %v2711_v57 = vpop.eup %2710 }
  0xbf   :  { %v356_v42 = vmul.f32 0.5, %v2711_v57  ;;  %v7598_v57 = vld [vmem:[#allocation80_spill] sm:$0xff] }
  0xc0   :  { %v2713_v58 = vpop.eup %2712 }
  0xc1   :  { %v357_v50 = vadd.f32 0.5, %v356_v42  ;;  %v363_v59 = vmul.f32 0.5, %v2713_v58  ;;  %v2715_v45 = vpop.eup %2714  ;;  %v7599_v42 = vld [vmem:[#allocation23_spill] sm:$0xff]  ;;  %v7600_v58 = vld [vmem:[#allocation84_spill] sm:$0xff] }
  0xc2   :  { %v2717_v22 = vpop.eup %2716 }
  0xc3   :  { %v364_v30 = vadd.f32 0.5, %v363_v59  ;;  %v375_v37 = vmul.f32 %v2715_v45, %v357_v50  ;;  %v372_v29 = vmul.f32 0.5, %v2717_v22  ;;  %v7601_v50 = vld [vmem:[#allocation20_spill] sm:$0xff]  ;;  %v7602_v59 = vld [vmem:[#allocation83_spill] sm:$0xff]  ;;  %v7604_v45 = vld [vmem:[#allocation86_spill] sm:$0xff] }
  0xc4   :  { %v7607_v22 = vld [vmem:[#allocation27_spill] sm:$0xff] }
  0xc5   :  { %v374_v26 = vmul.f32 0.0, %v364_v30  ;;  %v373_v9 = vadd.f32 0.5, %v372_v29  ;;  %v7603_v30 = vld [vmem:[#allocation25_spill] sm:$0xff]  ;;  %v7609_v29 = vld [vmem:[#allocation24_spill] sm:$0xff] }
  0xc7   :  { %v4211_v33 = vadd.f32 %v375_v37, %v374_v26  ;;  %v7605_v26 = vld [vmem:[#allocation22_spill] sm:$0xff]  ;;  %v7606_v37 = vld [vmem:[#allocation85_spill] sm:$0xff] }
  0xc9   :  { %2718 = vtanh.f32 %v4211_v33 }
  0xcf   :  { %v2719_v28 = vpop.eup %2718 }
  0xd0   :  { %v4222_v4 = vmul.f32 %v2719_v28, %v373_v9  ;;  %v7614_v9 = vld [vmem:[#allocation89_spill] sm:$0xff]  ;;  %v7616_v28 = vld [vmem:[#allocation92_spill] sm:$0xff] }
  0xd2   :  { %395 = vmatmul.f32.vlgmr.msrb.gmra.mxu0 %v4222_v4  ;;  %435 = vmatmul.f32.vlgmr.msrb.gmra.mxu2 %v4222_v4 }
  0xd3   :  { %559 = vmatpush.msrb.mxu0 %v7584_v53  ;;  %595 = vmatmul.f32.vlgmr.msrb.gmra.mxu1 %v4222_v4  ;;  %v7618_v53 = vld [vmem:[#allocation91_spill] sm:$0xff] }
  0xd4   :  { %599 = vmatpush.msrb.mxu2 %v7585_v35  ;;  %635 = vmatmul.f32.vlgmr.msrb.gmra.mxu3 %v4222_v4  ;;  %v7619_v35 = vld [vmem:[#allocation33_spill] sm:$0xff] }
  0xd5   :  { %560 = vmatpush.msrb.mxu0 %v7586_v13  ;;  %776 = vmatpush.msrb.mxu1 %v7594_v55  ;;  %v7620_v13 = vld [vmem:[#allocation94_spill] sm:$0xff] }
  0xd6   :  { %600 = vmatpush.msrb.mxu2 %v7587_v27  ;;  %816 = vmatpush.msrb.mxu3 %v7598_v57  ;;  %v7621_v27 = vld [vmem:[#allocation30_spill] sm:$0xff]  ;;  %v7632_v57 = vld [vmem:[#allocation36_spill] sm:$0xff] }
  0xd7   :  { %561 = vmatpush.msrb.mxu0 %v7589_v32  ;;  %777 = vmatpush.msrb.mxu1 %v7600_v58  ;;  %v7623_v32 = vld [vmem:[#allocation35_spill] sm:$0xff]  ;;  %v7628_v55 = vld [vmem:[#allocation98_spill] sm:$0xff]  ;;  %v7634_v58 = vld [vmem:[#allocation41_spill] sm:$0xff] }
  0xd8   :  { %601 = vmatpush.msrb.mxu2 %v7591_v51  ;;  %817 = vmatpush.msrb.mxu3 %v7602_v59  ;;  %v7625_v51 = vld [vmem:[#allocation32_spill] sm:$0xff]  ;;  %v7636_v59 = vld [vmem:[#allocation38_spill] sm:$0xff] }
  0xd9   :  { %562 = vmatpush.msrb.mxu0 %v7593_v19  ;;  %778 = vmatpush.msrb.mxu1 %v7604_v45  ;;  %v7627_v19 = vld [vmem:[#allocation37_spill] sm:$0xff]  ;;  %v7638_v45 = vld [vmem:[#allocation42_spill] sm:$0xff] }
  0xda   :  { %602 = vmatpush.msrb.mxu2 %v7595_v60  ;;  %475 = vmatmul.f32.vlgmr.msra.gmra.mxu0 %v4222_v4  ;;  %v7629_v60 = vld [vmem:[#allocation34_spill] sm:$0xff] }
  0xdb   :  { %515 = vmatmul.f32.vlgmr.msra.gmra.mxu2 %v4222_v4  ;;  %563 = vmatpush.msrb.mxu0 %v7596_v7  ;;  %v7630_v7 = vld [vmem:[#allocation97_spill] sm:$0xff] }
  0xdc   :  { %603 = vmatpush.msrb.mxu2 %v7597_v54  ;;  %818 = vmatpush.msrb.mxu3 %v7606_v37  ;;  %v7631_v54 = vld [vmem:[#allocation39_spill] sm:$0xff]  ;;  %v7640_v37 = vld [vmem:[#allocation40_spill] sm:$0xff] }
  0xdd   :  { %564 = vmatpush.msrb.mxu0 %v7599_v42  ;;  %779 = vmatpush.msrb.mxu1 %v7608_v18  ;;  %v7633_v42 = vld [vmem:[#allocation99_spill] sm:$0xff]  ;;  %v7643_v18 = vld [vmem:[#allocation102_spill] sm:$0xff] }
  0xde   :  { %604 = vmatpush.msrb.mxu2 %v7601_v50  ;;  %819 = vmatpush.msrb.mxu3 %v7610_v61  ;;  %v7635_v50 = vld [vmem:[#allocation101_spill] sm:$0xff] }
  0xdf   :  { %565 = vmatpush.msrb.mxu0 %v7603_v30  ;;  %780 = vmatpush.msrb.mxu1 %v7612_v25  ;;  %v7637_v30 = vld [vmem:[#allocation100_spill] sm:$0xff]  ;;  %v7645_v61 = vld [vmem:[#allocation105_spill] sm:$0xff] }
  0xe0   :  { %605 = vmatpush.msrb.mxu2 %v7605_v26  ;;  %820 = vmatpush.msrb.mxu3 %v7614_v9  ;;  %v7639_v26 = vld [vmem:[#allocation103_spill] sm:$0xff]  ;;  %v7647_v25 = vld [vmem:[#allocation104_spill] sm:$0xff] }
  0xe1   :  { %566 = vmatpush.msrb.mxu0 %v7607_v22  ;;  %781 = vmatpush.msrb.mxu1 %v7616_v28  ;;  %v7642_v22 = vld [vmem:[#allocation44_spill] sm:$0xff]  ;;  %v7649_v9 = vld [vmem:[#allocation107_spill] sm:$0xff]  ;;  %v7652_v28 = vld [vmem:[#allocation49_spill] sm:$0xff] }
  0xe2   :  { %606 = vmatpush.msrb.mxu2 %v7609_v29  ;;  %821 = vmatpush.msrb.mxu3 %v7618_v53  ;;  %v7644_v29 = vld [vmem:[#allocation45_spill] sm:$0xff]  ;;  %v7654_v53 = vld [vmem:[#allocation110_spill] sm:$0xff] }
  0xe3   :  { %567 = vmatpush.msrb.mxu0 %v7611_v14  ;;  %782 = vmatpush.msrb.mxu1 %v7620_v13  ;;  %v7646_v14 = vld [vmem:[#allocation46_spill] sm:$0xff]  ;;  %v7656_v13 = vld [vmem:[#allocation52_spill] sm:$0xff] }
  0xe4   :  { %607 = vmatpush.msrb.mxu2 %v7613_v62  ;;  %822 = vmatpush.msrb.mxu3 %v7622_v11  ;;  %v7648_v62 = vld [vmem:[#allocation47_spill] sm:$0xff]  ;;  %v7658_v11 = vld [vmem:[#allocation53_spill] sm:$0xff] }
  0xe5   :  { %568 = vmatpush.msrb.mxu0 %v7615_v21  ;;  %783 = vmatpush.msrb.mxu1 %v7624_v36  ;;  %v7650_v21 = vld [vmem:[#allocation48_spill] sm:$0xff]  ;;  %v7660_v36 = vld [vmem:[#allocation55_spill] sm:$0xff] }
  0xe6   :  { %608 = vmatpush.msrb.mxu2 %v7617_v48  ;;  %823 = vmatpush.msrb.mxu3 %v7626_v56  ;;  %v7653_v48 = vld [vmem:[#allocation50_spill] sm:$0xff] }
  0xe7   :  { %569 = vmatpush.msrb.mxu0 %v7619_v35  ;;  %784 = vmatpush.msrb.mxu1 %v7628_v55  ;;  %v7655_v35 = vld [vmem:[#allocation51_spill] sm:$0xff]  ;;  %v7663_v56 = vld [vmem:[#allocation58_spill] sm:$0xff]  ;;  %v7665_v55 = vld [vmem:[#allocation61_spill] sm:$0xff] }
  0xe8   :  { %609 = vmatpush.msrb.mxu2 %v7621_v27  ;;  %824 = vmatpush.msrb.mxu3 %v7630_v7  ;;  %v7657_v27 = vld [vmem:[#allocation113_spill] sm:$0xff]  ;;  %v7668_v7 = vld [vmem:[#allocation67_spill] sm:$0xff] }
  0xe9   :  { %570 = vmatpush.msrb.mxu0 %v7623_v32  ;;  %785 = vmatpush.msrb.mxu1 %v4004_v46  ;;  %v7641_v46 = vld [vmem:[#allocation43_spill] sm:$0xff]  ;;  %v7659_v32 = vld [vmem:[#allocation54_spill] sm:$0xff] }
  0xea   :  { %610 = vmatpush.msrb.mxu2 %v7625_v51  ;;  %825 = vmatpush.msrb.mxu3 %v7633_v42  ;;  %v7661_v51 = vld [vmem:[#allocation56_spill] sm:$0xff] }
  0xeb   :  { %571 = vmatpush.msrb.mxu0 %v7627_v19  ;;  %786 = vmatpush.msrb.mxu1 %v7635_v50  ;;  %v7664_v19 = vld [vmem:[#allocation60_spill] sm:$0xff]  ;;  %v7673_v50 = vld [vmem:[#allocation75_spill] sm:$0xff] }
  0xec   :  { %611 = vmatpush.msrb.mxu2 %v7629_v60  ;;  %826 = vmatpush.msrb.mxu3 %v7637_v30  ;;  %v7667_v60 = vld [vmem:[#allocation64_spill] sm:$0xff]  ;;  %v7675_v30 = vld [vmem:[#allocation78_spill] sm:$0xff] }
  0xed   :  { %572 = vmatpush.msrb.mxu0 %v7631_v54  ;;  %787 = vmatpush.msrb.mxu1 %v7639_v26  ;;  %v7669_v54 = vld [vmem:[#allocation68_spill] sm:$0xff]  ;;  %v7677_v26 = vld [vmem:[#allocation109_spill] sm:$0xff] }
  0xee   :  { %612 = vmatpush.msrb.mxu2 %v7632_v57  ;;  %827 = vmatpush.msrb.mxu3 %v7643_v18  ;;  %v7670_v57 = vld [vmem:[#allocation71_spill] sm:$0xff]  ;;  %v7671_v42 = vld [vmem:[#allocation72_spill] sm:$0xff] }
  0xef   :  { %573 = vmatpush.msrb.mxu0 %v7634_v58  ;;  %788 = vmatpush.msrb.mxu1 %v7645_v61  ;;  %v7672_v58 = vld [vmem:[#allocation74_spill] sm:$0xff] }
  0xf0   :  { %613 = vmatpush.msrb.mxu2 %v7636_v59  ;;  %828 = vmatpush.msrb.mxu3 %v7647_v25  ;;  %v7674_v59 = vld [vmem:[#allocation77_spill] sm:$0xff] }
  0xf1   :  { %574 = vmatpush.msrb.mxu0 %v7638_v45  ;;  %789 = vmatpush.msrb.mxu1 %v7649_v9  ;;  %v7676_v45 = vld [vmem:[#allocation108_spill] sm:$0xff] }
  0xf2   :  { %614 = vmatpush.msrb.mxu2 %v7640_v37  ;;  %575 = vmatmul.f32.vlgmr.msrb.gmra.mxu0 %v4222_v4  ;;  %v7678_v37 = vld [vmem:[#allocation111_spill] sm:$0xff] }
  0xf3   :  { %615 = vmatmul.f32.vlgmr.msrb.gmra.mxu2 %v4222_v4  ;;  %676 = vmatpush.msra.mxu0 %v7641_v46  ;;  %v7651_v4 = vld [vmem:[#allocation106_spill] sm:$0xff]  ;;  %v7679_v46 = vld [vmem:[#allocation112_spill] sm:$0xff] }
  0xf4   :  { %716 = vmatpush.msra.mxu2 %v7642_v22  ;;  %829 = vmatpush.msrb.mxu3 %v7651_v4  ;;  %v7680_v22 = vld [vmem:[#allocation114_spill] sm:$0xff] }
  0xf5   :  { %677 = vmatpush.msra.mxu0 %v7644_v29  ;;  %790 = vmatpush.msrb.mxu1 %v4037_v2  ;;  %v7662_v2 = vld [vmem:[#allocation57_spill] sm:$0xff] }
  0xf6   :  { %717 = vmatpush.msra.mxu2 %v7646_v14  ;;  %830 = vmatpush.msrb.mxu3 %v7654_v53 }
  0xf7   :  { %678 = vmatpush.msra.mxu0 %v7648_v62  ;;  %791 = vmatpush.msrb.mxu1 %v4051_v17  ;;  %v7666_v17 = vld [vmem:[#allocation63_spill] sm:$0xff] }
  0xf8   :  { %718 = vmatpush.msra.mxu2 %v7650_v21  ;;  %831 = vmatpush.msrb.mxu3 %v7657_v27 }
  0xf9   :  { %679 = vmatpush.msra.mxu0 %v7652_v28 }
  0xfa   :  { %719 = vmatpush.msra.mxu2 %v7653_v48 }
  0xfb   :  { %680 = vmatpush.msra.mxu0 %v7655_v35 }
  0xfc   :  { %720 = vmatpush.msra.mxu2 %v7656_v13 }
  0xfd   :  { %681 = vmatpush.msra.mxu0 %v7658_v11 }
  0xfe   :  { %721 = vmatpush.msra.mxu2 %v7659_v32 }
  0xff   :  { %682 = vmatpush.msra.mxu0 %v7660_v36 }
 0x100   :  { %722 = vmatpush.msra.mxu2 %v7661_v51 }
 0x101   :  { %683 = vmatpush.msra.mxu0 %v7662_v2 }
 0x102   :  { %723 = vmatpush.msra.mxu2 %v7663_v56 }
 0x103   :  { %684 = vmatpush.msra.mxu0 %v7664_v19 }
 0x104   :  { %724 = vmatpush.msra.mxu2 %v7665_v55 }
 0x105   :  { %685 = vmatpush.msra.mxu0 %v7666_v17 }
 0x106   :  { %725 = vmatpush.msra.mxu2 %v7667_v60 }
 0x107   :  { %686 = vmatpush.msra.mxu0 %v7668_v7 }
 0x108   :  { %726 = vmatpush.msra.mxu2 %v7669_v54 }
 0x109   :  { %687 = vmatpush.msra.mxu0 %v7670_v57 }
 0x10a   :  { %727 = vmatpush.msra.mxu2 %v7671_v42  ;;  %v4384_v42 = vld [vmem:[#allocation2 + $0x1e8] sm:$0xff] }
 0x10b   :  { %688 = vmatpush.msra.mxu0 %v7672_v58  ;;  %v4387_v58 = vld [vmem:[#allocation2 + $0x1f8] sm:$0xff] }
 0x10c   :  { %728 = vmatpush.msra.mxu2 %v7673_v50 }
 0x10d   :  { %689 = vmatpush.msra.mxu0 %v7674_v59 }
 0x10e   :  { %729 = vmatpush.msra.mxu2 %v7675_v30 }
 0x10f   :  { %690 = vmatpush.msra.mxu0 %v7676_v45 }
 0x110   :  { %730 = vmatpush.msra.mxu2 %v7677_v26 }
 0x111   :  { %691 = vmatpush.msra.mxu0 %v7678_v37  ;;  %v4390_v37 = vld [vmem:[#allocation2 + $0x1c8] sm:$0xff] }
 0x112   :  { %731 = vmatpush.msra.mxu2 %v7679_v46  ;;  %v4393_v46 = vld [vmem:[#allocation2 + $0x1d8] sm:$0xff] }
 0x113   :  { %756 = vmatpush.msrb.mxu0 %v4055_v41  ;;  %v7684_v41 = vld [vmem:[#allocation118_spill] sm:$0xff] }
 0x114   :  { %796 = vmatpush.msrb.mxu2 %v7680_v22  ;;  %v2696_v22 = vld [vmem:[%s6904_s0 + $0x8] sm:$0xff] }
 0x115   :  { %757 = vmatpush.msrb.mxu0 %v4063_v38  ;;  %v7683_v38 = vld [vmem:[#allocation117_spill] sm:$0xff] }
 0x116   :  { %797 = vmatpush.msrb.mxu2 %v4065_v49  ;;  %v7685_v49 = vld [vmem:[#allocation119_spill] sm:$0xff] }
 0x117   :  { %758 = vmatpush.msrb.mxu0 %v4071_v0  ;;  %v7681_v0 = vld [vmem:[#allocation115_spill] sm:$0xff] }
 0x118   :  { %798 = vmatpush.msrb.mxu2 %v4073_v34  ;;  %v7682_v34 = vld [vmem:[#allocation116_spill] sm:$0xff] }
 0x119   :  { %759 = vmatpush.msrb.mxu0 %v4079_v63  ;;  %v7686_v63 = vld [vmem:[#allocation120_spill] sm:$0xff] }
 0x11a   :  { %799 = vmatpush.msrb.mxu2 %v4081_v6  ;;  %v248_v6 = vld [vmem:[%s6907_s3] sm:$0xf] }
 0x11b   :  { %760 = vmatpush.msrb.mxu0 %v4087_v1  ;;  %v4369_v1 = vperm.slane %v248_v6, 0  ;;  %v4378_v62 = vperm.slane %v248_v6, 3 }
 0x11c   :  { %800 = vmatpush.msrb.mxu2 %v4089_v8  ;;  %v416_v8 = vpop.f32.mrf.mxu1 }
 0x11d   :  { %761 = vmatpush.msrb.mxu0 %v4095_v3  ;;  %7687 = vst [vmem:[#allocation59_spill] sm:$0xff] %v4369_v1 }
 0x11e   :  { %801 = vmatpush.msrb.mxu2 %v4097_v12 }
 0x11f   :  { %762 = vmatpush.msrb.mxu0 %v4103_v5 }
 0x120   :  { %802 = vmatpush.msrb.mxu2 %v4105_v16  ;;  %v4372_v16 = vperm.slane %v248_v6, 1 }
 0x121   :  { %763 = vmatpush.msrb.mxu0 %v4111_v10 }
 0x122   :  { %803 = vmatpush.msrb.mxu2 %v4113_v20  ;;  %7688 = vst [vmem:[#allocation65_spill] sm:$0xff] %v4372_v16  ;;  %v4374_v20 = vperm.slane %v248_v6, 2  ;;  %v4408_v6 = vld [vmem:[#allocation2 + $0x188] sm:$0xff] }
 0x123   :  { %764 = vmatpush.msrb.mxu0 %v4119_v15 }
 0x124   :  { %804 = vmatpush.msrb.mxu2 %v4121_v24  ;;  %v456_v24 = vpop.f32.mrf.mxu3  ;;  %v496_v61 = vpop.f32.mrf.mxu1 }
 0x125   :  { %765 = vmatpush.msrb.mxu0 %v7681_v0 }
 0x126   :  { %805 = vmatpush.msrb.mxu2 %v7682_v34 }
 0x127   :  { %766 = vmatpush.msrb.mxu0 %v7683_v38  ;;  %v4401_v38 = vld [vmem:[#allocation2 + $0x1a8] sm:$0xff] }
 0x128   :  { %806 = vmatpush.msrb.mxu2 %v7684_v41  ;;  %v4404_v41 = vld [vmem:[#allocation2 + $0x1b8] sm:$0xff] }
 0x129   :  { %767 = vmatpush.msrb.mxu0 %v7685_v49 }
 0x12a   :  { %807 = vmatpush.msrb.mxu2 %v7686_v63 }
 0x12b   :  { %768 = vmatpush.msrb.mxu0 %v4151_v31 }
 0x12c   :  { %808 = vmatpush.msrb.mxu2 %v4153_v40  ;;  %v536_v28 = vpop.f32.mrf.mxu3 }
 0x12d   :  { %769 = vmatpush.msrb.mxu0 %v4159_v39 }
 0x12e   :  { %809 = vmatpush.msrb.mxu2 %v4161_v44 }
 0x12f   :  { %770 = vmatpush.msrb.mxu0 %v4167_v43 }
 0x130   :  { %810 = vmatpush.msrb.mxu2 %v4169_v23 }
 0x131   :  { %771 = vmatpush.msrb.mxu0 %v4179_v47 }
 0x132   :  { %811 = vmatpush.msrb.mxu2 %v4181_v52 }
 0x14f   :  { %v396_v3 = vpop.f32.mrf.mxu0 }
 0x150   :  { %v397_v12 = vadd.f32 %v396_v3, %v4369_v1  ;;  %v596_v54 = vpop.f32.mrf.mxu1 }
 0x151   :  { %v643_v30 = vrot.slane %v596_v54, 6  ;;  %v4466_v54 = vld [vmem:[#allocation2 + $0x78] sm:$0xff] }
 0x152   :  { %v417_v5 = vadd.f32 %v416_v8, %v397_v12  ;;  %v4411_v8 = vld [vmem:[#allocation2 + $0x198] sm:$0xff] }
 0x154   :  { %v539_v10 = vmul.f32 0.5, %v417_v5  ;;  %v4414_v5 = vld [vmem:[#allocation2 + $0x168] sm:$0xff] }
 0x155   :  { %v436_v15 = vpop.f32.mrf.mxu2 }
 0x156   :  { %v437_v31 = vadd.f32 %v436_v15, %v4372_v16  ;;  %2720 = vtanh.f32 %v539_v10  ;;  %v4417_v10 = vld [vmem:[#allocation2 + $0x178] sm:$0xff] }
 0x157   :  { %v476_v40 = vpop.f32.mrf.mxu0  ;;  %v636_v57 = vpop.f32.mrf.mxu3 }
 0x158   :  { %v457_v18 = vadd.f32 %v456_v24, %v437_v31  ;;  %v477_v29 = vadd.f32 %v476_v40, %v4374_v20  ;;  %v645_v45 = vrot.slane %v636_v57, 2  ;;  %v4420_v24 = vld [vmem:[#allocation2 + $0x148] sm:$0xff]  ;;  %v4423_v31 = vld [vmem:[#allocation2 + $0x158] sm:$0xff] }
 0x15a   :  { %v543_v14 = vmul.f32 0.5, %v457_v18  ;;  %v497_v25 = vadd.f32 %v496_v61, %v477_v29  ;;  %v4426_v29 = vld [vmem:[#allocation2 + $0x128] sm:$0xff]  ;;  %v4429_v61 = vld [vmem:[#allocation2 + $0x138] sm:$0xff] }
 0x15c   :  { %2722 = vtanh.f32 %v543_v14  ;;  %v2721_v9 = vpop.eup %2720  ;;  %v4432_v14 = vld [vmem:[#allocation2 + $0x108] sm:$0xff] }
 0x15d   :  { %2724 = vtanh.f32 %v497_v25  ;;  %v541_v48 = vmul.f32 0.5, %v2721_v9  ;;  %v4435_v25 = vld [vmem:[#allocation2 + $0x118] sm:$0xff] }
 0x15e   :  { %v516_v21 = vpop.f32.mrf.mxu2 }
 0x15f   :  { %v517_v4 = vadd.f32 %v516_v21, %v4378_v62  ;;  %v542_v32 = vadd.f32 0.5, %v541_v48 }
 0x161   :  { %v537_v53 = vadd.f32 %v536_v28, %v517_v4  ;;  %v4438_v4 = vld [vmem:[#allocation2 + $0xe8] sm:$0xff]  ;;  %v4441_v28 = vld [vmem:[#allocation2 + $0xf8] sm:$0xff] }
 0x162   :  { %v2723_v35 = vpop.eup %2722 }
 0x163   :  { %v545_v13 = vmul.f32 0.5, %v2723_v35  ;;  %v548_v27 = vmul.f32 0.5, %v537_v53  ;;  %v2725_v11 = vpop.eup %2724  ;;  %v4444_v35 = vld [vmem:[#allocation2 + $0xc8] sm:$0xff] }
 0x164   :  { %v553_v2 = vmul.f32 %v2725_v11, %v542_v32  ;;  %v4450_v32 = vld [vmem:[#allocation2 + $0xa8] sm:$0xff] }
 0x165   :  { %v546_v36 = vadd.f32 0.5, %v545_v13  ;;  %2726 = vtanh.f32 %v548_v27  ;;  %v4447_v13 = vld [vmem:[#allocation2 + $0xd8] sm:$0xff] }
 0x167   :  { %v552_v51 = vmul.f32 0.0, %v546_v36  ;;  %v4453_v36 = vld [vmem:[#allocation2 + $0xb8] sm:$0xff] }
 0x169   :  { %v4381_v56 = vadd.f32 %v553_v2, %v552_v51 }
 0x16b   :  { %v2727_v19 = vpop.eup %2726  ;;  %2728 = vtanh.f32 %v4381_v56 }
 0x16c   :  { %v550_v55 = vmul.f32 0.5, %v2727_v19  ;;  %v4456_v19 = vld [vmem:[#allocation2 + $0x88] sm:$0xff] }
 0x16e   :  { %v551_v17 = vadd.f32 0.5, %v550_v55  ;;  %v4459_v55 = vld [vmem:[#allocation2 + $0x98] sm:$0xff] }
 0x16f   :  { %v576_v50 = vpop.f32.mrf.mxu0 }
 0x170   :  { %v646_v0 = vsel %vm346_vm0, %v576_v50, %v643_v30  ;;  %v4474_v30 = vld [vmem:[#allocation2 + $0x58] sm:$0xff] }
 0x171   :  { %v2729_v60 = vpop.eup %2728 }
 0x172   :  { %v556_v7 = vmul.f32 %v2729_v60, %v551_v17 }
 0x174   :  { %712 = vmatmul.f32.vlgmr.msra.gmra.mxu1 %v556_v7  ;;  %752 = vmatmul.f32.vlgmr.msra.gmra.mxu3 %v556_v7 }
 0x175   :  { %876 = vmatpush.msra.mxu1 %v4384_v42  ;;  %916 = vmatpush.msra.mxu3 %v4387_v58 }
 0x176   :  { %v616_v59 = vpop.f32.mrf.mxu2 }
 0x177   :  { %v644_v26 = vrot.slane %v616_v59, 4  ;;  %877 = vmatpush.msra.mxu1 %v4390_v37  ;;  %917 = vmatpush.msra.mxu3 %v4393_v46  ;;  %v4471_v59 = vld [vmem:[#allocation2 + $0x48] sm:$0xff] }
 0x179   :  { %v647_v34 = vsel %vm348_vm1, %v644_v26, %v645_v45  ;;  %878 = vmatpush.msra.mxu1 %v4401_v38  ;;  %918 = vmatpush.msra.mxu3 %v4404_v41  ;;  %v4478_v45 = vld [vmem:[#allocation2 + $0x28] sm:$0xff]  ;;  %v4481_v26 = vld [vmem:[#allocation2 + $0x38] sm:$0xff] }
 0x17a   :  { %v648_v49 = vsel %vm350_vm2, %v646_v0, %v647_v34  ;;  %v4487_v0 = vld [vmem:[#allocation2 + $0x18] sm:$0xff]  ;;  %v4490_v34 = vld [vmem:[#allocation5 + $0x3e0] sm:$0xff] }
 0x17b   :  { %v650_v63 = vadd.f32 %v2696_v22, %v648_v49  ;;  %879 = vmatpush.msra.mxu1 %v4408_v6  ;;  %919 = vmatpush.msra.mxu3 %v4411_v8  ;;  %v4484_v22 = vld [vmem:[#allocation2 + $0x8] sm:$0xff] }
 0x17c   :  { %792 = vmatmul.f32.vlgmr.msrb.gmra.mxu1 %v556_v7  ;;  %832 = vmatmul.f32.vlgmr.msrb.gmra.mxu3 %v556_v7  ;;  %v4463_v7 = vld [vmem:[#allocation2 + $0x68] sm:$0xff] }
 0x17d   :  { %v651_v3 = vmul.f32 0.5, %v650_v63  ;;  %v656_v12 = vrot.slane %v650_v63, 2  ;;  %880 = vmatpush.msra.mxu1 %v4414_v5  ;;  %920 = vmatpush.msra.mxu3 %v4417_v10  ;;  %v665_v40 = vrot.slane %v650_v63, 6  ;;  %v662_v18 = vrot.slane %v650_v63, 4  ;;  %v4493_v49 = vld [vmem:[#allocation5 + $0x3e8] sm:$0xff] }
 0x17f   :  { %2730 = vtanh.f32 %v651_v3  ;;  %v658_v15 = vmul.f32 0.5, %v656_v12  ;;  %881 = vmatpush.msra.mxu1 %v4420_v24  ;;  %921 = vmatpush.msra.mxu3 %v4423_v31  ;;  %v667_v9 = vmul.f32 0.5, %v665_v40  ;;  %v4496_v12 = vld [vmem:[#allocation5 + $0x3c0] sm:$0xff] }
 0x181   :  { %2732 = vtanh.f32 %v658_v15  ;;  %882 = vmatpush.msra.mxu1 %v4426_v29  ;;  %922 = vmatpush.msra.mxu3 %v4429_v61  ;;  %v4499_v15 = vld [vmem:[#allocation5 + $0x3c8] sm:$0xff] }
 0x182   :  { %2734 = vtanh.f32 %v662_v18  ;;  %v4504_v18 = vld [vmem:[#allocation5 + $0x3a0] sm:$0xff] }
 0x183   :  { %883 = vmatpush.msra.mxu1 %v4432_v14  ;;  %923 = vmatpush.msra.mxu3 %v4435_v25  ;;  %2736 = vtanh.f32 %v667_v9  ;;  %v4507_v9 = vld [vmem:[#allocation5 + $0x3a8] sm:$0xff] }
 0x185   :  { %v2731_v21 = vpop.eup %2730  ;;  %884 = vmatpush.msra.mxu1 %v4438_v4  ;;  %924 = vmatpush.msra.mxu3 %v4441_v28 }
 0x186   :  { %v653_v48 = vmul.f32 0.5, %v2731_v21  ;;  %v4512_v21 = vld [vmem:[#allocation2 + $0x1e0] sm:$0xff] }
 0x187   :  { %v2733_v53 = vpop.eup %2732  ;;  %885 = vmatpush.msra.mxu1 %v4444_v35  ;;  %925 = vmatpush.msra.mxu3 %v4447_v13 }
 0x188   :  { %v654_v27 = vadd.f32 0.5, %v653_v48  ;;  %v660_v11 = vmul.f32 0.5, %v2733_v53  ;;  %v2735_v2 = vpop.eup %2734  ;;  %v4516_v48 = vld [vmem:[#allocation2 + $0x1f0] sm:$0xff]  ;;  %v4520_v53 = vld [vmem:[#allocation2 + $0x1c0] sm:$0xff] }
 0x189   :  { %886 = vmatpush.msra.mxu1 %v4450_v32  ;;  %926 = vmatpush.msra.mxu3 %v4453_v36  ;;  %v2737_v57 = vpop.eup %2736 }
 0x18a   :  { %v661_v51 = vadd.f32 0.5, %v660_v11  ;;  %v672_v60 = vmul.f32 %v2735_v2, %v654_v27  ;;  %v4523_v27 = vld [vmem:[#allocation5 + $0x380] sm:$0xff]  ;;  %v4526_v11 = vld [vmem:[#allocation2 + $0x1d0] sm:$0xff] }
 0x18b   :  { %887 = vmatpush.msra.mxu1 %v4456_v19  ;;  %927 = vmatpush.msra.mxu3 %v4459_v55  ;;  %7689 = vst [vmem:[#allocation62_spill] sm:$0xff] %v4523_v27  ;;  %v4532_v2 = vld [vmem:[#allocation2 + $0x1a0] sm:$0xff] }
 0x18c   :  { %v671_v17 = vmul.f32 %v661_v51, %v4211_v33  ;;  %v669_v33 = vmul.f32 0.5, %v2737_v57  ;;  %7690 = vst [vmem:[#allocation69_spill] sm:$0xff] %v4526_v11  ;;  %v4529_v51 = vld [vmem:[#allocation5 + $0x388] sm:$0xff] }
 0x18d   :  { %888 = vmatpush.msra.mxu1 %v4463_v7  ;;  %928 = vmatpush.msra.mxu3 %v4466_v54  ;;  %7691 = vst [vmem:[#allocation66_spill] sm:$0xff] %v4529_v51  ;;  %v4541_v57 = vld [vmem:[#allocation5 + $0x368] sm:$0xff] }
 0x18e   :  { %v4469_v50 = vadd.f32 %v672_v60, %v671_v17  ;;  %v670_v63 = vadd.f32 0.5, %v669_v33  ;;  %7692 = vst [vmem:[#allocation70_spill] sm:$0xff] %v4532_v2  ;;  %v4535_v17 = vld [vmem:[#allocation5 + $0x360] sm:$0xff]  ;;  %v4538_v60 = vld [vmem:[#allocation2 + $0x1b0] sm:$0xff] }
 0x18f   :  { %889 = vmatpush.msra.mxu1 %v4471_v59  ;;  %929 = vmatpush.msra.mxu3 %v4474_v30  ;;  %7693 = vst [vmem:[#allocation73_spill] sm:$0xff] %v4535_v17  ;;  %v4544_v33 = vld [vmem:[#allocation2 + $0x180] sm:$0xff] }
 0x190   :  { %2738 = vtanh.f32 %v4469_v50  ;;  %7694 = vst [vmem:[#allocation14_spill] sm:$0xff] %v4538_v60 }
 0x191   :  { %890 = vmatpush.msra.mxu1 %v4478_v45  ;;  %930 = vmatpush.msra.mxu3 %v4481_v26  ;;  %7695 = vst [vmem:[#allocation11_spill] sm:$0xff] %v4541_v57 }
 0x192   :  { %7696 = vst [vmem:[#allocation16_spill] sm:$0xff] %v4544_v33 }
 0x193   :  { %891 = vmatpush.msra.mxu1 %v4484_v22  ;;  %931 = vmatpush.msra.mxu3 %v4487_v0 }
 0x195   :  { %993 = vmatpush.msrb.mxu1 %v4490_v34  ;;  %1033 = vmatpush.msrb.mxu3 %v4493_v49 }
 0x196   :  { %v2739_v3 = vpop.eup %2738 }
 0x197   :  { %994 = vmatpush.msrb.mxu1 %v4496_v12  ;;  %1034 = vmatpush.msrb.mxu3 %v4499_v15  ;;  %v4502_v40 = vmul.f32 %v2739_v3, %v670_v63  ;;  %v4547_v63 = vld [vmem:[#allocation5 + $0x340] sm:$0xff]  ;;  %v4550_v3 = vld [vmem:[#allocation2 + $0x190] sm:$0xff] }
 0x198   :  { %7697 = vst [vmem:[#allocation12_spill] sm:$0xff] %v4547_v63 }
 0x199   :  { %995 = vmatpush.msrb.mxu1 %v4504_v18  ;;  %1035 = vmatpush.msrb.mxu3 %v4507_v9  ;;  %7698 = vst [vmem:[#allocation76_spill] sm:$0xff] %v4550_v3 }
 0x19a   :  { %692 = vmatmul.f32.vlgmr.msra.gmra.mxu0 %v4502_v40  ;;  %732 = vmatmul.f32.vlgmr.msra.gmra.mxu2 %v4502_v40 }
 0x19b   :  { %856 = vmatpush.msra.mxu0 %v4512_v21  ;;  %892 = vmatmul.f32.vlgmr.msra.gmra.mxu1 %v4502_v40 }
 0x19c   :  { %896 = vmatpush.msra.mxu2 %v4516_v48  ;;  %932 = vmatmul.f32.vlgmr.msra.gmra.mxu3 %v4502_v40 }
 0x19d   :  { %857 = vmatpush.msra.mxu0 %v4520_v53  ;;  %996 = vmatpush.msrb.mxu1 %v4523_v27 }
 0x19e   :  { %897 = vmatpush.msra.mxu2 %v4526_v11  ;;  %1036 = vmatpush.msrb.mxu3 %v4529_v51 }
 0x19f   :  { %858 = vmatpush.msra.mxu0 %v4532_v2  ;;  %997 = vmatpush.msrb.mxu1 %v4535_v17  ;;  %v4570_v17 = vld [vmem:[#allocation2 + $0x150] sm:$0xff] }
 0x1a0   :  { %898 = vmatpush.msra.mxu2 %v4538_v60  ;;  %1037 = vmatpush.msrb.mxu3 %v4541_v57  ;;  %v4555_v60 = vld [vmem:[#allocation2 + $0x160] sm:$0xff]  ;;  %v4558_v57 = vld [vmem:[#allocation2 + $0x170] sm:$0xff]  ;;  %7704 = vst [vmem:[#allocation82_spill] sm:$0xff] %v4570_v17 }
 0x1a1   :  { %859 = vmatpush.msra.mxu0 %v4544_v33  ;;  %998 = vmatpush.msrb.mxu1 %v4547_v63  ;;  %7699 = vst [vmem:[#allocation17_spill] sm:$0xff] %v4555_v60  ;;  %v4561_v33 = vld [vmem:[#allocation5 + $0x348] sm:$0xff]  ;;  %v4564_v63 = vld [vmem:[#allocation2 + $0x140] sm:$0xff] }
 0x1a2   :  { %899 = vmatpush.msra.mxu2 %v4550_v3  ;;  %772 = vmatmul.f32.vlgmr.msrb.gmra.mxu0 %v4502_v40  ;;  %7700 = vst [vmem:[#allocation81_spill] sm:$0xff] %v4558_v57  ;;  %v4567_v3 = vld [vmem:[#allocation5 + $0x320] sm:$0xff] }
 0x1a3   :  { %812 = vmatmul.f32.vlgmr.msrb.gmra.mxu2 %v4502_v40  ;;  %860 = vmatpush.msra.mxu0 %v4555_v60  ;;  %7701 = vst [vmem:[#allocation13_spill] sm:$0xff] %v4561_v33  ;;  %v4573_v60 = vld [vmem:[#allocation5 + $0x328] sm:$0xff] }
 0x1a4   :  { %900 = vmatpush.msra.mxu2 %v4558_v57  ;;  %1038 = vmatpush.msrb.mxu3 %v4561_v33  ;;  %7702 = vst [vmem:[#allocation79_spill] sm:$0xff] %v4564_v63  ;;  %v4576_v57 = vld [vmem:[#allocation2 + $0x120] sm:$0xff] }
 0x1a5   :  { %861 = vmatpush.msra.mxu0 %v4564_v63  ;;  %7703 = vst [vmem:[#allocation19_spill] sm:$0xff] %v4567_v3  ;;  %999 = vmatpush.msrb.mxu1 %v4567_v3  ;;  %v4579_v33 = vld [vmem:[#allocation5 + $0x300] sm:$0xff]  ;;  %v4582_v63 = vld [vmem:[#allocation2 + $0x130] sm:$0xff]  ;;  %v4585_v3 = vld [vmem:[#allocation5 + $0x308] sm:$0xff] }
 0x1a6   :  { %901 = vmatpush.msra.mxu2 %v4570_v17  ;;  %7705 = vst [vmem:[#allocation15_spill] sm:$0xff] %v4573_v60  ;;  %1039 = vmatpush.msrb.mxu3 %v4573_v60  ;;  %v4588_v17 = vld [vmem:[#allocation2 + $0x100] sm:$0xff] }
 0x1a7   :  { %7706 = vst [vmem:[#allocation21_spill] sm:$0xff] %v4576_v57  ;;  %862 = vmatpush.msra.mxu0 %v4576_v57  ;;  %1000 = vmatpush.msrb.mxu1 %v4579_v33  ;;  %v4591_v60 = vld [vmem:[#allocation5 + $0x2e0] sm:$0xff]  ;;  %v4594_v57 = vld [vmem:[#allocation2 + $0x110] sm:$0xff] }
 0x1a8   :  { %7707 = vst [vmem:[#allocation18_spill] sm:$0xff] %v4579_v33  ;;  %902 = vmatpush.msra.mxu2 %v4582_v63  ;;  %1040 = vmatpush.msrb.mxu3 %v4585_v3  ;;  %v4597_v33 = vld [vmem:[#allocation5 + $0x2e8] sm:$0xff] }
 0x1a9   :  { %7708 = vst [vmem:[#allocation80_spill] sm:$0xff] %v4582_v63  ;;  %863 = vmatpush.msra.mxu0 %v4588_v17  ;;  %1001 = vmatpush.msrb.mxu1 %v4591_v60  ;;  %v4600_v63 = vld [vmem:[#allocation2 + $0xe0] sm:$0xff] }
 0x1aa   :  { %7709 = vst [vmem:[#allocation23_spill] sm:$0xff] %v4585_v3  ;;  %903 = vmatpush.msra.mxu2 %v4594_v57  ;;  %1041 = vmatpush.msrb.mxu3 %v4597_v33  ;;  %v4603_v3 = vld [vmem:[#allocation5 + $0x2c0] sm:$0xff] }
 0x1ab   :  { %7710 = vst [vmem:[#allocation84_spill] sm:$0xff] %v4588_v17  ;;  %864 = vmatpush.msra.mxu0 %v4600_v63  ;;  %1002 = vmatpush.msrb.mxu1 %v4603_v3  ;;  %v4606_v17 = vld [vmem:[#allocation2 + $0xf0] sm:$0xff] }
 0x1ac   :  { %7711 = vst [vmem:[#allocation20_spill] sm:$0xff] %v4591_v60  ;;  %904 = vmatpush.msra.mxu2 %v4606_v17  ;;  %v4609_v60 = vld [vmem:[#allocation5 + $0x2c8] sm:$0xff] }
 0x1ad   :  { %7712 = vst [vmem:[#allocation83_spill] sm:$0xff] %v4594_v57  ;;  %1042 = vmatpush.msrb.mxu3 %v4609_v60  ;;  %v4612_v57 = vld [vmem:[#allocation2 + $0xc0] sm:$0xff] }
 0x1ae   :  { %7713 = vst [vmem:[#allocation25_spill] sm:$0xff] %v4597_v33  ;;  %865 = vmatpush.msra.mxu0 %v4612_v57  ;;  %v4615_v33 = vld [vmem:[#allocation5 + $0x2a0] sm:$0xff] }
 0x1af   :  { %7714 = vst [vmem:[#allocation86_spill] sm:$0xff] %v4600_v63  ;;  %1003 = vmatpush.msrb.mxu1 %v4615_v33  ;;  %v4618_v63 = vld [vmem:[#allocation2 + $0xd0] sm:$0xff] }
 0x1b0   :  { %7715 = vst [vmem:[#allocation22_spill] sm:$0xff] %v4603_v3  ;;  %905 = vmatpush.msra.mxu2 %v4618_v63  ;;  %v4621_v3 = vld [vmem:[#allocation5 + $0x2a8] sm:$0xff] }
 0x1b1   :  { %7716 = vst [vmem:[#allocation85_spill] sm:$0xff] %v4606_v17  ;;  %1043 = vmatpush.msrb.mxu3 %v4621_v3  ;;  %v4624_v17 = vld [vmem:[#allocation2 + $0xa0] sm:$0xff] }
 0x1b2   :  { %7717 = vst [vmem:[#allocation27_spill] sm:$0xff] %v4609_v60  ;;  %866 = vmatpush.msra.mxu0 %v4624_v17  ;;  %v4627_v60 = vld [vmem:[#allocation5 + $0x280] sm:$0xff] }
 0x1b3   :  { %7718 = vst [vmem:[#allocation88_spill] sm:$0xff] %v4612_v57  ;;  %1004 = vmatpush.msrb.mxu1 %v4627_v60  ;;  %v4630_v57 = vld [vmem:[#allocation2 + $0xb0] sm:$0xff] }
 0x1b4   :  { %7719 = vst [vmem:[#allocation24_spill] sm:$0xff] %v4615_v33  ;;  %906 = vmatpush.msra.mxu2 %v4630_v57  ;;  %v4633_v33 = vld [vmem:[#allocation5 + $0x288] sm:$0xff] }
 0x1b5   :  { %7720 = vst [vmem:[#allocation87_spill] sm:$0xff] %v4618_v63  ;;  %1044 = vmatpush.msrb.mxu3 %v4633_v33  ;;  %v4636_v63 = vld [vmem:[#allocation2 + $0x80] sm:$0xff] }
 0x1b6   :  { %7721 = vst [vmem:[#allocation29_spill] sm:$0xff] %v4621_v3  ;;  %867 = vmatpush.msra.mxu0 %v4636_v63  ;;  %v4639_v3 = vld [vmem:[#allocation5 + $0x260] sm:$0xff] }
 0x1b7   :  { %7722 = vst [vmem:[#allocation90_spill] sm:$0xff] %v4624_v17  ;;  %1005 = vmatpush.msrb.mxu1 %v4639_v3  ;;  %v4642_v17 = vld [vmem:[#allocation2 + $0x90] sm:$0xff] }
 0x1b8   :  { %7723 = vst [vmem:[#allocation26_spill] sm:$0xff] %v4627_v60  ;;  %907 = vmatpush.msra.mxu2 %v4642_v17  ;;  %v4645_v60 = vld [vmem:[#allocation5 + $0x268] sm:$0xff] }
 0x1b9   :  { %7724 = vst [vmem:[#allocation89_spill] sm:$0xff] %v4630_v57  ;;  %1045 = vmatpush.msrb.mxu3 %v4645_v60  ;;  %v4648_v57 = vld [vmem:[#allocation2 + $0x60] sm:$0xff] }
 0x1ba   :  { %7725 = vst [vmem:[#allocation31_spill] sm:$0xff] %v4633_v33  ;;  %868 = vmatpush.msra.mxu0 %v4648_v57  ;;  %v4651_v33 = vld [vmem:[#allocation5 + $0x240] sm:$0xff] }
 0x1bb   :  { %7726 = vst [vmem:[#allocation92_spill] sm:$0xff] %v4636_v63  ;;  %1006 = vmatpush.msrb.mxu1 %v4651_v33  ;;  %v4654_v63 = vld [vmem:[#allocation2 + $0x70] sm:$0xff] }
 0x1bc   :  { %7727 = vst [vmem:[#allocation28_spill] sm:$0xff] %v4639_v3  ;;  %908 = vmatpush.msra.mxu2 %v4654_v63  ;;  %v4657_v3 = vld [vmem:[#allocation5 + $0x248] sm:$0xff] }
 0x1bd   :  { %7728 = vst [vmem:[#allocation91_spill] sm:$0xff] %v4642_v17  ;;  %1046 = vmatpush.msrb.mxu3 %v4657_v3  ;;  %v4660_v17 = vld [vmem:[#allocation2 + $0x40] sm:$0xff] }
 0x1be   :  { %7729 = vst [vmem:[#allocation33_spill] sm:$0xff] %v4645_v60  ;;  %869 = vmatpush.msra.mxu0 %v4660_v17  ;;  %v4663_v60 = vld [vmem:[#allocation5 + $0x220] sm:$0xff] }
 0x1bf   :  { %7730 = vst [vmem:[#allocation94_spill] sm:$0xff] %v4648_v57  ;;  %1007 = vmatpush.msrb.mxu1 %v4663_v60  ;;  %v4666_v57 = vld [vmem:[#allocation2 + $0x50] sm:$0xff] }
 0x1c0   :  { %7731 = vst [vmem:[#allocation30_spill] sm:$0xff] %v4651_v33  ;;  %909 = vmatpush.msra.mxu2 %v4666_v57  ;;  %v4669_v33 = vld [vmem:[#allocation5 + $0x228] sm:$0xff] }
 0x1c1   :  { %7732 = vst [vmem:[#allocation93_spill] sm:$0xff] %v4654_v63  ;;  %1047 = vmatpush.msrb.mxu3 %v4669_v33  ;;  %v4672_v63 = vld [vmem:[#allocation2 + $0x20] sm:$0xff] }
 0x1c2   :  { %7733 = vst [vmem:[#allocation35_spill] sm:$0xff] %v4657_v3  ;;  %870 = vmatpush.msra.mxu0 %v4672_v63  ;;  %v4675_v3 = vld [vmem:[#allocation5 + $0x200] sm:$0xff] }
 0x1c3   :  { %7734 = vst [vmem:[#allocation96_spill] sm:$0xff] %v4660_v17  ;;  %1008 = vmatpush.msrb.mxu1 %v4675_v3  ;;  %v4678_v17 = vld [vmem:[#allocation2 + $0x30] sm:$0xff] }
 0x1c4   :  { %7735 = vst [vmem:[#allocation32_spill] sm:$0xff] %v4663_v60  ;;  %910 = vmatpush.msra.mxu2 %v4678_v17  ;;  %v4681_v60 = vld [vmem:[#allocation5 + $0x208] sm:$0xff] }
 0x1c5   :  { %7736 = vst [vmem:[#allocation95_spill] sm:$0xff] %v4666_v57  ;;  %1048 = vmatpush.msrb.mxu3 %v4681_v60  ;;  %v4684_v57 = vld [vmem:[#allocation2] sm:$0xff] }
 0x1c6   :  { %7737 = vst [vmem:[#allocation37_spill] sm:$0xff] %v4669_v33  ;;  %871 = vmatpush.msra.mxu0 %v4684_v57  ;;  %v4687_v33 = vld [vmem:[#allocation5 + $0x3f0] sm:$0xff] }
 0x1c7   :  { %7738 = vst [vmem:[#allocation98_spill] sm:$0xff] %v4672_v63  ;;  %1073 = vmatpush.msra.mxu1 %v4687_v33  ;;  %v4690_v63 = vld [vmem:[#allocation2 + $0x10] sm:$0xff]  ;;  %872 = vmatmul.f32.vlgmr.msra.gmra.mxu0 %v4502_v40 }
 0x1c8   :  { %7739 = vst [vmem:[#allocation34_spill] sm:$0xff] %v4675_v3  ;;  %911 = vmatpush.msra.mxu2 %v4690_v63 }
 0x1c9   :  { %7740 = vst [vmem:[#allocation97_spill] sm:$0xff] %v4678_v17  ;;  %912 = vmatmul.f32.vlgmr.msra.gmra.mxu2 %v4502_v40  ;;  %v4695_v17 = vld [vmem:[#allocation5 + $0x1e0] sm:$0xff]  ;;  %v4710_v40 = vld [vmem:[#allocation5 + $0x1c8] sm:$0xff] }
 0x1ca   :  { %7741 = vst [vmem:[#allocation39_spill] sm:$0xff] %v4681_v60  ;;  %973 = vmatpush.msrb.mxu0 %v4695_v17  ;;  %v4698_v60 = vld [vmem:[#allocation5 + $0x1e8] sm:$0xff] }
 0x1cb   :  { %7742 = vst [vmem:[#allocation36_spill] sm:$0xff] %v4684_v57  ;;  %1013 = vmatpush.msrb.mxu2 %v4698_v60  ;;  %v4701_v57 = vld [vmem:[#allocation5 + $0x3f8] sm:$0xff] }
 0x1cc   :  { %7743 = vst [vmem:[#allocation99_spill] sm:$0xff] %v4687_v33  ;;  %1113 = vmatpush.msra.mxu3 %v4701_v57  ;;  %v4704_v33 = vld [vmem:[#allocation5 + $0x1c0] sm:$0xff] }
 0x1cd   :  { %7744 = vst [vmem:[#allocation41_spill] sm:$0xff] %v4690_v63  ;;  %974 = vmatpush.msrb.mxu0 %v4704_v33  ;;  %v4707_v63 = vld [vmem:[#allocation5 + $0x3d0] sm:$0xff]  ;;  %1014 = vmatpush.msrb.mxu2 %v4710_v40 }
 0x1ce   :  { %7745 = vst [vmem:[#allocation101_spill] sm:$0xff] %v4695_v17  ;;  %1074 = vmatpush.msra.mxu1 %v4707_v63  ;;  %v4713_v17 = vld [vmem:[#allocation5 + $0x3d8] sm:$0xff] }
 0x1cf   :  { %7746 = vst [vmem:[#allocation38_spill] sm:$0xff] %v4698_v60  ;;  %1114 = vmatpush.msra.mxu3 %v4713_v17  ;;  %v4716_v60 = vld [vmem:[#allocation5 + $0x1a0] sm:$0xff] }
 0x1d0   :  { %7747 = vst [vmem:[#allocation100_spill] sm:$0xff] %v4701_v57  ;;  %975 = vmatpush.msrb.mxu0 %v4716_v60  ;;  %v4719_v57 = vld [vmem:[#allocation5 + $0x3b0] sm:$0xff] }
 0x1d1   :  { %7748 = vst [vmem:[#allocation42_spill] sm:$0xff] %v4704_v33  ;;  %1075 = vmatpush.msra.mxu1 %v4719_v57  ;;  %v4722_v33 = vld [vmem:[#allocation5 + $0x1a8] sm:$0xff] }
 0x1d2   :  { %7749 = vst [vmem:[#allocation103_spill] sm:$0xff] %v4707_v63  ;;  %1015 = vmatpush.msrb.mxu2 %v4722_v33  ;;  %v4725_v63 = vld [vmem:[#allocation5 + $0x3b8] sm:$0xff] }
 0x1d3   :  { %7750 = vst [vmem:[#allocation40_spill] sm:$0xff] %v4710_v40  ;;  %1115 = vmatpush.msra.mxu3 %v4725_v63  ;;  %v4728_v40 = vld [vmem:[#allocation5 + $0x180] sm:$0xff] }
 0x1d4   :  { %7751 = vst [vmem:[#allocation43_spill] sm:$0xff] %v4713_v17  ;;  %976 = vmatpush.msrb.mxu0 %v4728_v40  ;;  %v4731_v17 = vld [vmem:[#allocation5 + $0x390] sm:$0xff] }
 0x1d5   :  { %7752 = vst [vmem:[#allocation44_spill] sm:$0xff] %v4716_v60  ;;  %1076 = vmatpush.msra.mxu1 %v4731_v17  ;;  %v4734_v60 = vld [vmem:[#allocation5 + $0x188] sm:$0xff] }
 0x1d6   :  { %7753 = vst [vmem:[#allocation102_spill] sm:$0xff] %v4719_v57  ;;  %1016 = vmatpush.msrb.mxu2 %v4734_v60  ;;  %v4737_v57 = vld [vmem:[#allocation5 + $0x398] sm:$0xff] }
 0x1d7   :  { %7754 = vst [vmem:[#allocation45_spill] sm:$0xff] %v4722_v33  ;;  %1116 = vmatpush.msra.mxu3 %v4737_v57  ;;  %v4740_v33 = vld [vmem:[#allocation5 + $0x160] sm:$0xff] }
 0x1d8   :  { %7755 = vst [vmem:[#allocation105_spill] sm:$0xff] %v4725_v63  ;;  %977 = vmatpush.msrb.mxu0 %v4740_v33  ;;  %v4743_v63 = vld [vmem:[#allocation5 + $0x370] sm:$0xff] }
 0x1d9   :  { %7756 = vst [vmem:[#allocation46_spill] sm:$0xff] %v4728_v40  ;;  %1077 = vmatpush.msra.mxu1 %v4743_v63  ;;  %v4746_v40 = vld [vmem:[#allocation5 + $0x168] sm:$0xff] }
 0x1da   :  { %7757 = vst [vmem:[#allocation104_spill] sm:$0xff] %v4731_v17  ;;  %1017 = vmatpush.msrb.mxu2 %v4746_v40  ;;  %v4749_v17 = vld [vmem:[#allocation5 + $0x378] sm:$0xff] }
 0x1db   :  { %7758 = vst [vmem:[#allocation47_spill] sm:$0xff] %v4734_v60  ;;  %1117 = vmatpush.msra.mxu3 %v4749_v17  ;;  %v4752_v60 = vld [vmem:[#allocation5 + $0x140] sm:$0xff] }
 0x1dc   :  { %7759 = vst [vmem:[#allocation107_spill] sm:$0xff] %v4737_v57  ;;  %978 = vmatpush.msrb.mxu0 %v4752_v60  ;;  %v4755_v57 = vld [vmem:[#allocation5 + $0x350] sm:$0xff] }
 0x1dd   :  { %7760 = vst [vmem:[#allocation48_spill] sm:$0xff] %v4740_v33  ;;  %1078 = vmatpush.msra.mxu1 %v4755_v57  ;;  %v4758_v33 = vld [vmem:[#allocation5 + $0x148] sm:$0xff] }
 0x1de   :  { %7761 = vst [vmem:[#allocation106_spill] sm:$0xff] %v4743_v63  ;;  %1018 = vmatpush.msrb.mxu2 %v4758_v33  ;;  %v4761_v63 = vld [vmem:[#allocation5 + $0x358] sm:$0xff] }
 0x1df   :  { %7762 = vst [vmem:[#allocation49_spill] sm:$0xff] %v4746_v40  ;;  %1118 = vmatpush.msra.mxu3 %v4761_v63  ;;  %v4764_v40 = vld [vmem:[#allocation5 + $0x120] sm:$0xff] }
 0x1e0   :  { %7763 = vst [vmem:[#allocation50_spill] sm:$0xff] %v4749_v17  ;;  %979 = vmatpush.msrb.mxu0 %v4764_v40  ;;  %v4767_v17 = vld [vmem:[#allocation5 + $0x330] sm:$0xff] }
 0x1e1   :  { %7764 = vst [vmem:[#allocation110_spill] sm:$0xff] %v4752_v60  ;;  %1079 = vmatpush.msra.mxu1 %v4767_v17  ;;  %v4770_v60 = vld [vmem:[#allocation5 + $0x128] sm:$0xff] }
 0x1e2   :  { %7765 = vst [vmem:[#allocation51_spill] sm:$0xff] %v4755_v57  ;;  %1019 = vmatpush.msrb.mxu2 %v4770_v60  ;;  %v4773_v57 = vld [vmem:[#allocation5 + $0x338] sm:$0xff] }
 0x1e3   :  { %7766 = vst [vmem:[#allocation52_spill] sm:$0xff] %v4758_v33  ;;  %1119 = vmatpush.msra.mxu3 %v4773_v57  ;;  %v4776_v33 = vld [vmem:[#allocation5 + $0x100] sm:$0xff] }
 0x1e4   :  { %7767 = vst [vmem:[#allocation113_spill] sm:$0xff] %v4761_v63  ;;  %980 = vmatpush.msrb.mxu0 %v4776_v33  ;;  %v4779_v63 = vld [vmem:[#allocation5 + $0x310] sm:$0xff] }
 0x1e5   :  { %7768 = vst [vmem:[#allocation53_spill] sm:$0xff] %v4764_v40  ;;  %1080 = vmatpush.msra.mxu1 %v4779_v63  ;;  %v4782_v40 = vld [vmem:[#allocation5 + $0x108] sm:$0xff] }
 0x1e6   :  { %7769 = vst [vmem:[#allocation54_spill] sm:$0xff] %v4767_v17  ;;  %1020 = vmatpush.msrb.mxu2 %v4782_v40  ;;  %v4785_v17 = vld [vmem:[#allocation5 + $0x318] sm:$0xff] }
 0x1e7   :  { %7770 = vst [vmem:[#allocation55_spill] sm:$0xff] %v4770_v60  ;;  %1120 = vmatpush.msra.mxu3 %v4785_v17  ;;  %v4788_v60 = vld [vmem:[#allocation5 + $0xe0] sm:$0xff] }
 0x1e8   :  { %7771 = vst [vmem:[#allocation56_spill] sm:$0xff] %v4773_v57  ;;  %981 = vmatpush.msrb.mxu0 %v4788_v60  ;;  %v4791_v57 = vld [vmem:[#allocation5 + $0x2f0] sm:$0xff] }
 0x1e9   :  { %7772 = vst [vmem:[#allocation57_spill] sm:$0xff] %v4776_v33  ;;  %1081 = vmatpush.msra.mxu1 %v4791_v57  ;;  %v4794_v33 = vld [vmem:[#allocation5 + $0xe8] sm:$0xff] }
 0x1ea   :  { %7773 = vst [vmem:[#allocation58_spill] sm:$0xff] %v4779_v63  ;;  %1021 = vmatpush.msrb.mxu2 %v4794_v33  ;;  %v4797_v63 = vld [vmem:[#allocation5 + $0x2f8] sm:$0xff] }
 0x1eb   :  { %7774 = vst [vmem:[#allocation60_spill] sm:$0xff] %v4782_v40  ;;  %1121 = vmatpush.msra.mxu3 %v4797_v63  ;;  %v4800_v40 = vld [vmem:[#allocation5 + $0xc0] sm:$0xff] }
 0x1ec   :  { %7775 = vst [vmem:[#allocation61_spill] sm:$0xff] %v4785_v17  ;;  %982 = vmatpush.msrb.mxu0 %v4800_v40  ;;  %v4803_v17 = vld [vmem:[#allocation5 + $0x2d0] sm:$0xff] }
 0x1ed   :  { %7776 = vst [vmem:[#allocation63_spill] sm:$0xff] %v4788_v60  ;;  %1082 = vmatpush.msra.mxu1 %v4803_v17  ;;  %v4806_v60 = vld [vmem:[#allocation5 + $0xc8] sm:$0xff] }
 0x1ee   :  { %7777 = vst [vmem:[#allocation64_spill] sm:$0xff] %v4791_v57  ;;  %1022 = vmatpush.msrb.mxu2 %v4806_v60  ;;  %v4809_v57 = vld [vmem:[#allocation5 + $0x2d8] sm:$0xff] }
 0x1ef   :  { %7778 = vst [vmem:[#allocation67_spill] sm:$0xff] %v4794_v33  ;;  %1122 = vmatpush.msra.mxu3 %v4809_v57  ;;  %v4812_v33 = vld [vmem:[#allocation5 + $0xa0] sm:$0xff] }
 0x1f0   :  { %7779 = vst [vmem:[#allocation68_spill] sm:$0xff] %v4797_v63  ;;  %983 = vmatpush.msrb.mxu0 %v4812_v33  ;;  %v4815_v63 = vld [vmem:[#allocation5 + $0x2b0] sm:$0xff] }
 0x1f1   :  { %7780 = vst [vmem:[#allocation71_spill] sm:$0xff] %v4800_v40  ;;  %1083 = vmatpush.msra.mxu1 %v4815_v63  ;;  %v4818_v40 = vld [vmem:[#allocation5 + $0xa8] sm:$0xff] }
 0x1f2   :  { %7781 = vst [vmem:[#allocation72_spill] sm:$0xff] %v4803_v17  ;;  %1023 = vmatpush.msrb.mxu2 %v4818_v40  ;;  %v4821_v17 = vld [vmem:[#allocation5 + $0x2b8] sm:$0xff] }
 0x1f3   :  { %7782 = vst [vmem:[#allocation74_spill] sm:$0xff] %v4806_v60  ;;  %1123 = vmatpush.msra.mxu3 %v4821_v17  ;;  %v4824_v60 = vld [vmem:[#allocation5 + $0x80] sm:$0xff] }
 0x1f4   :  { %7783 = vst [vmem:[#allocation75_spill] sm:$0xff] %v4809_v57  ;;  %984 = vmatpush.msrb.mxu0 %v4824_v60  ;;  %v4827_v57 = vld [vmem:[#allocation5 + $0x290] sm:$0xff] }
 0x1f5   :  { %7784 = vst [vmem:[#allocation77_spill] sm:$0xff] %v4812_v33  ;;  %1084 = vmatpush.msra.mxu1 %v4827_v57  ;;  %v4830_v33 = vld [vmem:[#allocation5 + $0x88] sm:$0xff] }
 0x1f6   :  { %7785 = vst [vmem:[#allocation78_spill] sm:$0xff] %v4815_v63  ;;  %1024 = vmatpush.msrb.mxu2 %v4830_v33  ;;  %v4833_v63 = vld [vmem:[#allocation5 + $0x298] sm:$0xff] }
 0x1f7   :  { %7786 = vst [vmem:[#allocation108_spill] sm:$0xff] %v4818_v40  ;;  %1124 = vmatpush.msra.mxu3 %v4833_v63  ;;  %v4836_v40 = vld [vmem:[#allocation5 + $0x60] sm:$0xff] }
 0x1f8   :  { %7787 = vst [vmem:[#allocation109_spill] sm:$0xff] %v4821_v17  ;;  %985 = vmatpush.msrb.mxu0 %v4836_v40  ;;  %v4839_v17 = vld [vmem:[#allocation5 + $0x270] sm:$0xff] }
 0x1f9   :  { %7788 = vst [vmem:[#allocation111_spill] sm:$0xff] %v4824_v60  ;;  %1085 = vmatpush.msra.mxu1 %v4839_v17  ;;  %v4842_v60 = vld [vmem:[#allocation5 + $0x68] sm:$0xff] }
 0x1fa   :  { %7789 = vst [vmem:[#allocation112_spill] sm:$0xff] %v4827_v57  ;;  %1025 = vmatpush.msrb.mxu2 %v4842_v60  ;;  %v4845_v57 = vld [vmem:[#allocation5 + $0x278] sm:$0xff] }
 0x1fb   :  { %7790 = vst [vmem:[#allocation114_spill] sm:$0xff] %v4830_v33  ;;  %1125 = vmatpush.msra.mxu3 %v4845_v57  ;;  %v4848_v33 = vld [vmem:[#allocation5 + $0x40] sm:$0xff] }
 0x1fc   :  { %7791 = vst [vmem:[#allocation115_spill] sm:$0xff] %v4833_v63  ;;  %986 = vmatpush.msrb.mxu0 %v4848_v33  ;;  %v4851_v63 = vld [vmem:[#allocation5 + $0x250] sm:$0xff] }
 0x1fd   :  { %7792 = vst [vmem:[#allocation116_spill] sm:$0xff] %v4836_v40  ;;  %1086 = vmatpush.msra.mxu1 %v4851_v63  ;;  %v4854_v40 = vld [vmem:[#allocation5 + $0x48] sm:$0xff] }
 0x1fe   :  { %7793 = vst [vmem:[#allocation117_spill] sm:$0xff] %v4839_v17  ;;  %1026 = vmatpush.msrb.mxu2 %v4854_v40  ;;  %v4857_v17 = vld [vmem:[#allocation5 + $0x258] sm:$0xff] }
 0x1ff   :  { %7794 = vst [vmem:[#allocation118_spill] sm:$0xff] %v4842_v60  ;;  %1126 = vmatpush.msra.mxu3 %v4857_v17  ;;  %v4860_v60 = vld [vmem:[#allocation5 + $0x20] sm:$0xff] }
 0x200   :  { %7795 = vst [vmem:[#allocation119_spill] sm:$0xff] %v4845_v57  ;;  %987 = vmatpush.msrb.mxu0 %v4860_v60  ;;  %v4863_v57 = vld [vmem:[#allocation5 + $0x230] sm:$0xff] }
 0x201   :  { %7796 = vst [vmem:[#allocation120_spill] sm:$0xff] %v4848_v33  ;;  %1087 = vmatpush.msra.mxu1 %v4863_v57  ;;  %v4866_v33 = vld [vmem:[#allocation5 + $0x28] sm:$0xff] }
 0x202   :  { %7797 = vst [vmem:[#allocation121_spill] sm:$0xff] %v4851_v63  ;;  %1027 = vmatpush.msrb.mxu2 %v4866_v33  ;;  %v4869_v63 = vld [vmem:[#allocation5 + $0x238] sm:$0xff] }
 0x203   :  { %7798 = vst [vmem:[#allocation122_spill] sm:$0xff] %v4854_v40  ;;  %1127 = vmatpush.msra.mxu3 %v4869_v63  ;;  %v4872_v40 = vld [vmem:[#allocation5] sm:$0xff] }
 0x204   :  { %7799 = vst [vmem:[#allocation123_spill] sm:$0xff] %v4857_v17  ;;  %988 = vmatpush.msrb.mxu0 %v4872_v40  ;;  %v4875_v17 = vld [vmem:[#allocation5 + $0x210] sm:$0xff] }
 0x205   :  { %7800 = vst [vmem:[#allocation124_spill] sm:$0xff] %v4860_v60  ;;  %1088 = vmatpush.msra.mxu1 %v4875_v17  ;;  %v4878_v60 = vld [vmem:[#allocation5 + $0x8] sm:$0xff] }
 0x206   :  { %7801 = vst [vmem:[#allocation125_spill] sm:$0xff] %v4863_v57  ;;  %1028 = vmatpush.msrb.mxu2 %v4878_v60  ;;  %v4881_v57 = vld [vmem:[#allocation5 + $0x218] sm:$0xff] }
 0x207   :  { %7802 = vst [vmem:[#allocation126_spill] sm:$0xff] %v4866_v33  ;;  %1128 = vmatpush.msra.mxu3 %v4881_v57  ;;  %v4884_v33 = vld [vmem:[#allocation5 + $0x1f0] sm:$0xff] }
 0x208   :  { %7803 = vst [vmem:[#allocation127_spill] sm:$0xff] %v4869_v63  ;;  %1053 = vmatpush.msra.mxu0 %v4884_v33  ;;  %v4887_v63 = vld [vmem:[#allocation5 + $0x1f8] sm:$0xff] }
 0x209   :  { %7804 = vst [vmem:[#allocation128_spill] sm:$0xff] %v4872_v40  ;;  %1093 = vmatpush.msra.mxu2 %v4887_v63  ;;  %v4890_v40 = vld [vmem:[#allocation5 + $0x1d0] sm:$0xff] }
 0x20a   :  { %7805 = vst [vmem:[#allocation129_spill] sm:$0xff] %v4875_v17  ;;  %1054 = vmatpush.msra.mxu0 %v4890_v40  ;;  %v4893_v17 = vld [vmem:[#allocation5 + $0x1d8] sm:$0xff] }
 0x20b   :  { %7806 = vst [vmem:[#allocation130_spill] sm:$0xff] %v4878_v60  ;;  %1094 = vmatpush.msra.mxu2 %v4893_v17  ;;  %v4896_v60 = vld [vmem:[#allocation5 + $0x1b0] sm:$0xff] }
 0x20c   :  { %7807 = vst [vmem:[#allocation131_spill] sm:$0xff] %v4881_v57  ;;  %1055 = vmatpush.msra.mxu0 %v4896_v60  ;;  %v4899_v57 = vld [vmem:[#allocation5 + $0x1b8] sm:$0xff] }
 0x20d   :  { %7808 = vst [vmem:[#allocation132_spill] sm:$0xff] %v4884_v33  ;;  %1095 = vmatpush.msra.mxu2 %v4899_v57  ;;  %v4902_v33 = vld [vmem:[#allocation5 + $0x190] sm:$0xff] }
 0x20e   :  { %7809 = vst [vmem:[#allocation133_spill] sm:$0xff] %v4887_v63  ;;  %1056 = vmatpush.msra.mxu0 %v4902_v33  ;;  %v4905_v63 = vld [vmem:[#allocation5 + $0x198] sm:$0xff] }
 0x20f   :  { %7810 = vst [vmem:[#allocation134_spill] sm:$0xff] %v4890_v40  ;;  %1096 = vmatpush.msra.mxu2 %v4905_v63  ;;  %v4908_v40 = vld [vmem:[#allocation5 + $0x170] sm:$0xff] }
 0x210   :  { %7811 = vst [vmem:[#allocation135_spill] sm:$0xff] %v4893_v17  ;;  %1057 = vmatpush.msra.mxu0 %v4908_v40  ;;  %v4911_v17 = vld [vmem:[#allocation5 + $0x178] sm:$0xff] }
 0x211   :  { %7812 = vst [vmem:[#allocation136_spill] sm:$0xff] %v4896_v60  ;;  %1097 = vmatpush.msra.mxu2 %v4911_v17  ;;  %v4914_v60 = vld [vmem:[#allocation5 + $0x150] sm:$0xff] }
 0x212   :  { %7813 = vst [vmem:[#allocation137_spill] sm:$0xff] %v4899_v57  ;;  %1058 = vmatpush.msra.mxu0 %v4914_v60  ;;  %v4917_v57 = vld [vmem:[#allocation5 + $0x158] sm:$0xff] }
 0x213   :  { %7814 = vst [vmem:[#allocation138_spill] sm:$0xff] %v4902_v33  ;;  %1098 = vmatpush.msra.mxu2 %v4917_v57  ;;  %v4920_v33 = vld [vmem:[#allocation5 + $0x130] sm:$0xff] }
 0x214   :  { %7815 = vst [vmem:[#allocation139_spill] sm:$0xff] %v4905_v63  ;;  %1059 = vmatpush.msra.mxu0 %v4920_v33  ;;  %v4923_v63 = vld [vmem:[#allocation5 + $0x138] sm:$0xff] }
 0x215   :  { %7816 = vst [vmem:[#allocation140_spill] sm:$0xff] %v4908_v40  ;;  %1099 = vmatpush.msra.mxu2 %v4923_v63  ;;  %v4926_v40 = vld [vmem:[#allocation5 + $0x110] sm:$0xff] }
 0x216   :  { %7817 = vst [vmem:[#allocation141_spill] sm:$0xff] %v4911_v17  ;;  %1060 = vmatpush.msra.mxu0 %v4926_v40  ;;  %v4929_v17 = vld [vmem:[#allocation5 + $0x118] sm:$0xff] }
 0x217   :  { %7818 = vst [vmem:[#allocation142_spill] sm:$0xff] %v4914_v60  ;;  %1100 = vmatpush.msra.mxu2 %v4929_v17  ;;  %v4932_v60 = vld [vmem:[#allocation5 + $0xf0] sm:$0xff] }
 0x218   :  { %7819 = vst [vmem:[#allocation143_spill] sm:$0xff] %v4917_v57  ;;  %1061 = vmatpush.msra.mxu0 %v4932_v60  ;;  %v4935_v57 = vld [vmem:[#allocation5 + $0xf8] sm:$0xff] }
 0x219   :  { %7820 = vst [vmem:[#allocation144_spill] sm:$0xff] %v4920_v33  ;;  %1101 = vmatpush.msra.mxu2 %v4935_v57  ;;  %v4938_v33 = vld [vmem:[#allocation5 + $0xd0] sm:$0xff] }
 0x21a   :  { %7821 = vst [vmem:[#allocation145_spill] sm:$0xff] %v4923_v63  ;;  %1062 = vmatpush.msra.mxu0 %v4938_v33  ;;  %v4941_v63 = vld [vmem:[#allocation5 + $0xd8] sm:$0xff] }
 0x21b   :  { %7822 = vst [vmem:[#allocation146_spill] sm:$0xff] %v4926_v40  ;;  %1102 = vmatpush.msra.mxu2 %v4941_v63  ;;  %v4944_v40 = vld [vmem:[#allocation5 + $0xb0] sm:$0xff] }
 0x21c   :  { %7823 = vst [vmem:[#allocation147_spill] sm:$0xff] %v4929_v17  ;;  %1063 = vmatpush.msra.mxu0 %v4944_v40  ;;  %v4947_v17 = vld [vmem:[#allocation5 + $0xb8] sm:$0xff] }
 0x21d   :  { %7824 = vst [vmem:[#allocation148_spill] sm:$0xff] %v4932_v60  ;;  %1103 = vmatpush.msra.mxu2 %v4947_v17  ;;  %v4950_v60 = vld [vmem:[#allocation5 + $0x90] sm:$0xff]  ;;  %v733_v3 = vpop.f32.mrf.mxu2 }
 0x21e   :  { %7825 = vst [vmem:[#allocation149_spill] sm:$0xff] %v4935_v57  ;;  %1064 = vmatpush.msra.mxu0 %v4950_v60  ;;  %v4953_v57 = vld [vmem:[#allocation5 + $0x98] sm:$0xff] }
 0x21f   :  { %7826 = vst [vmem:[#allocation150_spill] sm:$0xff] %v4938_v33  ;;  %1104 = vmatpush.msra.mxu2 %v4953_v57  ;;  %v4956_v33 = vld [vmem:[#allocation5 + $0x70] sm:$0xff] }
 0x220   :  { %7827 = vst [vmem:[#allocation151_spill] sm:$0xff] %v4941_v63  ;;  %1065 = vmatpush.msra.mxu0 %v4956_v33  ;;  %v4959_v63 = vld [vmem:[#allocation5 + $0x78] sm:$0xff] }
 0x221   :  { %7828 = vst [vmem:[#allocation152_spill] sm:$0xff] %v4944_v40  ;;  %1105 = vmatpush.msra.mxu2 %v4959_v63 }
 0x222   :  { %7829 = vst [vmem:[#allocation153_spill] sm:$0xff] %v4947_v17  ;;  %1066 = vmatpush.msra.mxu0 %v4159_v39  ;;  %v734_v39 = vadd.f32 %v733_v3, %v4372_v16 }
 0x223   :  { %7830 = vst [vmem:[#allocation154_spill] sm:$0xff] %v4950_v60  ;;  %1106 = vmatpush.msra.mxu2 %v4161_v44  ;;  %v693_v60 = vpop.f32.mrf.mxu0 }
 0x224   :  { %7831 = vst [vmem:[#allocation155_spill] sm:$0xff] %v4953_v57  ;;  %1067 = vmatpush.msra.mxu0 %v4167_v43  ;;  %v713_v57 = vpop.f32.mrf.mxu1 }
 0x225   :  { %7832 = vst [vmem:[#allocation156_spill] sm:$0xff] %v4956_v33  ;;  %1107 = vmatpush.msra.mxu2 %v4169_v23  ;;  %v694_v33 = vadd.f32 %v693_v60, %v4369_v1 }
 0x226   :  { %7833 = vst [vmem:[#allocation157_spill] sm:$0xff] %v4959_v63  ;;  %1068 = vmatpush.msra.mxu0 %v4179_v47  ;;  %v753_v63 = vpop.f32.mrf.mxu3  ;;  %v813_v11 = vpop.f32.mrf.mxu2 }
 0x227   :  { %1108 = vmatpush.msra.mxu2 %v4181_v52  ;;  %v714_v17 = vadd.f32 %v713_v57, %v694_v33  ;;  %v754_v44 = vadd.f32 %v753_v63, %v734_v39  ;;  %v814_v60 = vadd.f32 %v813_v11, %v4378_v62 }
 0x229   :  { %v836_v40 = vmul.f32 0.5, %v714_v17  ;;  %v840_v51 = vmul.f32 0.5, %v754_v44 }
 0x22b   :  { %v773_v2 = vpop.f32.mrf.mxu0  ;;  %2740 = vtanh.f32 %v836_v40 }
 0x22c   :  { %v774_v43 = vadd.f32 %v773_v2, %v4374_v20  ;;  %v793_v23 = vpop.f32.mrf.mxu1  ;;  %2742 = vtanh.f32 %v840_v51 }
 0x22e   :  { %v794_v47 = vadd.f32 %v793_v23, %v774_v43  ;;  %v833_v57 = vpop.f32.mrf.mxu3 }
 0x22f   :  { %v834_v33 = vadd.f32 %v833_v57, %v814_v60 }
 0x230   :  { %2744 = vtanh.f32 %v794_v47 }
 0x231   :  { %v2741_v52 = vpop.eup %2740  ;;  %v845_v3 = vmul.f32 0.5, %v834_v33 }
 0x232   :  { %v838_v17 = vmul.f32 0.5, %v2741_v52  ;;  %v2743_v1 = vpop.eup %2742 }
 0x233   :  { %v842_v27 = vmul.f32 0.5, %v2743_v1  ;;  %2746 = vtanh.f32 %v845_v3 }
 0x234   :  { %v839_v40 = vadd.f32 0.5, %v838_v17  ;;  %v893_v52 = vpop.f32.mrf.mxu1  ;;  %v2697_v17 = vld [vmem:[%s6904_s0 + $0x10] sm:$0xff] }
 0x235   :  { %v843_v63 = vadd.f32 0.5, %v842_v27 }
 0x236   :  { %v2745_v16 = vpop.eup %2744  ;;  %v933_v60 = vpop.f32.mrf.mxu3 }
 0x237   :  { %v849_v2 = vmul.f32 %v843_v63, %v4381_v56  ;;  %v850_v39 = vmul.f32 %v2745_v16, %v839_v40  ;;  %v940_v16 = vrot.slane %v893_v52, 6  ;;  %v942_v27 = vrot.slane %v933_v60, 2  ;;  %v7854_v63 = vld [vmem:[#allocation23_spill] sm:$0xff]  ;;  %v7863_v60 = vld [vmem:[#allocation88_spill] sm:$0xff] }
 0x238   :  { %v7862_v52 = vld [vmem:[#allocation27_spill] sm:$0xff] }
 0x239   :  { %v4973_v44 = vadd.f32 %v850_v39, %v849_v2  ;;  %v2747_v51 = vpop.eup %2746  ;;  %v7855_v2 = vld [vmem:[#allocation84_spill] sm:$0xff] }
 0x23a   :  { %v847_v43 = vmul.f32 0.5, %v2747_v51  ;;  %v7856_v39 = vld [vmem:[#allocation20_spill] sm:$0xff]  ;;  %v7857_v51 = vld [vmem:[#allocation83_spill] sm:$0xff] }
 0x23b   :  { %2748 = vtanh.f32 %v4973_v44 }
 0x23c   :  { %v848_v11 = vadd.f32 0.5, %v847_v43  ;;  %v7858_v43 = vld [vmem:[#allocation25_spill] sm:$0xff] }
 0x241   :  { %v2749_v23 = vpop.eup %2748 }
 0x242   :  { %v853_v47 = vmul.f32 %v2749_v23, %v848_v11  ;;  %v7859_v11 = vld [vmem:[#allocation86_spill] sm:$0xff] }
 0x243   :  { %v7860_v23 = vld [vmem:[#allocation22_spill] sm:$0xff] }
 0x244   :  { %1009 = vmatmul.f32.vlgmr.msrb.gmra.mxu1 %v853_v47  ;;  %1049 = vmatmul.f32.vlgmr.msrb.gmra.mxu3 %v853_v47  ;;  %v873_v1 = vpop.f32.mrf.mxu0 }
 0x245   :  { %1173 = vmatpush.msrb.mxu1 %v4384_v42  ;;  %1213 = vmatpush.msrb.mxu3 %v4387_v58  ;;  %v943_v33 = vsel %vm346_vm0, %v873_v1, %v940_v16  ;;  %v7864_v1 = vld [vmem:[#allocation24_spill] sm:$0xff]  ;;  %v7866_v16 = vld [vmem:[#allocation29_spill] sm:$0xff] }
 0x247   :  { %1174 = vmatpush.msrb.mxu1 %v4390_v37  ;;  %1214 = vmatpush.msrb.mxu3 %v4393_v46 }
 0x249   :  { %1175 = vmatpush.msrb.mxu1 %v4401_v38  ;;  %1215 = vmatpush.msrb.mxu3 %v4404_v41 }
 0x24b   :  { %1176 = vmatpush.msrb.mxu1 %v4408_v6  ;;  %1216 = vmatpush.msrb.mxu3 %v4411_v8 }
 0x24c   :  { %v913_v56 = vpop.f32.mrf.mxu2  ;;  %1089 = vmatmul.f32.vlgmr.msra.gmra.mxu1 %v853_v47  ;;  %1129 = vmatmul.f32.vlgmr.msra.gmra.mxu3 %v853_v47  ;;  %v7861_v47 = vld [vmem:[#allocation85_spill] sm:$0xff] }
 0x24d   :  { %v941_v57 = vrot.slane %v913_v56, 4  ;;  %1177 = vmatpush.msrb.mxu1 %v4414_v5  ;;  %1217 = vmatpush.msrb.mxu3 %v4417_v10  ;;  %v7865_v56 = vld [vmem:[#allocation87_spill] sm:$0xff] }
 0x24f   :  { %v944_v3 = vsel %vm348_vm1, %v941_v57, %v942_v27  ;;  %1178 = vmatpush.msrb.mxu1 %v4420_v24  ;;  %1218 = vmatpush.msrb.mxu3 %v4423_v31  ;;  %v7867_v27 = vld [vmem:[#allocation90_spill] sm:$0xff] }
 0x250   :  { %v945_v42 = vsel %vm350_vm2, %v943_v33, %v944_v3  ;;  %v7868_v57 = vld [vmem:[#allocation26_spill] sm:$0xff]  ;;  %v7870_v33 = vld [vmem:[#allocation31_spill] sm:$0xff]  ;;  %v7871_v3 = vld [vmem:[#allocation92_spill] sm:$0xff] }
 0x251   :  { %v947_v58 = vadd.f32 %v2697_v17, %v945_v42  ;;  %1179 = vmatpush.msrb.mxu1 %v4426_v29  ;;  %1219 = vmatpush.msrb.mxu3 %v4429_v61  ;;  %v7869_v17 = vld [vmem:[#allocation89_spill] sm:$0xff]  ;;  %v7872_v42 = vld [vmem:[#allocation28_spill] sm:$0xff] }
 0x253   :  { %v948_v37 = vmul.f32 0.5, %v947_v58  ;;  %v953_v46 = vrot.slane %v947_v58, 2  ;;  %v962_v38 = vrot.slane %v947_v58, 6  ;;  %v959_v41 = vrot.slane %v947_v58, 4  ;;  %1180 = vmatpush.msrb.mxu1 %v4432_v14  ;;  %1220 = vmatpush.msrb.mxu3 %v4435_v25  ;;  %v7873_v58 = vld [vmem:[#allocation91_spill] sm:$0xff] }
 0x255   :  { %2750 = vtanh.f32 %v948_v37  ;;  %v955_v40 = vmul.f32 0.5, %v953_v46  ;;  %v964_v6 = vmul.f32 0.5, %v962_v38  ;;  %1181 = vmatpush.msrb.mxu1 %v4438_v4  ;;  %1221 = vmatpush.msrb.mxu3 %v4441_v28  ;;  %v7874_v37 = vld [vmem:[#allocation33_spill] sm:$0xff]  ;;  %v7875_v46 = vld [vmem:[#allocation94_spill] sm:$0xff] }
 0x256   :  { %v7877_v38 = vld [vmem:[#allocation93_spill] sm:$0xff] }
 0x257   :  { %2752 = vtanh.f32 %v955_v40  ;;  %1182 = vmatpush.msrb.mxu1 %v4444_v35  ;;  %1222 = vmatpush.msrb.mxu3 %v4447_v13  ;;  %v7876_v40 = vld [vmem:[#allocation30_spill] sm:$0xff] }
 0x258   :  { %2754 = vtanh.f32 %v959_v41  ;;  %v7878_v41 = vld [vmem:[#allocation35_spill] sm:$0xff] }
 0x259   :  { %2756 = vtanh.f32 %v964_v6  ;;  %1183 = vmatpush.msrb.mxu1 %v4450_v32  ;;  %1223 = vmatpush.msrb.mxu3 %v4453_v36  ;;  %v7879_v6 = vld [vmem:[#allocation96_spill] sm:$0xff] }
 0x25b   :  { %v2751_v8 = vpop.eup %2750  ;;  %1184 = vmatpush.msrb.mxu1 %v4456_v19  ;;  %1224 = vmatpush.msrb.mxu3 %v4459_v55  ;;  %v7834_v19 = vld [vmem:[#allocation62_spill] sm:$0xff]  ;;  %v7835_v55 = vld [vmem:[#allocation69_spill] sm:$0xff] }
 0x25c   :  { %v950_v5 = vmul.f32 0.5, %v2751_v8  ;;  %v7880_v8 = vld [vmem:[#allocation32_spill] sm:$0xff] }
 0x25d   :  { %v2753_v10 = vpop.eup %2752  ;;  %1185 = vmatpush.msrb.mxu1 %v4463_v7  ;;  %1225 = vmatpush.msrb.mxu3 %v4466_v54  ;;  %v7836_v7 = vld [vmem:[#allocation66_spill] sm:$0xff] }
 0x25e   :  { %v951_v24 = vadd.f32 0.5, %v950_v5  ;;  %v957_v31 = vmul.f32 0.5, %v2753_v10  ;;  %v2755_v61 = vpop.eup %2754  ;;  %v7837_v54 = vld [vmem:[#allocation70_spill] sm:$0xff]  ;;  %v7881_v5 = vld [vmem:[#allocation95_spill] sm:$0xff]  ;;  %v7882_v10 = vld [vmem:[#allocation37_spill] sm:$0xff] }
 0x25f   :  { %v2757_v4 = vpop.eup %2756  ;;  %1186 = vmatpush.msrb.mxu1 %v4471_v59  ;;  %1226 = vmatpush.msrb.mxu3 %v4474_v30  ;;  %v7839_v59 = vld [vmem:[#allocation14_spill] sm:$0xff]  ;;  %v7840_v30 = vld [vmem:[#allocation11_spill] sm:$0xff] }
 0x260   :  { %v958_v29 = vadd.f32 0.5, %v957_v31  ;;  %v969_v25 = vmul.f32 %v2755_v61, %v951_v24  ;;  %v966_v35 = vmul.f32 0.5, %v2757_v4  ;;  %v7883_v24 = vld [vmem:[#allocation98_spill] sm:$0xff]  ;;  %v7886_v61 = vld [vmem:[#allocation39_spill] sm:$0xff]  ;;  %v7889_v4 = vld [vmem:[#allocation41_spill] sm:$0xff] }
 0x261   :  { %1187 = vmatpush.msrb.mxu1 %v4478_v45  ;;  %1227 = vmatpush.msrb.mxu3 %v4481_v26  ;;  %v7841_v45 = vld [vmem:[#allocation16_spill] sm:$0xff]  ;;  %v7884_v31 = vld [vmem:[#allocation34_spill] sm:$0xff] }
 0x262   :  { %v968_v14 = vmul.f32 %v958_v29, %v4469_v50  ;;  %v967_v13 = vadd.f32 0.5, %v966_v35  ;;  %v7838_v50 = vld [vmem:[#allocation73_spill] sm:$0xff]  ;;  %v7842_v26 = vld [vmem:[#allocation12_spill] sm:$0xff] }
 0x263   :  { %1188 = vmatpush.msrb.mxu1 %v4484_v22  ;;  %1228 = vmatpush.msrb.mxu3 %v4487_v0  ;;  %v7843_v22 = vld [vmem:[#allocation76_spill] sm:$0xff]  ;;  %v7844_v0 = vld [vmem:[#allocation17_spill] sm:$0xff] }
 0x264   :  { %v5009_v28 = vadd.f32 %v969_v25, %v968_v14  ;;  %v7885_v29 = vld [vmem:[#allocation97_spill] sm:$0xff]  ;;  %v7887_v14 = vld [vmem:[#allocation36_spill] sm:$0xff]  ;;  %v7888_v25 = vld [vmem:[#allocation99_spill] sm:$0xff] }
 0x265   :  { %1290 = vmatpush.msra.mxu1 %v4490_v34  ;;  %1330 = vmatpush.msra.mxu3 %v4493_v49  ;;  %v7845_v34 = vld [vmem:[#allocation81_spill] sm:$0xff] }
 0x266   :  { %2758 = vtanh.f32 %v5009_v28  ;;  %v7846_v49 = vld [vmem:[#allocation13_spill] sm:$0xff] }
 0x267   :  { %1291 = vmatpush.msra.mxu1 %v4496_v12  ;;  %1331 = vmatpush.msra.mxu3 %v4499_v15  ;;  %v7847_v12 = vld [vmem:[#allocation79_spill] sm:$0xff]  ;;  %v7890_v35 = vld [vmem:[#allocation101_spill] sm:$0xff] }
 0x268   :  { %v7848_v15 = vld [vmem:[#allocation19_spill] sm:$0xff] }
 0x269   :  { %1292 = vmatpush.msra.mxu1 %v4504_v18  ;;  %1332 = vmatpush.msra.mxu3 %v4507_v9  ;;  %v7849_v18 = vld [vmem:[#allocation82_spill] sm:$0xff]  ;;  %v7850_v9 = vld [vmem:[#allocation15_spill] sm:$0xff] }
 0x26b   :  { %1293 = vmatpush.msra.mxu1 %v7834_v19  ;;  %1333 = vmatpush.msra.mxu3 %v7836_v7  ;;  %v7893_v19 = vld [vmem:[#allocation42_spill] sm:$0xff]  ;;  %v7895_v7 = vld [vmem:[#allocation40_spill] sm:$0xff] }
 0x26c   :  { %v2759_v32 = vpop.eup %2758 }
 0x26d   :  { %v5022_v36 = vmul.f32 %v2759_v32, %v967_v13  ;;  %1294 = vmatpush.msra.mxu1 %v7838_v50  ;;  %1334 = vmatpush.msra.mxu3 %v7840_v30  ;;  %v7891_v13 = vld [vmem:[#allocation38_spill] sm:$0xff]  ;;  %v7892_v32 = vld [vmem:[#allocation100_spill] sm:$0xff]  ;;  %v7899_v30 = vld [vmem:[#allocation45_spill] sm:$0xff] }
 0x26e   :  { %v7897_v50 = vld [vmem:[#allocation44_spill] sm:$0xff] }
 0x26f   :  { %989 = vmatmul.f32.vlgmr.msrb.gmra.mxu0 %v5022_v36  ;;  %1029 = vmatmul.f32.vlgmr.msrb.gmra.mxu2 %v5022_v36 }
 0x270   :  { %1153 = vmatpush.msrb.mxu0 %v4512_v21  ;;  %1189 = vmatmul.f32.vlgmr.msrb.gmra.mxu1 %v5022_v36  ;;  %v7851_v21 = vld [vmem:[#allocation21_spill] sm:$0xff] }
 0x271   :  { %1193 = vmatpush.msrb.mxu2 %v4516_v48  ;;  %1229 = vmatmul.f32.vlgmr.msrb.gmra.mxu3 %v5022_v36  ;;  %v7852_v48 = vld [vmem:[#allocation18_spill] sm:$0xff] }
 0x272   :  { %1154 = vmatpush.msrb.mxu0 %v4520_v53  ;;  %1295 = vmatpush.msra.mxu1 %v7842_v26  ;;  %v7853_v53 = vld [vmem:[#allocation80_spill] sm:$0xff] }
 0x273   :  { %1194 = vmatpush.msrb.mxu2 %v7835_v55  ;;  %1335 = vmatpush.msra.mxu3 %v7846_v49  ;;  %v7894_v55 = vld [vmem:[#allocation103_spill] sm:$0xff]  ;;  %v7902_v26 = vld [vmem:[#allocation104_spill] sm:$0xff]  ;;  %v7906_v49 = vld [vmem:[#allocation106_spill] sm:$0xff] }
 0x274   :  { %1155 = vmatpush.msrb.mxu0 %v7837_v54  ;;  %1296 = vmatpush.msra.mxu1 %v7848_v15  ;;  %v7896_v54 = vld [vmem:[#allocation43_spill] sm:$0xff]  ;;  %v7908_v15 = vld [vmem:[#allocation50_spill] sm:$0xff] }
 0x275   :  { %1195 = vmatpush.msrb.mxu2 %v7839_v59  ;;  %1336 = vmatpush.msra.mxu3 %v7850_v9  ;;  %v7898_v59 = vld [vmem:[#allocation102_spill] sm:$0xff]  ;;  %v7910_v9 = vld [vmem:[#allocation51_spill] sm:$0xff] }
 0x276   :  { %1156 = vmatpush.msrb.mxu0 %v7841_v45  ;;  %1297 = vmatpush.msra.mxu1 %v7852_v48  ;;  %v7901_v45 = vld [vmem:[#allocation46_spill] sm:$0xff]  ;;  %v7912_v48 = vld [vmem:[#allocation113_spill] sm:$0xff] }
 0x277   :  { %1196 = vmatpush.msrb.mxu2 %v7843_v22  ;;  %1069 = vmatmul.f32.vlgmr.msra.gmra.mxu0 %v5022_v36  ;;  %v7903_v22 = vld [vmem:[#allocation47_spill] sm:$0xff] }
 0x278   :  { %1109 = vmatmul.f32.vlgmr.msra.gmra.mxu2 %v5022_v36  ;;  %1157 = vmatpush.msrb.mxu0 %v7844_v0  ;;  %v7904_v0 = vld [vmem:[#allocation107_spill] sm:$0xff] }
 0x279   :  { %1197 = vmatpush.msrb.mxu2 %v7845_v34  ;;  %1337 = vmatpush.msra.mxu3 %v7854_v63  ;;  %v7905_v34 = vld [vmem:[#allocation48_spill] sm:$0xff]  ;;  %v7914_v63 = vld [vmem:[#allocation54_spill] sm:$0xff] }
 0x27a   :  { %1158 = vmatpush.msrb.mxu0 %v7847_v12  ;;  %1298 = vmatpush.msra.mxu1 %v7856_v39  ;;  %v7907_v12 = vld [vmem:[#allocation49_spill] sm:$0xff]  ;;  %v7916_v39 = vld [vmem:[#allocation56_spill] sm:$0xff] }
 0x27b   :  { %1198 = vmatpush.msrb.mxu2 %v7849_v18  ;;  %1338 = vmatpush.msra.mxu3 %v7858_v43  ;;  %v7909_v18 = vld [vmem:[#allocation110_spill] sm:$0xff] }
 0x27c   :  { %1159 = vmatpush.msrb.mxu0 %v7851_v21  ;;  %1299 = vmatpush.msra.mxu1 %v7860_v23  ;;  %v7911_v21 = vld [vmem:[#allocation52_spill] sm:$0xff]  ;;  %v7918_v43 = vld [vmem:[#allocation58_spill] sm:$0xff]  ;;  %v7920_v23 = vld [vmem:[#allocation61_spill] sm:$0xff] }
 0x27d   :  { %1199 = vmatpush.msrb.mxu2 %v7853_v53  ;;  %1339 = vmatpush.msra.mxu3 %v7862_v52  ;;  %v7913_v53 = vld [vmem:[#allocation53_spill] sm:$0xff]  ;;  %v7922_v52 = vld [vmem:[#allocation64_spill] sm:$0xff] }
 0x27e   :  { %1160 = vmatpush.msrb.mxu0 %v7855_v2  ;;  %1300 = vmatpush.msra.mxu1 %v7864_v1  ;;  %v7915_v2 = vld [vmem:[#allocation55_spill] sm:$0xff]  ;;  %v7924_v1 = vld [vmem:[#allocation68_spill] sm:$0xff] }
 0x27f   :  { %1200 = vmatpush.msrb.mxu2 %v7857_v51  ;;  %1340 = vmatpush.msra.mxu3 %v7866_v16  ;;  %v7917_v51 = vld [vmem:[#allocation57_spill] sm:$0xff]  ;;  %v7926_v16 = vld [vmem:[#allocation72_spill] sm:$0xff] }
 0x280   :  { %1161 = vmatpush.msrb.mxu0 %v7859_v11  ;;  %1301 = vmatpush.msra.mxu1 %v7868_v57  ;;  %v7919_v11 = vld [vmem:[#allocation60_spill] sm:$0xff]  ;;  %v7928_v57 = vld [vmem:[#allocation75_spill] sm:$0xff] }
 0x281   :  { %1201 = vmatpush.msrb.mxu2 %v7861_v47  ;;  %1341 = vmatpush.msra.mxu3 %v7870_v33  ;;  %v7921_v47 = vld [vmem:[#allocation63_spill] sm:$0xff]  ;;  %v7930_v33 = vld [vmem:[#allocation78_spill] sm:$0xff] }
 0x282   :  { %1162 = vmatpush.msrb.mxu0 %v7863_v60  ;;  %1302 = vmatpush.msra.mxu1 %v7872_v42  ;;  %v7923_v60 = vld [vmem:[#allocation67_spill] sm:$0xff]  ;;  %v7932_v42 = vld [vmem:[#allocation109_spill] sm:$0xff] }
 0x283   :  { %1202 = vmatpush.msrb.mxu2 %v7865_v56  ;;  %1342 = vmatpush.msra.mxu3 %v7874_v37  ;;  %v7925_v56 = vld [vmem:[#allocation71_spill] sm:$0xff]  ;;  %v7934_v37 = vld [vmem:[#allocation112_spill] sm:$0xff] }
 0x284   :  { %1163 = vmatpush.msrb.mxu0 %v7867_v27  ;;  %1303 = vmatpush.msra.mxu1 %v7876_v40  ;;  %v7927_v27 = vld [vmem:[#allocation74_spill] sm:$0xff]  ;;  %v7936_v40 = vld [vmem:[#allocation115_spill] sm:$0xff] }
 0x285   :  { %1203 = vmatpush.msrb.mxu2 %v7869_v17  ;;  %1343 = vmatpush.msra.mxu3 %v7878_v41  ;;  %v7929_v17 = vld [vmem:[#allocation77_spill] sm:$0xff] }
 0x286   :  { %1164 = vmatpush.msrb.mxu0 %v7871_v3  ;;  %1304 = vmatpush.msra.mxu1 %v7880_v8  ;;  %v7931_v3 = vld [vmem:[#allocation108_spill] sm:$0xff]  ;;  %v7938_v41 = vld [vmem:[#allocation117_spill] sm:$0xff]  ;;  %v7940_v8 = vld [vmem:[#allocation119_spill] sm:$0xff] }
 0x287   :  { %1204 = vmatpush.msrb.mxu2 %v7873_v58  ;;  %1344 = vmatpush.msra.mxu3 %v7882_v10  ;;  %v7933_v58 = vld [vmem:[#allocation111_spill] sm:$0xff]  ;;  %v7942_v10 = vld [vmem:[#allocation121_spill] sm:$0xff] }
 0x288   :  { %1165 = vmatpush.msrb.mxu0 %v7875_v46  ;;  %1305 = vmatpush.msra.mxu1 %v7884_v31  ;;  %v7935_v46 = vld [vmem:[#allocation114_spill] sm:$0xff]  ;;  %v7944_v31 = vld [vmem:[#allocation123_spill] sm:$0xff] }
 0x289   :  { %1205 = vmatpush.msrb.mxu2 %v7877_v38  ;;  %1345 = vmatpush.msra.mxu3 %v7886_v61  ;;  %v7937_v38 = vld [vmem:[#allocation116_spill] sm:$0xff]  ;;  %v7946_v61 = vld [vmem:[#allocation125_spill] sm:$0xff] }
 0x28a   :  { %1166 = vmatpush.msrb.mxu0 %v7879_v6  ;;  %1370 = vmatpush.msrb.mxu1 %v7888_v25  ;;  %v7939_v6 = vld [vmem:[#allocation118_spill] sm:$0xff]  ;;  %v7948_v25 = vld [vmem:[#allocation127_spill] sm:$0xff] }
 0x28b   :  { %1206 = vmatpush.msrb.mxu2 %v7881_v5  ;;  %1410 = vmatpush.msrb.mxu3 %v7892_v32  ;;  %v7941_v5 = vld [vmem:[#allocation120_spill] sm:$0xff]  ;;  %v7952_v32 = vld [vmem:[#allocation131_spill] sm:$0xff] }
 0x28c   :  { %1167 = vmatpush.msrb.mxu0 %v7883_v24  ;;  %1371 = vmatpush.msrb.mxu1 %v7894_v55  ;;  %v7943_v24 = vld [vmem:[#allocation122_spill] sm:$0xff]  ;;  %v7954_v55 = vld [vmem:[#allocation133_spill] sm:$0xff] }
 0x28d   :  { %1207 = vmatpush.msrb.mxu2 %v7885_v29  ;;  %1411 = vmatpush.msrb.mxu3 %v7896_v54  ;;  %v7945_v29 = vld [vmem:[#allocation124_spill] sm:$0xff]  ;;  %v7956_v54 = vld [vmem:[#allocation135_spill] sm:$0xff] }
 0x28e   :  { %1168 = vmatpush.msrb.mxu0 %v7887_v14  ;;  %1372 = vmatpush.msrb.mxu1 %v7898_v59  ;;  %v7947_v14 = vld [vmem:[#allocation126_spill] sm:$0xff]  ;;  %v7958_v59 = vld [vmem:[#allocation137_spill] sm:$0xff] }
 0x28f   :  { %1208 = vmatpush.msrb.mxu2 %v7889_v4  ;;  %1169 = vmatmul.f32.vlgmr.msrb.gmra.mxu0 %v5022_v36  ;;  %v7949_v4 = vld [vmem:[#allocation128_spill] sm:$0xff] }
 0x290   :  { %1209 = vmatmul.f32.vlgmr.msrb.gmra.mxu2 %v5022_v36  ;;  %1270 = vmatpush.msra.mxu0 %v7890_v35  ;;  %v7900_v36 = vld [vmem:[#allocation105_spill] sm:$0xff] }
 0x291   :  { %1310 = vmatpush.msra.mxu2 %v7891_v13  ;;  %1412 = vmatpush.msrb.mxu3 %v7900_v36  ;;  %v7950_v35 = vld [vmem:[#allocation129_spill] sm:$0xff]  ;;  %v7951_v13 = vld [vmem:[#allocation130_spill] sm:$0xff]  ;;  %v7960_v36 = vld [vmem:[#allocation139_spill] sm:$0xff] }
 0x292   :  { %1271 = vmatpush.msra.mxu0 %v7893_v19  ;;  %1373 = vmatpush.msrb.mxu1 %v7902_v26  ;;  %v7953_v19 = vld [vmem:[#allocation132_spill] sm:$0xff]  ;;  %v7962_v26 = vld [vmem:[#allocation141_spill] sm:$0xff] }
 0x293   :  { %1311 = vmatpush.msra.mxu2 %v7895_v7  ;;  %1413 = vmatpush.msrb.mxu3 %v7904_v0  ;;  %v7955_v7 = vld [vmem:[#allocation134_spill] sm:$0xff]  ;;  %v7964_v0 = vld [vmem:[#allocation143_spill] sm:$0xff] }
 0x294   :  { %1272 = vmatpush.msra.mxu0 %v7897_v50  ;;  %1374 = vmatpush.msrb.mxu1 %v7906_v49  ;;  %v7957_v50 = vld [vmem:[#allocation136_spill] sm:$0xff]  ;;  %v7966_v49 = vld [vmem:[#allocation145_spill] sm:$0xff] }
 0x295   :  { %1312 = vmatpush.msra.mxu2 %v7899_v30  ;;  %1414 = vmatpush.msrb.mxu3 %v7908_v15  ;;  %v7959_v30 = vld [vmem:[#allocation138_spill] sm:$0xff]  ;;  %v7968_v15 = vld [vmem:[#allocation147_spill] sm:$0xff] }
 0x296   :  { %1273 = vmatpush.msra.mxu0 %v7901_v45  ;;  %1375 = vmatpush.msrb.mxu1 %v7910_v9  ;;  %v7961_v45 = vld [vmem:[#allocation140_spill] sm:$0xff]  ;;  %v7970_v9 = vld [vmem:[#allocation149_spill] sm:$0xff] }
 0x297   :  { %1313 = vmatpush.msra.mxu2 %v7903_v22  ;;  %1415 = vmatpush.msrb.mxu3 %v7912_v48  ;;  %v7963_v22 = vld [vmem:[#allocation142_spill] sm:$0xff]  ;;  %v7972_v48 = vld [vmem:[#allocation151_spill] sm:$0xff] }
 0x298   :  { %1274 = vmatpush.msra.mxu0 %v7905_v34  ;;  %1376 = vmatpush.msrb.mxu1 %v7914_v63  ;;  %v7965_v34 = vld [vmem:[#allocation144_spill] sm:$0xff]  ;;  %v7974_v63 = vld [vmem:[#allocation153_spill] sm:$0xff] }
 0x299   :  { %1314 = vmatpush.msra.mxu2 %v7907_v12  ;;  %1416 = vmatpush.msrb.mxu3 %v7916_v39  ;;  %v7967_v12 = vld [vmem:[#allocation146_spill] sm:$0xff]  ;;  %v7976_v39 = vld [vmem:[#allocation155_spill] sm:$0xff] }
 0x29a   :  { %1275 = vmatpush.msra.mxu0 %v7909_v18  ;;  %1377 = vmatpush.msrb.mxu1 %v7918_v43  ;;  %v7969_v18 = vld [vmem:[#allocation148_spill] sm:$0xff]  ;;  %v7978_v43 = vld [vmem:[#allocation157_spill] sm:$0xff] }
 0x29b   :  { %1315 = vmatpush.msra.mxu2 %v7911_v21  ;;  %1417 = vmatpush.msrb.mxu3 %v7920_v23  ;;  %v7971_v21 = vld [vmem:[#allocation150_spill] sm:$0xff] }
 0x29c   :  { %1276 = vmatpush.msra.mxu0 %v7913_v53  ;;  %1378 = vmatpush.msrb.mxu1 %v7922_v52  ;;  %v7973_v53 = vld [vmem:[#allocation152_spill] sm:$0xff]  ;;  %v5185_v23 = vld [vmem:[#allocation5 + $0x58] sm:$0xff] }
 0x29d   :  { %1316 = vmatpush.msra.mxu2 %v7915_v2  ;;  %1418 = vmatpush.msrb.mxu3 %v7924_v1  ;;  %v7975_v2 = vld [vmem:[#allocation154_spill] sm:$0xff] }
 0x29e   :  { %1277 = vmatpush.msra.mxu0 %v7917_v51  ;;  %1379 = vmatpush.msrb.mxu1 %v7926_v16  ;;  %v7977_v51 = vld [vmem:[#allocation156_spill] sm:$0xff]  ;;  %v5191_v52 = vld [vmem:[#allocation5 + $0x38] sm:$0xff] }
 0x29f   :  { %1317 = vmatpush.msra.mxu2 %v7919_v11  ;;  %1419 = vmatpush.msrb.mxu3 %v7928_v57  ;;  %v5182_v11 = vld [vmem:[#allocation5 + $0x50] sm:$0xff]  ;;  %v5197_v1 = vld [vmem:[#allocation5 + $0x18] sm:$0xff] }
 0x2a0   :  { %1278 = vmatpush.msra.mxu0 %v7921_v47  ;;  %1380 = vmatpush.msrb.mxu1 %v7930_v33  ;;  %v5188_v47 = vld [vmem:[#allocation5 + $0x30] sm:$0xff] }
 0x2a1   :  { %1318 = vmatpush.msra.mxu2 %v7923_v60  ;;  %1420 = vmatpush.msrb.mxu3 %v7932_v42  ;;  %v5194_v60 = vld [vmem:[#allocation5 + $0x10] sm:$0xff] }
 0x2a2   :  { %1279 = vmatpush.msra.mxu0 %v7925_v56  ;;  %1381 = vmatpush.msrb.mxu1 %v7934_v37 }
 0x2a3   :  { %1319 = vmatpush.msra.mxu2 %v7927_v27  ;;  %1421 = vmatpush.msrb.mxu3 %v7936_v40  ;;  %v7979_v27 = vld [vmem:[#allocation59_spill] sm:$0xff] }
 0x2a4   :  { %1280 = vmatpush.msra.mxu0 %v7929_v17  ;;  %1382 = vmatpush.msrb.mxu1 %v7938_v41 }
 0x2a5   :  { %1320 = vmatpush.msra.mxu2 %v7931_v3  ;;  %1422 = vmatpush.msrb.mxu3 %v7940_v8 }
 0x2a6   :  { %1281 = vmatpush.msra.mxu0 %v7933_v58  ;;  %1383 = vmatpush.msrb.mxu1 %v7942_v10  ;;  %v7980_v58 = vld [vmem:[#allocation65_spill] sm:$0xff] }
 0x2a7   :  { %1321 = vmatpush.msra.mxu2 %v7935_v46  ;;  %1423 = vmatpush.msrb.mxu3 %v7944_v31 }
 0x2a8   :  { %1282 = vmatpush.msra.mxu0 %v7937_v38  ;;  %1384 = vmatpush.msrb.mxu1 %v7946_v61 }
 0x2a9   :  { %1322 = vmatpush.msra.mxu2 %v7939_v6  ;;  %1424 = vmatpush.msrb.mxu3 %v7948_v25 }
 0x2aa   :  { %1283 = vmatpush.msra.mxu0 %v7941_v5  ;;  %1385 = vmatpush.msrb.mxu1 %v7950_v35 }
 0x2ab   :  { %1323 = vmatpush.msra.mxu2 %v7943_v24  ;;  %1425 = vmatpush.msrb.mxu3 %v7952_v32 }
 0x2ac   :  { %1284 = vmatpush.msra.mxu0 %v7945_v29 }
 0x2ad   :  { %1324 = vmatpush.msra.mxu2 %v7947_v14 }
 0x2ae   :  { %1285 = vmatpush.msra.mxu0 %v7949_v4 }
 0x2af   :  { %1325 = vmatpush.msra.mxu2 %v7951_v13 }
 0x2b0   :  { %1350 = vmatpush.msrb.mxu0 %v7953_v19 }
 0x2b1   :  { %1390 = vmatpush.msrb.mxu2 %v7954_v55 }
 0x2b2   :  { %1351 = vmatpush.msrb.mxu0 %v7955_v7 }
 0x2b3   :  { %1391 = vmatpush.msrb.mxu2 %v7956_v54 }
 0x2b4   :  { %1352 = vmatpush.msrb.mxu0 %v7957_v50 }
 0x2b5   :  { %1392 = vmatpush.msrb.mxu2 %v7958_v59 }
 0x2b6   :  { %1353 = vmatpush.msrb.mxu0 %v7959_v30 }
 0x2b7   :  { %1393 = vmatpush.msrb.mxu2 %v7960_v36 }
 0x2b8   :  { %1354 = vmatpush.msrb.mxu0 %v7961_v45 }
 0x2b9   :  { %1394 = vmatpush.msrb.mxu2 %v7962_v26 }
 0x2ba   :  { %1355 = vmatpush.msrb.mxu0 %v7963_v22  ;;  %v5208_v22 = vld [vmem:[#allocation2 + $0x1e8] sm:$0xff] }
 0x2bb   :  { %1395 = vmatpush.msrb.mxu2 %v7964_v0  ;;  %v5211_v0 = vld [vmem:[#allocation2 + $0x1f8] sm:$0xff] }
 0x2bc   :  { %1356 = vmatpush.msrb.mxu0 %v7965_v34 }
 0x2bd   :  { %1396 = vmatpush.msrb.mxu2 %v7966_v49 }
 0x2be   :  { %1357 = vmatpush.msrb.mxu0 %v7967_v12 }
 0x2bf   :  { %1397 = vmatpush.msrb.mxu2 %v7968_v15 }
 0x2c0   :  { %1358 = vmatpush.msrb.mxu0 %v7969_v18  ;;  %v5214_v18 = vld [vmem:[#allocation2 + $0x1c8] sm:$0xff] }
 0x2c1   :  { %1398 = vmatpush.msrb.mxu2 %v7970_v9  ;;  %v1010_v56 = vpop.f32.mrf.mxu1  ;;  %v5217_v9 = vld [vmem:[#allocation2 + $0x1d8] sm:$0xff] }
 0x2c2   :  { %1359 = vmatpush.msrb.mxu0 %v7971_v21  ;;  %v2698_v21 = vld [vmem:[%s6904_s0 + $0x18] sm:$0xff] }
 0x2c3   :  { %1399 = vmatpush.msrb.mxu2 %v7972_v48 }
 0x2c4   :  { %1360 = vmatpush.msrb.mxu0 %v7973_v53 }
 0x2c5   :  { %1400 = vmatpush.msrb.mxu2 %v7974_v63  ;;  %v5225_v63 = vld [vmem:[#allocation2 + $0x1a8] sm:$0xff] }
 0x2c6   :  { %1361 = vmatpush.msrb.mxu0 %v7975_v2  ;;  %v5228_v2 = vld [vmem:[#allocation2 + $0x1b8] sm:$0xff] }
 0x2c7   :  { %1401 = vmatpush.msrb.mxu2 %v7976_v39  ;;  %v1050_v42 = vpop.f32.mrf.mxu3 }
 0x2c8   :  { %1362 = vmatpush.msrb.mxu0 %v7977_v51 }
 0x2c9   :  { %1402 = vmatpush.msrb.mxu2 %v7978_v43  ;;  %v1090_v41 = vpop.f32.mrf.mxu1  ;;  %v5232_v43 = vld [vmem:[#allocation2 + $0x188] sm:$0xff] }
 0x2ca   :  { %1363 = vmatpush.msrb.mxu0 %v5182_v11 }
 0x2cb   :  { %1403 = vmatpush.msrb.mxu2 %v5185_v23 }
 0x2cc   :  { %1364 = vmatpush.msrb.mxu0 %v5188_v47 }
 0x2cd   :  { %1404 = vmatpush.msrb.mxu2 %v5191_v52 }
 0x2ce   :  { %1365 = vmatpush.msrb.mxu0 %v5194_v60 }
 0x2cf   :  { %1405 = vmatpush.msrb.mxu2 %v5197_v1  ;;  %v1130_v31 = vpop.f32.mrf.mxu3 }
 0x2ec   :  { %v990_v16 = vpop.f32.mrf.mxu0 }
 0x2ed   :  { %v991_v57 = vadd.f32 %v990_v16, %v7979_v27  ;;  %v1190_v45 = vpop.f32.mrf.mxu1 }
 0x2ee   :  { %v1237_v49 = vrot.slane %v1190_v45, 6  ;;  %v5290_v45 = vld [vmem:[#allocation2 + $0x78] sm:$0xff] }
 0x2ef   :  { %v1011_v17 = vadd.f32 %v1010_v56, %v991_v57  ;;  %v5235_v56 = vld [vmem:[#allocation2 + $0x198] sm:$0xff] }
 0x2f1   :  { %v1133_v33 = vmul.f32 0.5, %v1011_v17  ;;  %v5238_v17 = vld [vmem:[#allocation2 + $0x168] sm:$0xff] }
 0x2f2   :  { %v1030_v3 = vpop.f32.mrf.mxu2 }
 0x2f3   :  { %v1031_v37 = vadd.f32 %v1030_v3, %v7980_v58  ;;  %2760 = vtanh.f32 %v1133_v33  ;;  %v5241_v33 = vld [vmem:[#allocation2 + $0x178] sm:$0xff] }
 0x2f4   :  { %v1070_v46 = vpop.f32.mrf.mxu0  ;;  %v1230_v26 = vpop.f32.mrf.mxu3 }
 0x2f5   :  { %v1051_v40 = vadd.f32 %v1050_v42, %v1031_v37  ;;  %v1071_v38 = vadd.f32 %v1070_v46, %v4374_v20  ;;  %v1239_v12 = vrot.slane %v1230_v26, 2  ;;  %v5244_v42 = vld [vmem:[#allocation2 + $0x148] sm:$0xff]  ;;  %v5247_v37 = vld [vmem:[#allocation2 + $0x158] sm:$0xff] }
 0x2f7   :  { %v1137_v6 = vmul.f32 0.5, %v1051_v40  ;;  %v1091_v8 = vadd.f32 %v1090_v41, %v1071_v38  ;;  %v5250_v38 = vld [vmem:[#allocation2 + $0x128] sm:$0xff]  ;;  %v5253_v41 = vld [vmem:[#allocation2 + $0x138] sm:$0xff] }
 0x2f9   :  { %2762 = vtanh.f32 %v1137_v6  ;;  %v2761_v5 = vpop.eup %2760  ;;  %v5256_v6 = vld [vmem:[#allocation2 + $0x108] sm:$0xff] }
 0x2fa   :  { %2764 = vtanh.f32 %v1091_v8  ;;  %v1135_v29 = vmul.f32 0.5, %v2761_v5  ;;  %v5259_v8 = vld [vmem:[#allocation2 + $0x118] sm:$0xff] }
 0x2fb   :  { %v1110_v10 = vpop.f32.mrf.mxu2 }
 0x2fc   :  { %v1111_v24 = vadd.f32 %v1110_v10, %v4378_v62  ;;  %v1136_v13 = vadd.f32 0.5, %v1135_v29 }
 0x2fe   :  { %v1131_v61 = vadd.f32 %v1130_v31, %v1111_v24  ;;  %v5262_v24 = vld [vmem:[#allocation2 + $0xe8] sm:$0xff]  ;;  %v5265_v31 = vld [vmem:[#allocation2 + $0xf8] sm:$0xff] }
 0x2ff   :  { %v2763_v14 = vpop.eup %2762 }
 0x300   :  { %v1139_v25 = vmul.f32 0.5, %v2763_v14  ;;  %v1142_v4 = vmul.f32 0.5, %v1131_v61  ;;  %v2765_v35 = vpop.eup %2764  ;;  %v5268_v14 = vld [vmem:[#allocation2 + $0xc8] sm:$0xff] }
 0x301   :  { %v1147_v55 = vmul.f32 %v2765_v35, %v1136_v13  ;;  %v5274_v13 = vld [vmem:[#allocation2 + $0xa8] sm:$0xff] }
 0x302   :  { %v1140_v32 = vadd.f32 0.5, %v1139_v25  ;;  %2766 = vtanh.f32 %v1142_v4  ;;  %v5271_v25 = vld [vmem:[#allocation2 + $0xd8] sm:$0xff] }
 0x304   :  { %v1146_v19 = vmul.f32 %v1140_v32, %v4973_v44  ;;  %v5277_v32 = vld [vmem:[#allocation2 + $0xb8] sm:$0xff] }
 0x306   :  { %v5205_v7 = vadd.f32 %v1147_v55, %v1146_v19 }
 0x308   :  { %v2767_v54 = vpop.eup %2766  ;;  %2768 = vtanh.f32 %v5205_v7 }
 0x309   :  { %v1144_v50 = vmul.f32 0.5, %v2767_v54  ;;  %v5280_v54 = vld [vmem:[#allocation2 + $0x88] sm:$0xff] }
 0x30b   :  { %v1145_v59 = vadd.f32 0.5, %v1144_v50  ;;  %v5283_v50 = vld [vmem:[#allocation2 + $0x98] sm:$0xff] }
 0x30c   :  { %v1170_v44 = vpop.f32.mrf.mxu0 }
 0x30d   :  { %v1240_v48 = vsel %vm346_vm0, %v1170_v44, %v1237_v49  ;;  %v5298_v49 = vld [vmem:[#allocation2 + $0x58] sm:$0xff] }
 0x30e   :  { %v2769_v30 = vpop.eup %2768 }
 0x30f   :  { %v1150_v36 = vmul.f32 %v2769_v30, %v1145_v59 }
 0x311   :  { %1306 = vmatmul.f32.vlgmr.msra.gmra.mxu1 %v1150_v36  ;;  %1346 = vmatmul.f32.vlgmr.msra.gmra.mxu3 %v1150_v36 }
 0x312   :  { %1470 = vmatpush.msra.mxu1 %v5208_v22  ;;  %1510 = vmatpush.msra.mxu3 %v5211_v0 }
 0x313   :  { %v1210_v34 = vpop.f32.mrf.mxu2 }
 0x314   :  { %v1238_v15 = vrot.slane %v1210_v34, 4  ;;  %1471 = vmatpush.msra.mxu1 %v5214_v18  ;;  %1511 = vmatpush.msra.mxu3 %v5217_v9  ;;  %v5295_v34 = vld [vmem:[#allocation2 + $0x48] sm:$0xff] }
 0x316   :  { %v1241_v53 = vsel %vm348_vm1, %v1238_v15, %v1239_v12  ;;  %1472 = vmatpush.msra.mxu1 %v5225_v63  ;;  %1512 = vmatpush.msra.mxu3 %v5228_v2  ;;  %v5302_v12 = vld [vmem:[#allocation2 + $0x28] sm:$0xff]  ;;  %v5305_v15 = vld [vmem:[#allocation2 + $0x38] sm:$0xff] }
 0x317   :  { %v1242_v39 = vsel %vm350_vm2, %v1240_v48, %v1241_v53  ;;  %v5311_v48 = vld [vmem:[#allocation2 + $0x18] sm:$0xff]  ;;  %v5314_v53 = vld [vmem:[#allocation5 + $0x3e0] sm:$0xff] }
 0x318   :  { %v1244_v51 = vadd.f32 %v2698_v21, %v1242_v39  ;;  %1473 = vmatpush.msra.mxu1 %v5232_v43  ;;  %1513 = vmatpush.msra.mxu3 %v5235_v56  ;;  %v5308_v21 = vld [vmem:[#allocation2 + $0x8] sm:$0xff] }
 0x319   :  { %1386 = vmatmul.f32.vlgmr.msrb.gmra.mxu1 %v1150_v36  ;;  %1426 = vmatmul.f32.vlgmr.msrb.gmra.mxu3 %v1150_v36  ;;  %v5287_v36 = vld [vmem:[#allocation2 + $0x68] sm:$0xff] }
 0x31a   :  { %v1245_v16 = vmul.f32 0.5, %v1244_v51  ;;  %v1250_v57 = vrot.slane %v1244_v51, 2  ;;  %1474 = vmatpush.msra.mxu1 %v5238_v17  ;;  %1514 = vmatpush.msra.mxu3 %v5241_v33  ;;  %v1259_v46 = vrot.slane %v1244_v51, 6  ;;  %v1256_v40 = vrot.slane %v1244_v51, 4  ;;  %v5317_v39 = vld [vmem:[#allocation5 + $0x3e8] sm:$0xff] }
 0x31c   :  { %2770 = vtanh.f32 %v1245_v16  ;;  %v1252_v3 = vmul.f32 0.5, %v1250_v57  ;;  %1475 = vmatpush.msra.mxu1 %v5244_v42  ;;  %1515 = vmatpush.msra.mxu3 %v5247_v37  ;;  %v1261_v5 = vmul.f32 0.5, %v1259_v46  ;;  %v5320_v57 = vld [vmem:[#allocation5 + $0x3c0] sm:$0xff] }
 0x31e   :  { %2772 = vtanh.f32 %v1252_v3  ;;  %1476 = vmatpush.msra.mxu1 %v5250_v38  ;;  %1516 = vmatpush.msra.mxu3 %v5253_v41  ;;  %v5323_v3 = vld [vmem:[#allocation5 + $0x3c8] sm:$0xff] }
 0x31f   :  { %2774 = vtanh.f32 %v1256_v40  ;;  %v5328_v40 = vld [vmem:[#allocation5 + $0x3a0] sm:$0xff] }
 0x320   :  { %1477 = vmatpush.msra.mxu1 %v5256_v6  ;;  %1517 = vmatpush.msra.mxu3 %v5259_v8  ;;  %2776 = vtanh.f32 %v1261_v5  ;;  %v5331_v5 = vld [vmem:[#allocation5 + $0x3a8] sm:$0xff] }
 0x322   :  { %v2771_v10 = vpop.eup %2770  ;;  %1478 = vmatpush.msra.mxu1 %v5262_v24  ;;  %1518 = vmatpush.msra.mxu3 %v5265_v31 }
 0x323   :  { %v1247_v29 = vmul.f32 0.5, %v2771_v10  ;;  %v5336_v10 = vld [vmem:[#allocation2 + $0x1e0] sm:$0xff] }
 0x324   :  { %v2773_v61 = vpop.eup %2772  ;;  %1479 = vmatpush.msra.mxu1 %v5268_v14  ;;  %1519 = vmatpush.msra.mxu3 %v5271_v25 }
 0x325   :  { %v1248_v4 = vadd.f32 0.5, %v1247_v29  ;;  %v1254_v35 = vmul.f32 0.5, %v2773_v61  ;;  %v2775_v55 = vpop.eup %2774  ;;  %v5340_v29 = vld [vmem:[#allocation2 + $0x1f0] sm:$0xff]  ;;  %v5344_v61 = vld [vmem:[#allocation2 + $0x1c0] sm:$0xff] }
 0x326   :  { %1480 = vmatpush.msra.mxu1 %v5274_v13  ;;  %1520 = vmatpush.msra.mxu3 %v5277_v32  ;;  %v2777_v26 = vpop.eup %2776 }
 0x327   :  { %v1255_v19 = vadd.f32 0.5, %v1254_v35  ;;  %v1266_v30 = vmul.f32 %v2775_v55, %v1248_v4  ;;  %v5347_v4 = vld [vmem:[#allocation5 + $0x380] sm:$0xff]  ;;  %v5350_v35 = vld [vmem:[#allocation2 + $0x1d0] sm:$0xff] }
 0x328   :  { %1481 = vmatpush.msra.mxu1 %v5280_v54  ;;  %1521 = vmatpush.msra.mxu3 %v5283_v50  ;;  %7981 = vst [vmem:[#allocation62_spill] sm:$0xff] %v5347_v4  ;;  %v5356_v55 = vld [vmem:[#allocation2 + $0x1a0] sm:$0xff] }
 0x329   :  { %v1265_v59 = vmul.f32 %v1255_v19, %v5009_v28  ;;  %v1263_v28 = vmul.f32 0.5, %v2777_v26  ;;  %7982 = vst [vmem:[#allocation69_spill] sm:$0xff] %v5350_v35  ;;  %v5353_v19 = vld [vmem:[#allocation5 + $0x388] sm:$0xff] }
 0x32a   :  { %1482 = vmatpush.msra.mxu1 %v5287_v36  ;;  %1522 = vmatpush.msra.mxu3 %v5290_v45  ;;  %7983 = vst [vmem:[#allocation66_spill] sm:$0xff] %v5353_v19  ;;  %v5365_v26 = vld [vmem:[#allocation5 + $0x368] sm:$0xff] }
 0x32b   :  { %v5293_v44 = vadd.f32 %v1266_v30, %v1265_v59  ;;  %v1264_v51 = vadd.f32 0.5, %v1263_v28  ;;  %7984 = vst [vmem:[#allocation70_spill] sm:$0xff] %v5356_v55  ;;  %v5359_v59 = vld [vmem:[#allocation5 + $0x360] sm:$0xff]  ;;  %v5362_v30 = vld [vmem:[#allocation2 + $0x1b0] sm:$0xff] }
 0x32c   :  { %1483 = vmatpush.msra.mxu1 %v5295_v34  ;;  %1523 = vmatpush.msra.mxu3 %v5298_v49  ;;  %7985 = vst [vmem:[#allocation73_spill] sm:$0xff] %v5359_v59  ;;  %v5368_v28 = vld [vmem:[#allocation2 + $0x180] sm:$0xff] }
 0x32d   :  { %2778 = vtanh.f32 %v5293_v44  ;;  %7986 = vst [vmem:[#allocation14_spill] sm:$0xff] %v5362_v30 }
 0x32e   :  { %1484 = vmatpush.msra.mxu1 %v5302_v12  ;;  %1524 = vmatpush.msra.mxu3 %v5305_v15  ;;  %7987 = vst [vmem:[#allocation11_spill] sm:$0xff] %v5365_v26 }
 0x32f   :  { %7988 = vst [vmem:[#allocation16_spill] sm:$0xff] %v5368_v28 }
 0x330   :  { %1485 = vmatpush.msra.mxu1 %v5308_v21  ;;  %1525 = vmatpush.msra.mxu3 %v5311_v48 }
 0x332   :  { %1587 = vmatpush.msrb.mxu1 %v5314_v53  ;;  %1627 = vmatpush.msrb.mxu3 %v5317_v39 }
 0x333   :  { %v2779_v16 = vpop.eup %2778 }
 0x334   :  { %1588 = vmatpush.msrb.mxu1 %v5320_v57  ;;  %1628 = vmatpush.msrb.mxu3 %v5323_v3  ;;  %v5326_v46 = vmul.f32 %v2779_v16, %v1264_v51  ;;  %v5371_v51 = vld [vmem:[#allocation5 + $0x340] sm:$0xff]  ;;  %v5374_v16 = vld [vmem:[#allocation2 + $0x190] sm:$0xff] }
 0x335   :  { %7989 = vst [vmem:[#allocation12_spill] sm:$0xff] %v5371_v51 }
 0x336   :  { %1589 = vmatpush.msrb.mxu1 %v5328_v40  ;;  %1629 = vmatpush.msrb.mxu3 %v5331_v5  ;;  %7990 = vst [vmem:[#allocation76_spill] sm:$0xff] %v5374_v16 }
 0x337   :  { %1286 = vmatmul.f32.vlgmr.msra.gmra.mxu0 %v5326_v46  ;;  %1326 = vmatmul.f32.vlgmr.msra.gmra.mxu2 %v5326_v46 }
 0x338   :  { %1450 = vmatpush.msra.mxu0 %v5336_v10  ;;  %1486 = vmatmul.f32.vlgmr.msra.gmra.mxu1 %v5326_v46 }
 0x339   :  { %1490 = vmatpush.msra.mxu2 %v5340_v29  ;;  %1526 = vmatmul.f32.vlgmr.msra.gmra.mxu3 %v5326_v46 }
 0x33a   :  { %1451 = vmatpush.msra.mxu0 %v5344_v61  ;;  %1590 = vmatpush.msrb.mxu1 %v5347_v4 }
 0x33b   :  { %1491 = vmatpush.msra.mxu2 %v5350_v35  ;;  %1630 = vmatpush.msrb.mxu3 %v5353_v19 }
 0x33c   :  { %1452 = vmatpush.msra.mxu0 %v5356_v55  ;;  %1591 = vmatpush.msrb.mxu1 %v5359_v59  ;;  %v5394_v59 = vld [vmem:[#allocation2 + $0x150] sm:$0xff] }
 0x33d   :  { %1492 = vmatpush.msra.mxu2 %v5362_v30  ;;  %1631 = vmatpush.msrb.mxu3 %v5365_v26  ;;  %v5379_v30 = vld [vmem:[#allocation2 + $0x160] sm:$0xff]  ;;  %v5382_v26 = vld [vmem:[#allocation2 + $0x170] sm:$0xff]  ;;  %7996 = vst [vmem:[#allocation82_spill] sm:$0xff] %v5394_v59 }
 0x33e   :  { %1453 = vmatpush.msra.mxu0 %v5368_v28  ;;  %1592 = vmatpush.msrb.mxu1 %v5371_v51  ;;  %7991 = vst [vmem:[#allocation17_spill] sm:$0xff] %v5379_v30  ;;  %v5385_v28 = vld [vmem:[#allocation5 + $0x348] sm:$0xff]  ;;  %v5388_v51 = vld [vmem:[#allocation2 + $0x140] sm:$0xff] }
 0x33f   :  { %1493 = vmatpush.msra.mxu2 %v5374_v16  ;;  %1366 = vmatmul.f32.vlgmr.msrb.gmra.mxu0 %v5326_v46  ;;  %7992 = vst [vmem:[#allocation81_spill] sm:$0xff] %v5382_v26  ;;  %v5391_v16 = vld [vmem:[#allocation5 + $0x320] sm:$0xff] }
 0x340   :  { %1406 = vmatmul.f32.vlgmr.msrb.gmra.mxu2 %v5326_v46  ;;  %1454 = vmatpush.msra.mxu0 %v5379_v30  ;;  %7993 = vst [vmem:[#allocation13_spill] sm:$0xff] %v5385_v28  ;;  %v5397_v30 = vld [vmem:[#allocation5 + $0x328] sm:$0xff] }
 0x341   :  { %1494 = vmatpush.msra.mxu2 %v5382_v26  ;;  %1632 = vmatpush.msrb.mxu3 %v5385_v28  ;;  %7994 = vst [vmem:[#allocation79_spill] sm:$0xff] %v5388_v51  ;;  %v5400_v26 = vld [vmem:[#allocation2 + $0x120] sm:$0xff] }
 0x342   :  { %1455 = vmatpush.msra.mxu0 %v5388_v51  ;;  %7995 = vst [vmem:[#allocation19_spill] sm:$0xff] %v5391_v16  ;;  %1593 = vmatpush.msrb.mxu1 %v5391_v16  ;;  %v5403_v28 = vld [vmem:[#allocation5 + $0x300] sm:$0xff]  ;;  %v5406_v51 = vld [vmem:[#allocation2 + $0x130] sm:$0xff]  ;;  %v5409_v16 = vld [vmem:[#allocation5 + $0x308] sm:$0xff] }
 0x343   :  { %1495 = vmatpush.msra.mxu2 %v5394_v59  ;;  %7997 = vst [vmem:[#allocation15_spill] sm:$0xff] %v5397_v30  ;;  %1633 = vmatpush.msrb.mxu3 %v5397_v30  ;;  %v5412_v59 = vld [vmem:[#allocation2 + $0x100] sm:$0xff] }
 0x344   :  { %7998 = vst [vmem:[#allocation21_spill] sm:$0xff] %v5400_v26  ;;  %1456 = vmatpush.msra.mxu0 %v5400_v26  ;;  %1594 = vmatpush.msrb.mxu1 %v5403_v28  ;;  %v5415_v30 = vld [vmem:[#allocation5 + $0x2e0] sm:$0xff]  ;;  %v5418_v26 = vld [vmem:[#allocation2 + $0x110] sm:$0xff] }
 0x345   :  { %7999 = vst [vmem:[#allocation18_spill] sm:$0xff] %v5403_v28  ;;  %1496 = vmatpush.msra.mxu2 %v5406_v51  ;;  %1634 = vmatpush.msrb.mxu3 %v5409_v16  ;;  %v5421_v28 = vld [vmem:[#allocation5 + $0x2e8] sm:$0xff] }
 0x346   :  { %8000 = vst [vmem:[#allocation80_spill] sm:$0xff] %v5406_v51  ;;  %1457 = vmatpush.msra.mxu0 %v5412_v59  ;;  %1595 = vmatpush.msrb.mxu1 %v5415_v30  ;;  %v5424_v51 = vld [vmem:[#allocation2 + $0xe0] sm:$0xff] }
 0x347   :  { %8001 = vst [vmem:[#allocation23_spill] sm:$0xff] %v5409_v16  ;;  %1497 = vmatpush.msra.mxu2 %v5418_v26  ;;  %1635 = vmatpush.msrb.mxu3 %v5421_v28  ;;  %v5427_v16 = vld [vmem:[#allocation5 + $0x2c0] sm:$0xff] }
 0x348   :  { %8002 = vst [vmem:[#allocation84_spill] sm:$0xff] %v5412_v59  ;;  %1458 = vmatpush.msra.mxu0 %v5424_v51  ;;  %1596 = vmatpush.msrb.mxu1 %v5427_v16  ;;  %v5430_v59 = vld [vmem:[#allocation2 + $0xf0] sm:$0xff] }
 0x349   :  { %8003 = vst [vmem:[#allocation20_spill] sm:$0xff] %v5415_v30  ;;  %1498 = vmatpush.msra.mxu2 %v5430_v59  ;;  %v5433_v30 = vld [vmem:[#allocation5 + $0x2c8] sm:$0xff] }
 0x34a   :  { %8004 = vst [vmem:[#allocation83_spill] sm:$0xff] %v5418_v26  ;;  %1636 = vmatpush.msrb.mxu3 %v5433_v30  ;;  %v5436_v26 = vld [vmem:[#allocation2 + $0xc0] sm:$0xff] }
 0x34b   :  { %8005 = vst [vmem:[#allocation25_spill] sm:$0xff] %v5421_v28  ;;  %1459 = vmatpush.msra.mxu0 %v5436_v26  ;;  %v5439_v28 = vld [vmem:[#allocation5 + $0x2a0] sm:$0xff] }
 0x34c   :  { %8006 = vst [vmem:[#allocation86_spill] sm:$0xff] %v5424_v51  ;;  %1597 = vmatpush.msrb.mxu1 %v5439_v28  ;;  %v5442_v51 = vld [vmem:[#allocation2 + $0xd0] sm:$0xff] }
 0x34d   :  { %8007 = vst [vmem:[#allocation22_spill] sm:$0xff] %v5427_v16  ;;  %1499 = vmatpush.msra.mxu2 %v5442_v51  ;;  %v5445_v16 = vld [vmem:[#allocation5 + $0x2a8] sm:$0xff] }
 0x34e   :  { %8008 = vst [vmem:[#allocation85_spill] sm:$0xff] %v5430_v59  ;;  %1637 = vmatpush.msrb.mxu3 %v5445_v16  ;;  %v5448_v59 = vld [vmem:[#allocation2 + $0xa0] sm:$0xff] }
 0x34f   :  { %8009 = vst [vmem:[#allocation27_spill] sm:$0xff] %v5433_v30  ;;  %1460 = vmatpush.msra.mxu0 %v5448_v59  ;;  %v5451_v30 = vld [vmem:[#allocation5 + $0x280] sm:$0xff] }
 0x350   :  { %8010 = vst [vmem:[#allocation88_spill] sm:$0xff] %v5436_v26  ;;  %1598 = vmatpush.msrb.mxu1 %v5451_v30  ;;  %v5454_v26 = vld [vmem:[#allocation2 + $0xb0] sm:$0xff] }
 0x351   :  { %8011 = vst [vmem:[#allocation24_spill] sm:$0xff] %v5439_v28  ;;  %1500 = vmatpush.msra.mxu2 %v5454_v26  ;;  %v5457_v28 = vld [vmem:[#allocation5 + $0x288] sm:$0xff] }
 0x352   :  { %8012 = vst [vmem:[#allocation87_spill] sm:$0xff] %v5442_v51  ;;  %1638 = vmatpush.msrb.mxu3 %v5457_v28  ;;  %v5460_v51 = vld [vmem:[#allocation2 + $0x80] sm:$0xff] }
 0x353   :  { %8013 = vst [vmem:[#allocation29_spill] sm:$0xff] %v5445_v16  ;;  %1461 = vmatpush.msra.mxu0 %v5460_v51  ;;  %v5463_v16 = vld [vmem:[#allocation5 + $0x260] sm:$0xff] }
 0x354   :  { %8014 = vst [vmem:[#allocation90_spill] sm:$0xff] %v5448_v59  ;;  %1599 = vmatpush.msrb.mxu1 %v5463_v16  ;;  %v5466_v59 = vld [vmem:[#allocation2 + $0x90] sm:$0xff] }
 0x355   :  { %8015 = vst [vmem:[#allocation26_spill] sm:$0xff] %v5451_v30  ;;  %1501 = vmatpush.msra.mxu2 %v5466_v59  ;;  %v5469_v30 = vld [vmem:[#allocation5 + $0x268] sm:$0xff] }
 0x356   :  { %8016 = vst [vmem:[#allocation89_spill] sm:$0xff] %v5454_v26  ;;  %1639 = vmatpush.msrb.mxu3 %v5469_v30  ;;  %v5472_v26 = vld [vmem:[#allocation2 + $0x60] sm:$0xff] }
 0x357   :  { %8017 = vst [vmem:[#allocation31_spill] sm:$0xff] %v5457_v28  ;;  %1462 = vmatpush.msra.mxu0 %v5472_v26  ;;  %v5475_v28 = vld [vmem:[#allocation5 + $0x240] sm:$0xff] }
 0x358   :  { %8018 = vst [vmem:[#allocation92_spill] sm:$0xff] %v5460_v51  ;;  %1600 = vmatpush.msrb.mxu1 %v5475_v28  ;;  %v5478_v51 = vld [vmem:[#allocation2 + $0x70] sm:$0xff] }
 0x359   :  { %8019 = vst [vmem:[#allocation28_spill] sm:$0xff] %v5463_v16  ;;  %1502 = vmatpush.msra.mxu2 %v5478_v51  ;;  %v5481_v16 = vld [vmem:[#allocation5 + $0x248] sm:$0xff] }
 0x35a   :  { %8020 = vst [vmem:[#allocation91_spill] sm:$0xff] %v5466_v59  ;;  %1640 = vmatpush.msrb.mxu3 %v5481_v16  ;;  %v5484_v59 = vld [vmem:[#allocation2 + $0x40] sm:$0xff] }
 0x35b   :  { %8021 = vst [vmem:[#allocation33_spill] sm:$0xff] %v5469_v30  ;;  %1463 = vmatpush.msra.mxu0 %v5484_v59  ;;  %v5487_v30 = vld [vmem:[#allocation5 + $0x220] sm:$0xff] }
 0x35c   :  { %8022 = vst [vmem:[#allocation94_spill] sm:$0xff] %v5472_v26  ;;  %1601 = vmatpush.msrb.mxu1 %v5487_v30  ;;  %v5490_v26 = vld [vmem:[#allocation2 + $0x50] sm:$0xff] }
 0x35d   :  { %8023 = vst [vmem:[#allocation30_spill] sm:$0xff] %v5475_v28  ;;  %1503 = vmatpush.msra.mxu2 %v5490_v26  ;;  %v5493_v28 = vld [vmem:[#allocation5 + $0x228] sm:$0xff] }
 0x35e   :  { %8024 = vst [vmem:[#allocation93_spill] sm:$0xff] %v5478_v51  ;;  %1641 = vmatpush.msrb.mxu3 %v5493_v28  ;;  %v5496_v51 = vld [vmem:[#allocation2 + $0x20] sm:$0xff] }
 0x35f   :  { %8025 = vst [vmem:[#allocation35_spill] sm:$0xff] %v5481_v16  ;;  %1464 = vmatpush.msra.mxu0 %v5496_v51  ;;  %v5499_v16 = vld [vmem:[#allocation5 + $0x200] sm:$0xff] }
 0x360   :  { %8026 = vst [vmem:[#allocation96_spill] sm:$0xff] %v5484_v59  ;;  %1602 = vmatpush.msrb.mxu1 %v5499_v16  ;;  %v5502_v59 = vld [vmem:[#allocation2 + $0x30] sm:$0xff] }
 0x361   :  { %8027 = vst [vmem:[#allocation32_spill] sm:$0xff] %v5487_v30  ;;  %1504 = vmatpush.msra.mxu2 %v5502_v59  ;;  %v5505_v30 = vld [vmem:[#allocation5 + $0x208] sm:$0xff] }
 0x362   :  { %8028 = vst [vmem:[#allocation95_spill] sm:$0xff] %v5490_v26  ;;  %1642 = vmatpush.msrb.mxu3 %v5505_v30  ;;  %v5508_v26 = vld [vmem:[#allocation2] sm:$0xff] }
 0x363   :  { %8029 = vst [vmem:[#allocation37_spill] sm:$0xff] %v5493_v28  ;;  %1465 = vmatpush.msra.mxu0 %v5508_v26  ;;  %v5511_v28 = vld [vmem:[#allocation5 + $0x3f0] sm:$0xff] }
 0x364   :  { %8030 = vst [vmem:[#allocation98_spill] sm:$0xff] %v5496_v51  ;;  %1667 = vmatpush.msra.mxu1 %v5511_v28  ;;  %v5514_v51 = vld [vmem:[#allocation2 + $0x10] sm:$0xff]  ;;  %1466 = vmatmul.f32.vlgmr.msra.gmra.mxu0 %v5326_v46 }
 0x365   :  { %8031 = vst [vmem:[#allocation34_spill] sm:$0xff] %v5499_v16  ;;  %1505 = vmatpush.msra.mxu2 %v5514_v51 }
 0x366   :  { %8032 = vst [vmem:[#allocation97_spill] sm:$0xff] %v5502_v59  ;;  %1506 = vmatmul.f32.vlgmr.msra.gmra.mxu2 %v5326_v46  ;;  %v5519_v59 = vld [vmem:[#allocation5 + $0x1e0] sm:$0xff]  ;;  %v5534_v46 = vld [vmem:[#allocation5 + $0x1c8] sm:$0xff] }
 0x367   :  { %8033 = vst [vmem:[#allocation39_spill] sm:$0xff] %v5505_v30  ;;  %1567 = vmatpush.msrb.mxu0 %v5519_v59  ;;  %v5522_v30 = vld [vmem:[#allocation5 + $0x1e8] sm:$0xff] }
 0x368   :  { %8034 = vst [vmem:[#allocation36_spill] sm:$0xff] %v5508_v26  ;;  %1607 = vmatpush.msrb.mxu2 %v5522_v30  ;;  %v5525_v26 = vld [vmem:[#allocation5 + $0x3f8] sm:$0xff] }
 0x369   :  { %8035 = vst [vmem:[#allocation99_spill] sm:$0xff] %v5511_v28  ;;  %1707 = vmatpush.msra.mxu3 %v5525_v26  ;;  %v5528_v28 = vld [vmem:[#allocation5 + $0x1c0] sm:$0xff] }
 0x36a   :  { %8036 = vst [vmem:[#allocation41_spill] sm:$0xff] %v5514_v51  ;;  %1568 = vmatpush.msrb.mxu0 %v5528_v28  ;;  %v5531_v51 = vld [vmem:[#allocation5 + $0x3d0] sm:$0xff]  ;;  %1608 = vmatpush.msrb.mxu2 %v5534_v46 }
 0x36b   :  { %8037 = vst [vmem:[#allocation101_spill] sm:$0xff] %v5519_v59  ;;  %1668 = vmatpush.msra.mxu1 %v5531_v51  ;;  %v5537_v59 = vld [vmem:[#allocation5 + $0x3d8] sm:$0xff] }
 0x36c   :  { %8038 = vst [vmem:[#allocation38_spill] sm:$0xff] %v5522_v30  ;;  %1708 = vmatpush.msra.mxu3 %v5537_v59  ;;  %v5540_v30 = vld [vmem:[#allocation5 + $0x1a0] sm:$0xff] }
 0x36d   :  { %8039 = vst [vmem:[#allocation100_spill] sm:$0xff] %v5525_v26  ;;  %1569 = vmatpush.msrb.mxu0 %v5540_v30  ;;  %v5543_v26 = vld [vmem:[#allocation5 + $0x3b0] sm:$0xff] }
 0x36e   :  { %8040 = vst [vmem:[#allocation42_spill] sm:$0xff] %v5528_v28  ;;  %1669 = vmatpush.msra.mxu1 %v5543_v26  ;;  %v5546_v28 = vld [vmem:[#allocation5 + $0x1a8] sm:$0xff] }
 0x36f   :  { %8041 = vst [vmem:[#allocation103_spill] sm:$0xff] %v5531_v51  ;;  %1609 = vmatpush.msrb.mxu2 %v5546_v28  ;;  %v5549_v51 = vld [vmem:[#allocation5 + $0x3b8] sm:$0xff] }
 0x370   :  { %8042 = vst [vmem:[#allocation40_spill] sm:$0xff] %v5534_v46  ;;  %1709 = vmatpush.msra.mxu3 %v5549_v51  ;;  %v5552_v46 = vld [vmem:[#allocation5 + $0x180] sm:$0xff] }
 0x371   :  { %8043 = vst [vmem:[#allocation43_spill] sm:$0xff] %v5537_v59  ;;  %1570 = vmatpush.msrb.mxu0 %v5552_v46  ;;  %v5555_v59 = vld [vmem:[#allocation5 + $0x390] sm:$0xff] }
 0x372   :  { %8044 = vst [vmem:[#allocation44_spill] sm:$0xff] %v5540_v30  ;;  %1670 = vmatpush.msra.mxu1 %v5555_v59  ;;  %v5558_v30 = vld [vmem:[#allocation5 + $0x188] sm:$0xff] }
 0x373   :  { %8045 = vst [vmem:[#allocation102_spill] sm:$0xff] %v5543_v26  ;;  %1610 = vmatpush.msrb.mxu2 %v5558_v30  ;;  %v5561_v26 = vld [vmem:[#allocation5 + $0x398] sm:$0xff] }
 0x374   :  { %8046 = vst [vmem:[#allocation45_spill] sm:$0xff] %v5546_v28  ;;  %1710 = vmatpush.msra.mxu3 %v5561_v26  ;;  %v5564_v28 = vld [vmem:[#allocation5 + $0x160] sm:$0xff] }
 0x375   :  { %8047 = vst [vmem:[#allocation105_spill] sm:$0xff] %v5549_v51  ;;  %1571 = vmatpush.msrb.mxu0 %v5564_v28  ;;  %v5567_v51 = vld [vmem:[#allocation5 + $0x370] sm:$0xff] }
 0x376   :  { %8048 = vst [vmem:[#allocation46_spill] sm:$0xff] %v5552_v46  ;;  %1671 = vmatpush.msra.mxu1 %v5567_v51  ;;  %v5570_v46 = vld [vmem:[#allocation5 + $0x168] sm:$0xff] }
 0x377   :  { %8049 = vst [vmem:[#allocation104_spill] sm:$0xff] %v5555_v59  ;;  %1611 = vmatpush.msrb.mxu2 %v5570_v46  ;;  %v5573_v59 = vld [vmem:[#allocation5 + $0x378] sm:$0xff] }
 0x378   :  { %8050 = vst [vmem:[#allocation47_spill] sm:$0xff] %v5558_v30  ;;  %1711 = vmatpush.msra.mxu3 %v5573_v59  ;;  %v5576_v30 = vld [vmem:[#allocation5 + $0x140] sm:$0xff] }
 0x379   :  { %8051 = vst [vmem:[#allocation107_spill] sm:$0xff] %v5561_v26  ;;  %1572 = vmatpush.msrb.mxu0 %v5576_v30  ;;  %v5579_v26 = vld [vmem:[#allocation5 + $0x350] sm:$0xff] }
 0x37a   :  { %8052 = vst [vmem:[#allocation48_spill] sm:$0xff] %v5564_v28  ;;  %1672 = vmatpush.msra.mxu1 %v5579_v26  ;;  %v5582_v28 = vld [vmem:[#allocation5 + $0x148] sm:$0xff] }
 0x37b   :  { %8053 = vst [vmem:[#allocation106_spill] sm:$0xff] %v5567_v51  ;;  %1612 = vmatpush.msrb.mxu2 %v5582_v28  ;;  %v5585_v51 = vld [vmem:[#allocation5 + $0x358] sm:$0xff] }
 0x37c   :  { %8054 = vst [vmem:[#allocation49_spill] sm:$0xff] %v5570_v46  ;;  %1712 = vmatpush.msra.mxu3 %v5585_v51  ;;  %v5588_v46 = vld [vmem:[#allocation5 + $0x120] sm:$0xff] }
 0x37d   :  { %8055 = vst [vmem:[#allocation50_spill] sm:$0xff] %v5573_v59  ;;  %1573 = vmatpush.msrb.mxu0 %v5588_v46  ;;  %v5591_v59 = vld [vmem:[#allocation5 + $0x330] sm:$0xff] }
 0x37e   :  { %8056 = vst [vmem:[#allocation110_spill] sm:$0xff] %v5576_v30  ;;  %1673 = vmatpush.msra.mxu1 %v5591_v59  ;;  %v5594_v30 = vld [vmem:[#allocation5 + $0x128] sm:$0xff] }
 0x37f   :  { %8057 = vst [vmem:[#allocation51_spill] sm:$0xff] %v5579_v26  ;;  %1613 = vmatpush.msrb.mxu2 %v5594_v30  ;;  %v5597_v26 = vld [vmem:[#allocation5 + $0x338] sm:$0xff] }
 0x380   :  { %8058 = vst [vmem:[#allocation52_spill] sm:$0xff] %v5582_v28  ;;  %1713 = vmatpush.msra.mxu3 %v5597_v26  ;;  %v5600_v28 = vld [vmem:[#allocation5 + $0x100] sm:$0xff] }
 0x381   :  { %8059 = vst [vmem:[#allocation113_spill] sm:$0xff] %v5585_v51  ;;  %1574 = vmatpush.msrb.mxu0 %v5600_v28  ;;  %v5603_v51 = vld [vmem:[#allocation5 + $0x310] sm:$0xff] }
 0x382   :  { %8060 = vst [vmem:[#allocation53_spill] sm:$0xff] %v5588_v46  ;;  %1674 = vmatpush.msra.mxu1 %v5603_v51  ;;  %v5606_v46 = vld [vmem:[#allocation5 + $0x108] sm:$0xff] }
 0x383   :  { %8061 = vst [vmem:[#allocation54_spill] sm:$0xff] %v5591_v59  ;;  %1614 = vmatpush.msrb.mxu2 %v5606_v46  ;;  %v5609_v59 = vld [vmem:[#allocation5 + $0x318] sm:$0xff] }
 0x384   :  { %8062 = vst [vmem:[#allocation55_spill] sm:$0xff] %v5594_v30  ;;  %1714 = vmatpush.msra.mxu3 %v5609_v59  ;;  %v5612_v30 = vld [vmem:[#allocation5 + $0xe0] sm:$0xff] }
 0x385   :  { %8063 = vst [vmem:[#allocation56_spill] sm:$0xff] %v5597_v26  ;;  %1575 = vmatpush.msrb.mxu0 %v5612_v30  ;;  %v5615_v26 = vld [vmem:[#allocation5 + $0x2f0] sm:$0xff] }
 0x386   :  { %8064 = vst [vmem:[#allocation57_spill] sm:$0xff] %v5600_v28  ;;  %1675 = vmatpush.msra.mxu1 %v5615_v26  ;;  %v5618_v28 = vld [vmem:[#allocation5 + $0xe8] sm:$0xff] }
 0x387   :  { %8065 = vst [vmem:[#allocation58_spill] sm:$0xff] %v5603_v51  ;;  %1615 = vmatpush.msrb.mxu2 %v5618_v28  ;;  %v5621_v51 = vld [vmem:[#allocation5 + $0x2f8] sm:$0xff] }
 0x388   :  { %8066 = vst [vmem:[#allocation60_spill] sm:$0xff] %v5606_v46  ;;  %1715 = vmatpush.msra.mxu3 %v5621_v51  ;;  %v5624_v46 = vld [vmem:[#allocation5 + $0xc0] sm:$0xff] }
 0x389   :  { %8067 = vst [vmem:[#allocation61_spill] sm:$0xff] %v5609_v59  ;;  %1576 = vmatpush.msrb.mxu0 %v5624_v46  ;;  %v5627_v59 = vld [vmem:[#allocation5 + $0x2d0] sm:$0xff] }
 0x38a   :  { %8068 = vst [vmem:[#allocation63_spill] sm:$0xff] %v5612_v30  ;;  %1676 = vmatpush.msra.mxu1 %v5627_v59  ;;  %v5630_v30 = vld [vmem:[#allocation5 + $0xc8] sm:$0xff] }
 0x38b   :  { %8069 = vst [vmem:[#allocation64_spill] sm:$0xff] %v5615_v26  ;;  %1616 = vmatpush.msrb.mxu2 %v5630_v30  ;;  %v5633_v26 = vld [vmem:[#allocation5 + $0x2d8] sm:$0xff] }
 0x38c   :  { %8070 = vst [vmem:[#allocation67_spill] sm:$0xff] %v5618_v28  ;;  %1716 = vmatpush.msra.mxu3 %v5633_v26  ;;  %v5636_v28 = vld [vmem:[#allocation5 + $0xa0] sm:$0xff] }
 0x38d   :  { %8071 = vst [vmem:[#allocation68_spill] sm:$0xff] %v5621_v51  ;;  %1577 = vmatpush.msrb.mxu0 %v5636_v28  ;;  %v5639_v51 = vld [vmem:[#allocation5 + $0x2b0] sm:$0xff] }
 0x38e   :  { %8072 = vst [vmem:[#allocation71_spill] sm:$0xff] %v5624_v46  ;;  %1677 = vmatpush.msra.mxu1 %v5639_v51  ;;  %v5642_v46 = vld [vmem:[#allocation5 + $0xa8] sm:$0xff] }
 0x38f   :  { %8073 = vst [vmem:[#allocation72_spill] sm:$0xff] %v5627_v59  ;;  %1617 = vmatpush.msrb.mxu2 %v5642_v46  ;;  %v5645_v59 = vld [vmem:[#allocation5 + $0x2b8] sm:$0xff] }
 0x390   :  { %8074 = vst [vmem:[#allocation74_spill] sm:$0xff] %v5630_v30  ;;  %1717 = vmatpush.msra.mxu3 %v5645_v59  ;;  %v5648_v30 = vld [vmem:[#allocation5 + $0x80] sm:$0xff] }
 0x391   :  { %8075 = vst [vmem:[#allocation75_spill] sm:$0xff] %v5633_v26  ;;  %1578 = vmatpush.msrb.mxu0 %v5648_v30  ;;  %v5651_v26 = vld [vmem:[#allocation5 + $0x290] sm:$0xff] }
 0x392   :  { %8076 = vst [vmem:[#allocation77_spill] sm:$0xff] %v5636_v28  ;;  %1678 = vmatpush.msra.mxu1 %v5651_v26  ;;  %v5654_v28 = vld [vmem:[#allocation5 + $0x88] sm:$0xff] }
 0x393   :  { %8077 = vst [vmem:[#allocation78_spill] sm:$0xff] %v5639_v51  ;;  %1618 = vmatpush.msrb.mxu2 %v5654_v28  ;;  %v5657_v51 = vld [vmem:[#allocation5 + $0x298] sm:$0xff] }
 0x394   :  { %8078 = vst [vmem:[#allocation108_spill] sm:$0xff] %v5642_v46  ;;  %1718 = vmatpush.msra.mxu3 %v5657_v51  ;;  %v5660_v46 = vld [vmem:[#allocation5 + $0x60] sm:$0xff] }
 0x395   :  { %8079 = vst [vmem:[#allocation109_spill] sm:$0xff] %v5645_v59  ;;  %1579 = vmatpush.msrb.mxu0 %v5660_v46  ;;  %v5663_v59 = vld [vmem:[#allocation5 + $0x270] sm:$0xff] }
 0x396   :  { %8080 = vst [vmem:[#allocation111_spill] sm:$0xff] %v5648_v30  ;;  %1679 = vmatpush.msra.mxu1 %v5663_v59  ;;  %v5666_v30 = vld [vmem:[#allocation5 + $0x68] sm:$0xff] }
 0x397   :  { %8081 = vst [vmem:[#allocation112_spill] sm:$0xff] %v5651_v26  ;;  %1619 = vmatpush.msrb.mxu2 %v5666_v30  ;;  %v5669_v26 = vld [vmem:[#allocation5 + $0x278] sm:$0xff] }
 0x398   :  { %8082 = vst [vmem:[#allocation114_spill] sm:$0xff] %v5654_v28  ;;  %1719 = vmatpush.msra.mxu3 %v5669_v26  ;;  %v5672_v28 = vld [vmem:[#allocation5 + $0x40] sm:$0xff] }
 0x399   :  { %8083 = vst [vmem:[#allocation115_spill] sm:$0xff] %v5657_v51  ;;  %1580 = vmatpush.msrb.mxu0 %v5672_v28  ;;  %v5675_v51 = vld [vmem:[#allocation5 + $0x250] sm:$0xff] }
 0x39a   :  { %8084 = vst [vmem:[#allocation116_spill] sm:$0xff] %v5660_v46  ;;  %1680 = vmatpush.msra.mxu1 %v5675_v51  ;;  %v5678_v46 = vld [vmem:[#allocation5 + $0x48] sm:$0xff] }
 0x39b   :  { %8085 = vst [vmem:[#allocation117_spill] sm:$0xff] %v5663_v59  ;;  %1620 = vmatpush.msrb.mxu2 %v5678_v46  ;;  %v5681_v59 = vld [vmem:[#allocation5 + $0x258] sm:$0xff] }
 0x39c   :  { %8086 = vst [vmem:[#allocation118_spill] sm:$0xff] %v5666_v30  ;;  %1720 = vmatpush.msra.mxu3 %v5681_v59  ;;  %v5684_v30 = vld [vmem:[#allocation5 + $0x20] sm:$0xff] }
 0x39d   :  { %8087 = vst [vmem:[#allocation119_spill] sm:$0xff] %v5669_v26  ;;  %1581 = vmatpush.msrb.mxu0 %v5684_v30  ;;  %v5687_v26 = vld [vmem:[#allocation5 + $0x230] sm:$0xff] }
 0x39e   :  { %8088 = vst [vmem:[#allocation120_spill] sm:$0xff] %v5672_v28  ;;  %1681 = vmatpush.msra.mxu1 %v5687_v26  ;;  %v5690_v28 = vld [vmem:[#allocation5 + $0x28] sm:$0xff] }
 0x39f   :  { %8089 = vst [vmem:[#allocation121_spill] sm:$0xff] %v5675_v51  ;;  %1621 = vmatpush.msrb.mxu2 %v5690_v28  ;;  %v5693_v51 = vld [vmem:[#allocation5 + $0x238] sm:$0xff] }
 0x3a0   :  { %8090 = vst [vmem:[#allocation122_spill] sm:$0xff] %v5678_v46  ;;  %1721 = vmatpush.msra.mxu3 %v5693_v51  ;;  %v5696_v46 = vld [vmem:[#allocation5] sm:$0xff] }
 0x3a1   :  { %8091 = vst [vmem:[#allocation123_spill] sm:$0xff] %v5681_v59  ;;  %1582 = vmatpush.msrb.mxu0 %v5696_v46  ;;  %v5699_v59 = vld [vmem:[#allocation5 + $0x210] sm:$0xff] }
 0x3a2   :  { %8092 = vst [vmem:[#allocation124_spill] sm:$0xff] %v5684_v30  ;;  %1682 = vmatpush.msra.mxu1 %v5699_v59  ;;  %v5702_v30 = vld [vmem:[#allocation5 + $0x8] sm:$0xff] }
 0x3a3   :  { %8093 = vst [vmem:[#allocation125_spill] sm:$0xff] %v5687_v26  ;;  %1622 = vmatpush.msrb.mxu2 %v5702_v30  ;;  %v5705_v26 = vld [vmem:[#allocation5 + $0x218] sm:$0xff] }
 0x3a4   :  { %8094 = vst [vmem:[#allocation126_spill] sm:$0xff] %v5690_v28  ;;  %1722 = vmatpush.msra.mxu3 %v5705_v26  ;;  %v5708_v28 = vld [vmem:[#allocation5 + $0x1f0] sm:$0xff] }
 0x3a5   :  { %8095 = vst [vmem:[#allocation127_spill] sm:$0xff] %v5693_v51  ;;  %1647 = vmatpush.msra.mxu0 %v5708_v28  ;;  %v5711_v51 = vld [vmem:[#allocation5 + $0x1f8] sm:$0xff] }
 0x3a6   :  { %8096 = vst [vmem:[#allocation128_spill] sm:$0xff] %v5696_v46  ;;  %1687 = vmatpush.msra.mxu2 %v5711_v51  ;;  %v5714_v46 = vld [vmem:[#allocation5 + $0x1d0] sm:$0xff] }
 0x3a7   :  { %8097 = vst [vmem:[#allocation129_spill] sm:$0xff] %v5699_v59  ;;  %1648 = vmatpush.msra.mxu0 %v5714_v46  ;;  %v5717_v59 = vld [vmem:[#allocation5 + $0x1d8] sm:$0xff] }
 0x3a8   :  { %8098 = vst [vmem:[#allocation130_spill] sm:$0xff] %v5702_v30  ;;  %1688 = vmatpush.msra.mxu2 %v5717_v59  ;;  %v5720_v30 = vld [vmem:[#allocation5 + $0x1b0] sm:$0xff] }
 0x3a9   :  { %8099 = vst [vmem:[#allocation131_spill] sm:$0xff] %v5705_v26  ;;  %1649 = vmatpush.msra.mxu0 %v5720_v30  ;;  %v5723_v26 = vld [vmem:[#allocation5 + $0x1b8] sm:$0xff] }
 0x3aa   :  { %8100 = vst [vmem:[#allocation132_spill] sm:$0xff] %v5708_v28  ;;  %1689 = vmatpush.msra.mxu2 %v5723_v26  ;;  %v5726_v28 = vld [vmem:[#allocation5 + $0x190] sm:$0xff] }
 0x3ab   :  { %8101 = vst [vmem:[#allocation133_spill] sm:$0xff] %v5711_v51  ;;  %1650 = vmatpush.msra.mxu0 %v5726_v28  ;;  %v5729_v51 = vld [vmem:[#allocation5 + $0x198] sm:$0xff] }
 0x3ac   :  { %8102 = vst [vmem:[#allocation134_spill] sm:$0xff] %v5714_v46  ;;  %1690 = vmatpush.msra.mxu2 %v5729_v51  ;;  %v5732_v46 = vld [vmem:[#allocation5 + $0x170] sm:$0xff] }
 0x3ad   :  { %8103 = vst [vmem:[#allocation135_spill] sm:$0xff] %v5717_v59  ;;  %1651 = vmatpush.msra.mxu0 %v5732_v46  ;;  %v5735_v59 = vld [vmem:[#allocation5 + $0x178] sm:$0xff] }
 0x3ae   :  { %8104 = vst [vmem:[#allocation136_spill] sm:$0xff] %v5720_v30  ;;  %1691 = vmatpush.msra.mxu2 %v5735_v59  ;;  %v5738_v30 = vld [vmem:[#allocation5 + $0x150] sm:$0xff] }
 0x3af   :  { %8105 = vst [vmem:[#allocation137_spill] sm:$0xff] %v5723_v26  ;;  %1652 = vmatpush.msra.mxu0 %v5738_v30  ;;  %v5741_v26 = vld [vmem:[#allocation5 + $0x158] sm:$0xff] }
 0x3b0   :  { %8106 = vst [vmem:[#allocation138_spill] sm:$0xff] %v5726_v28  ;;  %1692 = vmatpush.msra.mxu2 %v5741_v26  ;;  %v5744_v28 = vld [vmem:[#allocation5 + $0x130] sm:$0xff] }
 0x3b1   :  { %8107 = vst [vmem:[#allocation139_spill] sm:$0xff] %v5729_v51  ;;  %1653 = vmatpush.msra.mxu0 %v5744_v28  ;;  %v5747_v51 = vld [vmem:[#allocation5 + $0x138] sm:$0xff] }
 0x3b2   :  { %8108 = vst [vmem:[#allocation140_spill] sm:$0xff] %v5732_v46  ;;  %1693 = vmatpush.msra.mxu2 %v5747_v51  ;;  %v5750_v46 = vld [vmem:[#allocation5 + $0x110] sm:$0xff] }
 0x3b3   :  { %8109 = vst [vmem:[#allocation141_spill] sm:$0xff] %v5735_v59  ;;  %1654 = vmatpush.msra.mxu0 %v5750_v46  ;;  %v5753_v59 = vld [vmem:[#allocation5 + $0x118] sm:$0xff] }
 0x3b4   :  { %8110 = vst [vmem:[#allocation142_spill] sm:$0xff] %v5738_v30  ;;  %1694 = vmatpush.msra.mxu2 %v5753_v59  ;;  %v5756_v30 = vld [vmem:[#allocation5 + $0xf0] sm:$0xff] }
 0x3b5   :  { %8111 = vst [vmem:[#allocation143_spill] sm:$0xff] %v5741_v26  ;;  %1655 = vmatpush.msra.mxu0 %v5756_v30  ;;  %v5759_v26 = vld [vmem:[#allocation5 + $0xf8] sm:$0xff] }
 0x3b6   :  { %8112 = vst [vmem:[#allocation144_spill] sm:$0xff] %v5744_v28  ;;  %1695 = vmatpush.msra.mxu2 %v5759_v26  ;;  %v5762_v28 = vld [vmem:[#allocation5 + $0xd0] sm:$0xff] }
 0x3b7   :  { %8113 = vst [vmem:[#allocation145_spill] sm:$0xff] %v5747_v51  ;;  %1656 = vmatpush.msra.mxu0 %v5762_v28  ;;  %v5765_v51 = vld [vmem:[#allocation5 + $0xd8] sm:$0xff] }
 0x3b8   :  { %8114 = vst [vmem:[#allocation146_spill] sm:$0xff] %v5750_v46  ;;  %1696 = vmatpush.msra.mxu2 %v5765_v51  ;;  %v5768_v46 = vld [vmem:[#allocation5 + $0xb0] sm:$0xff] }
 0x3b9   :  { %8115 = vst [vmem:[#allocation147_spill] sm:$0xff] %v5753_v59  ;;  %1657 = vmatpush.msra.mxu0 %v5768_v46  ;;  %v5771_v59 = vld [vmem:[#allocation5 + $0xb8] sm:$0xff] }
 0x3ba   :  { %8116 = vst [vmem:[#allocation148_spill] sm:$0xff] %v5756_v30  ;;  %1697 = vmatpush.msra.mxu2 %v5771_v59  ;;  %v5774_v30 = vld [vmem:[#allocation5 + $0x90] sm:$0xff]  ;;  %v1327_v16 = vpop.f32.mrf.mxu2 }
 0x3bb   :  { %8117 = vst [vmem:[#allocation149_spill] sm:$0xff] %v5759_v26  ;;  %1658 = vmatpush.msra.mxu0 %v5774_v30  ;;  %v5777_v26 = vld [vmem:[#allocation5 + $0x98] sm:$0xff] }
 0x3bc   :  { %8118 = vst [vmem:[#allocation150_spill] sm:$0xff] %v5762_v28  ;;  %1698 = vmatpush.msra.mxu2 %v5777_v26  ;;  %v5780_v28 = vld [vmem:[#allocation5 + $0x70] sm:$0xff] }
 0x3bd   :  { %8119 = vst [vmem:[#allocation151_spill] sm:$0xff] %v5765_v51  ;;  %1659 = vmatpush.msra.mxu0 %v5780_v28  ;;  %v5783_v51 = vld [vmem:[#allocation5 + $0x78] sm:$0xff] }
 0x3be   :  { %8120 = vst [vmem:[#allocation152_spill] sm:$0xff] %v5768_v46  ;;  %1699 = vmatpush.msra.mxu2 %v5783_v51 }
 0x3bf   :  { %8121 = vst [vmem:[#allocation153_spill] sm:$0xff] %v5771_v59  ;;  %1660 = vmatpush.msra.mxu0 %v5182_v11  ;;  %v1328_v11 = vadd.f32 %v1327_v16, %v7980_v58 }
 0x3c0   :  { %8122 = vst [vmem:[#allocation154_spill] sm:$0xff] %v5774_v30  ;;  %1700 = vmatpush.msra.mxu2 %v5185_v23  ;;  %v1287_v30 = vpop.f32.mrf.mxu0 }
 0x3c1   :  { %8123 = vst [vmem:[#allocation155_spill] sm:$0xff] %v5777_v26  ;;  %1661 = vmatpush.msra.mxu0 %v5188_v47  ;;  %v1307_v26 = vpop.f32.mrf.mxu1 }
 0x3c2   :  { %8124 = vst [vmem:[#allocation156_spill] sm:$0xff] %v5780_v28  ;;  %1701 = vmatpush.msra.mxu2 %v5191_v52  ;;  %v1288_v28 = vadd.f32 %v1287_v30, %v7979_v27 }
 0x3c3   :  { %8125 = vst [vmem:[#allocation157_spill] sm:$0xff] %v5783_v51  ;;  %1662 = vmatpush.msra.mxu0 %v5194_v60  ;;  %v1347_v51 = vpop.f32.mrf.mxu3  ;;  %v1407_v35 = vpop.f32.mrf.mxu2 }
 0x3c4   :  { %1702 = vmatpush.msra.mxu2 %v5197_v1  ;;  %v1308_v59 = vadd.f32 %v1307_v26, %v1288_v28  ;;  %v1348_v23 = vadd.f32 %v1347_v51, %v1328_v11  ;;  %v1408_v30 = vadd.f32 %v1407_v35, %v4378_v62 }
 0x3c6   :  { %v1430_v46 = vmul.f32 0.5, %v1308_v59  ;;  %v1434_v19 = vmul.f32 0.5, %v1348_v23 }
 0x3c8   :  { %v1367_v55 = vpop.f32.mrf.mxu0  ;;  %2780 = vtanh.f32 %v1430_v46 }
 0x3c9   :  { %v1368_v47 = vadd.f32 %v1367_v55, %v4374_v20  ;;  %v1387_v52 = vpop.f32.mrf.mxu1  ;;  %2782 = vtanh.f32 %v1434_v19 }
 0x3cb   :  { %v1388_v60 = vadd.f32 %v1387_v52, %v1368_v47  ;;  %v1427_v26 = vpop.f32.mrf.mxu3 }
 0x3cc   :  { %v1428_v28 = vadd.f32 %v1427_v26, %v1408_v30 }
 0x3cd   :  { %2784 = vtanh.f32 %v1388_v60 }
 0x3ce   :  { %v2781_v1 = vpop.eup %2780  ;;  %v1439_v16 = vmul.f32 0.5, %v1428_v28 }
 0x3cf   :  { %v1432_v59 = vmul.f32 0.5, %v2781_v1  ;;  %v2783_v27 = vpop.eup %2782 }
 0x3d0   :  { %v1436_v4 = vmul.f32 0.5, %v2783_v27  ;;  %2786 = vtanh.f32 %v1439_v16 }
 0x3d1   :  { %v1433_v46 = vadd.f32 0.5, %v1432_v59  ;;  %v1487_v1 = vpop.f32.mrf.mxu1  ;;  %v2699_v59 = vld [vmem:[%s6904_s0 + $0x20] sm:$0xff] }
 0x3d2   :  { %v1437_v51 = vadd.f32 0.5, %v1436_v4 }
 0x3d3   :  { %v2785_v58 = vpop.eup %2784  ;;  %v1527_v30 = vpop.f32.mrf.mxu3 }
 0x3d4   :  { %v1443_v55 = vmul.f32 %v1437_v51, %v5205_v7  ;;  %v1444_v11 = vmul.f32 %v2785_v58, %v1433_v46  ;;  %v1534_v58 = vrot.slane %v1487_v1, 6  ;;  %v1536_v4 = vrot.slane %v1527_v30, 2  ;;  %v8146_v51 = vld [vmem:[#allocation23_spill] sm:$0xff]  ;;  %v8155_v30 = vld [vmem:[#allocation88_spill] sm:$0xff] }
 0x3d5   :  { %v8154_v1 = vld [vmem:[#allocation27_spill] sm:$0xff] }
 0x3d6   :  { %v5797_v23 = vadd.f32 %v1444_v11, %v1443_v55  ;;  %v2787_v19 = vpop.eup %2786  ;;  %v8147_v55 = vld [vmem:[#allocation84_spill] sm:$0xff] }
 0x3d7   :  { %v1441_v47 = vmul.f32 0.5, %v2787_v19  ;;  %v8148_v11 = vld [vmem:[#allocation20_spill] sm:$0xff]  ;;  %v8149_v19 = vld [vmem:[#allocation83_spill] sm:$0xff] }
 0x3d8   :  { %2788 = vtanh.f32 %v5797_v23 }
 0x3d9   :  { %v1442_v35 = vadd.f32 0.5, %v1441_v47  ;;  %v8150_v47 = vld [vmem:[#allocation25_spill] sm:$0xff] }
 0x3de   :  { %v2789_v52 = vpop.eup %2788 }
 0x3df   :  { %v1447_v60 = vmul.f32 %v2789_v52, %v1442_v35  ;;  %v8151_v35 = vld [vmem:[#allocation86_spill] sm:$0xff] }
 0x3e0   :  { %v8152_v52 = vld [vmem:[#allocation22_spill] sm:$0xff] }
 0x3e1   :  { %1603 = vmatmul.f32.vlgmr.msrb.gmra.mxu1 %v1447_v60  ;;  %1643 = vmatmul.f32.vlgmr.msrb.gmra.mxu3 %v1447_v60  ;;  %v1467_v27 = vpop.f32.mrf.mxu0 }
 0x3e2   :  { %1767 = vmatpush.msrb.mxu1 %v5208_v22  ;;  %1807 = vmatpush.msrb.mxu3 %v5211_v0  ;;  %v1537_v28 = vsel %vm346_vm0, %v1467_v27, %v1534_v58  ;;  %v8156_v27 = vld [vmem:[#allocation24_spill] sm:$0xff]  ;;  %v8158_v58 = vld [vmem:[#allocation29_spill] sm:$0xff] }
 0x3e4   :  { %1768 = vmatpush.msrb.mxu1 %v5214_v18  ;;  %1808 = vmatpush.msrb.mxu3 %v5217_v9 }
 0x3e6   :  { %1769 = vmatpush.msrb.mxu1 %v5225_v63  ;;  %1809 = vmatpush.msrb.mxu3 %v5228_v2 }
 0x3e8   :  { %1770 = vmatpush.msrb.mxu1 %v5232_v43  ;;  %1810 = vmatpush.msrb.mxu3 %v5235_v56 }
 0x3e9   :  { %v1507_v7 = vpop.f32.mrf.mxu2  ;;  %1683 = vmatmul.f32.vlgmr.msra.gmra.mxu1 %v1447_v60  ;;  %1723 = vmatmul.f32.vlgmr.msra.gmra.mxu3 %v1447_v60  ;;  %v8153_v60 = vld [vmem:[#allocation85_spill] sm:$0xff] }
 0x3ea   :  { %v1535_v26 = vrot.slane %v1507_v7, 4  ;;  %1771 = vmatpush.msrb.mxu1 %v5238_v17  ;;  %1811 = vmatpush.msrb.mxu3 %v5241_v33  ;;  %v8157_v7 = vld [vmem:[#allocation87_spill] sm:$0xff] }
 0x3ec   :  { %v1538_v16 = vsel %vm348_vm1, %v1535_v26, %v1536_v4  ;;  %1772 = vmatpush.msrb.mxu1 %v5244_v42  ;;  %1812 = vmatpush.msrb.mxu3 %v5247_v37  ;;  %v8159_v4 = vld [vmem:[#allocation90_spill] sm:$0xff] }
 0x3ed   :  { %v1539_v22 = vsel %vm350_vm2, %v1537_v28, %v1538_v16  ;;  %v8160_v26 = vld [vmem:[#allocation26_spill] sm:$0xff]  ;;  %v8162_v28 = vld [vmem:[#allocation31_spill] sm:$0xff]  ;;  %v8163_v16 = vld [vmem:[#allocation92_spill] sm:$0xff] }
 0x3ee   :  { %v1541_v0 = vadd.f32 %v2699_v59, %v1539_v22  ;;  %1773 = vmatpush.msrb.mxu1 %v5250_v38  ;;  %1813 = vmatpush.msrb.mxu3 %v5253_v41  ;;  %v8161_v59 = vld [vmem:[#allocation89_spill] sm:$0xff]  ;;  %v8164_v22 = vld [vmem:[#allocation28_spill] sm:$0xff] }
 0x3f0   :  { %v1542_v18 = vmul.f32 0.5, %v1541_v0  ;;  %v1547_v9 = vrot.slane %v1541_v0, 2  ;;  %v1556_v63 = vrot.slane %v1541_v0, 6  ;;  %v1553_v2 = vrot.slane %v1541_v0, 4  ;;  %1774 = vmatpush.msrb.mxu1 %v5256_v6  ;;  %1814 = vmatpush.msrb.mxu3 %v5259_v8  ;;  %v8165_v0 = vld [vmem:[#allocation91_spill] sm:$0xff] }
 0x3f2   :  { %2790 = vtanh.f32 %v1542_v18  ;;  %v1549_v46 = vmul.f32 0.5, %v1547_v9  ;;  %v1558_v43 = vmul.f32 0.5, %v1556_v63  ;;  %1775 = vmatpush.msrb.mxu1 %v5262_v24  ;;  %1815 = vmatpush.msrb.mxu3 %v5265_v31  ;;  %v8166_v18 = vld [vmem:[#allocation33_spill] sm:$0xff]  ;;  %v8167_v9 = vld [vmem:[#allocation94_spill] sm:$0xff] }
 0x3f3   :  { %v8169_v63 = vld [vmem:[#allocation93_spill] sm:$0xff] }
 0x3f4   :  { %2792 = vtanh.f32 %v1549_v46  ;;  %1776 = vmatpush.msrb.mxu1 %v5268_v14  ;;  %1816 = vmatpush.msrb.mxu3 %v5271_v25  ;;  %v8168_v46 = vld [vmem:[#allocation30_spill] sm:$0xff] }
 0x3f5   :  { %2794 = vtanh.f32 %v1553_v2  ;;  %v8170_v2 = vld [vmem:[#allocation35_spill] sm:$0xff] }
 0x3f6   :  { %2796 = vtanh.f32 %v1558_v43  ;;  %1777 = vmatpush.msrb.mxu1 %v5274_v13  ;;  %1817 = vmatpush.msrb.mxu3 %v5277_v32  ;;  %v8171_v43 = vld [vmem:[#allocation96_spill] sm:$0xff] }
 0x3f8   :  { %v2791_v56 = vpop.eup %2790  ;;  %1778 = vmatpush.msrb.mxu1 %v5280_v54  ;;  %1818 = vmatpush.msrb.mxu3 %v5283_v50  ;;  %v8126_v54 = vld [vmem:[#allocation62_spill] sm:$0xff]  ;;  %v8127_v50 = vld [vmem:[#allocation69_spill] sm:$0xff] }
 0x3f9   :  { %v1544_v17 = vmul.f32 0.5, %v2791_v56  ;;  %v8172_v56 = vld [vmem:[#allocation32_spill] sm:$0xff] }
 0x3fa   :  { %v2793_v33 = vpop.eup %2792  ;;  %1779 = vmatpush.msrb.mxu1 %v5287_v36  ;;  %1819 = vmatpush.msrb.mxu3 %v5290_v45  ;;  %v8128_v36 = vld [vmem:[#allocation66_spill] sm:$0xff] }
 0x3fb   :  { %v1545_v42 = vadd.f32 0.5, %v1544_v17  ;;  %v1551_v37 = vmul.f32 0.5, %v2793_v33  ;;  %v2795_v41 = vpop.eup %2794  ;;  %v8129_v45 = vld [vmem:[#allocation70_spill] sm:$0xff]  ;;  %v8173_v17 = vld [vmem:[#allocation95_spill] sm:$0xff]  ;;  %v8174_v33 = vld [vmem:[#allocation37_spill] sm:$0xff] }
 0x3fc   :  { %v2797_v24 = vpop.eup %2796  ;;  %1780 = vmatpush.msrb.mxu1 %v5295_v34  ;;  %1820 = vmatpush.msrb.mxu3 %v5298_v49  ;;  %v8131_v34 = vld [vmem:[#allocation14_spill] sm:$0xff]  ;;  %v8132_v49 = vld [vmem:[#allocation11_spill] sm:$0xff] }
 0x3fd   :  { %v1552_v38 = vadd.f32 0.5, %v1551_v37  ;;  %v1563_v8 = vmul.f32 %v2795_v41, %v1545_v42  ;;  %v1560_v14 = vmul.f32 0.5, %v2797_v24  ;;  %v8175_v42 = vld [vmem:[#allocation98_spill] sm:$0xff]  ;;  %v8178_v41 = vld [vmem:[#allocation39_spill] sm:$0xff]  ;;  %v8181_v24 = vld [vmem:[#allocation41_spill] sm:$0xff] }
 0x3fe   :  { %1781 = vmatpush.msrb.mxu1 %v5302_v12  ;;  %1821 = vmatpush.msrb.mxu3 %v5305_v15  ;;  %v8133_v12 = vld [vmem:[#allocation16_spill] sm:$0xff]  ;;  %v8176_v37 = vld [vmem:[#allocation34_spill] sm:$0xff] }
 0x3ff   :  { %v1562_v6 = vmul.f32 %v1552_v38, %v5293_v44  ;;  %v1561_v25 = vadd.f32 0.5, %v1560_v14  ;;  %v8130_v44 = vld [vmem:[#allocation73_spill] sm:$0xff]  ;;  %v8134_v15 = vld [vmem:[#allocation12_spill] sm:$0xff] }
 0x400   :  { %1782 = vmatpush.msrb.mxu1 %v5308_v21  ;;  %1822 = vmatpush.msrb.mxu3 %v5311_v48  ;;  %v8135_v21 = vld [vmem:[#allocation76_spill] sm:$0xff]  ;;  %v8136_v48 = vld [vmem:[#allocation17_spill] sm:$0xff] }
 0x401   :  { %v5833_v31 = vadd.f32 %v1563_v8, %v1562_v6  ;;  %v8177_v38 = vld [vmem:[#allocation97_spill] sm:$0xff]  ;;  %v8179_v6 = vld [vmem:[#allocation36_spill] sm:$0xff]  ;;  %v8180_v8 = vld [vmem:[#allocation99_spill] sm:$0xff] }
 0x402   :  { %1884 = vmatpush.msra.mxu1 %v5314_v53  ;;  %1924 = vmatpush.msra.mxu3 %v5317_v39  ;;  %v8137_v53 = vld [vmem:[#allocation81_spill] sm:$0xff] }
 0x403   :  { %2798 = vtanh.f32 %v5833_v31  ;;  %v8138_v39 = vld [vmem:[#allocation13_spill] sm:$0xff] }
 0x404   :  { %1885 = vmatpush.msra.mxu1 %v5320_v57  ;;  %1925 = vmatpush.msra.mxu3 %v5323_v3  ;;  %v8139_v57 = vld [vmem:[#allocation79_spill] sm:$0xff]  ;;  %v8182_v14 = vld [vmem:[#allocation101_spill] sm:$0xff] }
 0x405   :  { %v8140_v3 = vld [vmem:[#allocation19_spill] sm:$0xff] }
 0x406   :  { %1886 = vmatpush.msra.mxu1 %v5328_v40  ;;  %1926 = vmatpush.msra.mxu3 %v5331_v5  ;;  %v8141_v40 = vld [vmem:[#allocation82_spill] sm:$0xff]  ;;  %v8142_v5 = vld [vmem:[#allocation15_spill] sm:$0xff] }
 0x408   :  { %1887 = vmatpush.msra.mxu1 %v8126_v54  ;;  %1927 = vmatpush.msra.mxu3 %v8128_v36  ;;  %v8185_v54 = vld [vmem:[#allocation42_spill] sm:$0xff]  ;;  %v8187_v36 = vld [vmem:[#allocation40_spill] sm:$0xff] }
 0x409   :  { %v2799_v13 = vpop.eup %2798 }
 0x40a   :  { %v5846_v32 = vmul.f32 %v2799_v13, %v1561_v25  ;;  %1888 = vmatpush.msra.mxu1 %v8130_v44  ;;  %1928 = vmatpush.msra.mxu3 %v8132_v49  ;;  %v8183_v25 = vld [vmem:[#allocation38_spill] sm:$0xff]  ;;  %v8184_v13 = vld [vmem:[#allocation100_spill] sm:$0xff]  ;;  %v8191_v49 = vld [vmem:[#allocation45_spill] sm:$0xff] }
 0x40b   :  { %v8189_v44 = vld [vmem:[#allocation44_spill] sm:$0xff] }
 0x40c   :  { %1583 = vmatmul.f32.vlgmr.msrb.gmra.mxu0 %v5846_v32  ;;  %1623 = vmatmul.f32.vlgmr.msrb.gmra.mxu2 %v5846_v32 }
 0x40d   :  { %1747 = vmatpush.msrb.mxu0 %v5336_v10  ;;  %1783 = vmatmul.f32.vlgmr.msrb.gmra.mxu1 %v5846_v32  ;;  %v8143_v10 = vld [vmem:[#allocation21_spill] sm:$0xff] }
 0x40e   :  { %1787 = vmatpush.msrb.mxu2 %v5340_v29  ;;  %1823 = vmatmul.f32.vlgmr.msrb.gmra.mxu3 %v5846_v32  ;;  %v8144_v29 = vld [vmem:[#allocation18_spill] sm:$0xff] }
 0x40f   :  { %1748 = vmatpush.msrb.mxu0 %v5344_v61  ;;  %1889 = vmatpush.msra.mxu1 %v8134_v15  ;;  %v8145_v61 = vld [vmem:[#allocation80_spill] sm:$0xff] }
 0x410   :  { %1788 = vmatpush.msrb.mxu2 %v8127_v50  ;;  %1929 = vmatpush.msra.mxu3 %v8138_v39  ;;  %v8186_v50 = vld [vmem:[#allocation103_spill] sm:$0xff]  ;;  %v8194_v15 = vld [vmem:[#allocation104_spill] sm:$0xff]  ;;  %v8198_v39 = vld [vmem:[#allocation106_spill] sm:$0xff] }
 0x411   :  { %1749 = vmatpush.msrb.mxu0 %v8129_v45  ;;  %1890 = vmatpush.msra.mxu1 %v8140_v3  ;;  %v8188_v45 = vld [vmem:[#allocation43_spill] sm:$0xff]  ;;  %v8200_v3 = vld [vmem:[#allocation50_spill] sm:$0xff] }
 0x412   :  { %1789 = vmatpush.msrb.mxu2 %v8131_v34  ;;  %1930 = vmatpush.msra.mxu3 %v8142_v5  ;;  %v8190_v34 = vld [vmem:[#allocation102_spill] sm:$0xff]  ;;  %v8202_v5 = vld [vmem:[#allocation51_spill] sm:$0xff] }
 0x413   :  { %1750 = vmatpush.msrb.mxu0 %v8133_v12  ;;  %1891 = vmatpush.msra.mxu1 %v8144_v29  ;;  %v8193_v12 = vld [vmem:[#allocation46_spill] sm:$0xff]  ;;  %v8204_v29 = vld [vmem:[#allocation113_spill] sm:$0xff] }
 0x414   :  { %1790 = vmatpush.msrb.mxu2 %v8135_v21  ;;  %1663 = vmatmul.f32.vlgmr.msra.gmra.mxu0 %v5846_v32  ;;  %v8195_v21 = vld [vmem:[#allocation47_spill] sm:$0xff] }
 0x415   :  { %1703 = vmatmul.f32.vlgmr.msra.gmra.mxu2 %v5846_v32  ;;  %1751 = vmatpush.msrb.mxu0 %v8136_v48  ;;  %v8196_v48 = vld [vmem:[#allocation107_spill] sm:$0xff] }
 0x416   :  { %1791 = vmatpush.msrb.mxu2 %v8137_v53  ;;  %1931 = vmatpush.msra.mxu3 %v8146_v51  ;;  %v8197_v53 = vld [vmem:[#allocation48_spill] sm:$0xff]  ;;  %v8206_v51 = vld [vmem:[#allocation54_spill] sm:$0xff] }
 0x417   :  { %1752 = vmatpush.msrb.mxu0 %v8139_v57  ;;  %1892 = vmatpush.msra.mxu1 %v8148_v11  ;;  %v8199_v57 = vld [vmem:[#allocation49_spill] sm:$0xff]  ;;  %v8208_v11 = vld [vmem:[#allocation56_spill] sm:$0xff] }
 0x418   :  { %1792 = vmatpush.msrb.mxu2 %v8141_v40  ;;  %1932 = vmatpush.msra.mxu3 %v8150_v47  ;;  %v8201_v40 = vld [vmem:[#allocation110_spill] sm:$0xff] }
 0x419   :  { %1753 = vmatpush.msrb.mxu0 %v8143_v10  ;;  %1893 = vmatpush.msra.mxu1 %v8152_v52  ;;  %v8203_v10 = vld [vmem:[#allocation52_spill] sm:$0xff]  ;;  %v8210_v47 = vld [vmem:[#allocation58_spill] sm:$0xff]  ;;  %v8212_v52 = vld [vmem:[#allocation61_spill] sm:$0xff] }
 0x41a   :  { %1793 = vmatpush.msrb.mxu2 %v8145_v61  ;;  %1933 = vmatpush.msra.mxu3 %v8154_v1  ;;  %v8205_v61 = vld [vmem:[#allocation53_spill] sm:$0xff]  ;;  %v8214_v1 = vld [vmem:[#allocation64_spill] sm:$0xff] }
 0x41b   :  { %1754 = vmatpush.msrb.mxu0 %v8147_v55  ;;  %1894 = vmatpush.msra.mxu1 %v8156_v27  ;;  %v8207_v55 = vld [vmem:[#allocation55_spill] sm:$0xff]  ;;  %v8216_v27 = vld [vmem:[#allocation68_spill] sm:$0xff] }
 0x41c   :  { %1794 = vmatpush.msrb.mxu2 %v8149_v19  ;;  %1934 = vmatpush.msra.mxu3 %v8158_v58  ;;  %v8209_v19 = vld [vmem:[#allocation57_spill] sm:$0xff]  ;;  %v8218_v58 = vld [vmem:[#allocation72_spill] sm:$0xff] }
 0x41d   :  { %1755 = vmatpush.msrb.mxu0 %v8151_v35  ;;  %1895 = vmatpush.msra.mxu1 %v8160_v26  ;;  %v8211_v35 = vld [vmem:[#allocation60_spill] sm:$0xff]  ;;  %v8220_v26 = vld [vmem:[#allocation75_spill] sm:$0xff] }
 0x41e   :  { %1795 = vmatpush.msrb.mxu2 %v8153_v60  ;;  %1935 = vmatpush.msra.mxu3 %v8162_v28  ;;  %v8213_v60 = vld [vmem:[#allocation63_spill] sm:$0xff]  ;;  %v8222_v28 = vld [vmem:[#allocation78_spill] sm:$0xff] }
 0x41f   :  { %1756 = vmatpush.msrb.mxu0 %v8155_v30  ;;  %1896 = vmatpush.msra.mxu1 %v8164_v22  ;;  %v8215_v30 = vld [vmem:[#allocation67_spill] sm:$0xff]  ;;  %v8224_v22 = vld [vmem:[#allocation109_spill] sm:$0xff] }
 0x420   :  { %1796 = vmatpush.msrb.mxu2 %v8157_v7  ;;  %1936 = vmatpush.msra.mxu3 %v8166_v18  ;;  %v8217_v7 = vld [vmem:[#allocation71_spill] sm:$0xff]  ;;  %v8226_v18 = vld [vmem:[#allocation112_spill] sm:$0xff] }
 0x421   :  { %1757 = vmatpush.msrb.mxu0 %v8159_v4  ;;  %1897 = vmatpush.msra.mxu1 %v8168_v46  ;;  %v8219_v4 = vld [vmem:[#allocation74_spill] sm:$0xff]  ;;  %v8228_v46 = vld [vmem:[#allocation115_spill] sm:$0xff] }
 0x422   :  { %1797 = vmatpush.msrb.mxu2 %v8161_v59  ;;  %1937 = vmatpush.msra.mxu3 %v8170_v2  ;;  %v8221_v59 = vld [vmem:[#allocation77_spill] sm:$0xff] }
 0x423   :  { %1758 = vmatpush.msrb.mxu0 %v8163_v16  ;;  %1898 = vmatpush.msra.mxu1 %v8172_v56  ;;  %v8223_v16 = vld [vmem:[#allocation108_spill] sm:$0xff]  ;;  %v8230_v2 = vld [vmem:[#allocation117_spill] sm:$0xff]  ;;  %v8232_v56 = vld [vmem:[#allocation119_spill] sm:$0xff] }
 0x424   :  { %1798 = vmatpush.msrb.mxu2 %v8165_v0  ;;  %1938 = vmatpush.msra.mxu3 %v8174_v33  ;;  %v8225_v0 = vld [vmem:[#allocation111_spill] sm:$0xff]  ;;  %v8234_v33 = vld [vmem:[#allocation121_spill] sm:$0xff] }
 0x425   :  { %1759 = vmatpush.msrb.mxu0 %v8167_v9  ;;  %1899 = vmatpush.msra.mxu1 %v8176_v37  ;;  %v8227_v9 = vld [vmem:[#allocation114_spill] sm:$0xff]  ;;  %v8236_v37 = vld [vmem:[#allocation123_spill] sm:$0xff] }
 0x426   :  { %1799 = vmatpush.msrb.mxu2 %v8169_v63  ;;  %1939 = vmatpush.msra.mxu3 %v8178_v41  ;;  %v8229_v63 = vld [vmem:[#allocation116_spill] sm:$0xff]  ;;  %v8238_v41 = vld [vmem:[#allocation125_spill] sm:$0xff] }
 0x427   :  { %1760 = vmatpush.msrb.mxu0 %v8171_v43  ;;  %1964 = vmatpush.msrb.mxu1 %v8180_v8  ;;  %v8231_v43 = vld [vmem:[#allocation118_spill] sm:$0xff]  ;;  %v8240_v8 = vld [vmem:[#allocation127_spill] sm:$0xff] }
 0x428   :  { %1800 = vmatpush.msrb.mxu2 %v8173_v17  ;;  %2004 = vmatpush.msrb.mxu3 %v8184_v13  ;;  %v8233_v17 = vld [vmem:[#allocation120_spill] sm:$0xff]  ;;  %v8244_v13 = vld [vmem:[#allocation131_spill] sm:$0xff] }
 0x429   :  { %1761 = vmatpush.msrb.mxu0 %v8175_v42  ;;  %1965 = vmatpush.msrb.mxu1 %v8186_v50  ;;  %v8235_v42 = vld [vmem:[#allocation122_spill] sm:$0xff]  ;;  %v8246_v50 = vld [vmem:[#allocation133_spill] sm:$0xff] }
 0x42a   :  { %1801 = vmatpush.msrb.mxu2 %v8177_v38  ;;  %2005 = vmatpush.msrb.mxu3 %v8188_v45  ;;  %v8237_v38 = vld [vmem:[#allocation124_spill] sm:$0xff]  ;;  %v8248_v45 = vld [vmem:[#allocation135_spill] sm:$0xff] }
 0x42b   :  { %1762 = vmatpush.msrb.mxu0 %v8179_v6  ;;  %1966 = vmatpush.msrb.mxu1 %v8190_v34  ;;  %v8239_v6 = vld [vmem:[#allocation126_spill] sm:$0xff]  ;;  %v8250_v34 = vld [vmem:[#allocation137_spill] sm:$0xff] }
 0x42c   :  { %1802 = vmatpush.msrb.mxu2 %v8181_v24  ;;  %1763 = vmatmul.f32.vlgmr.msrb.gmra.mxu0 %v5846_v32  ;;  %v8241_v24 = vld [vmem:[#allocation128_spill] sm:$0xff] }
 0x42d   :  { %1803 = vmatmul.f32.vlgmr.msrb.gmra.mxu2 %v5846_v32  ;;  %1864 = vmatpush.msra.mxu0 %v8182_v14  ;;  %v8192_v32 = vld [vmem:[#allocation105_spill] sm:$0xff] }
 0x42e   :  { %1904 = vmatpush.msra.mxu2 %v8183_v25  ;;  %2006 = vmatpush.msrb.mxu3 %v8192_v32  ;;  %v8242_v14 = vld [vmem:[#allocation129_spill] sm:$0xff]  ;;  %v8243_v25 = vld [vmem:[#allocation130_spill] sm:$0xff]  ;;  %v8252_v32 = vld [vmem:[#allocation139_spill] sm:$0xff] }
 0x42f   :  { %1865 = vmatpush.msra.mxu0 %v8185_v54  ;;  %1967 = vmatpush.msrb.mxu1 %v8194_v15  ;;  %v8245_v54 = vld [vmem:[#allocation132_spill] sm:$0xff]  ;;  %v8254_v15 = vld [vmem:[#allocation141_spill] sm:$0xff] }
 0x430   :  { %1905 = vmatpush.msra.mxu2 %v8187_v36  ;;  %2007 = vmatpush.msrb.mxu3 %v8196_v48  ;;  %v8247_v36 = vld [vmem:[#allocation134_spill] sm:$0xff]  ;;  %v8256_v48 = vld [vmem:[#allocation143_spill] sm:$0xff] }
 0x431   :  { %1866 = vmatpush.msra.mxu0 %v8189_v44  ;;  %1968 = vmatpush.msrb.mxu1 %v8198_v39  ;;  %v8249_v44 = vld [vmem:[#allocation136_spill] sm:$0xff]  ;;  %v8258_v39 = vld [vmem:[#allocation145_spill] sm:$0xff] }
 0x432   :  { %1906 = vmatpush.msra.mxu2 %v8191_v49  ;;  %2008 = vmatpush.msrb.mxu3 %v8200_v3  ;;  %v8251_v49 = vld [vmem:[#allocation138_spill] sm:$0xff]  ;;  %v8260_v3 = vld [vmem:[#allocation147_spill] sm:$0xff] }
 0x433   :  { %1867 = vmatpush.msra.mxu0 %v8193_v12  ;;  %1969 = vmatpush.msrb.mxu1 %v8202_v5  ;;  %v8253_v12 = vld [vmem:[#allocation140_spill] sm:$0xff]  ;;  %v8262_v5 = vld [vmem:[#allocation149_spill] sm:$0xff] }
 0x434   :  { %1907 = vmatpush.msra.mxu2 %v8195_v21  ;;  %2009 = vmatpush.msrb.mxu3 %v8204_v29  ;;  %v8255_v21 = vld [vmem:[#allocation142_spill] sm:$0xff]  ;;  %v8264_v29 = vld [vmem:[#allocation151_spill] sm:$0xff] }
 0x435   :  { %1868 = vmatpush.msra.mxu0 %v8197_v53  ;;  %1970 = vmatpush.msrb.mxu1 %v8206_v51  ;;  %v8257_v53 = vld [vmem:[#allocation144_spill] sm:$0xff]  ;;  %v8266_v51 = vld [vmem:[#allocation153_spill] sm:$0xff] }
 0x436   :  { %1908 = vmatpush.msra.mxu2 %v8199_v57  ;;  %2010 = vmatpush.msrb.mxu3 %v8208_v11  ;;  %v8259_v57 = vld [vmem:[#allocation146_spill] sm:$0xff]  ;;  %v8268_v11 = vld [vmem:[#allocation155_spill] sm:$0xff] }
 0x437   :  { %1869 = vmatpush.msra.mxu0 %v8201_v40  ;;  %1971 = vmatpush.msrb.mxu1 %v8210_v47  ;;  %v8261_v40 = vld [vmem:[#allocation148_spill] sm:$0xff]  ;;  %v8270_v47 = vld [vmem:[#allocation157_spill] sm:$0xff] }
 0x438   :  { %1909 = vmatpush.msra.mxu2 %v8203_v10  ;;  %2011 = vmatpush.msrb.mxu3 %v8212_v52  ;;  %v8263_v10 = vld [vmem:[#allocation150_spill] sm:$0xff] }
 0x439   :  { %1870 = vmatpush.msra.mxu0 %v8205_v61  ;;  %1972 = vmatpush.msrb.mxu1 %v8214_v1  ;;  %v8265_v61 = vld [vmem:[#allocation152_spill] sm:$0xff]  ;;  %v6009_v52 = vld [vmem:[#allocation5 + $0x58] sm:$0xff] }
 0x43a   :  { %1910 = vmatpush.msra.mxu2 %v8207_v55  ;;  %2012 = vmatpush.msrb.mxu3 %v8216_v27  ;;  %v8267_v55 = vld [vmem:[#allocation154_spill] sm:$0xff] }
 0x43b   :  { %1871 = vmatpush.msra.mxu0 %v8209_v19  ;;  %1973 = vmatpush.msrb.mxu1 %v8218_v58  ;;  %v8269_v19 = vld [vmem:[#allocation156_spill] sm:$0xff]  ;;  %v6015_v1 = vld [vmem:[#allocation5 + $0x38] sm:$0xff] }
 0x43c   :  { %1911 = vmatpush.msra.mxu2 %v8211_v35  ;;  %2013 = vmatpush.msrb.mxu3 %v8220_v26  ;;  %v6006_v35 = vld [vmem:[#allocation5 + $0x50] sm:$0xff]  ;;  %v6021_v27 = vld [vmem:[#allocation5 + $0x18] sm:$0xff] }
 0x43d   :  { %1872 = vmatpush.msra.mxu0 %v8213_v60  ;;  %1974 = vmatpush.msrb.mxu1 %v8222_v28  ;;  %v6012_v60 = vld [vmem:[#allocation5 + $0x30] sm:$0xff] }
 0x43e   :  { %1912 = vmatpush.msra.mxu2 %v8215_v30  ;;  %2014 = vmatpush.msrb.mxu3 %v8224_v22  ;;  %v6018_v30 = vld [vmem:[#allocation5 + $0x10] sm:$0xff] }
 0x43f   :  { %1873 = vmatpush.msra.mxu0 %v8217_v7  ;;  %1975 = vmatpush.msrb.mxu1 %v8226_v18 }
 0x440   :  { %1913 = vmatpush.msra.mxu2 %v8219_v4  ;;  %2015 = vmatpush.msrb.mxu3 %v8228_v46  ;;  %v8271_v4 = vld [vmem:[#allocation59_spill] sm:$0xff] }
 0x441   :  { %1874 = vmatpush.msra.mxu0 %v8221_v59  ;;  %1976 = vmatpush.msrb.mxu1 %v8230_v2 }
 0x442   :  { %1914 = vmatpush.msra.mxu2 %v8223_v16  ;;  %2016 = vmatpush.msrb.mxu3 %v8232_v56 }
 0x443   :  { %1875 = vmatpush.msra.mxu0 %v8225_v0  ;;  %1977 = vmatpush.msrb.mxu1 %v8234_v33  ;;  %v8272_v0 = vld [vmem:[#allocation65_spill] sm:$0xff] }
 0x444   :  { %1915 = vmatpush.msra.mxu2 %v8227_v9  ;;  %2017 = vmatpush.msrb.mxu3 %v8236_v37 }
 0x445   :  { %1876 = vmatpush.msra.mxu0 %v8229_v63  ;;  %1978 = vmatpush.msrb.mxu1 %v8238_v41 }
 0x446   :  { %1916 = vmatpush.msra.mxu2 %v8231_v43  ;;  %2018 = vmatpush.msrb.mxu3 %v8240_v8 }
 0x447   :  { %1877 = vmatpush.msra.mxu0 %v8233_v17  ;;  %1979 = vmatpush.msrb.mxu1 %v8242_v14 }
 0x448   :  { %1917 = vmatpush.msra.mxu2 %v8235_v42  ;;  %2019 = vmatpush.msrb.mxu3 %v8244_v13 }
 0x449   :  { %1878 = vmatpush.msra.mxu0 %v8237_v38 }
 0x44a   :  { %1918 = vmatpush.msra.mxu2 %v8239_v6 }
 0x44b   :  { %1879 = vmatpush.msra.mxu0 %v8241_v24 }
 0x44c   :  { %1919 = vmatpush.msra.mxu2 %v8243_v25 }
 0x44d   :  { %1944 = vmatpush.msrb.mxu0 %v8245_v54 }
 0x44e   :  { %1984 = vmatpush.msrb.mxu2 %v8246_v50 }
 0x44f   :  { %1945 = vmatpush.msrb.mxu0 %v8247_v36 }
 0x450   :  { %1985 = vmatpush.msrb.mxu2 %v8248_v45 }
 0x451   :  { %1946 = vmatpush.msrb.mxu0 %v8249_v44 }
 0x452   :  { %1986 = vmatpush.msrb.mxu2 %v8250_v34 }
 0x453   :  { %1947 = vmatpush.msrb.mxu0 %v8251_v49 }
 0x454   :  { %1987 = vmatpush.msrb.mxu2 %v8252_v32 }
 0x455   :  { %1948 = vmatpush.msrb.mxu0 %v8253_v12 }
 0x456   :  { %1988 = vmatpush.msrb.mxu2 %v8254_v15 }
 0x457   :  { %1949 = vmatpush.msrb.mxu0 %v8255_v21  ;;  %v6032_v21 = vld [vmem:[#allocation2 + $0x1e8] sm:$0xff] }
 0x458   :  { %1989 = vmatpush.msrb.mxu2 %v8256_v48  ;;  %v6035_v48 = vld [vmem:[#allocation2 + $0x1f8] sm:$0xff] }
 0x459   :  { %1950 = vmatpush.msrb.mxu0 %v8257_v53 }
 0x45a   :  { %1990 = vmatpush.msrb.mxu2 %v8258_v39 }
 0x45b   :  { %1951 = vmatpush.msrb.mxu0 %v8259_v57 }
 0x45c   :  { %1991 = vmatpush.msrb.mxu2 %v8260_v3 }
 0x45d   :  { %1952 = vmatpush.msrb.mxu0 %v8261_v40  ;;  %v6038_v40 = vld [vmem:[#allocation2 + $0x1c8] sm:$0xff] }
 0x45e   :  { %1992 = vmatpush.msrb.mxu2 %v8262_v5  ;;  %v1604_v7 = vpop.f32.mrf.mxu1  ;;  %v6041_v5 = vld [vmem:[#allocation2 + $0x1d8] sm:$0xff] }
 0x45f   :  { %1953 = vmatpush.msrb.mxu0 %v8263_v10  ;;  %v2700_v10 = vld [vmem:[%s6904_s0 + $0x28] sm:$0xff] }
 0x460   :  { %1993 = vmatpush.msrb.mxu2 %v8264_v29 }
 0x461   :  { %1954 = vmatpush.msrb.mxu0 %v8265_v61 }
 0x462   :  { %1994 = vmatpush.msrb.mxu2 %v8266_v51  ;;  %v6049_v51 = vld [vmem:[#allocation2 + $0x1a8] sm:$0xff] }
 0x463   :  { %1955 = vmatpush.msrb.mxu0 %v8267_v55  ;;  %v6052_v55 = vld [vmem:[#allocation2 + $0x1b8] sm:$0xff] }
 0x464   :  { %1995 = vmatpush.msrb.mxu2 %v8268_v11  ;;  %v1644_v22 = vpop.f32.mrf.mxu3 }
 0x465   :  { %1956 = vmatpush.msrb.mxu0 %v8269_v19 }
 0x466   :  { %1996 = vmatpush.msrb.mxu2 %v8270_v47  ;;  %v1684_v2 = vpop.f32.mrf.mxu1  ;;  %v6056_v47 = vld [vmem:[#allocation2 + $0x188] sm:$0xff] }
 0x467   :  { %1957 = vmatpush.msrb.mxu0 %v6006_v35 }
 0x468   :  { %1997 = vmatpush.msrb.mxu2 %v6009_v52 }
 0x469   :  { %1958 = vmatpush.msrb.mxu0 %v6012_v60 }
 0x46a   :  { %1998 = vmatpush.msrb.mxu2 %v6015_v1 }
 0x46b   :  { %1959 = vmatpush.msrb.mxu0 %v6018_v30 }
 0x46c   :  { %1999 = vmatpush.msrb.mxu2 %v6021_v27  ;;  %v1724_v37 = vpop.f32.mrf.mxu3 }
 0x489   :  { %v1584_v58 = vpop.f32.mrf.mxu0 }
 0x48a   :  { %v1585_v26 = vadd.f32 %v1584_v58, %v8271_v4  ;;  %v1784_v12 = vpop.f32.mrf.mxu1 }
 0x48b   :  { %v1831_v39 = vrot.slane %v1784_v12, 6  ;;  %v6114_v12 = vld [vmem:[#allocation2 + $0x78] sm:$0xff] }
 0x48c   :  { %v1605_v59 = vadd.f32 %v1604_v7, %v1585_v26  ;;  %v6059_v7 = vld [vmem:[#allocation2 + $0x198] sm:$0xff] }
 0x48e   :  { %v1727_v28 = vmul.f32 0.5, %v1605_v59  ;;  %v6062_v59 = vld [vmem:[#allocation2 + $0x168] sm:$0xff] }
 0x48f   :  { %v1624_v16 = vpop.f32.mrf.mxu2 }
 0x490   :  { %v1625_v18 = vadd.f32 %v1624_v16, %v8272_v0  ;;  %2800 = vtanh.f32 %v1727_v28  ;;  %v6065_v28 = vld [vmem:[#allocation2 + $0x178] sm:$0xff] }
 0x491   :  { %v1664_v9 = vpop.f32.mrf.mxu0  ;;  %v1824_v15 = vpop.f32.mrf.mxu3 }
 0x492   :  { %v1645_v46 = vadd.f32 %v1644_v22, %v1625_v18  ;;  %v1665_v63 = vadd.f32 %v1664_v9, %v4374_v20  ;;  %v1833_v57 = vrot.slane %v1824_v15, 2  ;;  %v6068_v22 = vld [vmem:[#allocation2 + $0x148] sm:$0xff]  ;;  %v6071_v18 = vld [vmem:[#allocation2 + $0x158] sm:$0xff] }
 0x494   :  { %v1731_v43 = vmul.f32 0.5, %v1645_v46  ;;  %v1685_v56 = vadd.f32 %v1684_v2, %v1665_v63  ;;  %v6074_v63 = vld [vmem:[#allocation2 + $0x128] sm:$0xff]  ;;  %v6077_v2 = vld [vmem:[#allocation2 + $0x138] sm:$0xff] }
 0x496   :  { %2802 = vtanh.f32 %v1731_v43  ;;  %v2801_v17 = vpop.eup %2800  ;;  %v6080_v43 = vld [vmem:[#allocation2 + $0x108] sm:$0xff] }
 0x497   :  { %2804 = vtanh.f32 %v1685_v56  ;;  %v1729_v38 = vmul.f32 0.5, %v2801_v17  ;;  %v6083_v56 = vld [vmem:[#allocation2 + $0x118] sm:$0xff] }
 0x498   :  { %v1704_v33 = vpop.f32.mrf.mxu2 }
 0x499   :  { %v1705_v42 = vadd.f32 %v1704_v33, %v4378_v62  ;;  %v1730_v25 = vadd.f32 0.5, %v1729_v38 }
 0x49b   :  { %v1725_v41 = vadd.f32 %v1724_v37, %v1705_v42  ;;  %v6086_v42 = vld [vmem:[#allocation2 + $0xe8] sm:$0xff]  ;;  %v6089_v37 = vld [vmem:[#allocation2 + $0xf8] sm:$0xff] }
 0x49c   :  { %v2803_v6 = vpop.eup %2802 }
 0x49d   :  { %v1733_v8 = vmul.f32 0.5, %v2803_v6  ;;  %v1736_v24 = vmul.f32 0.5, %v1725_v41  ;;  %v2805_v14 = vpop.eup %2804  ;;  %v6092_v6 = vld [vmem:[#allocation2 + $0xc8] sm:$0xff] }
 0x49e   :  { %v1741_v50 = vmul.f32 %v2805_v14, %v1730_v25  ;;  %v6098_v25 = vld [vmem:[#allocation2 + $0xa8] sm:$0xff] }
 0x49f   :  { %v1734_v13 = vadd.f32 0.5, %v1733_v8  ;;  %2806 = vtanh.f32 %v1736_v24  ;;  %v6095_v8 = vld [vmem:[#allocation2 + $0xd8] sm:$0xff] }
 0x4a1   :  { %v1740_v54 = vmul.f32 %v1734_v13, %v5797_v23  ;;  %v6101_v13 = vld [vmem:[#allocation2 + $0xb8] sm:$0xff] }
 0x4a3   :  { %v6029_v36 = vadd.f32 %v1741_v50, %v1740_v54 }
 0x4a5   :  { %v2807_v45 = vpop.eup %2806  ;;  %2808 = vtanh.f32 %v6029_v36 }
 0x4a6   :  { %v1738_v44 = vmul.f32 0.5, %v2807_v45  ;;  %v6104_v45 = vld [vmem:[#allocation2 + $0x88] sm:$0xff] }
 0x4a8   :  { %v1739_v34 = vadd.f32 0.5, %v1738_v44  ;;  %v6107_v44 = vld [vmem:[#allocation2 + $0x98] sm:$0xff] }
 0x4a9   :  { %v1764_v23 = vpop.f32.mrf.mxu0 }
 0x4aa   :  { %v1834_v29 = vsel %vm346_vm0, %v1764_v23, %v1831_v39  ;;  %v6122_v39 = vld [vmem:[#allocation2 + $0x58] sm:$0xff] }
 0x4ab   :  { %v2809_v49 = vpop.eup %2808 }
 0x4ac   :  { %v1744_v32 = vmul.f32 %v2809_v49, %v1739_v34 }
 0x4ae   :  { %1900 = vmatmul.f32.vlgmr.msra.gmra.mxu1 %v1744_v32  ;;  %1940 = vmatmul.f32.vlgmr.msra.gmra.mxu3 %v1744_v32 }
 0x4af   :  { %2064 = vmatpush.msra.mxu1 %v6032_v21  ;;  %2104 = vmatpush.msra.mxu3 %v6035_v48 }
 0x4b0   :  { %v1804_v53 = vpop.f32.mrf.mxu2 }
 0x4b1   :  { %v1832_v3 = vrot.slane %v1804_v53, 4  ;;  %2065 = vmatpush.msra.mxu1 %v6038_v40  ;;  %2105 = vmatpush.msra.mxu3 %v6041_v5  ;;  %v6119_v53 = vld [vmem:[#allocation2 + $0x48] sm:$0xff] }
 0x4b3   :  { %v1835_v61 = vsel %vm348_vm1, %v1832_v3, %v1833_v57  ;;  %2066 = vmatpush.msra.mxu1 %v6049_v51  ;;  %2106 = vmatpush.msra.mxu3 %v6052_v55  ;;  %v6126_v57 = vld [vmem:[#allocation2 + $0x28] sm:$0xff]  ;;  %v6129_v3 = vld [vmem:[#allocation2 + $0x38] sm:$0xff] }
 0x4b4   :  { %v1836_v11 = vsel %vm350_vm2, %v1834_v29, %v1835_v61  ;;  %v6135_v29 = vld [vmem:[#allocation2 + $0x18] sm:$0xff]  ;;  %v6138_v61 = vld [vmem:[#allocation5 + $0x3e0] sm:$0xff] }
 0x4b5   :  { %v1838_v19 = vadd.f32 %v2700_v10, %v1836_v11  ;;  %2067 = vmatpush.msra.mxu1 %v6056_v47  ;;  %2107 = vmatpush.msra.mxu3 %v6059_v7  ;;  %v6132_v10 = vld [vmem:[#allocation2 + $0x8] sm:$0xff] }
 0x4b6   :  { %1980 = vmatmul.f32.vlgmr.msrb.gmra.mxu1 %v1744_v32  ;;  %2020 = vmatmul.f32.vlgmr.msrb.gmra.mxu3 %v1744_v32  ;;  %v6111_v32 = vld [vmem:[#allocation2 + $0x68] sm:$0xff] }
 0x4b7   :  { %v1839_v58 = vmul.f32 0.5, %v1838_v19  ;;  %v1844_v26 = vrot.slane %v1838_v19, 2  ;;  %2068 = vmatpush.msra.mxu1 %v6062_v59  ;;  %2108 = vmatpush.msra.mxu3 %v6065_v28  ;;  %v1853_v9 = vrot.slane %v1838_v19, 6  ;;  %v1850_v46 = vrot.slane %v1838_v19, 4  ;;  %v6141_v11 = vld [vmem:[#allocation5 + $0x3e8] sm:$0xff] }
 0x4b9   :  { %2810 = vtanh.f32 %v1839_v58  ;;  %v1846_v16 = vmul.f32 0.5, %v1844_v26  ;;  %2069 = vmatpush.msra.mxu1 %v6068_v22  ;;  %2109 = vmatpush.msra.mxu3 %v6071_v18  ;;  %v1855_v17 = vmul.f32 0.5, %v1853_v9  ;;  %v6144_v26 = vld [vmem:[#allocation5 + $0x3c0] sm:$0xff] }
 0x4bb   :  { %2812 = vtanh.f32 %v1846_v16  ;;  %2070 = vmatpush.msra.mxu1 %v6074_v63  ;;  %2110 = vmatpush.msra.mxu3 %v6077_v2  ;;  %v6147_v16 = vld [vmem:[#allocation5 + $0x3c8] sm:$0xff] }
 0x4bc   :  { %2814 = vtanh.f32 %v1850_v46  ;;  %v6152_v46 = vld [vmem:[#allocation5 + $0x3a0] sm:$0xff] }
 0x4bd   :  { %2071 = vmatpush.msra.mxu1 %v6080_v43  ;;  %2111 = vmatpush.msra.mxu3 %v6083_v56  ;;  %2816 = vtanh.f32 %v1855_v17  ;;  %v6155_v17 = vld [vmem:[#allocation5 + $0x3a8] sm:$0xff] }
 0x4bf   :  { %v2811_v33 = vpop.eup %2810  ;;  %2072 = vmatpush.msra.mxu1 %v6086_v42  ;;  %2112 = vmatpush.msra.mxu3 %v6089_v37 }
 0x4c0   :  { %v1841_v38 = vmul.f32 0.5, %v2811_v33  ;;  %v6160_v33 = vld [vmem:[#allocation2 + $0x1e0] sm:$0xff] }
 0x4c1   :  { %v2813_v41 = vpop.eup %2812  ;;  %2073 = vmatpush.msra.mxu1 %v6092_v6  ;;  %2113 = vmatpush.msra.mxu3 %v6095_v8 }
 0x4c2   :  { %v1842_v24 = vadd.f32 0.5, %v1841_v38  ;;  %v1848_v14 = vmul.f32 0.5, %v2813_v41  ;;  %v2815_v50 = vpop.eup %2814  ;;  %v6164_v38 = vld [vmem:[#allocation2 + $0x1f0] sm:$0xff]  ;;  %v6168_v41 = vld [vmem:[#allocation2 + $0x1c0] sm:$0xff] }
 0x4c3   :  { %2074 = vmatpush.msra.mxu1 %v6098_v25  ;;  %2114 = vmatpush.msra.mxu3 %v6101_v13  ;;  %v2817_v15 = vpop.eup %2816 }
 0x4c4   :  { %v1849_v54 = vadd.f32 0.5, %v1848_v14  ;;  %v1860_v49 = vmul.f32 %v2815_v50, %v1842_v24  ;;  %v6171_v24 = vld [vmem:[#allocation5 + $0x380] sm:$0xff]  ;;  %v6174_v14 = vld [vmem:[#allocation2 + $0x1d0] sm:$0xff] }
 0x4c5   :  { %2075 = vmatpush.msra.mxu1 %v6104_v45  ;;  %2115 = vmatpush.msra.mxu3 %v6107_v44  ;;  %8273 = vst [vmem:[#allocation62_spill] sm:$0xff] %v6171_v24  ;;  %v6180_v50 = vld [vmem:[#allocation2 + $0x1a0] sm:$0xff] }
 0x4c6   :  { %v1859_v34 = vmul.f32 %v1849_v54, %v5833_v31  ;;  %v1857_v31 = vmul.f32 0.5, %v2817_v15  ;;  %8274 = vst [vmem:[#allocation69_spill] sm:$0xff] %v6174_v14  ;;  %v6177_v54 = vld [vmem:[#allocation5 + $0x388] sm:$0xff] }
 0x4c7   :  { %2076 = vmatpush.msra.mxu1 %v6111_v32  ;;  %2116 = vmatpush.msra.mxu3 %v6114_v12  ;;  %8275 = vst [vmem:[#allocation66_spill] sm:$0xff] %v6177_v54  ;;  %v6189_v15 = vld [vmem:[#allocation5 + $0x368] sm:$0xff] }
 0x4c8   :  { %v6117_v23 = vadd.f32 %v1860_v49, %v1859_v34  ;;  %v1858_v19 = vadd.f32 0.5, %v1857_v31  ;;  %8276 = vst [vmem:[#allocation70_spill] sm:$0xff] %v6180_v50  ;;  %v6183_v34 = vld [vmem:[#allocation5 + $0x360] sm:$0xff]  ;;  %v6186_v49 = vld [vmem:[#allocation2 + $0x1b0] sm:$0xff] }
 0x4c9   :  { %2077 = vmatpush.msra.mxu1 %v6119_v53  ;;  %2117 = vmatpush.msra.mxu3 %v6122_v39  ;;  %8277 = vst [vmem:[#allocation73_spill] sm:$0xff] %v6183_v34  ;;  %v6192_v31 = vld [vmem:[#allocation2 + $0x180] sm:$0xff] }
 0x4ca   :  { %2818 = vtanh.f32 %v6117_v23  ;;  %8278 = vst [vmem:[#allocation14_spill] sm:$0xff] %v6186_v49 }
 0x4cb   :  { %2078 = vmatpush.msra.mxu1 %v6126_v57  ;;  %2118 = vmatpush.msra.mxu3 %v6129_v3  ;;  %8279 = vst [vmem:[#allocation11_spill] sm:$0xff] %v6189_v15 }
 0x4cc   :  { %8280 = vst [vmem:[#allocation16_spill] sm:$0xff] %v6192_v31 }
 0x4cd   :  { %2079 = vmatpush.msra.mxu1 %v6132_v10  ;;  %2119 = vmatpush.msra.mxu3 %v6135_v29 }
 0x4cf   :  { %2181 = vmatpush.msrb.mxu1 %v6138_v61  ;;  %2221 = vmatpush.msrb.mxu3 %v6141_v11 }
 0x4d0   :  { %v2819_v58 = vpop.eup %2818 }
 0x4d1   :  { %2182 = vmatpush.msrb.mxu1 %v6144_v26  ;;  %2222 = vmatpush.msrb.mxu3 %v6147_v16  ;;  %v6150_v9 = vmul.f32 %v2819_v58, %v1858_v19  ;;  %v6195_v19 = vld [vmem:[#allocation5 + $0x340] sm:$0xff]  ;;  %v6198_v58 = vld [vmem:[#allocation2 + $0x190] sm:$0xff] }
 0x4d2   :  { %8281 = vst [vmem:[#allocation12_spill] sm:$0xff] %v6195_v19 }
 0x4d3   :  { %2183 = vmatpush.msrb.mxu1 %v6152_v46  ;;  %2223 = vmatpush.msrb.mxu3 %v6155_v17  ;;  %8282 = vst [vmem:[#allocation76_spill] sm:$0xff] %v6198_v58 }
 0x4d4   :  { %1880 = vmatmul.f32.vlgmr.msra.gmra.mxu0 %v6150_v9  ;;  %1920 = vmatmul.f32.vlgmr.msra.gmra.mxu2 %v6150_v9 }
 0x4d5   :  { %2044 = vmatpush.msra.mxu0 %v6160_v33  ;;  %2080 = vmatmul.f32.vlgmr.msra.gmra.mxu1 %v6150_v9 }
 0x4d6   :  { %2084 = vmatpush.msra.mxu2 %v6164_v38  ;;  %2120 = vmatmul.f32.vlgmr.msra.gmra.mxu3 %v6150_v9 }
 0x4d7   :  { %2045 = vmatpush.msra.mxu0 %v6168_v41  ;;  %2184 = vmatpush.msrb.mxu1 %v6171_v24 }
 0x4d8   :  { %2085 = vmatpush.msra.mxu2 %v6174_v14  ;;  %2224 = vmatpush.msrb.mxu3 %v6177_v54 }
 0x4d9   :  { %2046 = vmatpush.msra.mxu0 %v6180_v50  ;;  %2185 = vmatpush.msrb.mxu1 %v6183_v34  ;;  %v6218_v34 = vld [vmem:[#allocation2 + $0x150] sm:$0xff] }
 0x4da   :  { %2086 = vmatpush.msra.mxu2 %v6186_v49  ;;  %2225 = vmatpush.msrb.mxu3 %v6189_v15  ;;  %v6203_v49 = vld [vmem:[#allocation2 + $0x160] sm:$0xff]  ;;  %v6206_v15 = vld [vmem:[#allocation2 + $0x170] sm:$0xff]  ;;  %8288 = vst [vmem:[#allocation82_spill] sm:$0xff] %v6218_v34 }
 0x4db   :  { %2047 = vmatpush.msra.mxu0 %v6192_v31  ;;  %2186 = vmatpush.msrb.mxu1 %v6195_v19  ;;  %8283 = vst [vmem:[#allocation17_spill] sm:$0xff] %v6203_v49  ;;  %v6209_v31 = vld [vmem:[#allocation5 + $0x348] sm:$0xff]  ;;  %v6212_v19 = vld [vmem:[#allocation2 + $0x140] sm:$0xff] }
 0x4dc   :  { %2087 = vmatpush.msra.mxu2 %v6198_v58  ;;  %1960 = vmatmul.f32.vlgmr.msrb.gmra.mxu0 %v6150_v9  ;;  %8284 = vst [vmem:[#allocation81_spill] sm:$0xff] %v6206_v15  ;;  %v6215_v58 = vld [vmem:[#allocation5 + $0x320] sm:$0xff] }
 0x4dd   :  { %2000 = vmatmul.f32.vlgmr.msrb.gmra.mxu2 %v6150_v9  ;;  %2048 = vmatpush.msra.mxu0 %v6203_v49  ;;  %8285 = vst [vmem:[#allocation13_spill] sm:$0xff] %v6209_v31  ;;  %v6221_v49 = vld [vmem:[#allocation5 + $0x328] sm:$0xff] }
 0x4de   :  { %2088 = vmatpush.msra.mxu2 %v6206_v15  ;;  %2226 = vmatpush.msrb.mxu3 %v6209_v31  ;;  %8286 = vst [vmem:[#allocation79_spill] sm:$0xff] %v6212_v19  ;;  %v6224_v15 = vld [vmem:[#allocation2 + $0x120] sm:$0xff] }
 0x4df   :  { %2049 = vmatpush.msra.mxu0 %v6212_v19  ;;  %8287 = vst [vmem:[#allocation19_spill] sm:$0xff] %v6215_v58  ;;  %2187 = vmatpush.msrb.mxu1 %v6215_v58  ;;  %v6227_v31 = vld [vmem:[#allocation5 + $0x300] sm:$0xff]  ;;  %v6230_v19 = vld [vmem:[#allocation2 + $0x130] sm:$0xff]  ;;  %v6233_v58 = vld [vmem:[#allocation5 + $0x308] sm:$0xff] }
 0x4e0   :  { %2089 = vmatpush.msra.mxu2 %v6218_v34  ;;  %8289 = vst [vmem:[#allocation15_spill] sm:$0xff] %v6221_v49  ;;  %2227 = vmatpush.msrb.mxu3 %v6221_v49  ;;  %v6236_v34 = vld [vmem:[#allocation2 + $0x100] sm:$0xff] }
 0x4e1   :  { %8290 = vst [vmem:[#allocation21_spill] sm:$0xff] %v6224_v15  ;;  %2050 = vmatpush.msra.mxu0 %v6224_v15  ;;  %2188 = vmatpush.msrb.mxu1 %v6227_v31  ;;  %v6239_v49 = vld [vmem:[#allocation5 + $0x2e0] sm:$0xff]  ;;  %v6242_v15 = vld [vmem:[#allocation2 + $0x110] sm:$0xff] }
 0x4e2   :  { %8291 = vst [vmem:[#allocation18_spill] sm:$0xff] %v6227_v31  ;;  %2090 = vmatpush.msra.mxu2 %v6230_v19  ;;  %2228 = vmatpush.msrb.mxu3 %v6233_v58  ;;  %v6245_v31 = vld [vmem:[#allocation5 + $0x2e8] sm:$0xff] }
 0x4e3   :  { %8292 = vst [vmem:[#allocation80_spill] sm:$0xff] %v6230_v19  ;;  %2051 = vmatpush.msra.mxu0 %v6236_v34  ;;  %2189 = vmatpush.msrb.mxu1 %v6239_v49  ;;  %v6248_v19 = vld [vmem:[#allocation2 + $0xe0] sm:$0xff] }
 0x4e4   :  { %8293 = vst [vmem:[#allocation23_spill] sm:$0xff] %v6233_v58  ;;  %2091 = vmatpush.msra.mxu2 %v6242_v15  ;;  %2229 = vmatpush.msrb.mxu3 %v6245_v31  ;;  %v6251_v58 = vld [vmem:[#allocation5 + $0x2c0] sm:$0xff] }
 0x4e5   :  { %8294 = vst [vmem:[#allocation84_spill] sm:$0xff] %v6236_v34  ;;  %2052 = vmatpush.msra.mxu0 %v6248_v19  ;;  %2190 = vmatpush.msrb.mxu1 %v6251_v58  ;;  %v6254_v34 = vld [vmem:[#allocation2 + $0xf0] sm:$0xff] }
 0x4e6   :  { %8295 = vst [vmem:[#allocation20_spill] sm:$0xff] %v6239_v49  ;;  %2092 = vmatpush.msra.mxu2 %v6254_v34  ;;  %v6257_v49 = vld [vmem:[#allocation5 + $0x2c8] sm:$0xff] }
 0x4e7   :  { %8296 = vst [vmem:[#allocation83_spill] sm:$0xff] %v6242_v15  ;;  %2230 = vmatpush.msrb.mxu3 %v6257_v49  ;;  %v6260_v15 = vld [vmem:[#allocation2 + $0xc0] sm:$0xff] }
 0x4e8   :  { %8297 = vst [vmem:[#allocation25_spill] sm:$0xff] %v6245_v31  ;;  %2053 = vmatpush.msra.mxu0 %v6260_v15  ;;  %v6263_v31 = vld [vmem:[#allocation5 + $0x2a0] sm:$0xff] }
 0x4e9   :  { %8298 = vst [vmem:[#allocation86_spill] sm:$0xff] %v6248_v19  ;;  %2191 = vmatpush.msrb.mxu1 %v6263_v31  ;;  %v6266_v19 = vld [vmem:[#allocation2 + $0xd0] sm:$0xff] }
 0x4ea   :  { %8299 = vst [vmem:[#allocation22_spill] sm:$0xff] %v6251_v58  ;;  %2093 = vmatpush.msra.mxu2 %v6266_v19  ;;  %v6269_v58 = vld [vmem:[#allocation5 + $0x2a8] sm:$0xff] }
 0x4eb   :  { %8300 = vst [vmem:[#allocation85_spill] sm:$0xff] %v6254_v34  ;;  %2231 = vmatpush.msrb.mxu3 %v6269_v58  ;;  %v6272_v34 = vld [vmem:[#allocation2 + $0xa0] sm:$0xff] }
 0x4ec   :  { %8301 = vst [vmem:[#allocation27_spill] sm:$0xff] %v6257_v49  ;;  %2054 = vmatpush.msra.mxu0 %v6272_v34  ;;  %v6275_v49 = vld [vmem:[#allocation5 + $0x280] sm:$0xff] }
 0x4ed   :  { %8302 = vst [vmem:[#allocation88_spill] sm:$0xff] %v6260_v15  ;;  %2192 = vmatpush.msrb.mxu1 %v6275_v49  ;;  %v6278_v15 = vld [vmem:[#allocation2 + $0xb0] sm:$0xff] }
 0x4ee   :  { %8303 = vst [vmem:[#allocation24_spill] sm:$0xff] %v6263_v31  ;;  %2094 = vmatpush.msra.mxu2 %v6278_v15  ;;  %v6281_v31 = vld [vmem:[#allocation5 + $0x288] sm:$0xff] }
 0x4ef   :  { %8304 = vst [vmem:[#allocation87_spill] sm:$0xff] %v6266_v19  ;;  %2232 = vmatpush.msrb.mxu3 %v6281_v31  ;;  %v6284_v19 = vld [vmem:[#allocation2 + $0x80] sm:$0xff] }
 0x4f0   :  { %8305 = vst [vmem:[#allocation29_spill] sm:$0xff] %v6269_v58  ;;  %2055 = vmatpush.msra.mxu0 %v6284_v19  ;;  %v6287_v58 = vld [vmem:[#allocation5 + $0x260] sm:$0xff] }
 0x4f1   :  { %8306 = vst [vmem:[#allocation90_spill] sm:$0xff] %v6272_v34  ;;  %2193 = vmatpush.msrb.mxu1 %v6287_v58  ;;  %v6290_v34 = vld [vmem:[#allocation2 + $0x90] sm:$0xff] }
 0x4f2   :  { %8307 = vst [vmem:[#allocation26_spill] sm:$0xff] %v6275_v49  ;;  %2095 = vmatpush.msra.mxu2 %v6290_v34  ;;  %v6293_v49 = vld [vmem:[#allocation5 + $0x268] sm:$0xff] }
 0x4f3   :  { %8308 = vst [vmem:[#allocation89_spill] sm:$0xff] %v6278_v15  ;;  %2233 = vmatpush.msrb.mxu3 %v6293_v49  ;;  %v6296_v15 = vld [vmem:[#allocation2 + $0x60] sm:$0xff] }
 0x4f4   :  { %8309 = vst [vmem:[#allocation31_spill] sm:$0xff] %v6281_v31  ;;  %2056 = vmatpush.msra.mxu0 %v6296_v15  ;;  %v6299_v31 = vld [vmem:[#allocation5 + $0x240] sm:$0xff] }
 0x4f5   :  { %8310 = vst [vmem:[#allocation92_spill] sm:$0xff] %v6284_v19  ;;  %2194 = vmatpush.msrb.mxu1 %v6299_v31  ;;  %v6302_v19 = vld [vmem:[#allocation2 + $0x70] sm:$0xff] }
 0x4f6   :  { %8311 = vst [vmem:[#allocation28_spill] sm:$0xff] %v6287_v58  ;;  %2096 = vmatpush.msra.mxu2 %v6302_v19  ;;  %v6305_v58 = vld [vmem:[#allocation5 + $0x248] sm:$0xff] }
 0x4f7   :  { %8312 = vst [vmem:[#allocation91_spill] sm:$0xff] %v6290_v34  ;;  %2234 = vmatpush.msrb.mxu3 %v6305_v58  ;;  %v6308_v34 = vld [vmem:[#allocation2 + $0x40] sm:$0xff] }
 0x4f8   :  { %8313 = vst [vmem:[#allocation33_spill] sm:$0xff] %v6293_v49  ;;  %2057 = vmatpush.msra.mxu0 %v6308_v34  ;;  %v6311_v49 = vld [vmem:[#allocation5 + $0x220] sm:$0xff] }
 0x4f9   :  { %8314 = vst [vmem:[#allocation94_spill] sm:$0xff] %v6296_v15  ;;  %2195 = vmatpush.msrb.mxu1 %v6311_v49  ;;  %v6314_v15 = vld [vmem:[#allocation2 + $0x50] sm:$0xff] }
 0x4fa   :  { %8315 = vst [vmem:[#allocation30_spill] sm:$0xff] %v6299_v31  ;;  %2097 = vmatpush.msra.mxu2 %v6314_v15  ;;  %v6317_v31 = vld [vmem:[#allocation5 + $0x228] sm:$0xff] }
 0x4fb   :  { %8316 = vst [vmem:[#allocation93_spill] sm:$0xff] %v6302_v19  ;;  %2235 = vmatpush.msrb.mxu3 %v6317_v31  ;;  %v6320_v19 = vld [vmem:[#allocation2 + $0x20] sm:$0xff] }
 0x4fc   :  { %8317 = vst [vmem:[#allocation35_spill] sm:$0xff] %v6305_v58  ;;  %2058 = vmatpush.msra.mxu0 %v6320_v19  ;;  %v6323_v58 = vld [vmem:[#allocation5 + $0x200] sm:$0xff] }
 0x4fd   :  { %8318 = vst [vmem:[#allocation96_spill] sm:$0xff] %v6308_v34  ;;  %2196 = vmatpush.msrb.mxu1 %v6323_v58  ;;  %v6326_v34 = vld [vmem:[#allocation2 + $0x30] sm:$0xff] }
 0x4fe   :  { %8319 = vst [vmem:[#allocation32_spill] sm:$0xff] %v6311_v49  ;;  %2098 = vmatpush.msra.mxu2 %v6326_v34  ;;  %v6329_v49 = vld [vmem:[#allocation5 + $0x208] sm:$0xff] }
 0x4ff   :  { %8320 = vst [vmem:[#allocation95_spill] sm:$0xff] %v6314_v15  ;;  %2236 = vmatpush.msrb.mxu3 %v6329_v49  ;;  %v6332_v15 = vld [vmem:[#allocation2] sm:$0xff] }
 0x500   :  { %8321 = vst [vmem:[#allocation37_spill] sm:$0xff] %v6317_v31  ;;  %2059 = vmatpush.msra.mxu0 %v6332_v15  ;;  %v6335_v31 = vld [vmem:[#allocation5 + $0x3f0] sm:$0xff] }
 0x501   :  { %8322 = vst [vmem:[#allocation98_spill] sm:$0xff] %v6320_v19  ;;  %2261 = vmatpush.msra.mxu1 %v6335_v31  ;;  %v6338_v19 = vld [vmem:[#allocation2 + $0x10] sm:$0xff]  ;;  %2060 = vmatmul.f32.vlgmr.msra.gmra.mxu0 %v6150_v9 }
 0x502   :  { %8323 = vst [vmem:[#allocation34_spill] sm:$0xff] %v6323_v58  ;;  %2099 = vmatpush.msra.mxu2 %v6338_v19 }
 0x503   :  { %8324 = vst [vmem:[#allocation97_spill] sm:$0xff] %v6326_v34  ;;  %2100 = vmatmul.f32.vlgmr.msra.gmra.mxu2 %v6150_v9  ;;  %v6343_v34 = vld [vmem:[#allocation5 + $0x1e0] sm:$0xff]  ;;  %v6358_v9 = vld [vmem:[#allocation5 + $0x1c8] sm:$0xff] }
 0x504   :  { %8325 = vst [vmem:[#allocation39_spill] sm:$0xff] %v6329_v49  ;;  %2161 = vmatpush.msrb.mxu0 %v6343_v34  ;;  %v6346_v49 = vld [vmem:[#allocation5 + $0x1e8] sm:$0xff] }
 0x505   :  { %8326 = vst [vmem:[#allocation36_spill] sm:$0xff] %v6332_v15  ;;  %2201 = vmatpush.msrb.mxu2 %v6346_v49  ;;  %v6349_v15 = vld [vmem:[#allocation5 + $0x3f8] sm:$0xff] }
 0x506   :  { %8327 = vst [vmem:[#allocation99_spill] sm:$0xff] %v6335_v31  ;;  %2301 = vmatpush.msra.mxu3 %v6349_v15  ;;  %v6352_v31 = vld [vmem:[#allocation5 + $0x1c0] sm:$0xff] }
 0x507   :  { %8328 = vst [vmem:[#allocation41_spill] sm:$0xff] %v6338_v19  ;;  %2162 = vmatpush.msrb.mxu0 %v6352_v31  ;;  %v6355_v19 = vld [vmem:[#allocation5 + $0x3d0] sm:$0xff]  ;;  %2202 = vmatpush.msrb.mxu2 %v6358_v9 }
 0x508   :  { %8329 = vst [vmem:[#allocation101_spill] sm:$0xff] %v6343_v34  ;;  %2262 = vmatpush.msra.mxu1 %v6355_v19  ;;  %v6361_v34 = vld [vmem:[#allocation5 + $0x3d8] sm:$0xff] }
 0x509   :  { %8330 = vst [vmem:[#allocation38_spill] sm:$0xff] %v6346_v49  ;;  %2302 = vmatpush.msra.mxu3 %v6361_v34  ;;  %v6364_v49 = vld [vmem:[#allocation5 + $0x1a0] sm:$0xff] }
 0x50a   :  { %8331 = vst [vmem:[#allocation100_spill] sm:$0xff] %v6349_v15  ;;  %2163 = vmatpush.msrb.mxu0 %v6364_v49  ;;  %v6367_v15 = vld [vmem:[#allocation5 + $0x3b0] sm:$0xff] }
 0x50b   :  { %8332 = vst [vmem:[#allocation42_spill] sm:$0xff] %v6352_v31  ;;  %2263 = vmatpush.msra.mxu1 %v6367_v15  ;;  %v6370_v31 = vld [vmem:[#allocation5 + $0x1a8] sm:$0xff] }
 0x50c   :  { %8333 = vst [vmem:[#allocation103_spill] sm:$0xff] %v6355_v19  ;;  %2203 = vmatpush.msrb.mxu2 %v6370_v31  ;;  %v6373_v19 = vld [vmem:[#allocation5 + $0x3b8] sm:$0xff] }
 0x50d   :  { %8334 = vst [vmem:[#allocation40_spill] sm:$0xff] %v6358_v9  ;;  %2303 = vmatpush.msra.mxu3 %v6373_v19  ;;  %v6376_v9 = vld [vmem:[#allocation5 + $0x180] sm:$0xff] }
 0x50e   :  { %8335 = vst [vmem:[#allocation43_spill] sm:$0xff] %v6361_v34  ;;  %2164 = vmatpush.msrb.mxu0 %v6376_v9  ;;  %v6379_v34 = vld [vmem:[#allocation5 + $0x390] sm:$0xff] }
 0x50f   :  { %8336 = vst [vmem:[#allocation44_spill] sm:$0xff] %v6364_v49  ;;  %2264 = vmatpush.msra.mxu1 %v6379_v34  ;;  %v6382_v49 = vld [vmem:[#allocation5 + $0x188] sm:$0xff] }
 0x510   :  { %8337 = vst [vmem:[#allocation102_spill] sm:$0xff] %v6367_v15  ;;  %2204 = vmatpush.msrb.mxu2 %v6382_v49  ;;  %v6385_v15 = vld [vmem:[#allocation5 + $0x398] sm:$0xff] }
 0x511   :  { %8338 = vst [vmem:[#allocation45_spill] sm:$0xff] %v6370_v31  ;;  %2304 = vmatpush.msra.mxu3 %v6385_v15  ;;  %v6388_v31 = vld [vmem:[#allocation5 + $0x160] sm:$0xff] }
 0x512   :  { %8339 = vst [vmem:[#allocation105_spill] sm:$0xff] %v6373_v19  ;;  %2165 = vmatpush.msrb.mxu0 %v6388_v31  ;;  %v6391_v19 = vld [vmem:[#allocation5 + $0x370] sm:$0xff] }
 0x513   :  { %8340 = vst [vmem:[#allocation46_spill] sm:$0xff] %v6376_v9  ;;  %2265 = vmatpush.msra.mxu1 %v6391_v19  ;;  %v6394_v9 = vld [vmem:[#allocation5 + $0x168] sm:$0xff] }
 0x514   :  { %8341 = vst [vmem:[#allocation104_spill] sm:$0xff] %v6379_v34  ;;  %2205 = vmatpush.msrb.mxu2 %v6394_v9  ;;  %v6397_v34 = vld [vmem:[#allocation5 + $0x378] sm:$0xff] }
 0x515   :  { %8342 = vst [vmem:[#allocation47_spill] sm:$0xff] %v6382_v49  ;;  %2305 = vmatpush.msra.mxu3 %v6397_v34  ;;  %v6400_v49 = vld [vmem:[#allocation5 + $0x140] sm:$0xff] }
 0x516   :  { %8343 = vst [vmem:[#allocation107_spill] sm:$0xff] %v6385_v15  ;;  %2166 = vmatpush.msrb.mxu0 %v6400_v49  ;;  %v6403_v15 = vld [vmem:[#allocation5 + $0x350] sm:$0xff] }
 0x517   :  { %8344 = vst [vmem:[#allocation48_spill] sm:$0xff] %v6388_v31  ;;  %2266 = vmatpush.msra.mxu1 %v6403_v15  ;;  %v6406_v31 = vld [vmem:[#allocation5 + $0x148] sm:$0xff] }
 0x518   :  { %8345 = vst [vmem:[#allocation106_spill] sm:$0xff] %v6391_v19  ;;  %2206 = vmatpush.msrb.mxu2 %v6406_v31  ;;  %v6409_v19 = vld [vmem:[#allocation5 + $0x358] sm:$0xff] }
 0x519   :  { %8346 = vst [vmem:[#allocation49_spill] sm:$0xff] %v6394_v9  ;;  %2306 = vmatpush.msra.mxu3 %v6409_v19  ;;  %v6412_v9 = vld [vmem:[#allocation5 + $0x120] sm:$0xff] }
 0x51a   :  { %8347 = vst [vmem:[#allocation50_spill] sm:$0xff] %v6397_v34  ;;  %2167 = vmatpush.msrb.mxu0 %v6412_v9  ;;  %v6415_v34 = vld [vmem:[#allocation5 + $0x330] sm:$0xff] }
 0x51b   :  { %8348 = vst [vmem:[#allocation110_spill] sm:$0xff] %v6400_v49  ;;  %2267 = vmatpush.msra.mxu1 %v6415_v34  ;;  %v6418_v49 = vld [vmem:[#allocation5 + $0x128] sm:$0xff] }
 0x51c   :  { %8349 = vst [vmem:[#allocation51_spill] sm:$0xff] %v6403_v15  ;;  %2207 = vmatpush.msrb.mxu2 %v6418_v49  ;;  %v6421_v15 = vld [vmem:[#allocation5 + $0x338] sm:$0xff] }
 0x51d   :  { %8350 = vst [vmem:[#allocation52_spill] sm:$0xff] %v6406_v31  ;;  %2307 = vmatpush.msra.mxu3 %v6421_v15  ;;  %v6424_v31 = vld [vmem:[#allocation5 + $0x100] sm:$0xff] }
 0x51e   :  { %8351 = vst [vmem:[#allocation113_spill] sm:$0xff] %v6409_v19  ;;  %2168 = vmatpush.msrb.mxu0 %v6424_v31  ;;  %v6427_v19 = vld [vmem:[#allocation5 + $0x310] sm:$0xff] }
 0x51f   :  { %8352 = vst [vmem:[#allocation53_spill] sm:$0xff] %v6412_v9  ;;  %2268 = vmatpush.msra.mxu1 %v6427_v19  ;;  %v6430_v9 = vld [vmem:[#allocation5 + $0x108] sm:$0xff] }
 0x520   :  { %8353 = vst [vmem:[#allocation54_spill] sm:$0xff] %v6415_v34  ;;  %2208 = vmatpush.msrb.mxu2 %v6430_v9  ;;  %v6433_v34 = vld [vmem:[#allocation5 + $0x318] sm:$0xff] }
 0x521   :  { %8354 = vst [vmem:[#allocation55_spill] sm:$0xff] %v6418_v49  ;;  %2308 = vmatpush.msra.mxu3 %v6433_v34  ;;  %v6436_v49 = vld [vmem:[#allocation5 + $0xe0] sm:$0xff] }
 0x522   :  { %8355 = vst [vmem:[#allocation56_spill] sm:$0xff] %v6421_v15  ;;  %2169 = vmatpush.msrb.mxu0 %v6436_v49  ;;  %v6439_v15 = vld [vmem:[#allocation5 + $0x2f0] sm:$0xff] }
 0x523   :  { %8356 = vst [vmem:[#allocation57_spill] sm:$0xff] %v6424_v31  ;;  %2269 = vmatpush.msra.mxu1 %v6439_v15  ;;  %v6442_v31 = vld [vmem:[#allocation5 + $0xe8] sm:$0xff] }
 0x524   :  { %8357 = vst [vmem:[#allocation58_spill] sm:$0xff] %v6427_v19  ;;  %2209 = vmatpush.msrb.mxu2 %v6442_v31  ;;  %v6445_v19 = vld [vmem:[#allocation5 + $0x2f8] sm:$0xff] }
 0x525   :  { %8358 = vst [vmem:[#allocation60_spill] sm:$0xff] %v6430_v9  ;;  %2309 = vmatpush.msra.mxu3 %v6445_v19  ;;  %v6448_v9 = vld [vmem:[#allocation5 + $0xc0] sm:$0xff] }
 0x526   :  { %8359 = vst [vmem:[#allocation61_spill] sm:$0xff] %v6433_v34  ;;  %2170 = vmatpush.msrb.mxu0 %v6448_v9  ;;  %v6451_v34 = vld [vmem:[#allocation5 + $0x2d0] sm:$0xff] }
 0x527   :  { %8360 = vst [vmem:[#allocation63_spill] sm:$0xff] %v6436_v49  ;;  %2270 = vmatpush.msra.mxu1 %v6451_v34  ;;  %v6454_v49 = vld [vmem:[#allocation5 + $0xc8] sm:$0xff] }
 0x528   :  { %8361 = vst [vmem:[#allocation64_spill] sm:$0xff] %v6439_v15  ;;  %2210 = vmatpush.msrb.mxu2 %v6454_v49  ;;  %v6457_v15 = vld [vmem:[#allocation5 + $0x2d8] sm:$0xff] }
 0x529   :  { %8362 = vst [vmem:[#allocation67_spill] sm:$0xff] %v6442_v31  ;;  %2310 = vmatpush.msra.mxu3 %v6457_v15  ;;  %v6460_v31 = vld [vmem:[#allocation5 + $0xa0] sm:$0xff] }
 0x52a   :  { %8363 = vst [vmem:[#allocation68_spill] sm:$0xff] %v6445_v19  ;;  %2171 = vmatpush.msrb.mxu0 %v6460_v31  ;;  %v6463_v19 = vld [vmem:[#allocation5 + $0x2b0] sm:$0xff] }
 0x52b   :  { %8364 = vst [vmem:[#allocation71_spill] sm:$0xff] %v6448_v9  ;;  %2271 = vmatpush.msra.mxu1 %v6463_v19  ;;  %v6466_v9 = vld [vmem:[#allocation5 + $0xa8] sm:$0xff] }
 0x52c   :  { %8365 = vst [vmem:[#allocation72_spill] sm:$0xff] %v6451_v34  ;;  %2211 = vmatpush.msrb.mxu2 %v6466_v9  ;;  %v6469_v34 = vld [vmem:[#allocation5 + $0x2b8] sm:$0xff] }
 0x52d   :  { %8366 = vst [vmem:[#allocation74_spill] sm:$0xff] %v6454_v49  ;;  %2311 = vmatpush.msra.mxu3 %v6469_v34  ;;  %v6472_v49 = vld [vmem:[#allocation5 + $0x80] sm:$0xff] }
 0x52e   :  { %8367 = vst [vmem:[#allocation75_spill] sm:$0xff] %v6457_v15  ;;  %2172 = vmatpush.msrb.mxu0 %v6472_v49  ;;  %v6475_v15 = vld [vmem:[#allocation5 + $0x290] sm:$0xff] }
 0x52f   :  { %8368 = vst [vmem:[#allocation77_spill] sm:$0xff] %v6460_v31  ;;  %2272 = vmatpush.msra.mxu1 %v6475_v15  ;;  %v6478_v31 = vld [vmem:[#allocation5 + $0x88] sm:$0xff] }
 0x530   :  { %8369 = vst [vmem:[#allocation78_spill] sm:$0xff] %v6463_v19  ;;  %2212 = vmatpush.msrb.mxu2 %v6478_v31  ;;  %v6481_v19 = vld [vmem:[#allocation5 + $0x298] sm:$0xff] }
 0x531   :  { %8370 = vst [vmem:[#allocation108_spill] sm:$0xff] %v6466_v9  ;;  %2312 = vmatpush.msra.mxu3 %v6481_v19  ;;  %v6484_v9 = vld [vmem:[#allocation5 + $0x60] sm:$0xff] }
 0x532   :  { %8371 = vst [vmem:[#allocation109_spill] sm:$0xff] %v6469_v34  ;;  %2173 = vmatpush.msrb.mxu0 %v6484_v9  ;;  %v6487_v34 = vld [vmem:[#allocation5 + $0x270] sm:$0xff] }
 0x533   :  { %8372 = vst [vmem:[#allocation111_spill] sm:$0xff] %v6472_v49  ;;  %2273 = vmatpush.msra.mxu1 %v6487_v34  ;;  %v6490_v49 = vld [vmem:[#allocation5 + $0x68] sm:$0xff] }
 0x534   :  { %8373 = vst [vmem:[#allocation112_spill] sm:$0xff] %v6475_v15  ;;  %2213 = vmatpush.msrb.mxu2 %v6490_v49  ;;  %v6493_v15 = vld [vmem:[#allocation5 + $0x278] sm:$0xff] }
 0x535   :  { %8374 = vst [vmem:[#allocation114_spill] sm:$0xff] %v6478_v31  ;;  %2313 = vmatpush.msra.mxu3 %v6493_v15  ;;  %v6496_v31 = vld [vmem:[#allocation5 + $0x40] sm:$0xff] }
 0x536   :  { %8375 = vst [vmem:[#allocation115_spill] sm:$0xff] %v6481_v19  ;;  %2174 = vmatpush.msrb.mxu0 %v6496_v31  ;;  %v6499_v19 = vld [vmem:[#allocation5 + $0x250] sm:$0xff] }
 0x537   :  { %8376 = vst [vmem:[#allocation116_spill] sm:$0xff] %v6484_v9  ;;  %2274 = vmatpush.msra.mxu1 %v6499_v19  ;;  %v6502_v9 = vld [vmem:[#allocation5 + $0x48] sm:$0xff] }
 0x538   :  { %8377 = vst [vmem:[#allocation117_spill] sm:$0xff] %v6487_v34  ;;  %2214 = vmatpush.msrb.mxu2 %v6502_v9  ;;  %v6505_v34 = vld [vmem:[#allocation5 + $0x258] sm:$0xff] }
 0x539   :  { %8378 = vst [vmem:[#allocation118_spill] sm:$0xff] %v6490_v49  ;;  %2314 = vmatpush.msra.mxu3 %v6505_v34  ;;  %v6508_v49 = vld [vmem:[#allocation5 + $0x20] sm:$0xff] }
 0x53a   :  { %8379 = vst [vmem:[#allocation119_spill] sm:$0xff] %v6493_v15  ;;  %2175 = vmatpush.msrb.mxu0 %v6508_v49  ;;  %v6511_v15 = vld [vmem:[#allocation5 + $0x230] sm:$0xff] }
 0x53b   :  { %8380 = vst [vmem:[#allocation120_spill] sm:$0xff] %v6496_v31  ;;  %2275 = vmatpush.msra.mxu1 %v6511_v15  ;;  %v6514_v31 = vld [vmem:[#allocation5 + $0x28] sm:$0xff] }
 0x53c   :  { %8381 = vst [vmem:[#allocation121_spill] sm:$0xff] %v6499_v19  ;;  %2215 = vmatpush.msrb.mxu2 %v6514_v31  ;;  %v6517_v19 = vld [vmem:[#allocation5 + $0x238] sm:$0xff] }
 0x53d   :  { %8382 = vst [vmem:[#allocation122_spill] sm:$0xff] %v6502_v9  ;;  %2315 = vmatpush.msra.mxu3 %v6517_v19  ;;  %v6520_v9 = vld [vmem:[#allocation5] sm:$0xff] }
 0x53e   :  { %8383 = vst [vmem:[#allocation123_spill] sm:$0xff] %v6505_v34  ;;  %2176 = vmatpush.msrb.mxu0 %v6520_v9  ;;  %v6523_v34 = vld [vmem:[#allocation5 + $0x210] sm:$0xff] }
 0x53f   :  { %8384 = vst [vmem:[#allocation124_spill] sm:$0xff] %v6508_v49  ;;  %2276 = vmatpush.msra.mxu1 %v6523_v34  ;;  %v6526_v49 = vld [vmem:[#allocation5 + $0x8] sm:$0xff] }
 0x540   :  { %8385 = vst [vmem:[#allocation125_spill] sm:$0xff] %v6511_v15  ;;  %2216 = vmatpush.msrb.mxu2 %v6526_v49  ;;  %v6529_v15 = vld [vmem:[#allocation5 + $0x218] sm:$0xff] }
 0x541   :  { %8386 = vst [vmem:[#allocation126_spill] sm:$0xff] %v6514_v31  ;;  %2316 = vmatpush.msra.mxu3 %v6529_v15  ;;  %v6532_v31 = vld [vmem:[#allocation5 + $0x1f0] sm:$0xff] }
 0x542   :  { %8387 = vst [vmem:[#allocation127_spill] sm:$0xff] %v6517_v19  ;;  %2241 = vmatpush.msra.mxu0 %v6532_v31  ;;  %v6535_v19 = vld [vmem:[#allocation5 + $0x1f8] sm:$0xff] }
 0x543   :  { %8388 = vst [vmem:[#allocation128_spill] sm:$0xff] %v6520_v9  ;;  %2281 = vmatpush.msra.mxu2 %v6535_v19  ;;  %v6538_v9 = vld [vmem:[#allocation5 + $0x1d0] sm:$0xff] }
 0x544   :  { %8389 = vst [vmem:[#allocation129_spill] sm:$0xff] %v6523_v34  ;;  %2242 = vmatpush.msra.mxu0 %v6538_v9  ;;  %v6541_v34 = vld [vmem:[#allocation5 + $0x1d8] sm:$0xff] }
 0x545   :  { %8390 = vst [vmem:[#allocation130_spill] sm:$0xff] %v6526_v49  ;;  %2282 = vmatpush.msra.mxu2 %v6541_v34  ;;  %v6544_v49 = vld [vmem:[#allocation5 + $0x1b0] sm:$0xff] }
 0x546   :  { %8391 = vst [vmem:[#allocation131_spill] sm:$0xff] %v6529_v15  ;;  %2243 = vmatpush.msra.mxu0 %v6544_v49  ;;  %v6547_v15 = vld [vmem:[#allocation5 + $0x1b8] sm:$0xff] }
 0x547   :  { %8392 = vst [vmem:[#allocation132_spill] sm:$0xff] %v6532_v31  ;;  %2283 = vmatpush.msra.mxu2 %v6547_v15  ;;  %v6550_v31 = vld [vmem:[#allocation5 + $0x190] sm:$0xff] }
 0x548   :  { %8393 = vst [vmem:[#allocation133_spill] sm:$0xff] %v6535_v19  ;;  %2244 = vmatpush.msra.mxu0 %v6550_v31  ;;  %v6553_v19 = vld [vmem:[#allocation5 + $0x198] sm:$0xff] }
 0x549   :  { %8394 = vst [vmem:[#allocation134_spill] sm:$0xff] %v6538_v9  ;;  %2284 = vmatpush.msra.mxu2 %v6553_v19  ;;  %v6556_v9 = vld [vmem:[#allocation5 + $0x170] sm:$0xff] }
 0x54a   :  { %8395 = vst [vmem:[#allocation135_spill] sm:$0xff] %v6541_v34  ;;  %2245 = vmatpush.msra.mxu0 %v6556_v9  ;;  %v6559_v34 = vld [vmem:[#allocation5 + $0x178] sm:$0xff] }
 0x54b   :  { %8396 = vst [vmem:[#allocation136_spill] sm:$0xff] %v6544_v49  ;;  %2285 = vmatpush.msra.mxu2 %v6559_v34  ;;  %v6562_v49 = vld [vmem:[#allocation5 + $0x150] sm:$0xff] }
 0x54c   :  { %8397 = vst [vmem:[#allocation137_spill] sm:$0xff] %v6547_v15  ;;  %2246 = vmatpush.msra.mxu0 %v6562_v49  ;;  %v6565_v15 = vld [vmem:[#allocation5 + $0x158] sm:$0xff] }
 0x54d   :  { %8398 = vst [vmem:[#allocation138_spill] sm:$0xff] %v6550_v31  ;;  %2286 = vmatpush.msra.mxu2 %v6565_v15  ;;  %v6568_v31 = vld [vmem:[#allocation5 + $0x130] sm:$0xff] }
 0x54e   :  { %8399 = vst [vmem:[#allocation139_spill] sm:$0xff] %v6553_v19  ;;  %2247 = vmatpush.msra.mxu0 %v6568_v31  ;;  %v6571_v19 = vld [vmem:[#allocation5 + $0x138] sm:$0xff] }
 0x54f   :  { %8400 = vst [vmem:[#allocation140_spill] sm:$0xff] %v6556_v9  ;;  %2287 = vmatpush.msra.mxu2 %v6571_v19  ;;  %v6574_v9 = vld [vmem:[#allocation5 + $0x110] sm:$0xff] }
 0x550   :  { %8401 = vst [vmem:[#allocation141_spill] sm:$0xff] %v6559_v34  ;;  %2248 = vmatpush.msra.mxu0 %v6574_v9  ;;  %v6577_v34 = vld [vmem:[#allocation5 + $0x118] sm:$0xff] }
 0x551   :  { %8402 = vst [vmem:[#allocation142_spill] sm:$0xff] %v6562_v49  ;;  %2288 = vmatpush.msra.mxu2 %v6577_v34  ;;  %v6580_v49 = vld [vmem:[#allocation5 + $0xf0] sm:$0xff] }
 0x552   :  { %8403 = vst [vmem:[#allocation143_spill] sm:$0xff] %v6565_v15  ;;  %2249 = vmatpush.msra.mxu0 %v6580_v49  ;;  %v6583_v15 = vld [vmem:[#allocation5 + $0xf8] sm:$0xff] }
 0x553   :  { %8404 = vst [vmem:[#allocation144_spill] sm:$0xff] %v6568_v31  ;;  %2289 = vmatpush.msra.mxu2 %v6583_v15  ;;  %v6586_v31 = vld [vmem:[#allocation5 + $0xd0] sm:$0xff] }
 0x554   :  { %8405 = vst [vmem:[#allocation145_spill] sm:$0xff] %v6571_v19  ;;  %2250 = vmatpush.msra.mxu0 %v6586_v31  ;;  %v6589_v19 = vld [vmem:[#allocation5 + $0xd8] sm:$0xff] }
 0x555   :  { %8406 = vst [vmem:[#allocation146_spill] sm:$0xff] %v6574_v9  ;;  %2290 = vmatpush.msra.mxu2 %v6589_v19  ;;  %v6592_v9 = vld [vmem:[#allocation5 + $0xb0] sm:$0xff] }
 0x556   :  { %8407 = vst [vmem:[#allocation147_spill] sm:$0xff] %v6577_v34  ;;  %2251 = vmatpush.msra.mxu0 %v6592_v9  ;;  %v6595_v34 = vld [vmem:[#allocation5 + $0xb8] sm:$0xff] }
 0x557   :  { %8408 = vst [vmem:[#allocation148_spill] sm:$0xff] %v6580_v49  ;;  %2291 = vmatpush.msra.mxu2 %v6595_v34  ;;  %v6598_v49 = vld [vmem:[#allocation5 + $0x90] sm:$0xff]  ;;  %v1921_v58 = vpop.f32.mrf.mxu2 }
 0x558   :  { %8409 = vst [vmem:[#allocation149_spill] sm:$0xff] %v6583_v15  ;;  %2252 = vmatpush.msra.mxu0 %v6598_v49  ;;  %v6601_v15 = vld [vmem:[#allocation5 + $0x98] sm:$0xff] }
 0x559   :  { %8410 = vst [vmem:[#allocation150_spill] sm:$0xff] %v6586_v31  ;;  %2292 = vmatpush.msra.mxu2 %v6601_v15  ;;  %v6604_v31 = vld [vmem:[#allocation5 + $0x70] sm:$0xff] }
 0x55a   :  { %8411 = vst [vmem:[#allocation151_spill] sm:$0xff] %v6589_v19  ;;  %2253 = vmatpush.msra.mxu0 %v6604_v31  ;;  %v6607_v19 = vld [vmem:[#allocation5 + $0x78] sm:$0xff] }
 0x55b   :  { %8412 = vst [vmem:[#allocation152_spill] sm:$0xff] %v6592_v9  ;;  %2293 = vmatpush.msra.mxu2 %v6607_v19 }
 0x55c   :  { %8413 = vst [vmem:[#allocation153_spill] sm:$0xff] %v6595_v34  ;;  %2254 = vmatpush.msra.mxu0 %v6006_v35  ;;  %v1922_v35 = vadd.f32 %v1921_v58, %v8272_v0 }
 0x55d   :  { %8414 = vst [vmem:[#allocation154_spill] sm:$0xff] %v6598_v49  ;;  %2294 = vmatpush.msra.mxu2 %v6009_v52  ;;  %v1881_v49 = vpop.f32.mrf.mxu0 }
 0x55e   :  { %8415 = vst [vmem:[#allocation155_spill] sm:$0xff] %v6601_v15  ;;  %2255 = vmatpush.msra.mxu0 %v6012_v60  ;;  %v1901_v15 = vpop.f32.mrf.mxu1 }
 0x55f   :  { %8416 = vst [vmem:[#allocation156_spill] sm:$0xff] %v6604_v31  ;;  %2295 = vmatpush.msra.mxu2 %v6015_v1  ;;  %v1882_v31 = vadd.f32 %v1881_v49, %v8271_v4 }
 0x560   :  { %8417 = vst [vmem:[#allocation157_spill] sm:$0xff] %v6607_v19  ;;  %2256 = vmatpush.msra.mxu0 %v6018_v30  ;;  %v1941_v19 = vpop.f32.mrf.mxu3  ;;  %v2001_v14 = vpop.f32.mrf.mxu2 }
 0x561   :  { %2296 = vmatpush.msra.mxu2 %v6021_v27  ;;  %v1902_v34 = vadd.f32 %v1901_v15, %v1882_v31  ;;  %v1942_v52 = vadd.f32 %v1941_v19, %v1922_v35  ;;  %v2002_v49 = vadd.f32 %v2001_v14, %v4378_v62 }
 0x563   :  { %v2024_v9 = vmul.f32 0.5, %v1902_v34  ;;  %v2028_v54 = vmul.f32 0.5, %v1942_v52 }
 0x565   :  { %v1961_v50 = vpop.f32.mrf.mxu0  ;;  %2820 = vtanh.f32 %v2024_v9 }
 0x566   :  { %v1962_v60 = vadd.f32 %v1961_v50, %v4374_v20  ;;  %v1981_v1 = vpop.f32.mrf.mxu1  ;;  %2822 = vtanh.f32 %v2028_v54 }
 0x568   :  { %v1982_v30 = vadd.f32 %v1981_v1, %v1962_v60  ;;  %v2021_v15 = vpop.f32.mrf.mxu3 }
 0x569   :  { %v2022_v31 = vadd.f32 %v2021_v15, %v2002_v49 }
 0x56a   :  { %2824 = vtanh.f32 %v1982_v30 }
 0x56b   :  { %v2821_v27 = vpop.eup %2820  ;;  %v2033_v58 = vmul.f32 0.5, %v2022_v31 }
 0x56c   :  { %v2026_v34 = vmul.f32 0.5, %v2821_v27  ;;  %v2823_v4 = vpop.eup %2822 }
 0x56d   :  { %v2030_v24 = vmul.f32 0.5, %v2823_v4  ;;  %2826 = vtanh.f32 %v2033_v58 }
 0x56e   :  { %v2027_v9 = vadd.f32 0.5, %v2026_v34  ;;  %v2081_v27 = vpop.f32.mrf.mxu1  ;;  %v2701_v34 = vld [vmem:[%s6904_s0 + $0x30] sm:$0xff] }
 0x56f   :  { %v2031_v19 = vadd.f32 0.5, %v2030_v24 }
 0x570   :  { %v2825_v0 = vpop.eup %2824  ;;  %v2121_v49 = vpop.f32.mrf.mxu3 }
 0x571   :  { %v2037_v50 = vmul.f32 %v2031_v19, %v6029_v36  ;;  %v2038_v35 = vmul.f32 %v2825_v0, %v2027_v9  ;;  %v2128_v0 = vrot.slane %v2081_v27, 6  ;;  %v2130_v24 = vrot.slane %v2121_v49, 2  ;;  %v8438_v19 = vld [vmem:[#allocation23_spill] sm:$0xff]  ;;  %v8447_v49 = vld [vmem:[#allocation88_spill] sm:$0xff] }
 0x572   :  { %v8446_v27 = vld [vmem:[#allocation27_spill] sm:$0xff] }
 0x573   :  { %v6621_v52 = vadd.f32 %v2038_v35, %v2037_v50  ;;  %v2827_v54 = vpop.eup %2826  ;;  %v8439_v50 = vld [vmem:[#allocation84_spill] sm:$0xff] }
 0x574   :  { %v2035_v60 = vmul.f32 0.5, %v2827_v54  ;;  %v8440_v35 = vld [vmem:[#allocation20_spill] sm:$0xff]  ;;  %v8441_v54 = vld [vmem:[#allocation83_spill] sm:$0xff] }
 0x575   :  { %2828 = vtanh.f32 %v6621_v52 }
 0x576   :  { %v2036_v14 = vadd.f32 0.5, %v2035_v60  ;;  %v8442_v60 = vld [vmem:[#allocation25_spill] sm:$0xff] }
 0x57b   :  { %v2829_v1 = vpop.eup %2828 }
 0x57c   :  { %v2041_v30 = vmul.f32 %v2829_v1, %v2036_v14  ;;  %v8443_v14 = vld [vmem:[#allocation86_spill] sm:$0xff] }
 0x57d   :  { %v8444_v1 = vld [vmem:[#allocation22_spill] sm:$0xff] }
 0x57e   :  { %2197 = vmatmul.f32.vlgmr.msrb.gmra.mxu1 %v2041_v30  ;;  %2237 = vmatmul.f32.vlgmr.msrb.gmra.mxu3 %v2041_v30  ;;  %v2061_v4 = vpop.f32.mrf.mxu0 }
 0x57f   :  { %2361 = vmatpush.msrb.mxu1 %v6032_v21  ;;  %2401 = vmatpush.msrb.mxu3 %v6035_v48  ;;  %v2131_v31 = vsel %vm346_vm0, %v2061_v4, %v2128_v0  ;;  %v8448_v4 = vld [vmem:[#allocation24_spill] sm:$0xff]  ;;  %v8450_v0 = vld [vmem:[#allocation29_spill] sm:$0xff] }
 0x581   :  { %2362 = vmatpush.msrb.mxu1 %v6038_v40  ;;  %2402 = vmatpush.msrb.mxu3 %v6041_v5 }
 0x583   :  { %2363 = vmatpush.msrb.mxu1 %v6049_v51  ;;  %2403 = vmatpush.msrb.mxu3 %v6052_v55 }
 0x585   :  { %2364 = vmatpush.msrb.mxu1 %v6056_v47  ;;  %2404 = vmatpush.msrb.mxu3 %v6059_v7 }
 0x586   :  { %v2101_v36 = vpop.f32.mrf.mxu2  ;;  %2277 = vmatmul.f32.vlgmr.msra.gmra.mxu1 %v2041_v30  ;;  %2317 = vmatmul.f32.vlgmr.msra.gmra.mxu3 %v2041_v30  ;;  %v8445_v30 = vld [vmem:[#allocation85_spill] sm:$0xff] }
 0x587   :  { %v2129_v15 = vrot.slane %v2101_v36, 4  ;;  %2365 = vmatpush.msrb.mxu1 %v6062_v59  ;;  %2405 = vmatpush.msrb.mxu3 %v6065_v28  ;;  %v8449_v36 = vld [vmem:[#allocation87_spill] sm:$0xff] }
 0x589   :  { %v2132_v58 = vsel %vm348_vm1, %v2129_v15, %v2130_v24  ;;  %2366 = vmatpush.msrb.mxu1 %v6068_v22  ;;  %2406 = vmatpush.msrb.mxu3 %v6071_v18  ;;  %v8451_v24 = vld [vmem:[#allocation90_spill] sm:$0xff] }
 0x58a   :  { %v2133_v21 = vsel %vm350_vm2, %v2131_v31, %v2132_v58  ;;  %v8452_v15 = vld [vmem:[#allocation26_spill] sm:$0xff]  ;;  %v8454_v31 = vld [vmem:[#allocation31_spill] sm:$0xff]  ;;  %v8455_v58 = vld [vmem:[#allocation92_spill] sm:$0xff] }
 0x58b   :  { %v2135_v48 = vadd.f32 %v2701_v34, %v2133_v21  ;;  %2367 = vmatpush.msrb.mxu1 %v6074_v63  ;;  %2407 = vmatpush.msrb.mxu3 %v6077_v2  ;;  %v8453_v34 = vld [vmem:[#allocation89_spill] sm:$0xff]  ;;  %v8456_v21 = vld [vmem:[#allocation28_spill] sm:$0xff] }
 0x58d   :  { %v2136_v40 = vmul.f32 0.5, %v2135_v48  ;;  %v2141_v5 = vrot.slane %v2135_v48, 2  ;;  %v2150_v51 = vrot.slane %v2135_v48, 6  ;;  %v2147_v55 = vrot.slane %v2135_v48, 4  ;;  %2368 = vmatpush.msrb.mxu1 %v6080_v43  ;;  %2408 = vmatpush.msrb.mxu3 %v6083_v56  ;;  %v8457_v48 = vld [vmem:[#allocation91_spill] sm:$0xff] }
 0x58f   :  { %2830 = vtanh.f32 %v2136_v40  ;;  %v2143_v9 = vmul.f32 0.5, %v2141_v5  ;;  %v2152_v47 = vmul.f32 0.5, %v2150_v51  ;;  %2369 = vmatpush.msrb.mxu1 %v6086_v42  ;;  %2409 = vmatpush.msrb.mxu3 %v6089_v37  ;;  %v8458_v40 = vld [vmem:[#allocation33_spill] sm:$0xff]  ;;  %v8459_v5 = vld [vmem:[#allocation94_spill] sm:$0xff] }
 0x590   :  { %v8461_v51 = vld [vmem:[#allocation93_spill] sm:$0xff] }
 0x591   :  { %2832 = vtanh.f32 %v2143_v9  ;;  %2370 = vmatpush.msrb.mxu1 %v6092_v6  ;;  %2410 = vmatpush.msrb.mxu3 %v6095_v8  ;;  %v8460_v9 = vld [vmem:[#allocation30_spill] sm:$0xff] }
 0x592   :  { %2834 = vtanh.f32 %v2147_v55  ;;  %v8462_v55 = vld [vmem:[#allocation35_spill] sm:$0xff] }
 0x593   :  { %2836 = vtanh.f32 %v2152_v47  ;;  %2371 = vmatpush.msrb.mxu1 %v6098_v25  ;;  %2411 = vmatpush.msrb.mxu3 %v6101_v13  ;;  %v8463_v47 = vld [vmem:[#allocation96_spill] sm:$0xff] }
 0x595   :  { %v2831_v7 = vpop.eup %2830  ;;  %2372 = vmatpush.msrb.mxu1 %v6104_v45  ;;  %2412 = vmatpush.msrb.mxu3 %v6107_v44  ;;  %v8418_v45 = vld [vmem:[#allocation62_spill] sm:$0xff]  ;;  %v8419_v44 = vld [vmem:[#allocation69_spill] sm:$0xff] }
 0x596   :  { %v2138_v59 = vmul.f32 0.5, %v2831_v7  ;;  %v8464_v7 = vld [vmem:[#allocation32_spill] sm:$0xff] }
 0x597   :  { %v2833_v28 = vpop.eup %2832  ;;  %2373 = vmatpush.msrb.mxu1 %v6111_v32  ;;  %2413 = vmatpush.msrb.mxu3 %v6114_v12  ;;  %v8420_v32 = vld [vmem:[#allocation66_spill] sm:$0xff] }
 0x598   :  { %v2139_v22 = vadd.f32 0.5, %v2138_v59  ;;  %v2145_v18 = vmul.f32 0.5, %v2833_v28  ;;  %v2835_v2 = vpop.eup %2834  ;;  %v8421_v12 = vld [vmem:[#allocation70_spill] sm:$0xff]  ;;  %v8465_v59 = vld [vmem:[#allocation95_spill] sm:$0xff]  ;;  %v8466_v28 = vld [vmem:[#allocation37_spill] sm:$0xff] }
 0x599   :  { %v2837_v42 = vpop.eup %2836  ;;  %2374 = vmatpush.msrb.mxu1 %v6119_v53  ;;  %2414 = vmatpush.msrb.mxu3 %v6122_v39  ;;  %v8423_v53 = vld [vmem:[#allocation14_spill] sm:$0xff]  ;;  %v8424_v39 = vld [vmem:[#allocation11_spill] sm:$0xff] }
 0x59a   :  { %v2146_v63 = vadd.f32 0.5, %v2145_v18  ;;  %v2157_v56 = vmul.f32 %v2835_v2, %v2139_v22  ;;  %v2154_v6 = vmul.f32 0.5, %v2837_v42  ;;  %v8467_v22 = vld [vmem:[#allocation98_spill] sm:$0xff]  ;;  %v8470_v2 = vld [vmem:[#allocation39_spill] sm:$0xff]  ;;  %v8473_v42 = vld [vmem:[#allocation41_spill] sm:$0xff] }
 0x59b   :  { %2375 = vmatpush.msrb.mxu1 %v6126_v57  ;;  %2415 = vmatpush.msrb.mxu3 %v6129_v3  ;;  %v8425_v57 = vld [vmem:[#allocation16_spill] sm:$0xff]  ;;  %v8468_v18 = vld [vmem:[#allocation34_spill] sm:$0xff] }
 0x59c   :  { %v2156_v43 = vmul.f32 %v2146_v63, %v6117_v23  ;;  %v2155_v8 = vadd.f32 0.5, %v2154_v6  ;;  %v8422_v23 = vld [vmem:[#allocation73_spill] sm:$0xff]  ;;  %v8426_v3 = vld [vmem:[#allocation12_spill] sm:$0xff] }
 0x59d   :  { %2376 = vmatpush.msrb.mxu1 %v6132_v10  ;;  %2416 = vmatpush.msrb.mxu3 %v6135_v29  ;;  %v8427_v10 = vld [vmem:[#allocation76_spill] sm:$0xff]  ;;  %v8428_v29 = vld [vmem:[#allocation17_spill] sm:$0xff] }
 0x59e   :  { %v6657_v37 = vadd.f32 %v2157_v56, %v2156_v43  ;;  %v8469_v63 = vld [vmem:[#allocation97_spill] sm:$0xff]  ;;  %v8471_v43 = vld [vmem:[#allocation36_spill] sm:$0xff]  ;;  %v8472_v56 = vld [vmem:[#allocation99_spill] sm:$0xff] }
 0x59f   :  { %2478 = vmatpush.msra.mxu1 %v6138_v61  ;;  %2518 = vmatpush.msra.mxu3 %v6141_v11  ;;  %v8429_v61 = vld [vmem:[#allocation81_spill] sm:$0xff]  ;;  %v8474_v6 = vld [vmem:[#allocation100_spill] sm:$0xff] }
 0x5a0   :  { %2838 = vtanh.f32 %v6657_v37  ;;  %v8430_v11 = vld [vmem:[#allocation13_spill] sm:$0xff] }
 0x5a1   :  { %2479 = vmatpush.msra.mxu1 %v6144_v26  ;;  %2519 = vmatpush.msra.mxu3 %v6147_v16  ;;  %v8431_v26 = vld [vmem:[#allocation79_spill] sm:$0xff] }
 0x5a2   :  { %v8432_v16 = vld [vmem:[#allocation19_spill] sm:$0xff] }
 0x5a3   :  { %2480 = vmatpush.msra.mxu1 %v6152_v46  ;;  %2520 = vmatpush.msra.mxu3 %v6155_v17  ;;  %v8433_v46 = vld [vmem:[#allocation82_spill] sm:$0xff]  ;;  %v8434_v17 = vld [vmem:[#allocation15_spill] sm:$0xff] }
 0x5a5   :  { %2481 = vmatpush.msra.mxu1 %v8418_v45  ;;  %2521 = vmatpush.msra.mxu3 %v8420_v32  ;;  %v8477_v45 = vld [vmem:[#allocation43_spill] sm:$0xff]  ;;  %v8479_v32 = vld [vmem:[#allocation102_spill] sm:$0xff] }
 0x5a6   :  { %v2839_v25 = vpop.eup %2838 }
 0x5a7   :  { %v6670_v13 = vmul.f32 %v2839_v25, %v2155_v8  ;;  %2482 = vmatpush.msra.mxu1 %v8422_v23  ;;  %2522 = vmatpush.msra.mxu3 %v8424_v39  ;;  %v8475_v8 = vld [vmem:[#allocation103_spill] sm:$0xff]  ;;  %v8476_v25 = vld [vmem:[#allocation101_spill] sm:$0xff]  ;;  %v8483_v39 = vld [vmem:[#allocation104_spill] sm:$0xff] }
 0x5a8   :  { %v8481_v23 = vld [vmem:[#allocation105_spill] sm:$0xff] }
 0x5a9   :  { %2177 = vmatmul.f32.vlgmr.msrb.gmra.mxu0 %v6670_v13  ;;  %2217 = vmatmul.f32.vlgmr.msrb.gmra.mxu2 %v6670_v13 }
 0x5aa   :  { %2341 = vmatpush.msrb.mxu0 %v6160_v33  ;;  %2377 = vmatmul.f32.vlgmr.msrb.gmra.mxu1 %v6670_v13  ;;  %v8435_v33 = vld [vmem:[#allocation21_spill] sm:$0xff] }
 0x5ab   :  { %2381 = vmatpush.msrb.mxu2 %v6164_v38  ;;  %2417 = vmatmul.f32.vlgmr.msrb.gmra.mxu3 %v6670_v13  ;;  %v8436_v38 = vld [vmem:[#allocation18_spill] sm:$0xff] }
 0x5ac   :  { %2342 = vmatpush.msrb.mxu0 %v6168_v41  ;;  %2483 = vmatpush.msra.mxu1 %v8426_v3  ;;  %v8437_v41 = vld [vmem:[#allocation80_spill] sm:$0xff]  ;;  %v8486_v3 = vld [vmem:[#allocation45_spill] sm:$0xff] }
 0x5ad   :  { %2382 = vmatpush.msrb.mxu2 %v8419_v44  ;;  %2523 = vmatpush.msra.mxu3 %v8430_v11  ;;  %v8478_v44 = vld [vmem:[#allocation38_spill] sm:$0xff]  ;;  %v8490_v11 = vld [vmem:[#allocation47_spill] sm:$0xff] }
 0x5ae   :  { %2343 = vmatpush.msrb.mxu0 %v8421_v12  ;;  %2484 = vmatpush.msra.mxu1 %v8432_v16  ;;  %v8480_v12 = vld [vmem:[#allocation42_spill] sm:$0xff]  ;;  %v8492_v16 = vld [vmem:[#allocation48_spill] sm:$0xff] }
 0x5af   :  { %2383 = vmatpush.msrb.mxu2 %v8423_v53  ;;  %2524 = vmatpush.msra.mxu3 %v8434_v17  ;;  %v8482_v53 = vld [vmem:[#allocation40_spill] sm:$0xff]  ;;  %v8494_v17 = vld [vmem:[#allocation49_spill] sm:$0xff] }
 0x5b0   :  { %2344 = vmatpush.msrb.mxu0 %v8425_v57  ;;  %2485 = vmatpush.msra.mxu1 %v8436_v38  ;;  %v8485_v57 = vld [vmem:[#allocation107_spill] sm:$0xff]  ;;  %v8496_v38 = vld [vmem:[#allocation110_spill] sm:$0xff] }
 0x5b1   :  { %2384 = vmatpush.msrb.mxu2 %v8427_v10  ;;  %2257 = vmatmul.f32.vlgmr.msra.gmra.mxu0 %v6670_v13  ;;  %v8487_v10 = vld [vmem:[#allocation106_spill] sm:$0xff] }
 0x5b2   :  { %2297 = vmatmul.f32.vlgmr.msra.gmra.mxu2 %v6670_v13  ;;  %2345 = vmatpush.msrb.mxu0 %v8428_v29  ;;  %v8488_v29 = vld [vmem:[#allocation46_spill] sm:$0xff] }
 0x5b3   :  { %2385 = vmatpush.msrb.mxu2 %v8429_v61  ;;  %2525 = vmatpush.msra.mxu3 %v8438_v19  ;;  %v8489_v61 = vld [vmem:[#allocation50_spill] sm:$0xff]  ;;  %v8498_v19 = vld [vmem:[#allocation52_spill] sm:$0xff] }
 0x5b4   :  { %2346 = vmatpush.msrb.mxu0 %v8431_v26  ;;  %2486 = vmatpush.msra.mxu1 %v8440_v35  ;;  %v8491_v26 = vld [vmem:[#allocation51_spill] sm:$0xff]  ;;  %v8500_v35 = vld [vmem:[#allocation53_spill] sm:$0xff] }
 0x5b5   :  { %2386 = vmatpush.msrb.mxu2 %v8433_v46  ;;  %2526 = vmatpush.msra.mxu3 %v8442_v60  ;;  %v8493_v46 = vld [vmem:[#allocation113_spill] sm:$0xff]  ;;  %v8502_v60 = vld [vmem:[#allocation55_spill] sm:$0xff] }
 0x5b6   :  { %2347 = vmatpush.msrb.mxu0 %v8435_v33  ;;  %2487 = vmatpush.msra.mxu1 %v8444_v1  ;;  %v8495_v33 = vld [vmem:[#allocation54_spill] sm:$0xff]  ;;  %v8504_v1 = vld [vmem:[#allocation57_spill] sm:$0xff] }
 0x5b7   :  { %2387 = vmatpush.msrb.mxu2 %v8437_v41  ;;  %2527 = vmatpush.msra.mxu3 %v8446_v27  ;;  %v8497_v41 = vld [vmem:[#allocation56_spill] sm:$0xff] }
 0x5b8   :  { %2348 = vmatpush.msrb.mxu0 %v8439_v50  ;;  %2488 = vmatpush.msra.mxu1 %v8448_v4  ;;  %v8499_v50 = vld [vmem:[#allocation58_spill] sm:$0xff]  ;;  %v8506_v27 = vld [vmem:[#allocation60_spill] sm:$0xff]  ;;  %v8508_v4 = vld [vmem:[#allocation63_spill] sm:$0xff] }
 0x5b9   :  { %2388 = vmatpush.msrb.mxu2 %v8441_v54  ;;  %2528 = vmatpush.msra.mxu3 %v8450_v0  ;;  %v8501_v54 = vld [vmem:[#allocation61_spill] sm:$0xff]  ;;  %v8510_v0 = vld [vmem:[#allocation67_spill] sm:$0xff] }
 0x5ba   :  { %2349 = vmatpush.msrb.mxu0 %v8443_v14  ;;  %2489 = vmatpush.msra.mxu1 %v8452_v15  ;;  %v8503_v14 = vld [vmem:[#allocation64_spill] sm:$0xff]  ;;  %v8512_v15 = vld [vmem:[#allocation71_spill] sm:$0xff] }
 0x5bb   :  { %2389 = vmatpush.msrb.mxu2 %v8445_v30  ;;  %2529 = vmatpush.msra.mxu3 %v8454_v31  ;;  %v8505_v30 = vld [vmem:[#allocation68_spill] sm:$0xff]  ;;  %v8514_v31 = vld [vmem:[#allocation74_spill] sm:$0xff] }
 0x5bc   :  { %2350 = vmatpush.msrb.mxu0 %v8447_v49  ;;  %2490 = vmatpush.msra.mxu1 %v8456_v21  ;;  %v8507_v49 = vld [vmem:[#allocation72_spill] sm:$0xff]  ;;  %v8516_v21 = vld [vmem:[#allocation77_spill] sm:$0xff] }
 0x5bd   :  { %2390 = vmatpush.msrb.mxu2 %v8449_v36  ;;  %2530 = vmatpush.msra.mxu3 %v8458_v40  ;;  %v8509_v36 = vld [vmem:[#allocation75_spill] sm:$0xff]  ;;  %v8518_v40 = vld [vmem:[#allocation108_spill] sm:$0xff] }
 0x5be   :  { %2351 = vmatpush.msrb.mxu0 %v8451_v24  ;;  %2491 = vmatpush.msra.mxu1 %v8460_v9  ;;  %v8511_v24 = vld [vmem:[#allocation78_spill] sm:$0xff]  ;;  %v8520_v9 = vld [vmem:[#allocation111_spill] sm:$0xff] }
 0x5bf   :  { %2391 = vmatpush.msrb.mxu2 %v8453_v34  ;;  %2531 = vmatpush.msra.mxu3 %v8462_v55  ;;  %v8513_v34 = vld [vmem:[#allocation109_spill] sm:$0xff]  ;;  %v8522_v55 = vld [vmem:[#allocation114_spill] sm:$0xff] }
 0x5c0   :  { %2352 = vmatpush.msrb.mxu0 %v8455_v58  ;;  %2492 = vmatpush.msra.mxu1 %v8464_v7  ;;  %v8515_v58 = vld [vmem:[#allocation112_spill] sm:$0xff] }
 0x5c1   :  { %2392 = vmatpush.msrb.mxu2 %v8457_v48  ;;  %2532 = vmatpush.msra.mxu3 %v8466_v28  ;;  %v8517_v48 = vld [vmem:[#allocation115_spill] sm:$0xff]  ;;  %v8524_v7 = vld [vmem:[#allocation116_spill] sm:$0xff]  ;;  %v8526_v28 = vld [vmem:[#allocation118_spill] sm:$0xff] }
 0x5c2   :  { %2353 = vmatpush.msrb.mxu0 %v8459_v5  ;;  %2493 = vmatpush.msra.mxu1 %v8468_v18  ;;  %v8519_v5 = vld [vmem:[#allocation117_spill] sm:$0xff]  ;;  %v8528_v18 = vld [vmem:[#allocation120_spill] sm:$0xff] }
 0x5c3   :  { %2393 = vmatpush.msrb.mxu2 %v8461_v51  ;;  %2533 = vmatpush.msra.mxu3 %v8470_v2  ;;  %v8521_v51 = vld [vmem:[#allocation119_spill] sm:$0xff]  ;;  %v8530_v2 = vld [vmem:[#allocation122_spill] sm:$0xff] }
 0x5c4   :  { %2354 = vmatpush.msrb.mxu0 %v8463_v47  ;;  %2558 = vmatpush.msrb.mxu1 %v8472_v56  ;;  %v8523_v47 = vld [vmem:[#allocation121_spill] sm:$0xff]  ;;  %v8532_v56 = vld [vmem:[#allocation124_spill] sm:$0xff] }
 0x5c5   :  { %2394 = vmatpush.msrb.mxu2 %v8465_v59  ;;  %2598 = vmatpush.msrb.mxu3 %v8474_v6  ;;  %v8525_v59 = vld [vmem:[#allocation123_spill] sm:$0xff]  ;;  %v8534_v6 = vld [vmem:[#allocation126_spill] sm:$0xff] }
 0x5c6   :  { %2355 = vmatpush.msrb.mxu0 %v8467_v22  ;;  %2559 = vmatpush.msrb.mxu1 %v8475_v8  ;;  %v8527_v22 = vld [vmem:[#allocation125_spill] sm:$0xff]  ;;  %v8535_v8 = vld [vmem:[#allocation128_spill] sm:$0xff] }
 0x5c7   :  { %2395 = vmatpush.msrb.mxu2 %v8469_v63  ;;  %2599 = vmatpush.msrb.mxu3 %v8477_v45  ;;  %v8529_v63 = vld [vmem:[#allocation127_spill] sm:$0xff]  ;;  %v8537_v45 = vld [vmem:[#allocation132_spill] sm:$0xff] }
 0x5c8   :  { %2356 = vmatpush.msrb.mxu0 %v8471_v43  ;;  %2560 = vmatpush.msrb.mxu1 %v8479_v32  ;;  %v8531_v43 = vld [vmem:[#allocation129_spill] sm:$0xff]  ;;  %v8539_v32 = vld [vmem:[#allocation134_spill] sm:$0xff] }
 0x5c9   :  { %2396 = vmatpush.msrb.mxu2 %v8473_v42  ;;  %2357 = vmatmul.f32.vlgmr.msrb.gmra.mxu0 %v6670_v13  ;;  %v8533_v42 = vld [vmem:[#allocation131_spill] sm:$0xff] }
 0x5ca   :  { %2397 = vmatmul.f32.vlgmr.msrb.gmra.mxu2 %v6670_v13  ;;  %2458 = vmatpush.msra.mxu0 %v8476_v25  ;;  %v8484_v13 = vld [vmem:[#allocation44_spill] sm:$0xff]  ;;  %v8536_v25 = vld [vmem:[#allocation130_spill] sm:$0xff] }
 0x5cb   :  { %2498 = vmatpush.msra.mxu2 %v8478_v44  ;;  %2600 = vmatpush.msrb.mxu3 %v8481_v23  ;;  %v8538_v44 = vld [vmem:[#allocation133_spill] sm:$0xff]  ;;  %v8541_v23 = vld [vmem:[#allocation136_spill] sm:$0xff] }
 0x5cc   :  { %2459 = vmatpush.msra.mxu0 %v8480_v12  ;;  %2561 = vmatpush.msrb.mxu1 %v8483_v39  ;;  %v8540_v12 = vld [vmem:[#allocation135_spill] sm:$0xff]  ;;  %v8543_v39 = vld [vmem:[#allocation138_spill] sm:$0xff] }
 0x5cd   :  { %2499 = vmatpush.msra.mxu2 %v8482_v53  ;;  %2601 = vmatpush.msrb.mxu3 %v8485_v57  ;;  %v8542_v53 = vld [vmem:[#allocation137_spill] sm:$0xff]  ;;  %v8545_v57 = vld [vmem:[#allocation140_spill] sm:$0xff] }
 0x5ce   :  { %2460 = vmatpush.msra.mxu0 %v8484_v13  ;;  %2562 = vmatpush.msrb.mxu1 %v8487_v10  ;;  %v8544_v13 = vld [vmem:[#allocation139_spill] sm:$0xff]  ;;  %v8547_v10 = vld [vmem:[#allocation142_spill] sm:$0xff] }
 0x5cf   :  { %2500 = vmatpush.msra.mxu2 %v8486_v3  ;;  %2602 = vmatpush.msrb.mxu3 %v8489_v61  ;;  %v8546_v3 = vld [vmem:[#allocation141_spill] sm:$0xff]  ;;  %v8549_v61 = vld [vmem:[#allocation144_spill] sm:$0xff] }
 0x5d0   :  { %2461 = vmatpush.msra.mxu0 %v8488_v29  ;;  %2563 = vmatpush.msrb.mxu1 %v8491_v26  ;;  %v8548_v29 = vld [vmem:[#allocation143_spill] sm:$0xff]  ;;  %v8551_v26 = vld [vmem:[#allocation146_spill] sm:$0xff] }
 0x5d1   :  { %2501 = vmatpush.msra.mxu2 %v8490_v11  ;;  %2603 = vmatpush.msrb.mxu3 %v8493_v46  ;;  %v8550_v11 = vld [vmem:[#allocation145_spill] sm:$0xff]  ;;  %v8553_v46 = vld [vmem:[#allocation148_spill] sm:$0xff] }
 0x5d2   :  { %2462 = vmatpush.msra.mxu0 %v8492_v16  ;;  %2564 = vmatpush.msrb.mxu1 %v8495_v33  ;;  %v8552_v16 = vld [vmem:[#allocation147_spill] sm:$0xff]  ;;  %v8555_v33 = vld [vmem:[#allocation150_spill] sm:$0xff] }
 0x5d3   :  { %2502 = vmatpush.msra.mxu2 %v8494_v17  ;;  %2604 = vmatpush.msrb.mxu3 %v8497_v41  ;;  %v8554_v17 = vld [vmem:[#allocation149_spill] sm:$0xff]  ;;  %v8557_v41 = vld [vmem:[#allocation152_spill] sm:$0xff] }
 0x5d4   :  { %2463 = vmatpush.msra.mxu0 %v8496_v38  ;;  %2565 = vmatpush.msrb.mxu1 %v8499_v50  ;;  %v8556_v38 = vld [vmem:[#allocation151_spill] sm:$0xff]  ;;  %v8559_v50 = vld [vmem:[#allocation154_spill] sm:$0xff] }
 0x5d5   :  { %2503 = vmatpush.msra.mxu2 %v8498_v19  ;;  %2605 = vmatpush.msrb.mxu3 %v8501_v54  ;;  %v8558_v19 = vld [vmem:[#allocation153_spill] sm:$0xff]  ;;  %v8561_v54 = vld [vmem:[#allocation156_spill] sm:$0xff] }
 0x5d6   :  { %2464 = vmatpush.msra.mxu0 %v8500_v35  ;;  %2566 = vmatpush.msrb.mxu1 %v8503_v14  ;;  %v8560_v35 = vld [vmem:[#allocation155_spill] sm:$0xff]  ;;  %v3440_v14 = vld [vmem:[#allocation5 + $0x50] sm:$0xff] }
 0x5d7   :  { %2504 = vmatpush.msra.mxu2 %v8502_v60  ;;  %2606 = vmatpush.msrb.mxu3 %v8505_v30  ;;  %v8562_v60 = vld [vmem:[#allocation157_spill] sm:$0xff] }
 0x5d8   :  { %2465 = vmatpush.msra.mxu0 %v8504_v1  ;;  %2567 = vmatpush.msrb.mxu1 %v8507_v49  ;;  %v3441_v1 = vld [vmem:[#allocation5 + $0x58] sm:$0xff]  ;;  %v3442_v30 = vld [vmem:[#allocation5 + $0x30] sm:$0xff] }
 0x5d9   :  { %2505 = vmatpush.msra.mxu2 %v8506_v27  ;;  %2607 = vmatpush.msrb.mxu3 %v8509_v36  ;;  %v3443_v27 = vld [vmem:[#allocation5 + $0x38] sm:$0xff]  ;;  %v3444_v49 = vld [vmem:[#allocation5 + $0x10] sm:$0xff] }
 0x5da   :  { %2466 = vmatpush.msra.mxu0 %v8508_v4  ;;  %2568 = vmatpush.msrb.mxu1 %v8511_v24  ;;  %v3445_v4 = vld [vmem:[#allocation5 + $0x18] sm:$0xff]  ;;  %v8563_v24 = vld [vmem:[#allocation59_spill] sm:$0xff] }
 0x5db   :  { %2506 = vmatpush.msra.mxu2 %v8510_v0  ;;  %2608 = vmatpush.msrb.mxu3 %v8513_v34 }
 0x5dc   :  { %2467 = vmatpush.msra.mxu0 %v8512_v15  ;;  %2569 = vmatpush.msrb.mxu1 %v8515_v58 }
 0x5dd   :  { %2507 = vmatpush.msra.mxu2 %v8514_v31  ;;  %2609 = vmatpush.msrb.mxu3 %v8517_v48  ;;  %v8564_v48 = vld [vmem:[#allocation65_spill] sm:$0xff] }
 0x5de   :  { %2468 = vmatpush.msra.mxu0 %v8516_v21  ;;  %2570 = vmatpush.msrb.mxu1 %v8519_v5 }
 0x5df   :  { %2508 = vmatpush.msra.mxu2 %v8518_v40  ;;  %2610 = vmatpush.msrb.mxu3 %v8521_v51 }
 0x5e0   :  { %2469 = vmatpush.msra.mxu0 %v8520_v9  ;;  %2571 = vmatpush.msrb.mxu1 %v8523_v47 }
 0x5e1   :  { %2509 = vmatpush.msra.mxu2 %v8522_v55  ;;  %2611 = vmatpush.msrb.mxu3 %v8525_v59 }
 0x5e2   :  { %2470 = vmatpush.msra.mxu0 %v8524_v7  ;;  %2572 = vmatpush.msrb.mxu1 %v8527_v22 }
 0x5e3   :  { %2510 = vmatpush.msra.mxu2 %v8526_v28  ;;  %2612 = vmatpush.msrb.mxu3 %v8529_v63 }
 0x5e4   :  { %2471 = vmatpush.msra.mxu0 %v8528_v18  ;;  %2573 = vmatpush.msrb.mxu1 %v8531_v43 }
 0x5e5   :  { %2511 = vmatpush.msra.mxu2 %v8530_v2  ;;  %2613 = vmatpush.msrb.mxu3 %v8533_v42 }
 0x5e6   :  { %2472 = vmatpush.msra.mxu0 %v8532_v56 }
 0x5e7   :  { %2512 = vmatpush.msra.mxu2 %v8534_v6 }
 0x5e8   :  { %2473 = vmatpush.msra.mxu0 %v8535_v8 }
 0x5e9   :  { %2513 = vmatpush.msra.mxu2 %v8536_v25 }
 0x5ea   :  { %2538 = vmatpush.msrb.mxu0 %v8537_v45 }
 0x5eb   :  { %2578 = vmatpush.msrb.mxu2 %v8538_v44 }
 0x5ec   :  { %2539 = vmatpush.msrb.mxu0 %v8539_v32 }
 0x5ed   :  { %2579 = vmatpush.msrb.mxu2 %v8540_v12 }
 0x5ee   :  { %2540 = vmatpush.msrb.mxu0 %v8541_v23 }
 0x5ef   :  { %2580 = vmatpush.msrb.mxu2 %v8542_v53 }
 0x5f0   :  { %2541 = vmatpush.msrb.mxu0 %v8543_v39 }
 0x5f1   :  { %2581 = vmatpush.msrb.mxu2 %v8544_v13 }
 0x5f2   :  { %2542 = vmatpush.msrb.mxu0 %v8545_v57 }
 0x5f3   :  { %2582 = vmatpush.msrb.mxu2 %v8546_v3 }
 0x5f4   :  { %2543 = vmatpush.msrb.mxu0 %v8547_v10 }
 0x5f5   :  { %2583 = vmatpush.msrb.mxu2 %v8548_v29 }
 0x5f6   :  { %2544 = vmatpush.msrb.mxu0 %v8549_v61 }
 0x5f7   :  { %2584 = vmatpush.msrb.mxu2 %v8550_v11 }
 0x5f8   :  { %2545 = vmatpush.msrb.mxu0 %v8551_v26 }
 0x5f9   :  { %2585 = vmatpush.msrb.mxu2 %v8552_v16 }
 0x5fa   :  { %2546 = vmatpush.msrb.mxu0 %v8553_v46 }
 0x5fb   :  { %2586 = vmatpush.msrb.mxu2 %v8554_v17  ;;  %v2198_v36 = vpop.f32.mrf.mxu1 }
 0x5fc   :  { %2547 = vmatpush.msrb.mxu0 %v8555_v33 }
 0x5fd   :  { %2587 = vmatpush.msrb.mxu2 %v8556_v38 }
 0x5fe   :  { %2548 = vmatpush.msrb.mxu0 %v8557_v41 }
 0x5ff   :  { %2588 = vmatpush.msrb.mxu2 %v8558_v19 }
 0x600   :  { %2549 = vmatpush.msrb.mxu0 %v8559_v50 }
 0x601   :  { %2589 = vmatpush.msrb.mxu2 %v8560_v35  ;;  %v2238_v21 = vpop.f32.mrf.mxu3 }
 0x602   :  { %2550 = vmatpush.msrb.mxu0 %v8561_v54 }
 0x603   :  { %2590 = vmatpush.msrb.mxu2 %v8562_v60  ;;  %v2278_v55 = vpop.f32.mrf.mxu1 }
 0x604   :  { %2551 = vmatpush.msrb.mxu0 %v3440_v14 }
 0x605   :  { %2591 = vmatpush.msrb.mxu2 %v3441_v1 }
 0x606   :  { %2552 = vmatpush.msrb.mxu0 %v3442_v30 }
 0x607   :  { %2592 = vmatpush.msrb.mxu2 %v3443_v27 }
 0x608   :  { %2553 = vmatpush.msrb.mxu0 %v3444_v49 }
 0x609   :  { %2593 = vmatpush.msrb.mxu2 %v3445_v4  ;;  %v2318_v18 = vpop.f32.mrf.mxu3 }
 0x626   :  { %v2178_v0 = vpop.f32.mrf.mxu0 }
 0x627   :  { %v2179_v15 = vadd.f32 %v2178_v0, %v8563_v24  ;;  %v2378_v57 = vpop.f32.mrf.mxu1 }
 0x628   :  { %v2425_v61 = vrot.slane %v2378_v57, 6 }
 0x629   :  { %v2199_v34 = vadd.f32 %v2198_v36, %v2179_v15 }
 0x62b   :  { %v2321_v31 = vmul.f32 0.5, %v2199_v34 }
 0x62c   :  { %v2218_v58 = vpop.f32.mrf.mxu2 }
 0x62d   :  { %v2219_v40 = vadd.f32 %v2218_v58, %v8564_v48  ;;  %2840 = vtanh.f32 %v2321_v31 }
 0x62e   :  { %v2258_v5 = vpop.f32.mrf.mxu0  ;;  %v2418_v3 = vpop.f32.mrf.mxu3 }
 0x62f   :  { %v2239_v9 = vadd.f32 %v2238_v21, %v2219_v40  ;;  %v2259_v51 = vadd.f32 %v2258_v5, %v4374_v20  ;;  %v2427_v11 = vrot.slane %v2418_v3, 2  ;;  %v2651_v5 = vld [vmem:[%s6908_s4 + $0x78] sm:$0xff] }
 0x631   :  { %v2325_v47 = vmul.f32 0.5, %v2239_v9  ;;  %v2279_v7 = vadd.f32 %v2278_v55, %v2259_v51  ;;  %v2649_v9 = vld [vmem:[%s6908_s4 + $0x68] sm:$0xff]  ;;  %v2648_v51 = vld [vmem:[%s6908_s4 + $0x60] sm:$0xff]  ;;  %v2647_v55 = vld [vmem:[%s6908_s4 + $0x58] sm:$0xff] }
 0x633   :  { %2842 = vtanh.f32 %v2325_v47  ;;  %v2841_v59 = vpop.eup %2840  ;;  %v2646_v47 = vld [vmem:[%s6908_s4 + $0x50] sm:$0xff] }
 0x634   :  { %2844 = vtanh.f32 %v2279_v7  ;;  %v2323_v63 = vmul.f32 0.5, %v2841_v59  ;;  %v2645_v7 = vld [vmem:[%s6908_s4 + $0x48] sm:$0xff]  ;;  %v2644_v59 = vld [vmem:[%s6908_s4 + $0x40] sm:$0xff] }
 0x635   :  { %v2298_v28 = vpop.f32.mrf.mxu2 }
 0x636   :  { %v2299_v22 = vadd.f32 %v2298_v28, %v4378_v62  ;;  %v2324_v8 = vadd.f32 0.5, %v2323_v63  ;;  %v2643_v28 = vld [vmem:[%s6908_s4 + $0x38] sm:$0xff]  ;;  %v2640_v63 = vld [vmem:[%s6908_s4 + $0x20] sm:$0xff] }
 0x638   :  { %v2319_v2 = vadd.f32 %v2318_v18, %v2299_v22  ;;  %v2642_v22 = vld [vmem:[%s6908_s4 + $0x30] sm:$0xff]  ;;  %v2641_v18 = vld [vmem:[%s6908_s4 + $0x28] sm:$0xff] }
 0x639   :  { %v2843_v43 = vpop.eup %2842 }
 0x63a   :  { %v2327_v56 = vmul.f32 0.5, %v2843_v43  ;;  %v2330_v42 = vmul.f32 0.5, %v2319_v2  ;;  %v2845_v6 = vpop.eup %2844  ;;  %v2639_v2 = vld [vmem:[%s6908_s4 + $0x18] sm:$0xff] }
 0x63b   :  { %v2335_v44 = vmul.f32 %v2845_v6, %v2324_v8  ;;  %v2637_v8 = vld [vmem:[%s6908_s4 + $0x8] sm:$0xff] }
 0x63c   :  { %v2328_v25 = vadd.f32 0.5, %v2327_v56  ;;  %2846 = vtanh.f32 %v2330_v42  ;;  %v2638_v42 = vld [vmem:[%s6908_s4 + $0x10] sm:$0xff] }
 0x63e   :  { %v2334_v45 = vmul.f32 %v2328_v25, %v6621_v52  ;;  %v2702_v52 = vld [vmem:[%s6904_s0 + $0x38] sm:$0xff] }
 0x640   :  { %v6835_v32 = vadd.f32 %v2335_v44, %v2334_v45  ;;  %v2636_v45 = vld [vmem:[%s6908_s4] sm:$0xff] }
 0x642   :  { %v2847_v12 = vpop.eup %2846  ;;  %2848 = vtanh.f32 %v6835_v32 }
 0x643   :  { %v2332_v23 = vmul.f32 0.5, %v2847_v12 }
 0x645   :  { %v2333_v53 = vadd.f32 0.5, %v2332_v23 }
 0x646   :  { %v2358_v10 = vpop.f32.mrf.mxu0 }
 0x647   :  { %v2428_v16 = vsel %vm346_vm0, %v2358_v10, %v2425_v61 }
 0x648   :  { %v2849_v39 = vpop.eup %2848 }
 0x649   :  { %v2338_v13 = vmul.f32 %v2849_v39, %v2333_v53 }
 0x64b   :  { %2494 = vmatmul.f32.vlgmr.msra.gmra.mxu1 %v2338_v13  ;;  %2534 = vmatmul.f32.vlgmr.msra.gmra.mxu3 %v2338_v13 }
 0x64d   :  { %v2398_v29 = vpop.f32.mrf.mxu2 }
 0x64e   :  { %v2426_v26 = vrot.slane %v2398_v29, 4 }
 0x650   :  { %v2429_v46 = vsel %vm348_vm1, %v2426_v26, %v2427_v11 }
 0x651   :  { %v2430_v17 = vsel %vm350_vm2, %v2428_v16, %v2429_v46 }
 0x652   :  { %v2432_v33 = vadd.f32 %v2702_v52, %v2430_v17 }
 0x653   :  { %2574 = vmatmul.f32.vlgmr.msrb.gmra.mxu1 %v2338_v13  ;;  %2614 = vmatmul.f32.vlgmr.msrb.gmra.mxu3 %v2338_v13 }
 0x654   :  { %v2433_v38 = vmul.f32 0.5, %v2432_v33  ;;  %v2438_v41 = vrot.slane %v2432_v33, 2  ;;  %v2447_v50 = vrot.slane %v2432_v33, 6  ;;  %v2444_v35 = vrot.slane %v2432_v33, 4 }
 0x656   :  { %2850 = vtanh.f32 %v2433_v38  ;;  %v2440_v19 = vmul.f32 0.5, %v2438_v41  ;;  %v2449_v54 = vmul.f32 0.5, %v2447_v50 }
 0x658   :  { %2852 = vtanh.f32 %v2440_v19 }
 0x659   :  { %2854 = vtanh.f32 %v2444_v35 }
 0x65a   :  { %2856 = vtanh.f32 %v2449_v54 }
 0x65c   :  { %v2851_v60 = vpop.eup %2850 }
 0x65d   :  { %v2435_v14 = vmul.f32 0.5, %v2851_v60 }
 0x65e   :  { %v2853_v1 = vpop.eup %2852 }
 0x65f   :  { %v2442_v30 = vmul.f32 0.5, %v2853_v1  ;;  %v2436_v27 = vadd.f32 0.5, %v2435_v14  ;;  %v2855_v4 = vpop.eup %2854  ;;  %v2709_v1 = vld [vmem:[%s6909_s5] ss:$0 sm:$0xff] }
 0x660   :  { %v2857_v15 = vpop.eup %2856 }
 0x661   :  { %v2443_v49 = vadd.f32 0.5, %v2442_v30  ;;  %v2454_v0 = vmul.f32 %v2855_v4, %v2436_v27  ;;  %v2451_v31 = vmul.f32 0.5, %v2857_v15 }
 0x663   :  { %v2453_v36 = vmul.f32 %v2443_v49, %v6657_v37  ;;  %v2452_v58 = vadd.f32 0.5, %v2451_v31  ;;  %v2650_v37 = vld [vmem:[%s6908_s4 + $0x70] sm:$0xff] }
 0x665   :  { %v2455_v34 = vadd.f32 %v2454_v0, %v2453_v36 }
 0x667   :  { %2858 = vtanh.f32 %v2455_v34 }
 0x66d   :  { %v2859_v21 = vpop.eup %2858 }
 0x66e   :  { %v2457_v40 = vmul.f32 %v2859_v21, %v2452_v58 }
 0x670   :  { %2474 = vmatmul.f32.vlgmr.msra.gmra.mxu0 %v2457_v40  ;;  %2514 = vmatmul.f32.vlgmr.msra.gmra.mxu2 %v2457_v40 }
 0x671   :  { %2656 = vmatpush.msra.mxu0 %v2651_v5 }
 0x673   :  { %2657 = vmatpush.msra.mxu0 %v2650_v37 }
 0x675   :  { %2658 = vmatpush.msra.mxu0 %v2649_v9 }
 0x677   :  { %2659 = vmatpush.msra.mxu0 %v2648_v51 }
 0x678   :  { %2554 = vmatmul.f32.vlgmr.msrb.gmra.mxu0 %v2457_v40  ;;  %2594 = vmatmul.f32.vlgmr.msrb.gmra.mxu2 %v2457_v40 }
 0x679   :  { %2660 = vmatpush.msra.mxu0 %v2647_v55 }
 0x67b   :  { %2661 = vmatpush.msra.mxu0 %v2646_v47 }
 0x67d   :  { %2662 = vmatpush.msra.mxu0 %v2645_v7 }
 0x67f   :  { %2663 = vmatpush.msra.mxu0 %v2644_v59 }
 0x681   :  { %2664 = vmatpush.msra.mxu0 %v2643_v28 }
 0x683   :  { %2665 = vmatpush.msra.mxu0 %v2642_v22 }
 0x685   :  { %2666 = vmatpush.msra.mxu0 %v2641_v18 }
 0x687   :  { %2667 = vmatpush.msra.mxu0 %v2640_v63 }
 0x689   :  { %2668 = vmatpush.msra.mxu0 %v2639_v2 }
 0x68b   :  { %2669 = vmatpush.msra.mxu0 %v2638_v42 }
 0x68d   :  { %2670 = vmatpush.msra.mxu0 %v2637_v8 }
 0x68f   :  { %2671 = vmatpush.msra.mxu0 %v2636_v45 }
 0x6c8   :  { %v2495_v43 = vpop.f32.mrf.mxu1 }
 0x6ce   :  { %v2535_v12 = vpop.f32.mrf.mxu3 }
 0x6d0   :  { %v2575_v57 = vpop.f32.mrf.mxu1 }
 0x6d6   :  { %v2615_v26 = vpop.f32.mrf.mxu3 }
 0x6ed   :  { %v2475_v56 = vpop.f32.mrf.mxu0 }
 0x6ee   :  { %v2476_v6 = vadd.f32 %v2475_v56, %v8563_v24 }
 0x6f0   :  { %v2496_v25 = vadd.f32 %v2495_v43, %v2476_v6 }
 0x6f2   :  { %v2618_v44 = vmul.f32 0.5, %v2496_v25 }
 0x6f3   :  { %v2515_v23 = vpop.f32.mrf.mxu2 }
 0x6f4   :  { %v2516_v53 = vadd.f32 %v2515_v23, %v8564_v48  ;;  %2860 = vtanh.f32 %v2618_v44 }
 0x6f5   :  { %v2555_v39 = vpop.f32.mrf.mxu0 }
 0x6f6   :  { %v2536_v24 = vadd.f32 %v2535_v12, %v2516_v53  ;;  %v2556_v13 = vadd.f32 %v2555_v39, %v4374_v20 }
 0x6f8   :  { %v2622_v3 = vmul.f32 0.5, %v2536_v24  ;;  %v2576_v10 = vadd.f32 %v2575_v57, %v2556_v13 }
 0x6fa   :  { %2862 = vtanh.f32 %v2622_v3  ;;  %v2861_v61 = vpop.eup %2860 }
 0x6fb   :  { %v2595_v29 = vpop.f32.mrf.mxu2  ;;  %2864 = vtanh.f32 %v2576_v10  ;;  %v2620_v16 = vmul.f32 0.5, %v2861_v61 }
 0x6fc   :  { %v2596_v11 = vadd.f32 %v2595_v29, %v4378_v62 }
 0x6fd   :  { %v2621_v38 = vadd.f32 0.5, %v2620_v16 }
 0x6fe   :  { %v2616_v52 = vadd.f32 %v2615_v26, %v2596_v11 }
 0x700   :  { %v2863_v46 = vpop.eup %2862  ;;  %v2627_v17 = vmul.f32 0.5, %v2616_v52 }
 0x701   :  { %v2624_v48 = vmul.f32 0.5, %v2863_v46  ;;  %v2865_v33 = vpop.eup %2864 }
 0x702   :  { %2866 = vtanh.f32 %v2627_v17  ;;  %v2632_v19 = vmul.f32 %v2865_v33, %v2621_v38 }
 0x703   :  { %v2625_v41 = vadd.f32 0.5, %v2624_v48 }
 0x705   :  { %v2631_v20 = vmul.f32 %v2625_v41, %v6835_v32 }
 0x707   :  { %v2633_v50 = vadd.f32 %v2632_v19, %v2631_v20 }
 0x708   :  { %v2867_v35 = vpop.eup %2866 }
 0x709   :  { %2868 = vtanh.f32 %v2633_v50  ;;  %v2629_v54 = vmul.f32 0.5, %v2867_v35 }
 0x70b   :  { %v2630_v60 = vadd.f32 0.5, %v2629_v54 }
 0x70f   :  { %v2869_v14 = vpop.eup %2868 }
 0x710   :  { %v2635_v62 = vmul.f32 %v2869_v14, %v2630_v60 }
 0x712   :  { %2672 = vmatmul.f32.vlgmr.msra.gmra.mxu0 %v2635_v62 }
 0x78f   :  { %v2673_v32 = vpop.f32.mrf.mxu0 }
 0x790   :  { %v2674_v30 = vadd.f32 %v2709_v1, %v2673_v32 }
 0x792   :  { %2677 = vst.msk [vmem:[#allocation7] sm:$0x3] %vm2676_vm3, %v2674_v30 }
 0x793   :  { %2688 = dma.vmem_to_hbm [thread:$0]  %s2684_s29, 32, %s2686_s8, [#allocation4]  }
 0x794   :  { %3522 = dma.done.wait [#allocation4], 32  }
 0x795   :  { %3523 = vsyncadd [#allocation4], 4294967264 }
 0x796   :  { %2693 = vsyncpa [#allocation3], 1 }
 0x797   :  { %2694 = vsyncpa [#allocation6], 1 }
 0x798   :  { %2695 = vsyncpa [#allocation4], 1 }

</bundles_post_ra>
